<compile_context>
chip_gen: v7x
topology: tpu7x:2x2x1
jax: 0.10.0
libtpu: 0.0.40
codegen_flags: <defaults>
</compile_context>

<pallas_src>
import jax
import jax.numpy as jnp
from jax.experimental import pallas as pl
from jax.experimental.pallas import tpu as pltpu

EPS = 1e-5
_VMEM_LIMIT = 32 * 1024 * 1024


def _compiler_params():
    return pltpu.CompilerParams(
        dimension_semantics=("parallel",),
        vmem_limit_bytes=_VMEM_LIMIT,
    )


# ----------------------------------------------------------------------------
# In-kernel helpers
# ----------------------------------------------------------------------------
def _zero_border(pad_ref):
    """Zero only the 1-pixel halo of a (H+2, W+2, C) pad scratch (review #3)."""
    Hp, Wp, C = pad_ref.shape
    zrow = jnp.zeros((1, Wp, C), pad_ref.dtype)
    zcol = jnp.zeros((Hp, 1, C), pad_ref.dtype)
    pad_ref[0:1, :, :] = zrow
    pad_ref[Hp - 1:Hp, :, :] = zrow
    pad_ref[:, 0:1, :] = zcol
    pad_ref[:, Wp - 1:Wp, :] = zcol


def _bn_relu_conv3x3(x, scale, shift, w_flat, b, pad_ref):
    """relu(x*scale+shift) -> 3x3 conv (stride 1, pad 1) as ONE im2col matmul.

    x:           (1, H, W, C)  f32
    scale/shift: (1, C)        f32 (folded BN)
    w_flat:      (9*C, F)      bf16, K order = [tap (ky*3+kx) major, cin minor]
    b:           (1, F)        f32
    pad_ref:     (H+2, W+2, C) f32 VMEM scratch (zero halo built in-kernel)
    returns      (H*W, F)      f32 accumulator (conv output incl. bias)
    """
    _, H, W, C = x.shape
    y = jnp.maximum(x * scale + shift, 0.0)[0]                        # (H, W, C)
    _zero_border(pad_ref)
    pad_ref[1:H + 1, 1:W + 1, :] = y
    xp = pad_ref[...]
    patches = [xp[i:i + H, j:j + W, :].reshape(H * W, C)
               for i in range(3) for j in range(3)]
    lhs = jnp.concatenate(patches, axis=-1).astype(jnp.bfloat16)      # (H*W, 9C)
    return jnp.dot(lhs, w_flat, preferred_element_type=jnp.float32) + b


# ----------------------------------------------------------------------------
# Pallas kernels
# ----------------------------------------------------------------------------
def _conv1_stats_kernel(x_ref, w1_ref, b1_ref, scale1_ref, shift1_ref,
                        s_ref, xpad_ref):
    """Pass 1: BN1+ReLU+conv1 -> per-batch partial BN2 stats (sum, sum^2).

    The conv1 activation never touches HBM; it is recomputed in pass 2 (cheaper
    than a lane-sparse HBM round trip for the (B,H,W,F) intermediate).
    """
    x = x_ref[...].astype(jnp.float32)
    acc = _bn_relu_conv3x3(x, scale1_ref[...], shift1_ref[...],
                           w1_ref[...], b1_ref[...], xpad_ref)        # (H*W, F) f32
    s_ref[0] = jnp.concatenate(
        [jnp.sum(acc, axis=0, keepdims=True),
         jnp.sum(acc * acc, axis=0, keepdims=True)], axis=0)


def _fused_block_kernel(x_ref, w1_ref, b1_ref, scale1_ref, shift1_ref,
                        scale2_ref, shift2_ref, wc_ref, bc_ref,
                        o_ref, xpad_ref, zpad_ref):
    """Pass 2: BN1+ReLU+conv1 (recompute) -> BN2+ReLU -> ONE matmul fusing the
    upsample-folded 3x3 conv, the upsample-folded 1x1 skip conv, the residual
    add and both biases for all four output parities (N = 4*Cout = 128).

    x_ref:       (1, H, W, Cin)     block input (also the raw skip branch)
    w1_ref:      (9*Cin, F)         bf16
    wc_ref:      (9*F + Cin, 4*Cout) bf16 folded weights (shared 9-tap layout)
    bc_ref:      (1, 4*Cout)        b2 + bs, tiled per parity
    o_ref:       (1, H, W, 4*Cout)  lane-dense; channel = p*Cout + co, p = 2*py+px
    """
    _, H, W, Cin = x_ref.shape
    F = w1_ref.shape[-1]
    No = o_ref.shape[-1]                                              # 4 * Cout

    x = x_ref[...].astype(jnp.float32)
    h = _bn_relu_conv3x3(x, scale1_ref[...], shift1_ref[...],
                         w1_ref[...], b1_ref[...], xpad_ref)          # (H*W, F) f32

    z = jnp.maximum(h * scale2_ref[...] + shift2_ref[...], 0.0)       # BN2 + ReLU

    _zero_border(zpad_ref)
    zpad_ref[1:H + 1, 1:W + 1, :] = z.reshape(H, W, F)
    zp = zpad_ref[...]

    patches = [zp[i:i + H, j:j + W, :].reshape(H * W, F)
               for i in range(3) for j in range(3)]
    xs = x[0].reshape(H * W, Cin)                                     # raw skip input
    lhs = jnp.concatenate(patches + [xs], axis=-1).astype(jnp.bfloat16)   # (H*W, 9F+Cin)

    acc = jnp.dot(lhs, wc_ref[...], preferred_element_type=jnp.float32)
    acc = acc + bc_ref[...]
    o_ref[...] = acc.reshape(1, H, W, No).astype(o_ref.dtype)


# ----------------------------------------------------------------------------
# pallas_call wrappers
# ----------------------------------------------------------------------------
def conv1_stats(x, w1_flat, b1, scale1, shift1):
    B, H, W, Cin = x.shape
    F = w1_flat.shape[-1]
    return pl.pallas_call(
        _conv1_stats_kernel,
        grid=(B,),
        in_specs=[pl.BlockSpec((1, H, W, Cin), lambda b: (b, 0, 0, 0)),
                  pl.BlockSpec((9 * Cin, F), lambda b: (0, 0)),
                  pl.BlockSpec((1, F), lambda b: (0, 0)),
                  pl.BlockSpec((1, Cin), lambda b: (0, 0)),
                  pl.BlockSpec((1, Cin), lambda b: (0, 0))],
        out_specs=pl.BlockSpec((1, 2, F), lambda b: (b, 0, 0)),
        out_shape=jax.ShapeDtypeStruct((B, 2, F), jnp.float32),
        scratch_shapes=[pltpu.VMEM((H + 2, W + 2, Cin), jnp.float32)],
        compiler_params=_compiler_params(),
    )(x, w1_flat, b1, scale1, shift1)


def fused_block(x, w1_flat, b1, scale1, shift1, scale2, shift2, w_comb, bias):
    B, H, W, Cin = x.shape
    F = w1_flat.shape[-1]
    No = w_comb.shape[-1]                        # 4 * Cout
    return pl.pallas_call(
        _fused_block_kernel,
        grid=(B,),
        in_specs=[pl.BlockSpec((1, H, W, Cin), lambda b: (b, 0, 0, 0)),
                  pl.BlockSpec((9 * Cin, F), lambda b: (0, 0)),
                  pl.BlockSpec((1, F), lambda b: (0, 0)),
                  pl.BlockSpec((1, Cin), lambda b: (0, 0)),
                  pl.BlockSpec((1, Cin), lambda b: (0, 0)),
                  pl.BlockSpec((1, F), lambda b: (0, 0)),
                  pl.BlockSpec((1, F), lambda b: (0, 0)),
                  pl.BlockSpec((9 * F + Cin, No), lambda b: (0, 0)),
                  pl.BlockSpec((1, No), lambda b: (0, 0))],
        out_specs=pl.BlockSpec((1, H, W, No), lambda b: (b, 0, 0, 0)),
        out_shape=jax.ShapeDtypeStruct((B, H, W, No), jnp.float32),
        scratch_shapes=[pltpu.VMEM((H + 2, W + 2, Cin), jnp.float32),
                        pltpu.VMEM((H + 2, W + 2, F), jnp.float32)],
        compiler_params=_compiler_params(),
    )(x, w1_flat, b1, scale1, shift1, scale2, shift2, w_comb, bias)


# ----------------------------------------------------------------------------
# Weight folding: cat(x4)+pixel_shuffle(2) folded into the following convs
# ----------------------------------------------------------------------------
def _perm_matrix(C, offset, dtype):
    """M[g, c] = 1 iff upsampled channel c (at parity `offset`) reads source channel
    g = (4*c + offset) % C.  Non-bijective when C % 4 == 0; rows sum contributions."""
    c = jnp.arange(C)
    src = (4 * c + offset) % C
    return (src[None, :] == jnp.arange(C)[:, None]).astype(dtype)


def fold_upsample_weights(w2, ws):
    """Build the single fused rhs for the pass-2 matmul (review #1).

    w2: (9, F, Cout)   3x3 conv applied to the upsampled main activation (tap = ky*3+kx)
    ws: (1, Cin, Cout) 1x1 conv applied to the upsampled skip input
    returns (9*F + Cin, 4*Cout): all four parities share one 3x3 low-res im2col lhs
    (K order = [3x3 taps, F chans each] + [Cin skip]); taps a parity never touches
    get zero weights.  Column block p = 2*py + px.
    """
    _, F, Cout = w2.shape
    Cin = ws.shape[1]
    cols = []
    for py in range(2):
        for px in range(2):
            eff = [[jnp.zeros((F, Cout), w2.dtype) for _ in range(3)] for _ in range(3)]
            for ky in range(3):
                ry = py + ky - 1
                i = (ry // 2) + 1             # shared-lhs tap row in {0,1,2}
                iy = ry % 2                   # upsample row parity read at this tap
                for kx in range(3):
                    rx = px + kx - 1
                    j = (rx // 2) + 1
                    ix = rx % 2
                    perm = _perm_matrix(F, 2 * iy + ix, w2.dtype)
                    eff[i][j] = eff[i][j] + perm @ w2[ky * 3 + kx]
            skip = _perm_matrix(Cin, 2 * py + px, ws.dtype) @ ws[0]
            cols.append(jnp.concatenate(
                [eff[i][j] for i in range(3) for j in range(3)] + [skip], axis=0))
    return jnp.concatenate(cols, axis=1)       # (9F+Cin, 4*Cout)


# ----------------------------------------------------------------------------
# Parameters (deterministic synthetic init, PyTorch-like fan-in bounds)
# ----------------------------------------------------------------------------
def init_params(key, in_dim, n_filters):
    def conv_init(kk, khw, cin, cout):
        fan_in = cin * khw
        bound = 1.0 / (fan_in ** 0.5)
        kw_, kb_ = jax.random.split(kk)
        w = jax.random.uniform(kw_, (khw, cin, cout), jnp.float32, -bound, bound)
        b = jax.random.uniform(kb_, (1, cout), jnp.float32, -bound, bound)
        return w, b

    k = jax.random.split(key, 3)
    w1, b1 = conv_init(k[0], 9, in_dim, n_filters)      # Conv2d 3x3 (main)
    w2, b2 = conv_init(k[1], 9, n_filters, n_filters)   # UpSampleConv2d 3x3 (main)
    ws, bs = conv_init(k[2], 1, in_dim, n_filters)      # UpSampleConv2d 1x1 (skip)
    return dict(
        w1=w1, b1=b1, w2=w2, b2=b2, ws=ws, bs=bs,
        bn1_gamma=jnp.ones((1, in_dim), jnp.float32),
        bn1_beta=jnp.zeros((1, in_dim), jnp.float32),
        bn2_gamma=jnp.ones((1, n_filters), jnp.float32),
        bn2_beta=jnp.zeros((1, n_filters), jnp.float32),
    )


# ----------------------------------------------------------------------------
# ResNetBlockUp forward (Pallas path)
# ----------------------------------------------------------------------------
def resnet_block_up(x_nchw, p):
    x = jnp.transpose(x_nchw, (0, 2, 3, 1)).astype(jnp.float32)       # NCHW -> NHWC
    B, H, W, Cin = x.shape
    F = p["w1"].shape[-1]
    Cout = p["w2"].shape[-1]
    n = float(B * H * W)

    # BN1 batch statistics in plain XLA (review #8: the stats kernel was pure overhead).
    mean1 = jnp.mean(x, axis=(0, 1, 2)).reshape(1, Cin)
    ex2_1 = jnp.mean(x * x, axis=(0, 1, 2)).reshape(1, Cin)
    var1 = jnp.maximum(ex2_1 - mean1 * mean1, 0.0)                    # biased, clamped
    scale1 = p["bn1_gamma"] / jnp.sqrt(var1 + EPS)
    shift1 = p["bn1_beta"] - mean1 * scale1

    w1_flat = p["w1"].reshape(9 * Cin, F).astype(jnp.bfloat16)

    # Pass 1: fused BN1+ReLU+conv1 -> per-batch BN2 partial stats (tiny output only).
    stats2 = conv1_stats(x, w1_flat, p["b1"], scale1, shift1)         # (B, 2, F)
    s = jnp.sum(stats2, axis=0)
    mean2 = s[0:1] / n
    var2 = jnp.maximum(s[1:2] / n - mean2 * mean2, 0.0)
    scale2 = p["bn2_gamma"] / jnp.sqrt(var2 + EPS)
    shift2 = p["bn2_beta"] - mean2 * scale2

    # Weight-side folding (weight-sized work, once per call).
    w_comb = fold_upsample_weights(p["w2"], p["ws"]).astype(jnp.bfloat16)  # (9F+Cin, 4*Cout)
    bias = jnp.tile(p["b2"] + p["bs"], (1, 4))                             # (1, 4*Cout)

    # Pass 2: conv1 recompute + BN2+ReLU + fused upsample-conv + skip + add.
    out = fused_block(x, w1_flat, p["b1"], scale1, shift1,
                      scale2, shift2, w_comb, bias)                    # (B, H, W, 4*Cout)

    # Parity de-interleave rides on the NHWC->NCHW transpose we need anyway.
    out = out.reshape(B, H, W, 2, 2, Cout)
    out = jnp.transpose(out, (0, 5, 1, 3, 2, 4)).reshape(B, Cout, 2 * H, 2 * W)
    return out


# ----------------------------------------------------------------------------
# Pure-JAX f32 reference (mirrors the PyTorch module, training-mode BN)
# ----------------------------------------------------------------------------
def _upsample_x2(t):
    """cat([t]*4, channel) + pixel_shuffle(2), NHWC."""
    B, H, W, C = t.shape
    idx = (4 * jnp.arange(C)[None, :] + jnp.arange(4)[:, None]) % C   # (4, C)
    g = t[:, :, :, idx].reshape(B, H, W, 2, 2, C)                     # (b,r,c,iy,ix,co)
    return jnp.transpose(g, (0, 1, 3, 2, 4, 5)).reshape(B, 2 * H, 2 * W, C)


def _conv_nhwc(x, w_hwio, b, pad):
    y = jax.lax.conv_general_dilated(
        x, w_hwio, window_strides=(1, 1), padding=[(pad, pad), (pad, pad)],
        dimension_numbers=("NHWC", "HWIO", "NHWC"),
        precision=jax.lax.Precision.HIGHEST)
    return y + b.reshape(1, 1, 1, -1)


def reference_block(x_nchw, p):
    x = jnp.transpose(x_nchw, (0, 2, 3, 1)).astype(jnp.float32)
    _, _, _, Cin = x.shape
    F = p["w1"].shape[-1]
    Cout = p["w2"].shape[-1]

    m1 = jnp.mean(x, axis=(0, 1, 2))
    v1 = jnp.var(x, axis=(0, 1, 2))
    y = jnp.maximum((x - m1) * jax.lax.rsqrt(v1 + EPS) * p["bn1_gamma"][0]
                    + p["bn1_beta"][0], 0.0)
    h = _conv_nhwc(y, p["w1"].reshape(3, 3, Cin, F), p["b1"], 1)

    m2 = jnp.mean(h, axis=(0, 1, 2))
    v2 = jnp.var(h, axis=(0, 1, 2))
    z = jnp.maximum((h - m2) * jax.lax.rsqrt(v2 + EPS) * p["bn2_gamma"][0]
                    + p["bn2_beta"][0], 0.0)

    main = _conv_nhwc(_upsample_x2(z), p["w2"].reshape(3, 3, F, Cout), p["b2"], 1)
    skip = _conv_nhwc(_upsample_x2(x), p["ws"].reshape(1, 1, Cin, Cout), p["bs"], 0)
    return jnp.transpose(main + skip, (0, 3, 1, 2))


if __name__ == "__main__":
    B, C_IN, H, W = 2, 4, 16, 16
    N_FILTERS = 32                     # 4 * N_FILTERS = 128 -> exact lane width

    key = jax.random.PRNGKey(0)
    kx, kp = jax.random.split(key)
    x = jax.random.normal(kx, (B, C_IN, H, W), jnp.float32)
    params = init_params(kp, C_IN, N_FILTERS)

    fwd = jax.jit(resnet_block_up)
    out = jax.block_until_ready(fwd(x, params))

    assert out.shape == (B, N_FILTERS, 2 * H, 2 * W), out.shape
    assert bool(jnp.all(jnp.isfinite(out)))

    # Tolerance-check against the pure-f32 reference (bf16 MXU path => ~1e-2 level error).
    ref = jax.block_until_ready(jax.jit(reference_block)(x, params))
    assert bool(jnp.allclose(out, ref, rtol=1e-1, atol=1e-1)), \
        float(jnp.max(jnp.abs(out - ref)))

    print("KERNEL_OK")
</pallas_src>

<mosaic_0001>
module attributes {stable_mosaic.version = 11 : i64} {
  func.func @_conv1_stats_kernel(%arg0: i32, %arg1: memref<1x16x16x4xf32, #tpu.memory_space<vmem>>, %arg2: memref<36x32xbf16, #tpu.memory_space<vmem>>, %arg3: memref<1x32xf32, #tpu.memory_space<vmem>>, %arg4: memref<1x4xf32, #tpu.memory_space<vmem>>, %arg5: memref<1x4xf32, #tpu.memory_space<vmem>>, %arg6: memref<1x2x32xf32, #tpu.memory_space<vmem>>, %arg7: memref<18x18x4xf32, #tpu.memory_space<vmem>>) attributes {dimension_semantics = [#tpu.dimension_semantics<parallel>], iteration_bounds = array<i64: 2>, scalar_prefetch = 0 : i64, scratch_operands = 1 : i64, tpu.core_type = #tpu.core_type<tc>, window_params = [{transform_indices = @transform_0, window_bounds = array<i64: 1, 16, 16, 4>}, {pipeline_mode = #tpu.pipeline_mode<synchronous>, transform_indices = @transform_1, window_bounds = array<i64: 36, 32>}, {pipeline_mode = #tpu.pipeline_mode<synchronous>, transform_indices = @transform_2, window_bounds = array<i64: 1, 32>}, {pipeline_mode = #tpu.pipeline_mode<synchronous>, transform_indices = @transform_3, window_bounds = array<i64: 1, 4>}, {pipeline_mode = #tpu.pipeline_mode<synchronous>, transform_indices = @transform_4, window_bounds = array<i64: 1, 4>}, {transform_indices = @transform_5, window_bounds = array<i64: 1, 2, 32>}]} {
    %c0 = arith.constant 0 : index
    %c0_0 = arith.constant 0 : index
    %c0_1 = arith.constant 0 : index
    %c0_2 = arith.constant 0 : index
    %0 = vector.load %arg1[%c0, %c0_0, %c0_1, %c0_2] : memref<1x16x16x4xf32, #tpu.memory_space<vmem>>, vector<1x16x16x4xf32>
    %c0_3 = arith.constant 0 : index
    %c0_4 = arith.constant 0 : index
    %1 = vector.load %arg4[%c0_3, %c0_4] : memref<1x4xf32, #tpu.memory_space<vmem>>, vector<1x4xf32>
    %c0_5 = arith.constant 0 : index
    %c0_6 = arith.constant 0 : index
    %2 = vector.load %arg5[%c0_5, %c0_6] : memref<1x4xf32, #tpu.memory_space<vmem>>, vector<1x4xf32>
    %c0_7 = arith.constant 0 : index
    %c0_8 = arith.constant 0 : index
    %3 = vector.load %arg2[%c0_7, %c0_8] : memref<36x32xbf16, #tpu.memory_space<vmem>>, vector<36x32xbf16>
    %c0_9 = arith.constant 0 : index
    %c0_10 = arith.constant 0 : index
    %4 = vector.load %arg3[%c0_9, %c0_10] : memref<1x32xf32, #tpu.memory_space<vmem>>, vector<1x32xf32>
    %5 = vector.shape_cast %1 : vector<1x4xf32> to vector<1x1x1x4xf32>
    %6 = vector.broadcast %5 : vector<1x1x1x4xf32> to vector<1x16x16x4xf32>
    %7 = arith.mulf %0, %6 : vector<1x16x16x4xf32>
    %8 = vector.shape_cast %2 : vector<1x4xf32> to vector<1x1x1x4xf32>
    %9 = vector.broadcast %8 : vector<1x1x1x4xf32> to vector<1x16x16x4xf32>
    %10 = arith.addf %7, %9 : vector<1x16x16x4xf32>
    %cst = arith.constant 0.000000e+00 : f32
    %11 = vector.broadcast %cst : f32 to vector<1x16x16x4xf32>
    %12 = arith.maximumf %10, %11 : vector<1x16x16x4xf32>
    %13 = vector.shape_cast %12 : vector<1x16x16x4xf32> to vector<16x16x4xf32>
    %cst_11 = arith.constant 0.000000e+00 : f32
    %14 = vector.broadcast %cst_11 : f32 to vector<1x18x4xf32>
    %cst_12 = arith.constant 0.000000e+00 : f32
    %15 = vector.broadcast %cst_12 : f32 to vector<18x1x4xf32>
    %c0_13 = arith.constant 0 : index
    %c0_14 = arith.constant 0 : index
    %c0_15 = arith.constant 0 : index
    %16 = vector.load %arg7[%c0_13, %c0_14, %c0_15] : memref<18x18x4xf32, #tpu.memory_space<vmem>>, vector<1x18x4xf32>
    tpu.vector_store %arg7[%c0_13, %c0_14, %c0_15], %14 {strides = array<i32>} : memref<18x18x4xf32, #tpu.memory_space<vmem>>, vector<1x18x4xf32>,
    %c17 = arith.constant 17 : index
    %c0_16 = arith.constant 0 : index
    %c0_17 = arith.constant 0 : index
    %17 = vector.load %arg7[%c17, %c0_16, %c0_17] : memref<18x18x4xf32, #tpu.memory_space<vmem>>, vector<1x18x4xf32>
    tpu.vector_store %arg7[%c17, %c0_16, %c0_17], %14 {strides = array<i32>} : memref<18x18x4xf32, #tpu.memory_space<vmem>>, vector<1x18x4xf32>,
    %c0_18 = arith.constant 0 : index
    %c0_19 = arith.constant 0 : index
    %c0_20 = arith.constant 0 : index
    %18 = vector.load %arg7[%c0_18, %c0_19, %c0_20] : memref<18x18x4xf32, #tpu.memory_space<vmem>>, vector<18x1x4xf32>
    tpu.vector_store %arg7[%c0_18, %c0_19, %c0_20], %15 {strides = array<i32>} : memref<18x18x4xf32, #tpu.memory_space<vmem>>, vector<18x1x4xf32>,
    %c0_21 = arith.constant 0 : index
    %c17_22 = arith.constant 17 : index
    %c0_23 = arith.constant 0 : index
    %19 = vector.load %arg7[%c0_21, %c17_22, %c0_23] : memref<18x18x4xf32, #tpu.memory_space<vmem>>, vector<18x1x4xf32>
    tpu.vector_store %arg7[%c0_21, %c17_22, %c0_23], %15 {strides = array<i32>} : memref<18x18x4xf32, #tpu.memory_space<vmem>>, vector<18x1x4xf32>,
    %c1 = arith.constant 1 : index
    %c1_24 = arith.constant 1 : index
    %c0_25 = arith.constant 0 : index
    %20 = vector.load %arg7[%c1, %c1_24, %c0_25] : memref<18x18x4xf32, #tpu.memory_space<vmem>>, vector<16x16x4xf32>
    tpu.vector_store %arg7[%c1, %c1_24, %c0_25], %13 {strides = array<i32>} : memref<18x18x4xf32, #tpu.memory_space<vmem>>, vector<16x16x4xf32>,
    %c0_26 = arith.constant 0 : index
    %c0_27 = arith.constant 0 : index
    %c0_28 = arith.constant 0 : index
    %21 = vector.load %arg7[%c0_26, %c0_27, %c0_28] : memref<18x18x4xf32, #tpu.memory_space<vmem>>, vector<18x18x4xf32>
    %22 = vector.extract_strided_slice %21 {offsets = [0, 0, 0], sizes = [16, 16, 4], strides = [1, 1, 1]} : vector<18x18x4xf32> to vector<16x16x4xf32>
    %23 = vector.shape_cast %22 : vector<16x16x4xf32> to vector<256x4xf32>
    %24 = vector.extract_strided_slice %21 {offsets = [0, 1, 0], sizes = [16, 16, 4], strides = [1, 1, 1]} : vector<18x18x4xf32> to vector<16x16x4xf32>
    %25 = vector.shape_cast %24 : vector<16x16x4xf32> to vector<256x4xf32>
    %26 = vector.extract_strided_slice %21 {offsets = [0, 2, 0], sizes = [16, 16, 4], strides = [1, 1, 1]} : vector<18x18x4xf32> to vector<16x16x4xf32>
    %27 = vector.shape_cast %26 : vector<16x16x4xf32> to vector<256x4xf32>
    %28 = vector.extract_strided_slice %21 {offsets = [1, 0, 0], sizes = [16, 16, 4], strides = [1, 1, 1]} : vector<18x18x4xf32> to vector<16x16x4xf32>
    %29 = vector.shape_cast %28 : vector<16x16x4xf32> to vector<256x4xf32>
    %30 = vector.extract_strided_slice %21 {offsets = [1, 1, 0], sizes = [16, 16, 4], strides = [1, 1, 1]} : vector<18x18x4xf32> to vector<16x16x4xf32>
    %31 = vector.shape_cast %30 : vector<16x16x4xf32> to vector<256x4xf32>
    %32 = vector.extract_strided_slice %21 {offsets = [1, 2, 0], sizes = [16, 16, 4], strides = [1, 1, 1]} : vector<18x18x4xf32> to vector<16x16x4xf32>
    %33 = vector.shape_cast %32 : vector<16x16x4xf32> to vector<256x4xf32>
    %34 = vector.extract_strided_slice %21 {offsets = [2, 0, 0], sizes = [16, 16, 4], strides = [1, 1, 1]} : vector<18x18x4xf32> to vector<16x16x4xf32>
    %35 = vector.shape_cast %34 : vector<16x16x4xf32> to vector<256x4xf32>
    %36 = vector.extract_strided_slice %21 {offsets = [2, 1, 0], sizes = [16, 16, 4], strides = [1, 1, 1]} : vector<18x18x4xf32> to vector<16x16x4xf32>
    %37 = vector.shape_cast %36 : vector<16x16x4xf32> to vector<256x4xf32>
    %38 = vector.extract_strided_slice %21 {offsets = [2, 2, 0], sizes = [16, 16, 4], strides = [1, 1, 1]} : vector<18x18x4xf32> to vector<16x16x4xf32>
    %39 = vector.shape_cast %38 : vector<16x16x4xf32> to vector<256x4xf32>
    %40 = tpu.concatenate %23, %25, %27, %29, %31, %33, %35, %37, %39 in 1 : vector<256x4xf32>, vector<256x4xf32>, vector<256x4xf32>, vector<256x4xf32>, vector<256x4xf32>, vector<256x4xf32>, vector<256x4xf32>, vector<256x4xf32>, vector<256x4xf32> -> vector<256x36xf32>
    %41 = arith.truncf %40 : vector<256x36xf32> to vector<256x36xbf16>
    %cst_29 = arith.constant dense<0.000000e+00> : vector<256x32xf32>
    %42 = tpu.matmul %41, %3, %cst_29 {dimension_numbers = #tpu.dot_dimension_numbers<[1], [0], [0], [1], [0, 0, 1, 1], [], []>} : vector<256x36xbf16>, vector<36x32xbf16>, vector<256x32xf32> -> vector<256x32xf32>
    %43 = vector.broadcast %4 : vector<1x32xf32> to vector<256x32xf32>
    %44 = arith.addf %42, %43 : vector<256x32xf32>
    %cst_30 = arith.constant dense<0.000000e+00> : vector<32xf32>
    %45 = vector.multi_reduction <add>, %44, %cst_30 [0] : vector<256x32xf32> to vector<32xf32>
    %46 = vector.shape_cast %45 : vector<32xf32> to vector<1x32xf32>
    %47 = arith.mulf %44, %44 : vector<256x32xf32>
    %cst_31 = arith.constant dense<0.000000e+00> : vector<32xf32>
    %48 = vector.multi_reduction <add>, %47, %cst_31 [0] : vector<256x32xf32> to vector<32xf32>
    %49 = vector.shape_cast %48 : vector<32xf32> to vector<1x32xf32>
    %50 = tpu.concatenate %46, %49 in 0 : vector<1x32xf32>, vector<1x32xf32> -> vector<2x32xf32>
    %c0_32 = arith.constant 0 : index
    %c0_33 = arith.constant 0 : index
    %c0_34 = arith.constant 0 : index
    %51 = vector.load %arg6[%c0_32, %c0_33, %c0_34] : memref<1x2x32xf32, #tpu.memory_space<vmem>>, vector<1x2x32xf32>
    %52 = vector.shape_cast %51 : vector<1x2x32xf32> to vector<2x32xf32>
    %53 = vector.shape_cast %50 : vector<2x32xf32> to vector<1x2x32xf32>
    tpu.vector_store %arg6[%c0_32, %c0_33, %c0_34], %53 {strides = array<i32>} : memref<1x2x32xf32, #tpu.memory_space<vmem>>, vector<1x2x32xf32>,
    return
  }
  func.func @transform_0(%arg0: i32) -> (i32, i32, i32, i32) {
    %c0_i32 = arith.constant 0 : i32
    %c0_i32_0 = arith.constant 0 : i32
    %c0_i32_1 = arith.constant 0 : i32
    %c0_i32_2 = arith.constant 0 : i32
    return %arg0, %c0_i32, %c0_i32_0, %c0_i32_1 : i32, i32, i32, i32
  }
  func.func @transform_1(%arg0: i32) -> (i32, i32) {
    %c0_i32 = arith.constant 0 : i32
    %c0_i32_0 = arith.constant 0 : i32
    %c0_i32_1 = arith.constant 0 : i32
    return %c0_i32, %c0_i32_0 : i32, i32
  }
  func.func @transform_2(%arg0: i32) -> (i32, i32) {
    %c0_i32 = arith.constant 0 : i32
    %c0_i32_0 = arith.constant 0 : i32
    %c0_i32_1 = arith.constant 0 : i32
    return %c0_i32, %c0_i32_0 : i32, i32
  }
  func.func @transform_3(%arg0: i32) -> (i32, i32) {
    %c0_i32 = arith.constant 0 : i32
    %c0_i32_0 = arith.constant 0 : i32
    %c0_i32_1 = arith.constant 0 : i32
    return %c0_i32, %c0_i32_0 : i32, i32
  }
  func.func @transform_4(%arg0: i32) -> (i32, i32) {
    %c0_i32 = arith.constant 0 : i32
    %c0_i32_0 = arith.constant 0 : i32
    %c0_i32_1 = arith.constant 0 : i32
    return %c0_i32, %c0_i32_0 : i32, i32
  }
  func.func @transform_5(%arg0: i32) -> (i32, i32, i32) {
    %c0_i32 = arith.constant 0 : i32
    %c0_i32_0 = arith.constant 0 : i32
    %c0_i32_1 = arith.constant 0 : i32
    return %arg0, %c0_i32, %c0_i32_0 : i32, i32, i32
  }
}

module attributes {stable_mosaic.version = 11 : i64} {
  func.func @_fused_block_kernel(%arg0: i32, %arg1: memref<1x16x16x4xf32, #tpu.memory_space<vmem>>, %arg2: memref<36x32xbf16, #tpu.memory_space<vmem>>, %arg3: memref<1x32xf32, #tpu.memory_space<vmem>>, %arg4: memref<1x4xf32, #tpu.memory_space<vmem>>, %arg5: memref<1x4xf32, #tpu.memory_space<vmem>>, %arg6: memref<1x32xf32, #tpu.memory_space<vmem>>, %arg7: memref<1x32xf32, #tpu.memory_space<vmem>>, %arg8: memref<292x128xbf16, #tpu.memory_space<vmem>>, %arg9: memref<1x128xf32, #tpu.memory_space<vmem>>, %arg10: memref<1x16x16x128xf32, #tpu.memory_space<vmem>>, %arg11: memref<18x18x4xf32, #tpu.memory_space<vmem>>, %arg12: memref<18x18x32xf32, #tpu.memory_space<vmem>>) attributes {dimension_semantics = [#tpu.dimension_semantics<parallel>], iteration_bounds = array<i64: 2>, scalar_prefetch = 0 : i64, scratch_operands = 2 : i64, tpu.core_type = #tpu.core_type<tc>, window_params = [{transform_indices = @transform_0, window_bounds = array<i64: 1, 16, 16, 4>}, {pipeline_mode = #tpu.pipeline_mode<synchronous>, transform_indices = @transform_1, window_bounds = array<i64: 36, 32>}, {pipeline_mode = #tpu.pipeline_mode<synchronous>, transform_indices = @transform_2, window_bounds = array<i64: 1, 32>}, {pipeline_mode = #tpu.pipeline_mode<synchronous>, transform_indices = @transform_3, window_bounds = array<i64: 1, 4>}, {pipeline_mode = #tpu.pipeline_mode<synchronous>, transform_indices = @transform_4, window_bounds = array<i64: 1, 4>}, {pipeline_mode = #tpu.pipeline_mode<synchronous>, transform_indices = @transform_5, window_bounds = array<i64: 1, 32>}, {pipeline_mode = #tpu.pipeline_mode<synchronous>, transform_indices = @transform_6, window_bounds = array<i64: 1, 32>}, {pipeline_mode = #tpu.pipeline_mode<synchronous>, transform_indices = @transform_7, window_bounds = array<i64: 292, 128>}, {pipeline_mode = #tpu.pipeline_mode<synchronous>, transform_indices = @transform_8, window_bounds = array<i64: 1, 128>}, {transform_indices = @transform_9, window_bounds = array<i64: 1, 16, 16, 128>}]} {
    %c0 = arith.constant 0 : index
    %c0_0 = arith.constant 0 : index
    %c0_1 = arith.constant 0 : index
    %c0_2 = arith.constant 0 : index
    %0 = vector.load %arg1[%c0, %c0_0, %c0_1, %c0_2] : memref<1x16x16x4xf32, #tpu.memory_space<vmem>>, vector<1x16x16x4xf32>
    %c0_3 = arith.constant 0 : index
    %c0_4 = arith.constant 0 : index
    %1 = vector.load %arg4[%c0_3, %c0_4] : memref<1x4xf32, #tpu.memory_space<vmem>>, vector<1x4xf32>
    %c0_5 = arith.constant 0 : index
    %c0_6 = arith.constant 0 : index
    %2 = vector.load %arg5[%c0_5, %c0_6] : memref<1x4xf32, #tpu.memory_space<vmem>>, vector<1x4xf32>
    %c0_7 = arith.constant 0 : index
    %c0_8 = arith.constant 0 : index
    %3 = vector.load %arg2[%c0_7, %c0_8] : memref<36x32xbf16, #tpu.memory_space<vmem>>, vector<36x32xbf16>
    %c0_9 = arith.constant 0 : index
    %c0_10 = arith.constant 0 : index
    %4 = vector.load %arg3[%c0_9, %c0_10] : memref<1x32xf32, #tpu.memory_space<vmem>>, vector<1x32xf32>
    %5 = vector.shape_cast %1 : vector<1x4xf32> to vector<1x1x1x4xf32>
    %6 = vector.broadcast %5 : vector<1x1x1x4xf32> to vector<1x16x16x4xf32>
    %7 = arith.mulf %0, %6 : vector<1x16x16x4xf32>
    %8 = vector.shape_cast %2 : vector<1x4xf32> to vector<1x1x1x4xf32>
    %9 = vector.broadcast %8 : vector<1x1x1x4xf32> to vector<1x16x16x4xf32>
    %10 = arith.addf %7, %9 : vector<1x16x16x4xf32>
    %cst = arith.constant 0.000000e+00 : f32
    %11 = vector.broadcast %cst : f32 to vector<1x16x16x4xf32>
    %12 = arith.maximumf %10, %11 : vector<1x16x16x4xf32>
    %13 = vector.shape_cast %12 : vector<1x16x16x4xf32> to vector<16x16x4xf32>
    %cst_11 = arith.constant 0.000000e+00 : f32
    %14 = vector.broadcast %cst_11 : f32 to vector<1x18x4xf32>
    %cst_12 = arith.constant 0.000000e+00 : f32
    %15 = vector.broadcast %cst_12 : f32 to vector<18x1x4xf32>
    %c0_13 = arith.constant 0 : index
    %c0_14 = arith.constant 0 : index
    %c0_15 = arith.constant 0 : index
    %16 = vector.load %arg11[%c0_13, %c0_14, %c0_15] : memref<18x18x4xf32, #tpu.memory_space<vmem>>, vector<1x18x4xf32>
    tpu.vector_store %arg11[%c0_13, %c0_14, %c0_15], %14 {strides = array<i32>} : memref<18x18x4xf32, #tpu.memory_space<vmem>>, vector<1x18x4xf32>,
    %c17 = arith.constant 17 : index
    %c0_16 = arith.constant 0 : index
    %c0_17 = arith.constant 0 : index
    %17 = vector.load %arg11[%c17, %c0_16, %c0_17] : memref<18x18x4xf32, #tpu.memory_space<vmem>>, vector<1x18x4xf32>
    tpu.vector_store %arg11[%c17, %c0_16, %c0_17], %14 {strides = array<i32>} : memref<18x18x4xf32, #tpu.memory_space<vmem>>, vector<1x18x4xf32>,
    %c0_18 = arith.constant 0 : index
    %c0_19 = arith.constant 0 : index
    %c0_20 = arith.constant 0 : index
    %18 = vector.load %arg11[%c0_18, %c0_19, %c0_20] : memref<18x18x4xf32, #tpu.memory_space<vmem>>, vector<18x1x4xf32>
    tpu.vector_store %arg11[%c0_18, %c0_19, %c0_20], %15 {strides = array<i32>} : memref<18x18x4xf32, #tpu.memory_space<vmem>>, vector<18x1x4xf32>,
    %c0_21 = arith.constant 0 : index
    %c17_22 = arith.constant 17 : index
    %c0_23 = arith.constant 0 : index
    %19 = vector.load %arg11[%c0_21, %c17_22, %c0_23] : memref<18x18x4xf32, #tpu.memory_space<vmem>>, vector<18x1x4xf32>
    tpu.vector_store %arg11[%c0_21, %c17_22, %c0_23], %15 {strides = array<i32>} : memref<18x18x4xf32, #tpu.memory_space<vmem>>, vector<18x1x4xf32>,
    %c1 = arith.constant 1 : index
    %c1_24 = arith.constant 1 : index
    %c0_25 = arith.constant 0 : index
    %20 = vector.load %arg11[%c1, %c1_24, %c0_25] : memref<18x18x4xf32, #tpu.memory_space<vmem>>, vector<16x16x4xf32>
    tpu.vector_store %arg11[%c1, %c1_24, %c0_25], %13 {strides = array<i32>} : memref<18x18x4xf32, #tpu.memory_space<vmem>>, vector<16x16x4xf32>,
    %c0_26 = arith.constant 0 : index
    %c0_27 = arith.constant 0 : index
    %c0_28 = arith.constant 0 : index
    %21 = vector.load %arg11[%c0_26, %c0_27, %c0_28] : memref<18x18x4xf32, #tpu.memory_space<vmem>>, vector<18x18x4xf32>
    %22 = vector.extract_strided_slice %21 {offsets = [0, 0, 0], sizes = [16, 16, 4], strides = [1, 1, 1]} : vector<18x18x4xf32> to vector<16x16x4xf32>
    %23 = vector.shape_cast %22 : vector<16x16x4xf32> to vector<256x4xf32>
    %24 = vector.extract_strided_slice %21 {offsets = [0, 1, 0], sizes = [16, 16, 4], strides = [1, 1, 1]} : vector<18x18x4xf32> to vector<16x16x4xf32>
    %25 = vector.shape_cast %24 : vector<16x16x4xf32> to vector<256x4xf32>
    %26 = vector.extract_strided_slice %21 {offsets = [0, 2, 0], sizes = [16, 16, 4], strides = [1, 1, 1]} : vector<18x18x4xf32> to vector<16x16x4xf32>
    %27 = vector.shape_cast %26 : vector<16x16x4xf32> to vector<256x4xf32>
    %28 = vector.extract_strided_slice %21 {offsets = [1, 0, 0], sizes = [16, 16, 4], strides = [1, 1, 1]} : vector<18x18x4xf32> to vector<16x16x4xf32>
    %29 = vector.shape_cast %28 : vector<16x16x4xf32> to vector<256x4xf32>
    %30 = vector.extract_strided_slice %21 {offsets = [1, 1, 0], sizes = [16, 16, 4], strides = [1, 1, 1]} : vector<18x18x4xf32> to vector<16x16x4xf32>
    %31 = vector.shape_cast %30 : vector<16x16x4xf32> to vector<256x4xf32>
    %32 = vector.extract_strided_slice %21 {offsets = [1, 2, 0], sizes = [16, 16, 4], strides = [1, 1, 1]} : vector<18x18x4xf32> to vector<16x16x4xf32>
    %33 = vector.shape_cast %32 : vector<16x16x4xf32> to vector<256x4xf32>
    %34 = vector.extract_strided_slice %21 {offsets = [2, 0, 0], sizes = [16, 16, 4], strides = [1, 1, 1]} : vector<18x18x4xf32> to vector<16x16x4xf32>
    %35 = vector.shape_cast %34 : vector<16x16x4xf32> to vector<256x4xf32>
    %36 = vector.extract_strided_slice %21 {offsets = [2, 1, 0], sizes = [16, 16, 4], strides = [1, 1, 1]} : vector<18x18x4xf32> to vector<16x16x4xf32>
    %37 = vector.shape_cast %36 : vector<16x16x4xf32> to vector<256x4xf32>
    %38 = vector.extract_strided_slice %21 {offsets = [2, 2, 0], sizes = [16, 16, 4], strides = [1, 1, 1]} : vector<18x18x4xf32> to vector<16x16x4xf32>
    %39 = vector.shape_cast %38 : vector<16x16x4xf32> to vector<256x4xf32>
    %40 = tpu.concatenate %23, %25, %27, %29, %31, %33, %35, %37, %39 in 1 : vector<256x4xf32>, vector<256x4xf32>, vector<256x4xf32>, vector<256x4xf32>, vector<256x4xf32>, vector<256x4xf32>, vector<256x4xf32>, vector<256x4xf32>, vector<256x4xf32> -> vector<256x36xf32>
    %41 = arith.truncf %40 : vector<256x36xf32> to vector<256x36xbf16>
    %cst_29 = arith.constant dense<0.000000e+00> : vector<256x32xf32>
    %42 = tpu.matmul %41, %3, %cst_29 {dimension_numbers = #tpu.dot_dimension_numbers<[1], [0], [0], [1], [0, 0, 1, 1], [], []>} : vector<256x36xbf16>, vector<36x32xbf16>, vector<256x32xf32> -> vector<256x32xf32>
    %43 = vector.broadcast %4 : vector<1x32xf32> to vector<256x32xf32>
    %44 = arith.addf %42, %43 : vector<256x32xf32>
    %c0_30 = arith.constant 0 : index
    %c0_31 = arith.constant 0 : index
    %45 = vector.load %arg6[%c0_30, %c0_31] : memref<1x32xf32, #tpu.memory_space<vmem>>, vector<1x32xf32>
    %46 = vector.broadcast %45 : vector<1x32xf32> to vector<256x32xf32>
    %47 = arith.mulf %44, %46 : vector<256x32xf32>
    %c0_32 = arith.constant 0 : index
    %c0_33 = arith.constant 0 : index
    %48 = vector.load %arg7[%c0_32, %c0_33] : memref<1x32xf32, #tpu.memory_space<vmem>>, vector<1x32xf32>
    %49 = vector.broadcast %48 : vector<1x32xf32> to vector<256x32xf32>
    %50 = arith.addf %47, %49 : vector<256x32xf32>
    %cst_34 = arith.constant 0.000000e+00 : f32
    %51 = vector.broadcast %cst_34 : f32 to vector<256x32xf32>
    %52 = arith.maximumf %50, %51 : vector<256x32xf32>
    %cst_35 = arith.constant 0.000000e+00 : f32
    %53 = vector.broadcast %cst_35 : f32 to vector<1x18x32xf32>
    %cst_36 = arith.constant 0.000000e+00 : f32
    %54 = vector.broadcast %cst_36 : f32 to vector<18x1x32xf32>
    %c0_37 = arith.constant 0 : index
    %c0_38 = arith.constant 0 : index
    %c0_39 = arith.constant 0 : index
    %55 = vector.load %arg12[%c0_37, %c0_38, %c0_39] : memref<18x18x32xf32, #tpu.memory_space<vmem>>, vector<1x18x32xf32>
    tpu.vector_store %arg12[%c0_37, %c0_38, %c0_39], %53 {strides = array<i32>} : memref<18x18x32xf32, #tpu.memory_space<vmem>>, vector<1x18x32xf32>,
    %c17_40 = arith.constant 17 : index
    %c0_41 = arith.constant 0 : index
    %c0_42 = arith.constant 0 : index
    %56 = vector.load %arg12[%c17_40, %c0_41, %c0_42] : memref<18x18x32xf32, #tpu.memory_space<vmem>>, vector<1x18x32xf32>
    tpu.vector_store %arg12[%c17_40, %c0_41, %c0_42], %53 {strides = array<i32>} : memref<18x18x32xf32, #tpu.memory_space<vmem>>, vector<1x18x32xf32>,
    %c0_43 = arith.constant 0 : index
    %c0_44 = arith.constant 0 : index
    %c0_45 = arith.constant 0 : index
    %57 = vector.load %arg12[%c0_43, %c0_44, %c0_45] : memref<18x18x32xf32, #tpu.memory_space<vmem>>, vector<18x1x32xf32>
    tpu.vector_store %arg12[%c0_43, %c0_44, %c0_45], %54 {strides = array<i32>} : memref<18x18x32xf32, #tpu.memory_space<vmem>>, vector<18x1x32xf32>,
    %c0_46 = arith.constant 0 : index
    %c17_47 = arith.constant 17 : index
    %c0_48 = arith.constant 0 : index
    %58 = vector.load %arg12[%c0_46, %c17_47, %c0_48] : memref<18x18x32xf32, #tpu.memory_space<vmem>>, vector<18x1x32xf32>
    tpu.vector_store %arg12[%c0_46, %c17_47, %c0_48], %54 {strides = array<i32>} : memref<18x18x32xf32, #tpu.memory_space<vmem>>, vector<18x1x32xf32>,
    %59 = vector.shape_cast %52 : vector<256x32xf32> to vector<16x16x32xf32>
    %c1_49 = arith.constant 1 : index
    %c1_50 = arith.constant 1 : index
    %c0_51 = arith.constant 0 : index
    %60 = vector.load %arg12[%c1_49, %c1_50, %c0_51] : memref<18x18x32xf32, #tpu.memory_space<vmem>>, vector<16x16x32xf32>
    tpu.vector_store %arg12[%c1_49, %c1_50, %c0_51], %59 {strides = array<i32>} : memref<18x18x32xf32, #tpu.memory_space<vmem>>, vector<16x16x32xf32>,
    %c0_52 = arith.constant 0 : index
    %c0_53 = arith.constant 0 : index
    %c0_54 = arith.constant 0 : index
    %61 = vector.load %arg12[%c0_52, %c0_53, %c0_54] : memref<18x18x32xf32, #tpu.memory_space<vmem>>, vector<18x18x32xf32>
    %62 = vector.extract_strided_slice %61 {offsets = [0, 0, 0], sizes = [16, 16, 32], strides = [1, 1, 1]} : vector<18x18x32xf32> to vector<16x16x32xf32>
    %63 = vector.shape_cast %62 : vector<16x16x32xf32> to vector<256x32xf32>
    %64 = vector.extract_strided_slice %61 {offsets = [0, 1, 0], sizes = [16, 16, 32], strides = [1, 1, 1]} : vector<18x18x32xf32> to vector<16x16x32xf32>
    %65 = vector.shape_cast %64 : vector<16x16x32xf32> to vector<256x32xf32>
    %66 = vector.extract_strided_slice %61 {offsets = [0, 2, 0], sizes = [16, 16, 32], strides = [1, 1, 1]} : vector<18x18x32xf32> to vector<16x16x32xf32>
    %67 = vector.shape_cast %66 : vector<16x16x32xf32> to vector<256x32xf32>
    %68 = vector.extract_strided_slice %61 {offsets = [1, 0, 0], sizes = [16, 16, 32], strides = [1, 1, 1]} : vector<18x18x32xf32> to vector<16x16x32xf32>
    %69 = vector.shape_cast %68 : vector<16x16x32xf32> to vector<256x32xf32>
    %70 = vector.extract_strided_slice %61 {offsets = [1, 1, 0], sizes = [16, 16, 32], strides = [1, 1, 1]} : vector<18x18x32xf32> to vector<16x16x32xf32>
    %71 = vector.shape_cast %70 : vector<16x16x32xf32> to vector<256x32xf32>
    %72 = vector.extract_strided_slice %61 {offsets = [1, 2, 0], sizes = [16, 16, 32], strides = [1, 1, 1]} : vector<18x18x32xf32> to vector<16x16x32xf32>
    %73 = vector.shape_cast %72 : vector<16x16x32xf32> to vector<256x32xf32>
    %74 = vector.extract_strided_slice %61 {offsets = [2, 0, 0], sizes = [16, 16, 32], strides = [1, 1, 1]} : vector<18x18x32xf32> to vector<16x16x32xf32>
    %75 = vector.shape_cast %74 : vector<16x16x32xf32> to vector<256x32xf32>
    %76 = vector.extract_strided_slice %61 {offsets = [2, 1, 0], sizes = [16, 16, 32], strides = [1, 1, 1]} : vector<18x18x32xf32> to vector<16x16x32xf32>
    %77 = vector.shape_cast %76 : vector<16x16x32xf32> to vector<256x32xf32>
    %78 = vector.extract_strided_slice %61 {offsets = [2, 2, 0], sizes = [16, 16, 32], strides = [1, 1, 1]} : vector<18x18x32xf32> to vector<16x16x32xf32>
    %79 = vector.shape_cast %78 : vector<16x16x32xf32> to vector<256x32xf32>
    %80 = vector.shape_cast %0 : vector<1x16x16x4xf32> to vector<16x16x4xf32>
    %81 = vector.shape_cast %80 : vector<16x16x4xf32> to vector<256x4xf32>
    %82 = tpu.concatenate %63, %65, %67, %69, %71, %73, %75, %77, %79, %81 in 1 : vector<256x32xf32>, vector<256x32xf32>, vector<256x32xf32>, vector<256x32xf32>, vector<256x32xf32>, vector<256x32xf32>, vector<256x32xf32>, vector<256x32xf32>, vector<256x32xf32>, vector<256x4xf32> -> vector<256x292xf32>
    %83 = arith.truncf %82 : vector<256x292xf32> to vector<256x292xbf16>
    %c0_55 = arith.constant 0 : index
    %c0_56 = arith.constant 0 : index
    %84 = vector.load %arg8[%c0_55, %c0_56] : memref<292x128xbf16, #tpu.memory_space<vmem>>, vector<292x128xbf16>
    %cst_57 = arith.constant dense<0.000000e+00> : vector<256x128xf32>
    %85 = tpu.matmul %83, %84, %cst_57 {dimension_numbers = #tpu.dot_dimension_numbers<[1], [0], [0], [1], [0, 0, 1, 1], [], []>} : vector<256x292xbf16>, vector<292x128xbf16>, vector<256x128xf32> -> vector<256x128xf32>
    %c0_58 = arith.constant 0 : index
    %c0_59 = arith.constant 0 : index
    %86 = vector.load %arg9[%c0_58, %c0_59] : memref<1x128xf32, #tpu.memory_space<vmem>>, vector<1x128xf32>
    %87 = vector.broadcast %86 : vector<1x128xf32> to vector<256x128xf32>
    %88 = arith.addf %85, %87 : vector<256x128xf32>
    %89 = vector.shape_cast %88 : vector<256x128xf32> to vector<1x16x16x128xf32>
    %c0_60 = arith.constant 0 : index
    %c0_61 = arith.constant 0 : index
    %c0_62 = arith.constant 0 : index
    %c0_63 = arith.constant 0 : index
    %90 = vector.load %arg10[%c0_60, %c0_61, %c0_62, %c0_63] : memref<1x16x16x128xf32, #tpu.memory_space<vmem>>, vector<1x16x16x128xf32>
    tpu.vector_store %arg10[%c0_60, %c0_61, %c0_62, %c0_63], %89 {strides = array<i32>} : memref<1x16x16x128xf32, #tpu.memory_space<vmem>>, vector<1x16x16x128xf32>,
    return
  }
  func.func @transform_0(%arg0: i32) -> (i32, i32, i32, i32) {
    %c0_i32 = arith.constant 0 : i32
    %c0_i32_0 = arith.constant 0 : i32
    %c0_i32_1 = arith.constant 0 : i32
    %c0_i32_2 = arith.constant 0 : i32
    return %arg0, %c0_i32, %c0_i32_0, %c0_i32_1 : i32, i32, i32, i32
  }
  func.func @transform_1(%arg0: i32) -> (i32, i32) {
    %c0_i32 = arith.constant 0 : i32
    %c0_i32_0 = arith.constant 0 : i32
    %c0_i32_1 = arith.constant 0 : i32
    return %c0_i32, %c0_i32_0 : i32, i32
  }
  func.func @transform_2(%arg0: i32) -> (i32, i32) {
    %c0_i32 = arith.constant 0 : i32
    %c0_i32_0 = arith.constant 0 : i32
    %c0_i32_1 = arith.constant 0 : i32
    return %c0_i32, %c0_i32_0 : i32, i32
  }
  func.func @transform_3(%arg0: i32) -> (i32, i32) {
    %c0_i32 = arith.constant 0 : i32
    %c0_i32_0 = arith.constant 0 : i32
    %c0_i32_1 = arith.constant 0 : i32
    return %c0_i32, %c0_i32_0 : i32, i32
  }
  func.func @transform_4(%arg0: i32) -> (i32, i32) {
    %c0_i32 = arith.constant 0 : i32
    %c0_i32_0 = arith.constant 0 : i32
    %c0_i32_1 = arith.constant 0 : i32
    return %c0_i32, %c0_i32_0 : i32, i32
  }
  func.func @transform_5(%arg0: i32) -> (i32, i32) {
    %c0_i32 = arith.constant 0 : i32
    %c0_i32_0 = arith.constant 0 : i32
    %c0_i32_1 = arith.constant 0 : i32
    return %c0_i32, %c0_i32_0 : i32, i32
  }
  func.func @transform_6(%arg0: i32) -> (i32, i32) {
    %c0_i32 = arith.constant 0 : i32
    %c0_i32_0 = arith.constant 0 : i32
    %c0_i32_1 = arith.constant 0 : i32
    return %c0_i32, %c0_i32_0 : i32, i32
  }
  func.func @transform_7(%arg0: i32) -> (i32, i32) {
    %c0_i32 = arith.constant 0 : i32
    %c0_i32_0 = arith.constant 0 : i32
    %c0_i32_1 = arith.constant 0 : i32
    return %c0_i32, %c0_i32_0 : i32, i32
  }
  func.func @transform_8(%arg0: i32) -> (i32, i32) {
    %c0_i32 = arith.constant 0 : i32
    %c0_i32_0 = arith.constant 0 : i32
    %c0_i32_1 = arith.constant 0 : i32
    return %c0_i32, %c0_i32_0 : i32, i32
  }
  func.func @transform_9(%arg0: i32) -> (i32, i32, i32, i32) {
    %c0_i32 = arith.constant 0 : i32
    %c0_i32_0 = arith.constant 0 : i32
    %c0_i32_1 = arith.constant 0 : i32
    %c0_i32_2 = arith.constant 0 : i32
    return %arg0, %c0_i32, %c0_i32_0, %c0_i32_1 : i32, i32, i32, i32
  }
}

</mosaic_0001>

<bundles_post_ra>
// kernel: resnet_block_up.2
= control target key start
LH: loop header
LB: loop body
LE: loop exit
PB: predicated region body
PF: predicated region fallthrough
CT: control target
= control target key end

     0   :  { %s3085_s18 = smov 0   ;;  %s4545_s0 = inlined_call_operand.vmem [shape: f32[2,16,16,4], index: 0, kind: input, shape index: {}]   ;;  %s4546_s1 = inlined_call_operand.vmem [shape: bf16[36,32], index: 1, kind: input, shape index: {}]   ;;  %s4547_s2 = inlined_call_operand.vmem [shape: f32[1,32], index: 2, kind: input, shape index: {}]   ;;  %s4548_s3 = inlined_call_operand.vmem [shape: f32[1,4], index: 3, kind: input, shape index: {}]   ;;  %s4549_s4 = inlined_call_operand.vmem [shape: f32[1,4], index: 4, kind: input, shape index: {}]   ;;  %s4550_s5 = inlined_call_operand.vmem [shape: f32[2,2,32], index: 5, kind: output, shape index: {}]  }
   0x1 LB: > { %s2250_s19 = sadd.s32 4294967295, %s3044_s18   ;;  %p2254_p0 = scmp.ge.s32.totalorder %s3044_s18, 1  ;;  %s3044_s18 = sphi %s3085_s18, %s15_s18  }
   0x2   : > { %p187_p1 = scmp.lt.s32.totalorder %s3044_s18, 3 }
   0x4   : > { %p188_p2 = pnand %p2254_p0, %p187_p1 }
   0x6   : > { %191 = sbr.rel (%p188_p2) target bundleno = 667 (0x29b), region = 40 }
   0xd   : > { %vm372_vm0 = vcmask 31744   ;;  %vm375_vm1 = vcmask 25600   ;;  %vm381_vm2 = vcmask 24576   ;;  %p3095_p3 = scmp.lt.s32.totalorder %s2250_s19, 1  ;;  %v3046_v0 = vmov 0.0   ;;  %s3047_s29 = smov 4  }
   0xe   : > { %373 = vst.msk [vmem:[#allocation2] sm:$0xff] %vm372_vm0, %v3046_v0  ;;  %374 = vst.msk [vmem:[#allocation2 + $0x8] sm:$0xff] %vm372_vm0, %v3046_v0  ;;  %v3149_v1 = vld [vmem:[%s4548_s3] ss:$0 sm:$0xff]  ;;  %vm553_vm3 = vcmask 1046528   ;;  %vm634_vm4 = vcmask 1045504  }
   0xf   : > { %376 = vst.msk [vmem:[#allocation2 + $0x10] sm:$0x3] %vm375_vm1, %v3046_v0  ;;  %380 = vst.msk [vmem:[#allocation2 + $0x1a8] sm:$0x3] %vm375_vm1, %v3046_v0  ;;  %s4643_s19 = smov (!%p3095_p3, %s2250_s19), 1  ;;  %s3048_s30 = smov 8  }
  0x10   : > { %378 = vst.msk [vmem:[#allocation2 + $0x198] sm:$0xff] %vm372_vm0, %v3046_v0  ;;  %379 = vst.msk [vmem:[#allocation2 + $0x1a0] sm:$0xff] %vm372_vm0, %v3046_v0  ;;  %s2282_s21 = sshll.u32 %s4643_s19, 8  ;;  %v3159_v2 = vld [vmem:[%s4549_s4] ss:$0 sm:$0xff]  ;;  %s3049_s6 = smov 12  }
  0x11   : > { %383 = vst.msk [vmem:[#allocation2 + $0x18] sm:$0x1] %vm381_vm2, %v3046_v0  ;;  %384 = vst.msk [vmem:[#allocation2 + $0x30] sm:$0x1] %vm381_vm2, %v3046_v0  ;;  %s3154_s26 = scalar_lea.vmem %s4545_s0, %s2282_s21  ;;  %s3050_s9 = smov 16   ;;  %vm1858_vm5 = vcmask 1041408  }
  0x12   : > { %385 = vst.msk [vmem:[#allocation2 + $0x48] sm:$0x1] %vm381_vm2, %v3046_v0  ;;  %386 = vst.msk [vmem:[#allocation2 + $0x60] sm:$0x1] %vm381_vm2, %v3046_v0  ;;  %v226_v3 = vld [vmem:[%s3154_s26 + $0x10] sm:$0xff]  ;;  %v227_v4 = vld [vmem:[%s3154_s26 + $0x18] sm:$0xff] }
  0x13   : > { %387 = vst.msk [vmem:[#allocation2 + $0x78] sm:$0x1] %vm381_vm2, %v3046_v0  ;;  %388 = vst.msk [vmem:[#allocation2 + $0x90] sm:$0x1] %vm381_vm2, %v3046_v0  ;;  %v224_v5 = vld [vmem:[%s3154_s26] sm:$0xff]  ;;  %v272_v6 = vmul.f32 %v3149_v1, %v226_v3  ;;  %v273_v7 = vmul.f32 %v3149_v1, %v227_v4  ;;  %v225_v8 = vld [vmem:[%s3154_s26 + $0x8] sm:$0xff] }
  0x14   : > { %389 = vst.msk [vmem:[#allocation2 + $0xa8] sm:$0x1] %vm381_vm2, %v3046_v0  ;;  %390 = vst.msk [vmem:[#allocation2 + $0xc0] sm:$0x1] %vm381_vm2, %v3046_v0  ;;  %v270_v9 = vmul.f32 %v3149_v1, %v224_v5  ;;  %v228_v10 = vld [vmem:[%s3154_s26 + $0x20] sm:$0xff]  ;;  %v229_v11 = vld [vmem:[%s3154_s26 + $0x28] sm:$0xff]  ;;  %v271_v13 = vmul.f32 %v3149_v1, %v225_v8 }
  0x15   : > { %391 = vst.msk [vmem:[#allocation2 + $0xd8] sm:$0x1] %vm381_vm2, %v3046_v0  ;;  %392 = vst.msk [vmem:[#allocation2 + $0xf0] sm:$0x1] %vm381_vm2, %v3046_v0  ;;  %v3170_v12 = vld [vmem:[#allocation2 + $0x8] sm:$0xff]  ;;  %v274_v14 = vmul.f32 %v3149_v1, %v228_v10  ;;  %v275_v15 = vmul.f32 %v3149_v1, %v229_v11  ;;  %v310_v19 = vadd.f32 %v3159_v2, %v272_v6  ;;  %v230_v25 = vld [vmem:[%s3154_s26 + $0x30] sm:$0xff] }
  0x16   : > { %393 = vst.msk [vmem:[#allocation2 + $0x108] sm:$0x1] %vm381_vm2, %v3046_v0  ;;  %394 = vst.msk [vmem:[#allocation2 + $0x120] sm:$0x1] %vm381_vm2, %v3046_v0  ;;  %v555_v18 = vrot.slane %v3170_v12, 1  ;;  %v311_v20 = vadd.f32 %v3159_v2, %v273_v7  ;;  %v308_v21 = vadd.f32 %v3159_v2, %v270_v9  ;;  %v309_v24 = vadd.f32 %v3159_v2, %v271_v13  ;;  %v231_v26 = vld [vmem:[%s3154_s26 + $0x38] sm:$0xff] }
  0x17   : > { %395 = vst.msk [vmem:[#allocation2 + $0x138] sm:$0x1] %vm381_vm2, %v3046_v0  ;;  %396 = vst.msk [vmem:[#allocation2 + $0x150] sm:$0x1] %vm381_vm2, %v3046_v0  ;;  %v342_v27 = vmax.f32 %v310_v19, 0.0  ;;  %v312_v30 = vadd.f32 %v3159_v2, %v274_v14  ;;  %v232_v31 = vld [vmem:[%s3154_s26 + $0x40] sm:$0xff]  ;;  %v313_v37 = vadd.f32 %v3159_v2, %v275_v15  ;;  %v276_v42 = vmul.f32 %v3149_v1, %v230_v25 }
  0x18   : > { %397 = vst.msk [vmem:[#allocation2 + $0x168] sm:$0x1] %vm381_vm2, %v3046_v0  ;;  %398 = vst.msk [vmem:[#allocation2 + $0x180] sm:$0x1] %vm381_vm2, %v3046_v0  ;;  %v343_v28 = vmax.f32 %v311_v20, 0.0  ;;  %v340_v29 = vmax.f32 %v308_v21, 0.0  ;;  %v277_v43 = vmul.f32 %v3149_v1, %v231_v26  ;;  %v278_v46 = vmul.f32 %v3149_v1, %v232_v31 }
  0x19   : > { %401 = vst.msk [vmem:[#allocation2 + $0x29] sm:$0x1] %vm381_vm2, %v3046_v0  ;;  %402 = vst.msk [vmem:[#allocation2 + $0x41] sm:$0x1] %vm381_vm2, %v3046_v0  ;;  %v233_v32 = vld [vmem:[%s3154_s26 + $0x48] sm:$0xff]  ;;  %v234_v33 = vld [vmem:[%s3154_s26 + $0x50] sm:$0xff]  ;;  %v314_v49 = vadd.f32 %v3159_v2, %v276_v42 }
  0x1a   : > { %403 = vst.msk [vmem:[#allocation2 + $0x59] sm:$0x1] %vm381_vm2, %v3046_v0  ;;  %404 = vst.msk [vmem:[#allocation2 + $0x71] sm:$0x1] %vm381_vm2, %v3046_v0  ;;  %v341_v36 = vmax.f32 %v309_v24, 0.0  ;;  %v235_v38 = vld [vmem:[%s3154_s26 + $0x58] sm:$0xff]  ;;  %v279_v47 = vmul.f32 %v3149_v1, %v233_v32  ;;  %v280_v48 = vmul.f32 %v3149_v1, %v234_v33  ;;  %v315_v50 = vadd.f32 %v3159_v2, %v277_v43 }
  0x1b   : > { %405 = vst.msk [vmem:[#allocation2 + $0x89] sm:$0x1] %vm381_vm2, %v3046_v0  ;;  %406 = vst.msk [vmem:[#allocation2 + $0xa1] sm:$0x1] %vm381_vm2, %v3046_v0  ;;  %v236_v39 = vld [vmem:[%s3154_s26 + $0x60] sm:$0xff]  ;;  %v344_v41 = vmax.f32 %v312_v30, 0.0  ;;  %v281_v51 = vmul.f32 %v3149_v1, %v235_v38  ;;  %v316_v53 = vadd.f32 %v3159_v2, %v278_v46 }
  0x1c   : > { %407 = vst.msk [vmem:[#allocation2 + $0xb9] sm:$0x1] %vm381_vm2, %v3046_v0  ;;  %408 = vst.msk [vmem:[#allocation2 + $0xd1] sm:$0x1] %vm381_vm2, %v3046_v0  ;;  %v237_v44 = vld [vmem:[%s3154_s26 + $0x68] sm:$0xff]  ;;  %v345_v45 = vmax.f32 %v313_v37, 0.0  ;;  %v282_v52 = vmul.f32 %v3149_v1, %v236_v39  ;;  %v317_v54 = vadd.f32 %v3159_v2, %v279_v47  ;;  %v318_v55 = vadd.f32 %v3159_v2, %v280_v48 }
  0x1d   : > { %409 = vst.msk [vmem:[#allocation2 + $0xe9] sm:$0x1] %vm381_vm2, %v3046_v0  ;;  %410 = vst.msk [vmem:[#allocation2 + $0x101] sm:$0x1] %vm381_vm2, %v3046_v0  ;;  %v283_v56 = vmul.f32 %v3149_v1, %v237_v44  ;;  %v238_v57 = vld [vmem:[%s3154_s26 + $0x70] sm:$0xff]  ;;  %v239_v58 = vld [vmem:[%s3154_s26 + $0x78] sm:$0xff]  ;;  %v319_v61 = vadd.f32 %v3159_v2, %v281_v51 }
  0x1e   : > { %411 = vst.msk [vmem:[#allocation2 + $0x119] sm:$0x1] %vm381_vm2, %v3046_v0  ;;  %412 = vst.msk [vmem:[#allocation2 + $0x131] sm:$0x1] %vm381_vm2, %v3046_v0  ;;  %v346_v59 = vmax.f32 %v314_v49, 0.0  ;;  %v347_v60 = vmax.f32 %v315_v50, 0.0  ;;  %v320_v62 = vadd.f32 %v3159_v2, %v282_v52  ;;  %v284_v10 = vmul.f32 %v3149_v1, %v238_v57 }
  0x1f   : > { %413 = vst.msk [vmem:[#allocation2 + $0x149] sm:$0x1] %vm381_vm2, %v3046_v0  ;;  %414 = vst.msk [vmem:[#allocation2 + $0x161] sm:$0x1] %vm381_vm2, %v3046_v0  ;;  %v240_v63 = vld [vmem:[%s3154_s26 + $0x80] sm:$0xff]  ;;  %v348_v3 = vmax.f32 %v316_v53, 0.0  ;;  %v321_v6 = vadd.f32 %v3159_v2, %v283_v56  ;;  %v285_v11 = vmul.f32 %v3149_v1, %v239_v58 }
  0x20   : > { %415 = vst.msk [vmem:[#allocation2 + $0x179] sm:$0x1] %vm381_vm2, %v3046_v0  ;;  %416 = vst.msk [vmem:[#allocation2 + $0x191] sm:$0x1] %vm381_vm2, %v3046_v0  ;;  %v349_v4 = vmax.f32 %v317_v54, 0.0  ;;  %v350_v5 = vmax.f32 %v318_v55, 0.0  ;;  %v286_v19 = vmul.f32 %v3149_v1, %v240_v63  ;;  %v322_v31 = vadd.f32 %v3159_v2, %v284_v10 }
  0x21   : > { %382 = vst.msk [vmem:[#allocation2] sm:$0x1] %vm381_vm2, %v3046_v0  ;;  %400 = vst.msk [vmem:[#allocation2 + $0x11] sm:$0x1] %vm381_vm2, %v3046_v0  ;;  %v242_v7 = vld [vmem:[%s3154_s26 + $0x90] sm:$0xff]  ;;  %v351_v8 = vmax.f32 %v319_v61, 0.0  ;;  %v323_v32 = vadd.f32 %v3159_v2, %v285_v11 }
  0x22   : > { %417 = vst.msk [vmem:[#allocation2 + $0x1a9] sm:$0x1] %vm381_vm2, %v3046_v0  ;;  %399 = vst.msk [vmem:[#allocation2 + $0x198] sm:$0x1] %vm381_vm2, %v3046_v0  ;;  %v241_v0 = vld [vmem:[%s3154_s26 + $0x88] sm:$0xff]  ;;  %v352_v9 = vmax.f32 %v320_v62, 0.0  ;;  %v3251_v26 = vmul.f32 %v3149_v1, %v242_v7  ;;  %v3277_v46 = vadd.f32 %v3159_v2, %v286_v19 }
  0x23   : > { %421 = vst.msk [vmem:[#allocation2 + $0x31] sm:$0xff] %vm372_vm0, %v342_v27  ;;  %422 = vst.msk [vmem:[#allocation2 + $0x39] sm:$0xff] %vm372_vm0, %v343_v28  ;;  %v287_v20 = vmul.f32 %v3149_v1, %v241_v0  ;;  %v354_v44 = vmax.f32 %v322_v31, 0.0  ;;  %v243_v47 = vld [vmem:[%s3154_s26 + $0x98] sm:$0xff]  ;;  %s3051_s12 = smov 20   ;;  %s3052_s15 = smov 24  }
  0x24   : > { %419 = vst.msk [vmem:[#allocation2 + $0x19] sm:$0xff] %vm372_vm0, %v340_v29  ;;  %420 = vst.msk [vmem:[#allocation2 + $0x21] sm:$0xff] %vm372_vm0, %v341_v36  ;;  %s3053_s16 = smov 28   ;;  %s3054_s17 = smov 32   ;;  %vm1541_vm6 = vcmask 64512   ;;  %vm1574_vm7 = vcmask 97280  }
  0x25   : > { %423 = vst.msk [vmem:[#allocation2 + $0x49] sm:$0xff] %vm372_vm0, %v344_v41  ;;  %424 = vst.msk [vmem:[#allocation2 + $0x51] sm:$0xff] %vm372_vm0, %v345_v45  ;;  %v355_v45 = vmax.f32 %v323_v32, 0.0  ;;  %v325_v54 = vadd.f32 %v3159_v2, %v287_v20  ;;  %vm1607_vm8 = vcmask 130048   ;;  %vm1640_vm9 = vcmask 162816  }
  0x26   : > { %425 = vst.msk [vmem:[#allocation2 + $0x61] sm:$0xff] %vm372_vm0, %v346_v59  ;;  %426 = vst.msk [vmem:[#allocation2 + $0x69] sm:$0xff] %vm372_vm0, %v347_v60  ;;  %vm1673_vm10 = vcmask 195584   ;;  %vm1706_vm11 = vcmask 228352   ;;  %vm1739_vm12 = vcmask 261120   ;;  %vm1809_vm13 = vcmask 293888  }
  0x27   : > { %427 = vst.msk [vmem:[#allocation2 + $0x79] sm:$0xff] %vm372_vm0, %v348_v3  ;;  %428 = vst.msk [vmem:[#allocation2 + $0x81] sm:$0xff] %vm372_vm0, %v349_v4  ;;  %vm2193_vm14 = vcmask 1040384   ;;  %vm2195_vm15 = vcmask 254976  }
  0x28   : > { %v3175_v16 = vld [vmem:[#allocation2] sm:$0xff]  ;;  %v3177_v17 = vld [vmem:[#allocation2 + $0x10] sm:$0x3]  ;;  %429 = vst.msk [vmem:[#allocation2 + $0x91] sm:$0xff] %vm372_vm0, %v350_v5  ;;  %430 = vst.msk [vmem:[#allocation2 + $0x99] sm:$0xff] %vm372_vm0, %v351_v8  ;;  %v289_v5 = vmul.f32 %v3149_v1, %v243_v47 }
  0x29   : > { %v554_v22 = vrot.slane %v3175_v16, 1  ;;  %v557_v23 = vrot.slane %v3177_v17, 1  ;;  %431 = vst.msk [vmem:[#allocation2 + $0xa9] sm:$0xff] %vm372_vm0, %v352_v9  ;;  %433 = vst.msk [vmem:[#allocation2 + $0xc1] sm:$0xff] %vm372_vm0, %v354_v44  ;;  %v246_v47 = vld [vmem:[%s3154_s26 + $0xb0] sm:$0xff] }
  0x2a   : > { %v3230_v13 = vld [vmem:[#allocation2 + $0x30] sm:$0xff]  ;;  %v3232_v14 = vld [vmem:[#allocation2 + $0x38] sm:$0xff]  ;;  %v3234_v15 = vld [vmem:[#allocation2 + $0x40] sm:$0x3]  ;;  %434 = vst.msk [vmem:[#allocation2 + $0xc9] sm:$0xff] %vm372_vm0, %v355_v45  ;;  %v326_v45 = vadd.f32 %v3159_v2, %v3251_v26  ;;  %v327_v26 = vadd.f32 %v3159_v2, %v289_v5 }
  0x2b   : > { %v556_v34 = vsel %vm553_vm3, %v554_v22, %v555_v18  ;;  %v558_v35 = vsel %vm553_vm3, %v555_v18, %v557_v23  ;;  %4584 = vst [vmem:[#allocation3_spill] sm:$0xff] %v3230_v13  ;;  %4585 = vst [vmem:[#allocation4_spill] sm:$0xff] %v3232_v14  ;;  %v353_v18 = vmax.f32 %v321_v6, 0.0  ;;  %v564_v21 = vrot.slane %v3230_v13, 1  ;;  %v3244_v24 = vld [vmem:[#allocation2 + $0x18] sm:$0xff]  ;;  %v3246_v25 = vld [vmem:[#allocation2 + $0x20] sm:$0xff] }
  0x2c   : > { %v2365_v40 = vpack.i.bf16 %v558_v35, %v556_v34  ;;  %v565_v22 = vrot.slane %v3232_v14, 1  ;;  %v567_v23 = vrot.slane %v3234_v15, 1  ;;  %4586 = vst [vmem:[#allocation5_spill] sm:$0xff] %v3244_v24  ;;  %4587 = vst [vmem:[#allocation6_spill] sm:$0xff] %v3246_v25  ;;  %v3253_v27 = vld [vmem:[#allocation2 + $0x28] sm:$0x3] }
  0x2d   : > { %v559_v28 = vrot.slane %v3244_v24, 1  ;;  %v560_v29 = vrot.slane %v3246_v25, 1  ;;  %v3257_v30 = vld [vmem:[#allocation2 + $0x48] sm:$0xff]  ;;  %432 = vst.msk [vmem:[#allocation2 + $0xb1] sm:$0xff] %vm372_vm0, %v353_v18  ;;  %v562_v35 = vrot.slane %v3253_v27, 1  ;;  %v3265_v36 = vld [vmem:[#allocation2 + $0x50] sm:$0xff] }
  0x2e   : > { %2366 = vrot.lane.b32.xlu0 %v2365_v40, %s3047_s29  ;;  %v566_v33 = vsel %vm553_vm3, %v564_v21, %v565_v22  ;;  %v568_v34 = vsel %vm553_vm3, %v565_v22, %v567_v23  ;;  %v3267_v37 = vld [vmem:[#allocation2 + $0x58] sm:$0x3]  ;;  %v569_v38 = vrot.slane %v3257_v30, 1  ;;  %v570_v41 = vrot.slane %v3265_v36, 1  ;;  %v3286_v51 = vld [vmem:[#allocation2 + $0x60] sm:$0xff]  ;;  %v3288_v52 = vld [vmem:[#allocation2 + $0x68] sm:$0xff] }
  0x2f   : > { %v3270_v39 = vpack.i.bf16 %v568_v34, %v566_v33  ;;  %v561_v40 = vsel %vm553_vm3, %v559_v28, %v560_v29  ;;  %v572_v42 = vrot.slane %v3267_v37, 1  ;;  %v563_v43 = vsel %vm553_vm3, %v560_v29, %v562_v35  ;;  %v3290_v53 = vld [vmem:[#allocation2 + $0x70] sm:$0x3]  ;;  %v3298_v59 = vld [vmem:[#allocation2 + $0x78] sm:$0xff]  ;;  %v3300_v60 = vld [vmem:[#allocation2 + $0x80] sm:$0xff] }
  0x30   : > { %v3282_v48 = vpack.i.bf16 %v563_v43, %v561_v40  ;;  %v571_v49 = vsel %vm553_vm3, %v569_v38, %v570_v41  ;;  %v574_v56 = vrot.slane %v3286_v51, 1  ;;  %v575_v57 = vrot.slane %v3288_v52, 1  ;;  %v3302_v61 = vld [vmem:[#allocation2 + $0x90] sm:$0xff]  ;;  %v3308_v62 = vld [vmem:[#allocation2 + $0x88] sm:$0x3]  ;;  %v3312_v3 = vld [vmem:[#allocation2 + $0x98] sm:$0xff] }
  0x31   : > { %4588 = vst [vmem:[#allocation7_spill] sm:$0xff] %v3270_v39  ;;  %2376 = vrot.lane.b32.xlu1 %v3270_v39, %s3047_s29  ;;  %v573_v50 = vsel %vm553_vm3, %v570_v41, %v572_v42  ;;  %v577_v58 = vrot.slane %v3290_v53, 1  ;;  %v579_v63 = vrot.slane %v3298_v59, 1  ;;  %v580_v0 = vrot.slane %v3300_v60, 1  ;;  %v3319_v9 = vld [vmem:[#allocation2 + $0xa0] sm:$0x3] }
  0x32   : > { %4589 = vst [vmem:[#allocation8_spill] sm:$0xff] %v3282_v48  ;;  %v3293_v55 = vpack.i.bf16 %v573_v50, %v571_v49  ;;  %2371 = vrot.lane.b32.xlu0 %v3282_v48, %s3047_s29  ;;  %v584_v4 = vrot.slane %v3302_v61, 1  ;;  %v576_v6 = vsel %vm553_vm3, %v574_v56, %v575_v57  ;;  %v582_v8 = vrot.slane %v3308_v62, 1  ;;  %v3322_v11 = vld [vmem:[#allocation2 + $0xa8] sm:$0xff]  ;;  %v244_v33 = vld [vmem:[%s3154_s26 + $0xa0] sm:$0xff]  ;;  %v247_v49 = vld [vmem:[%s3154_s26 + $0xb8] sm:$0xff] }
  0x33   : > { %v578_v7 = vsel %vm553_vm3, %v575_v57, %v577_v58  ;;  %v585_v10 = vrot.slane %v3312_v3, 1  ;;  %v581_v20 = vsel %vm553_vm3, %v579_v63, %v580_v0  ;;  %v587_v21 = vrot.slane %v3319_v9, 1  ;;  %v245_v34 = vld [vmem:[%s3154_s26 + $0xa8] sm:$0xff]  ;;  %v248_v50 = vld [vmem:[%s3154_s26 + $0xc0] sm:$0xff] }
  0x34   : > { %4590 = vst [vmem:[#allocation9_spill] sm:$0xff] %v3293_v55  ;;  %v3324_v18 = vld [vmem:[#allocation2 + $0xb0] sm:$0xff]  ;;  %v3328_v19 = vpack.i.bf16 %v578_v7, %v576_v6  ;;  %v3332_v22 = vld [vmem:[#allocation2 + $0xb8] sm:$0x3]  ;;  %v589_v23 = vrot.slane %v3322_v11, 1  ;;  %v583_v28 = vsel %vm553_vm3, %v580_v0, %v582_v8  ;;  %v356_v40 = vmax.f32 %v3277_v46, 0.0 }
  0x35   : > { %2381 = vrot.lane.b32.xlu1 %v3293_v55, %s3047_s29  ;;  %v586_v29 = vsel %vm553_vm3, %v584_v4, %v585_v10  ;;  %v590_v31 = vrot.slane %v3324_v18, 1  ;;  %v592_v32 = vrot.slane %v3332_v22, 1  ;;  %v3343_v35 = vpack.i.bf16 %v583_v28, %v581_v20  ;;  %v3360_v57 = vld [vmem:[#allocation2 + $0xc0] sm:$0xff]  ;;  %v3362_v46 = vld [vmem:[#allocation2 + $0xc8] sm:$0xff] }
  0x36   : > { %4591 = vst [vmem:[#allocation10_spill] sm:$0xff] %v3328_v19  ;;  %2386 = vrot.lane.b32.xlu0 %v3328_v19, %s3047_s29  ;;  %v588_v38 = vsel %vm553_vm3, %v585_v10, %v587_v21  ;;  %v357_v41 = vmax.f32 %v325_v54, 0.0  ;;  %v3364_v54 = vld [vmem:[#allocation2 + $0xd0] sm:$0x3]  ;;  %435 = vst.msk [vmem:[#allocation2 + $0xd9] sm:$0xff] %vm372_vm0, %v356_v40  ;;  %v290_v58 = vmul.f32 %v3149_v1, %v244_v33  ;;  %v594_v0 = vrot.slane %v3360_v57, 1 }
  0x37   : > { %4592 = vst [vmem:[#allocation11_spill] sm:$0xff] %v3343_v35  ;;  %v3347_v42 = vpack.i.bf16 %v588_v38, %v586_v29  ;;  %v591_v43 = vsel %vm553_vm3, %v589_v23, %v590_v31  ;;  %v593_v44 = vsel %vm553_vm3, %v590_v31, %v592_v32  ;;  %v291_v63 = vmul.f32 %v3149_v1, %v245_v34  ;;  %v249_v21 = vld [vmem:[%s3154_s26 + $0xc8] sm:$0xff]  ;;  %v250_v23 = vld [vmem:[%s3154_s26 + $0xd0] sm:$0xff]  ;;  %v251_v33 = vld [vmem:[%s3154_s26 + $0xd8] sm:$0xff] }
  0x38   : > { %v3358_v56 = vpack.i.bf16 %v593_v44, %v591_v43  ;;  %436 = vst.msk [vmem:[#allocation2 + $0xe1] sm:$0xff] %vm372_vm0, %v357_v41  ;;  %v595_v4 = vrot.slane %v3362_v46, 1  ;;  %v597_v6 = vrot.slane %v3364_v54, 1  ;;  %v358_v7 = vmax.f32 %v326_v45, 0.0  ;;  %v252_v34 = vld [vmem:[%s3154_s26 + $0xe0] sm:$0xff]  ;;  %v253_v38 = vld [vmem:[%s3154_s26 + $0xe8] sm:$0xff] }
  0x39   : > { %4593 = vst [vmem:[#allocation12_spill] sm:$0xff] %v3347_v42  ;;  %2391 = vrot.lane.b32.xlu1 %v3343_v35, %s3047_s29  ;;  %v359_v8 = vmax.f32 %v327_v26, 0.0  ;;  %v328_v5 = vadd.f32 %v3159_v2, %v290_v58  ;;  %v329_v10 = vadd.f32 %v3159_v2, %v291_v63  ;;  %v292_v20 = vmul.f32 %v3149_v1, %v246_v47 }
  0x3a   : > { %4594 = vst [vmem:[#allocation13_spill] sm:$0xff] %v3358_v56  ;;  %2396 = vrot.lane.b32.xlu0 %v3347_v42, %s3047_s29  ;;  %v596_v28 = vsel %vm553_vm3, %v594_v0, %v595_v4  ;;  %v598_v29 = vsel %vm553_vm3, %v595_v4, %v597_v6  ;;  %437 = vst.msk [vmem:[#allocation2 + $0xf1] sm:$0xff] %vm372_vm0, %v358_v7  ;;  %v293_v31 = vmul.f32 %v3149_v1, %v247_v49 }
  0x3b   : > { %v294_v32 = vmul.f32 %v3149_v1, %v248_v50  ;;  %v3391_v40 = vpack.i.bf16 %v598_v29, %v596_v28  ;;  %438 = vst.msk [vmem:[#allocation2 + $0xf9] sm:$0xff] %vm372_vm0, %v359_v8  ;;  %v360_v41 = vmax.f32 %v328_v5, 0.0  ;;  %v361_v43 = vmax.f32 %v329_v10, 0.0 }
  0x3c   : > { %v330_v44 = vadd.f32 %v3159_v2, %v292_v20  ;;  %v331_v45 = vadd.f32 %v3159_v2, %v293_v31  ;;  %v295_v47 = vmul.f32 %v3149_v1, %v249_v21  ;;  %v296_v50 = vmul.f32 %v3149_v1, %v250_v23 }
  0x3d   : > { %2401 = vrot.lane.b32.xlu1 %v3358_v56, %s3047_s29  ;;  %4595 = vst [vmem:[#allocation14_spill] sm:$0xff] %v3391_v40  ;;  %v332_v49 = vadd.f32 %v3159_v2, %v294_v32  ;;  %439 = vst.msk [vmem:[#allocation2 + $0x109] sm:$0xff] %vm372_vm0, %v360_v41  ;;  %v297_v58 = vmul.f32 %v3149_v1, %v251_v33  ;;  %v298_v63 = vmul.f32 %v3149_v1, %v252_v34  ;;  %v3406_v4 = vld [vmem:[#allocation2 + $0xd8] sm:$0xff] }
  0x3e   : > { %2406 = vrot.lane.b32.xlu0 %v3391_v40, %s3047_s29  ;;  %440 = vst.msk [vmem:[#allocation2 + $0x111] sm:$0xff] %vm372_vm0, %v361_v43  ;;  %v362_v26 = vmax.f32 %v330_v44, 0.0  ;;  %v299_v0 = vmul.f32 %v3149_v1, %v253_v38  ;;  %v363_v8 = vmax.f32 %v331_v45, 0.0  ;;  %v333_v5 = vadd.f32 %v3159_v2, %v295_v47 }
  0x3f   : > { %v3408_v6 = vld [vmem:[#allocation2 + $0xe0] sm:$0xff]  ;;  %v3410_v7 = vld [vmem:[#allocation2 + $0xe8] sm:$0x3]  ;;  %v364_v10 = vmax.f32 %v332_v49, 0.0  ;;  %v334_v20 = vadd.f32 %v3159_v2, %v296_v50  ;;  %v599_v21 = vrot.slane %v3406_v4, 1  ;;  %v335_v1 = vadd.f32 %v3159_v2, %v297_v58 }
  0x40   : > { %v600_v23 = vrot.slane %v3408_v6, 1  ;;  %v602_v28 = vrot.slane %v3410_v7, 1  ;;  %441 = vst.msk [vmem:[#allocation2 + $0x121] sm:$0xff] %vm372_vm0, %v362_v26  ;;  %442 = vst.msk [vmem:[#allocation2 + $0x129] sm:$0xff] %vm372_vm0, %v363_v8  ;;  %v365_v29 = vmax.f32 %v333_v5, 0.0  ;;  %v336_v32 = vadd.f32 %v3159_v2, %v298_v63 }
  0x41   : > { %443 = vst.msk [vmem:[#allocation2 + $0x139] sm:$0xff] %vm372_vm0, %v364_v10  ;;  %v366_v31 = vmax.f32 %v334_v20, 0.0  ;;  %v337_v33 = vadd.f32 %v3159_v2, %v299_v0  ;;  %v3425_v41 = vld [vmem:[#allocation2 + $0xf0] sm:$0xff]  ;;  %v367_v43 = vmax.f32 %v335_v1, 0.0  ;;  %v635_v20 = vrot.slane %v3175_v16, 2 }
  0x42   : > { %v601_v34 = vsel %vm553_vm3, %v599_v21, %v600_v23  ;;  %v603_v38 = vsel %vm553_vm3, %v600_v23, %v602_v28  ;;  %v3429_v45 = vld [vmem:[#allocation2 + $0xf8] sm:$0xff]  ;;  %v3431_v47 = vld [vmem:[#allocation2 + $0x100] sm:$0x3]  ;;  %v604_v49 = vrot.slane %v3425_v41, 1  ;;  %444 = vst.msk [vmem:[#allocation2 + $0x141] sm:$0xff] %vm372_vm0, %v365_v29  ;;  %v368_v2 = vmax.f32 %v336_v32, 0.0 }
  0x43   : > { %v3427_v44 = vpack.i.bf16 %v603_v38, %v601_v34  ;;  %445 = vst.msk [vmem:[#allocation2 + $0x151] sm:$0xff] %vm372_vm0, %v366_v31  ;;  %v369_v50 = vmax.f32 %v337_v33, 0.0  ;;  %v605_v63 = vrot.slane %v3429_v45, 1  ;;  %v607_v0 = vrot.slane %v3431_v47, 1  ;;  %446 = vst.msk [vmem:[#allocation2 + $0x159] sm:$0xff] %vm372_vm0, %v367_v43 }
  0x44   : > { %v3443_v8 = vld [vmem:[#allocation2 + $0x108] sm:$0xff]  ;;  %447 = vst.msk [vmem:[#allocation2 + $0x169] sm:$0xff] %vm372_vm0, %v368_v2  ;;  %v636_v21 = vrot.slane %v3170_v12, 2  ;;  %v640_v34 = vrot.slane %v3244_v24, 2  ;;  %v641_v16 = vrot.slane %v3246_v25, 2 }
  0x45   : > { %4596 = vst [vmem:[#allocation15_spill] sm:$0xff] %v3427_v44  ;;  %2411 = vrot.lane.b32.xlu1 %v3427_v44, %s3047_s29  ;;  %v3445_v5 = vld [vmem:[#allocation2 + $0x110] sm:$0xff]  ;;  %v3447_v10 = vld [vmem:[#allocation2 + $0x118] sm:$0x3]  ;;  %448 = vst.msk [vmem:[#allocation2 + $0x171] sm:$0xff] %vm372_vm0, %v369_v50  ;;  %v606_v23 = vsel %vm553_vm3, %v604_v49, %v605_v63  ;;  %v608_v28 = vsel %vm553_vm3, %v605_v63, %v607_v0  ;;  %v609_v1 = vrot.slane %v3443_v8, 1 }
  0x46   : > { %v610_v29 = vrot.slane %v3445_v5, 1  ;;  %v3457_v31 = vpack.i.bf16 %v608_v28, %v606_v23  ;;  %v612_v32 = vrot.slane %v3447_v10, 1  ;;  %v643_v50 = vrot.slane %v3253_v27, 2 }
  0x47   : > { %v3460_v33 = vld [vmem:[#allocation2 + $0x120] sm:$0xff]  ;;  %v3465_v38 = vld [vmem:[#allocation2 + $0x128] sm:$0xff]  ;;  %v3467_v43 = vld [vmem:[#allocation2 + $0x130] sm:$0x3]  ;;  %v637_v27 = vsel %vm634_vm4, %v635_v20, %v636_v21 }
  0x48   : > { %4597 = vst [vmem:[#allocation16_spill] sm:$0xff] %v3457_v31  ;;  %v611_v12 = vsel %vm553_vm3, %v609_v1, %v610_v29  ;;  %v614_v49 = vrot.slane %v3460_v33, 1  ;;  %v3470_v2 = vld [vmem:[#allocation2 + $0x138] sm:$0xff]  ;;  %2416 = vrot.lane.b32.xlu0 %v3457_v31, %s3047_s29  ;;  %v613_v63 = vsel %vm553_vm3, %v610_v29, %v612_v32  ;;  %v615_v0 = vrot.slane %v3465_v38, 1 }
  0x49   : > { %v617_v23 = vrot.slane %v3467_v43, 1  ;;  %v619_v28 = vrot.slane %v3470_v2, 1  ;;  %v3479_v1 = vpack.i.bf16 %v613_v63, %v611_v12  ;;  %v3481_v58 = vld [vmem:[#allocation2 + $0x140] sm:$0xff]  ;;  %v3483_v26 = vld [vmem:[#allocation2 + $0x148] sm:$0x3]  ;;  %v645_v31 = vrot.slane %v3230_v13, 2 }
  0x4a   : > { %v3485_v44 = vld [vmem:[#allocation2 + $0x150] sm:$0xff]  ;;  %v646_v29 = vrot.slane %v3232_v14, 2  ;;  %v616_v32 = vsel %vm553_vm3, %v614_v49, %v615_v0  ;;  %v620_v56 = vrot.slane %v3481_v58, 1  ;;  %v622_v12 = vrot.slane %v3483_v26, 1  ;;  %v3494_v63 = vld [vmem:[#allocation2 + $0x158] sm:$0xff] }
  0x4b   : > { %4598 = vst [vmem:[#allocation17_spill] sm:$0xff] %v3479_v1  ;;  %v618_v40 = vsel %vm553_vm3, %v615_v0, %v617_v23  ;;  %v3496_v42 = vld [vmem:[#allocation2 + $0x160] sm:$0x3]  ;;  %2421 = vrot.lane.b32.xlu1 %v3479_v1, %s3047_s29  ;;  %v624_v35 = vrot.slane %v3485_v44, 1  ;;  %v625_v19 = vrot.slane %v3494_v63, 1  ;;  %v3505_v0 = vld [vmem:[#allocation2 + $0x168] sm:$0xff] }
  0x4c   : > { %v3500_v20 = vpack.i.bf16 %v618_v40, %v616_v32  ;;  %v627_v49 = vrot.slane %v3496_v42, 1  ;;  %v3507_v23 = vld [vmem:[#allocation2 + $0x170] sm:$0xff]  ;;  %v621_v55 = vsel %vm553_vm3, %v619_v28, %v620_v56  ;;  %v623_v39 = vsel %vm553_vm3, %v620_v56, %v622_v12  ;;  %v3511_v48 = vld [vmem:[#allocation2 + $0x178] sm:$0x3] }
  0x4d   : > { %4599 = vst [vmem:[#allocation18_spill] sm:$0xff] %v3507_v23  ;;  %v629_v1 = vrot.slane %v3505_v0, 1  ;;  %v630_v40 = vrot.slane %v3507_v23, 1  ;;  %v3517_v32 = vpack.i.bf16 %v623_v39, %v621_v55  ;;  %v626_v14 = vsel %vm553_vm3, %v624_v35, %v625_v19 }
  0x4e   : > { %2426 = vrot.lane.b32.xlu0 %v3500_v20, %s3047_s29  ;;  %v628_v13 = vsel %vm553_vm3, %v625_v19, %v627_v49  ;;  %v632_v25 = vrot.slane %v3511_v48, 1  ;;  %v4600_v12 = vrot.slane %v3177_v17, 2  ;;  %v642_v23 = vsel %vm634_vm4, %v640_v34, %v641_v16 }
  0x4f   : > { %v3522_v28 = vpack.i.bf16 %v628_v13, %v626_v14  ;;  %v631_v56 = vsel %vm553_vm3, %v629_v1, %v630_v40  ;;  %2431 = vrot.lane.b32.xlu1 %v3517_v32, %s3047_s29  ;;  %v644_v55 = vsel %vm634_vm4, %v641_v16, %v643_v50  ;;  %v650_v19 = vrot.slane %v3257_v30, 2 }
  0x50   : > { %v639_v24 = vsel %vm634_vm4, %v636_v21, %v4600_v12  ;;  %v633_v39 = vsel %vm553_vm3, %v630_v40, %v632_v25  ;;  %v651_v13 = vrot.slane %v3265_v36, 2  ;;  %v647_v35 = vsel %vm634_vm4, %v645_v31, %v646_v29 }
  0x51   : > { %v3535_v14 = vpack.i.bf16 %v633_v39, %v631_v56  ;;  %v4601_v17 = vrot.slane %v3234_v15, 2  ;;  %v653_v34 = vrot.slane %v3267_v37, 2  ;;  %v2445_v25 = vpack.i.bf16 %v639_v24, %v637_v27 }
  0x52   : > { %2436 = vrot.lane.b32.xlu0 %v3522_v28, %s3047_s29  ;;  %v655_v16 = vrot.slane %v3286_v51, 2  ;;  %v656_v50 = vrot.slane %v3288_v52, 2  ;;  %v658_v1 = vrot.slane %v3290_v53, 2  ;;  %v3549_v31 = vpack.i.bf16 %v644_v55, %v642_v23 }
  0x53   : > { %v649_v21 = vsel %vm634_vm4, %v646_v29, %v4601_v17  ;;  %2441 = vrot.lane.b32.xlu1 %v3535_v14, %s3047_s29  ;;  %v652_v29 = vsel %vm634_vm4, %v650_v19, %v651_v13  ;;  %v654_v37 = vsel %vm634_vm4, %v651_v13, %v653_v34  ;;  %v660_v49 = vrot.slane %v3298_v59, 2 }
  0x54   : > { %v3551_v15 = vpack.i.bf16 %v649_v21, %v647_v35  ;;  %v661_v24 = vrot.slane %v3300_v60, 2  ;;  %v663_v27 = vrot.slane %v3308_v62, 2  ;;  %v657_v53 = vsel %vm634_vm4, %v655_v16, %v656_v50 }
  0x55   : > { %v665_v23 = vrot.slane %v3302_v61, 2  ;;  %v666_v40 = vrot.slane %v3312_v3, 2  ;;  %v668_v56 = vrot.slane %v3319_v9, 2  ;;  %v659_v12 = vsel %vm634_vm4, %v656_v50, %v658_v1 }
  0x56   : > { %2446 = vrot.lane.b32.xlu0 %v2445_v25, %s3048_s30  ;;  %v670_v39 = vrot.slane %v3322_v11, 2  ;;  %v671_v55 = vrot.slane %v3324_v18, 2  ;;  %v673_v19 = vrot.slane %v3332_v22, 2  ;;  %v3569_v62 = vpack.i.bf16 %v654_v37, %v652_v29 }
  0x57   : > { %2451 = vrot.lane.b32.xlu1 %v3549_v31, %s3048_s30  ;;  %v662_v13 = vsel %vm634_vm4, %v660_v49, %v661_v24  ;;  %v664_v35 = vsel %vm634_vm4, %v661_v24, %v663_v27  ;;  %v675_v17 = vrot.slane %v3360_v57, 2  ;;  %v676_v9 = vrot.slane %v3362_v46, 2 }
  0x58   : > { %v3577_v21 = vpack.i.bf16 %v659_v12, %v657_v53  ;;  %v667_v22 = vsel %vm634_vm4, %v665_v23, %v666_v40  ;;  %v669_v34 = vsel %vm634_vm4, %v666_v40, %v668_v56  ;;  %v678_v25 = vrot.slane %v3364_v54, 2 }
  0x59   : > { %v672_v16 = vsel %vm634_vm4, %v670_v39, %v671_v55  ;;  %v674_v50 = vsel %vm634_vm4, %v671_v55, %v673_v19  ;;  %v3586_v1 = vpack.i.bf16 %v664_v35, %v662_v13  ;;  %v680_v29 = vrot.slane %v3406_v4, 2 }
  0x5a   : > { %2456 = vrot.lane.b32.xlu0 %v3551_v15, %s3048_s30  ;;  %v681_v37 = vrot.slane %v3408_v6, 2  ;;  %v3590_v49 = vpack.i.bf16 %v669_v34, %v667_v22  ;;  %v677_v24 = vsel %vm634_vm4, %v675_v17, %v676_v9  ;;  %v683_v27 = vrot.slane %v3410_v7, 2 }
  0x5b   : > { %2461 = vrot.lane.b32.xlu1 %v3569_v62, %s3048_s30  ;;  %v3596_v54 = vpack.i.bf16 %v674_v50, %v672_v16  ;;  %v679_v53 = vsel %vm634_vm4, %v676_v9, %v678_v25  ;;  %v685_v23 = vrot.slane %v3425_v41, 2  ;;  %v686_v40 = vrot.slane %v3429_v45, 2 }
  0x5c   : > { %v688_v56 = vrot.slane %v3431_v47, 2  ;;  %v690_v12 = vrot.slane %v3443_v8, 2  ;;  %v691_v39 = vrot.slane %v3445_v5, 2  ;;  %v693_v55 = vrot.slane %v3447_v10, 2 }
  0x5d   : > { %v682_v7 = vsel %vm634_vm4, %v680_v29, %v681_v37  ;;  %v695_v19 = vrot.slane %v3460_v33, 2  ;;  %v696_v13 = vrot.slane %v3465_v38, 2  ;;  %v698_v35 = vrot.slane %v3467_v43, 2 }
  0x5e   : > { %2466 = vrot.lane.b32.xlu0 %v3577_v21, %s3048_s30  ;;  %v684_v17 = vsel %vm634_vm4, %v681_v37, %v683_v27  ;;  %v700_v47 = vrot.slane %v3470_v2, 2  ;;  %v701_v9 = vrot.slane %v3481_v58, 2  ;;  %v703_v22 = vrot.slane %v3483_v26, 2 }
  0x5f   : > { %2471 = vrot.lane.b32.xlu1 %v3586_v1, %s3048_s30  ;;  %v3617_v10 = vpack.i.bf16 %v679_v53, %v677_v24  ;;  %v687_v34 = vsel %vm634_vm4, %v685_v23, %v686_v40  ;;  %v689_v25 = vsel %vm634_vm4, %v686_v40, %v688_v56  ;;  %v692_v16 = vsel %vm634_vm4, %v690_v12, %v691_v39 }
  0x60   : > { %v694_v43 = vsel %vm634_vm4, %v691_v39, %v693_v55  ;;  %v3625_v50 = vpack.i.bf16 %v684_v17, %v682_v7  ;;  %v697_v26 = vsel %vm634_vm4, %v695_v19, %v696_v13  ;;  %v699_v29 = vsel %vm634_vm4, %v696_v13, %v698_v35  ;;  %v4602_v7 = vld [vmem:[#allocation18_spill] sm:$0xff] }
  0x61   : > { %v702_v37 = vsel %vm634_vm4, %v700_v47, %v701_v9  ;;  %v704_v24 = vsel %vm634_vm4, %v701_v9, %v703_v22  ;;  %v3633_v27 = vpack.i.bf16 %v689_v25, %v687_v34  ;;  %v3635_v53 = vpack.i.bf16 %v694_v43, %v692_v16  ;;  %v4603_v22 = vld [vmem:[#allocation5_spill] sm:$0xff]  ;;  %v4604_v34 = vld [vmem:[#allocation6_spill] sm:$0xff]  ;;  %v4605_v16 = vld [vmem:[#allocation3_spill] sm:$0xff] }
  0x62   : > { %2476 = vrot.lane.b32.xlu0 %v3590_v49, %s3048_s30  ;;  %v705_v23 = vrot.slane %v3485_v44, 2  ;;  %v706_v40 = vrot.slane %v3494_v63, 2  ;;  %v3639_v56 = vpack.i.bf16 %v699_v29, %v697_v26  ;;  %v708_v12 = vrot.slane %v3496_v42, 2  ;;  %v4606_v43 = vld [vmem:[#allocation4_spill] sm:$0xff] }
  0x63   : > { %2481 = vrot.lane.b32.xlu1 %v3596_v54, %s3048_s30  ;;  %v3644_v39 = vpack.i.bf16 %v704_v24, %v702_v37  ;;  %v710_v55 = vrot.slane %v3505_v0, 2  ;;  %v711_v19 = vrot.slane %v4602_v7, 2  ;;  %v713_v13 = vrot.slane %v3511_v48, 2 }
  0x64   : > { %v707_v35 = vsel %vm634_vm4, %v705_v23, %v706_v40  ;;  %v709_v17 = vsel %vm634_vm4, %v706_v40, %v708_v12  ;;  %v2525_v25 = vpack.i.bf16 %v4604_v34, %v4603_v22  ;;  %v2530_v26 = vpack.i.bf16 %v4606_v43, %v4605_v16  ;;  %v3008_v40 = vld [vmem:[%s4548_s3] ss:$0 sm:$0xff]  ;;  %v4611_v34 = vld [vmem:[#allocation11_spill] sm:$0xff]  ;;  %v4612_v43 = vld [vmem:[#allocation12_spill] sm:$0xff] }
  0x65   : > { %v712_v42 = vsel %vm634_vm4, %v710_v55, %v711_v19  ;;  %v714_v47 = vsel %vm634_vm4, %v711_v19, %v713_v13  ;;  %v3659_v9 = vpack.i.bf16 %v709_v17, %v707_v35  ;;  %v2535_v29 = vpack.i.bf16 %v3265_v36, %v3257_v30  ;;  %v3005_v30 = vld [vmem:[%s4546_s1] sm:$0xff]   ;;  %v4607_v36 = vld [vmem:[#allocation8_spill] sm:$0xff] }
  0x66   : > { %2486 = vrot.lane.b32.xlu0 %v3617_v10, %s3048_s30  ;;  %v3663_v48 = vpack.i.bf16 %v714_v47, %v712_v42  ;;  %v2540_v37 = vpack.i.bf16 %v3288_v52, %v3286_v51  ;;  %v2545_v24 = vpack.i.bf16 %v3300_v60, %v3298_v59  ;;  %v3685_v23 = vpack.i.bf16 %v3312_v3, %v3302_v61  ;;  %v4608_v51 = vld [vmem:[#allocation7_spill] sm:$0xff]  ;;  %v3006_v52 = vld [vmem:[%s4546_s1 + $0x8] sm:$0xff]   ;;  %v4609_v61 = vld [vmem:[#allocation9_spill] sm:$0xff] }
  0x67   : > { %2491 = vrot.lane.b32.xlu1 %v3625_v50, %s3048_s30  ;;  %2302 = vmatprep.subr.bf16.mxu0 %v3005_v30  ;;  %v3007_v59 = vld [vmem:[%s4546_s1 + $0x10] ss:$0 sps:$4 sm:$0x33]   ;;  %v3009_v19 = vld [vmem:[%s4549_s4] ss:$0 sm:$0xff]  ;;  %v4610_v42 = vld [vmem:[#allocation10_spill] sm:$0xff] }
  0x68   : > { %2303 = vmatpush3.bf16.msra.mxu0 %v3005_v30  ;;  %2340 = vmatprep.subr.bf16.mxu1 %v3005_v30  ;;  %v1860_v60 = vsel %vm1858_vm5, %v3007_v59, 0  ;;  %v254_v3 = vld [vmem:[%s3154_s26 + $0xf0] sm:$0xff] }
  0x69   : > { %2343 = vmatpush3.bf16.msra.mxu1 %v3005_v30  ;;  %2304 = vmatprep.subr.bf16.mxu0 %v3006_v52  ;;  %v300_v12 = vmul.f32 %v3008_v40, %v254_v3 }
  0x6a   : > { %2496 = vrot.lane.b32.xlu0 %v3633_v27, %s3048_s30  ;;  %2341 = vmatprep.subr.bf16.mxu1 %v3006_v52 }
  0x6b   : > { %2501 = vrot.lane.b32.xlu1 %v3635_v53, %s3048_s30  ;;  %v338_v13 = vadd.f32 %v3009_v19, %v300_v12 }
  0x6c   : > { %2305 = vmatpush3.bf16.msra.mxu0 %v3006_v52 }
  0x6d   : > { %2344 = vmatpush3.bf16.msra.mxu1 %v3006_v52  ;;  %2346 = vmatprep.subr.msk.bf16.mxu0 %vm1858_vm5, %v3007_v59  ;;  %v370_v17 = vmax.f32 %v338_v13, 0.0  ;;  %v4616_v52 = vld [vmem:[#allocation14_spill] sm:$0xff]  ;;  %v4618_v13 = vld [vmem:[#allocation16_spill] sm:$0xff] }
  0x6e   : > { %2506 = vrot.lane.b32.xlu0 %v3639_v56, %s3048_s30  ;;  %2347 = vmatprep.subr.msk.bf16.mxu1 %vm1858_vm5, %v3007_v59  ;;  %v2740_v59 = vpack.i.bf16 %v3408_v6, %v3406_v4 }
  0x6f   : > { %2511 = vrot.lane.b32.xlu1 %v3644_v39, %s3048_s30  ;;  %449 = vst.msk [vmem:[#allocation2 + $0x181] sm:$0xff] %vm372_vm0, %v370_v17 }
  0x70   : > { %2307 = vmatpush3.bf16.msra.mxu0 %v1860_v60 }
  0x71   : > { %2345 = vmatpush3.bf16.msra.mxu1 %v1860_v60 }
  0x72   : > { %2516 = vrot.lane.b32.xlu0 %v3659_v9, %s3048_s30 }
  0x73   : > { %2521 = vrot.lane.b32.xlu1 %v3663_v48, %s3048_s30 }
  0x76   : > { %2526 = vrot.lane.b32.xlu0 %v2525_v25, %s3049_s6 }
  0x77   : > { %2531 = vrot.lane.b32.xlu1 %v2530_v26, %s3049_s6 }
  0x7a   : > { %2536 = vrot.lane.b32.xlu0 %v2535_v29, %s3049_s6 }
  0x7b   : > { %2541 = vrot.lane.b32.xlu1 %v2540_v37, %s3049_s6 }
  0x7e   : > { %2546 = vrot.lane.b32.xlu0 %v2545_v24, %s3049_s6 }
  0x7f   : > { %2551 = vrot.lane.b32.xlu1 %v3685_v23, %s3049_s6 }
  0x82   : > { %2556 = vrot.lane.b32.xlu0 %v4607_v36, %s3050_s9 }
  0x83   : > { %2561 = vrot.lane.b32.xlu1 %v4608_v51, %s3050_s9 }
  0x86   : > { %2566 = vrot.lane.b32.xlu0 %v3549_v31, %s3051_s12  ;;  %v255_v31 = vld [vmem:[%s3154_s26 + $0xf8] sm:$0xff]  ;;  %s2257_s26 = sshll.u32 %s4643_s19, 1 }
  0x87   : > { %2571 = vrot.lane.b32.xlu1 %v3551_v15, %s3051_s12  ;;  %v301_v55 = vmul.f32 %v3008_v40, %v255_v31  ;;  %v4617_v31 = vld [vmem:[#allocation15_spill] sm:$0xff]  ;;  %v2770_v40 = vpack.i.bf16 %v3429_v45, %v3425_v41  ;;  %s222_s29 = scalar_lea.vmem %s4550_s5, %s2257_s26 }
  0x89   : > { %v339_v35 = vadd.f32 %v3009_v19, %v301_v55 }
  0x8a   : > { %2576 = vrot.lane.b32.xlu0 %v2530_v26, %s3052_s15 }
  0x8b   : > { %2581 = vrot.lane.b32.xlu1 %v2535_v29, %s3052_s15 }
  0x8e   : > { %2586 = vrot.lane.b32.xlu0 %v4608_v51, %s3053_s16 }
  0x8f   : > { %2591 = vrot.lane.b32.xlu1 %v4609_v61, %s3053_s16 }
  0x92   : > { %2596 = vrot.lane.b32.xlu0 %v3551_v15, %s3054_s17  ;;  %v371_v15 = vmax.f32 %v339_v35, 0.0  ;;  %v2800_v35 = vpack.i.bf16 %v3445_v5, %v3443_v8 }
  0x93   : > { %2601 = vrot.lane.b32.xlu1 %v3569_v62, %s3054_s17 }
  0x94   : > { %450 = vst.msk [vmem:[#allocation2 + $0x189] sm:$0xff] %vm372_vm0, %v371_v15 }
  0x96   : > { %2606 = vrot.lane.b32.xlu0 %v4609_v61, %s3050_s9 }
  0x97   : > { %2611 = vrot.lane.b32.xlu1 %v4610_v42, %s3050_s9 }
  0x9a   : > { %2616 = vrot.lane.b32.xlu0 %v3569_v62, %s3051_s12 }
  0x9b   : > { %2621 = vrot.lane.b32.xlu1 %v3577_v21, %s3051_s12 }
  0x9e   : > { %2626 = vrot.lane.b32.xlu0 %v2540_v37, %s3052_s15 }
  0x9f   : > { %2631 = vrot.lane.b32.xlu1 %v2545_v24, %s3052_s15 }
  0xa0   : > { %v3736_v47 = vpop.permute.xlu0 %2366 }
  0xa2   : > { %2636 = vrot.lane.b32.xlu0 %v4610_v42, %s3053_s16 }
  0xa3   : > { %v3741_v22 = vpop.permute.xlu1 %2376  ;;  %2641 = vrot.lane.b32.xlu1 %v4611_v34, %s3053_s16 }
  0xa4   : > { %v3745_v25 = vpop.permute.xlu0 %2371 }
  0xa6   : > { %2646 = vrot.lane.b32.xlu0 %v3577_v21, %s3054_s17  ;;  %v2680_v21 = vpack.i.bf16 %v3324_v18, %v3322_v11  ;;  %v2710_v18 = vpack.i.bf16 %v3362_v46, %v3360_v57 }
  0xa7   : > { %v3749_v62 = vpop.permute.xlu1 %2381  ;;  %2651 = vrot.lane.b32.xlu1 %v3586_v1, %s3054_s17 }
  0xa8   : > { %v3753_v16 = vpop.permute.xlu0 %2386 }
  0xaa   : > { %2656 = vrot.lane.b32.xlu0 %v4611_v34, %s3050_s9 }
  0xab   : > { %2661 = vrot.lane.b32.xlu1 %v4612_v43, %s3050_s9  ;;  %v3759_v26 = vpop.permute.xlu1 %2391 }
  0xac   : > { %v3763_v29 = vpop.permute.xlu0 %2396 }
  0xae   : > { %2666 = vrot.lane.b32.xlu0 %v3586_v1, %s3051_s12  ;;  %v4613_v1 = vld [vmem:[#allocation13_spill] sm:$0xff] }
  0xaf   : > { %2671 = vrot.lane.b32.xlu1 %v3590_v49, %s3051_s12  ;;  %v3771_v37 = vpop.permute.xlu1 %2401 }
  0xb0   : > { %v3774_v24 = vpop.permute.xlu0 %2406 }
  0xb2   : > { %2676 = vrot.lane.b32.xlu0 %v3685_v23, %s3052_s15 }
  0xb3   : > { %2681 = vrot.lane.b32.xlu1 %v2680_v21, %s3052_s15 }
  0xb6   : > { %2686 = vrot.lane.b32.xlu0 %v4612_v43, %s3053_s16 }
  0xb7   : > { %2691 = vrot.lane.b32.xlu1 %v4613_v1, %s3053_s16  ;;  %v3780_v30 = vpop.permute.xlu1 %2411 }
  0xba   : > { %2696 = vrot.lane.b32.xlu0 %v3590_v49, %s3054_s17  ;;  %v3784_v11 = vpop.permute.xlu0 %2416 }
  0xbb   : > { %2701 = vrot.lane.b32.xlu1 %v3596_v54, %s3054_s17 }
  0xbd   : > { %v3791_v23 = vpop.permute.xlu1 %2421 }
  0xbe   : > { %2706 = vrot.lane.b32.xlu0 %v2680_v21, %s3049_s6 }
  0xbf   : > { %2711 = vrot.lane.b32.xlu1 %v2710_v18, %s3049_s6 }
  0xc0   : > { %v3793_v36 = vpop.permute.xlu0 %2426 }
  0xc1   : > { %4614 = vst [vmem:[#allocation18_spill] sm:$0xff] %v3793_v36  ;;  %v3798_v49 = vpop.permute.xlu1 %2431 }
  0xc2   : > { %2716 = vrot.lane.b32.xlu0 %v4613_v1, %s3050_s9  ;;  %4615 = vst [vmem:[#allocation5_spill] sm:$0xff] %v3798_v49 }
  0xc3   : > { %2721 = vrot.lane.b32.xlu1 %v4616_v52, %s3050_s9 }
  0xc4   : > { %v2437_v51 = vpop.permute.xlu0 %2436 }
  0xc5   : > { %v2442_v57 = vpop.permute.xlu1 %2441  ;;  %v2439_v17 = vunpack.i.h.bf16 %v2437_v51  ;;  %v2438_v15 = vunpack.i.l.bf16 %v2437_v51 }
  0xc6   : > { %2726 = vrot.lane.b32.xlu0 %v3596_v54, %s3051_s12  ;;  %v2444_v34 = vunpack.i.h.bf16 %v2442_v57  ;;  %v2443_v43 = vunpack.i.l.bf16 %v2442_v57 }
  0xc7   : > { %2731 = vrot.lane.b32.xlu1 %v3617_v10, %s3051_s12 }
  0xc8   : > { %v3804_v46 = vpop.permute.xlu0 %2446 }
  0xc9   : > { %v3811_v60 = vpop.permute.xlu1 %2451 }
  0xca   : > { %2736 = vrot.lane.b32.xlu0 %v2710_v18, %s3052_s15  ;;  %v1538_v18 = vsel %vm372_vm0, %v3494_v63, %v2439_v17 }
  0xcb   : > { %2741 = vrot.lane.b32.xlu1 %v2740_v59, %s3052_s15 }
  0xcc   : > { %v3813_v61 = vpop.permute.xlu0 %2456 }
  0xcd   : > { %v3818_v54 = vpop.permute.xlu1 %2461 }
  0xce   : > { %2746 = vrot.lane.b32.xlu0 %v4616_v52, %s3053_s16  ;;  %v1537_v52 = vsel %vm372_vm0, %v3485_v44, %v2438_v15  ;;  %v4624_v15 = vld [vmem:[#allocation17_spill] sm:$0xff] }
  0xcf   : > { %2751 = vrot.lane.b32.xlu1 %v4617_v31, %s3053_s16 }
  0xd0   : > { %v3820_v3 = vpop.permute.xlu0 %2466 }
  0xd1   : > { %v3826_v4 = vpop.permute.xlu1 %2471 }
  0xd2   : > { %2756 = vrot.lane.b32.xlu0 %v3617_v10, %s3054_s17 }
  0xd3   : > { %2761 = vrot.lane.b32.xlu1 %v3625_v50, %s3054_s17 }
  0xd4   : > { %v3828_v6 = vpop.permute.xlu0 %2476 }
  0xd5   : > { %v3835_v12 = vpop.permute.xlu1 %2481 }
  0xd6   : > { %2766 = vrot.lane.b32.xlu0 %v2740_v59, %s3049_s6 }
  0xd7   : > { %2771 = vrot.lane.b32.xlu1 %v2770_v40, %s3049_s6 }
  0xd8   : > { %v3837_v55 = vpop.permute.xlu0 %2486 }
  0xd9   : > { %v3842_v10 = vpop.permute.xlu1 %2491 }
  0xda   : > { %2776 = vrot.lane.b32.xlu0 %v4617_v31, %s3050_s9  ;;  %v1540_v31 = vsel %vm372_vm0, %v4602_v7, %v2444_v34 }
  0xdb   : > { %2781 = vrot.lane.b32.xlu1 %v4618_v13, %s3050_s9 }
  0xdc   : > { %v3844_v19 = vpop.permute.xlu0 %2496 }
  0xdd   : > { %v3850_v41 = vpop.permute.xlu1 %2501 }
  0xde   : > { %2786 = vrot.lane.b32.xlu0 %v3625_v50, %s3051_s12  ;;  %4619 = vst [vmem:[#allocation6_spill] sm:$0xff] %v3850_v41 }
  0xdf   : > { %2791 = vrot.lane.b32.xlu1 %v3633_v27, %s3051_s12 }
  0xe0   : > { %v3852_v45 = vpop.permute.xlu0 %2506 }
  0xe1   : > { %4620 = vst [vmem:[#allocation3_spill] sm:$0xff] %v3852_v45  ;;  %v3859_v42 = vpop.permute.xlu1 %2511  ;;  %v3013_v45 = vld [vmem:[#allocation2 + $0x18] sm:$0xff] }
  0xe2   : > { %2796 = vrot.lane.b32.xlu0 %v2770_v40, %s3052_s15  ;;  %4621 = vst [vmem:[#allocation4_spill] sm:$0xff] %v3859_v42  ;;  %v1539_v40 = vsel %vm372_vm0, %v3505_v0, %v2443_v43  ;;  %v2830_v43 = vpack.i.bf16 %v3465_v38, %v3460_v33  ;;  %v2368_v33 = vunpack.i.l.bf16 %v3736_v47  ;;  %v3012_v42 = vld [vmem:[#allocation2 + $0x20] sm:$0xff] }
  0xe3   : > { %2801 = vrot.lane.b32.xlu1 %v2800_v35, %s3052_s15 }
  0xe4   : > { %v2517_v21 = vpop.permute.xlu0 %2516 }
  0xe5   : > { %v2519_v50 = vunpack.i.h.bf16 %v2517_v21  ;;  %v2518_v1 = vunpack.i.l.bf16 %v2517_v21  ;;  %v2522_v8 = vpop.permute.xlu1 %2521 }
  0xe6   : > { %2806 = vrot.lane.b32.xlu0 %v4618_v13, %s3053_s16  ;;  %v2524_v57 = vunpack.i.h.bf16 %v2522_v8  ;;  %v2523_v59 = vunpack.i.l.bf16 %v2522_v8 }
  0xe7   : > { %v3869_v5 = vsel %vm1541_vm6, %v1537_v52, %v2518_v1  ;;  %v3872_v51 = vsel %vm1541_vm6, %v1538_v18, %v2519_v50  ;;  %2811 = vrot.lane.b32.xlu1 %v4624_v15, %s3053_s16  ;;  %v2369_v52 = vunpack.i.h.bf16 %v3736_v47  ;;  %v3930_v47 = vpack.i.bf16 %v4602_v7, %v3505_v0 }
  0xe8   : > { %4622 = vst [vmem:[#allocation8_spill] sm:$0xff] %v3869_v5  ;;  %4623 = vst [vmem:[#allocation7_spill] sm:$0xff] %v3872_v51  ;;  %v3878_v17 = vpop.permute.xlu0 %2526  ;;  %v3883_v13 = vsel %vm1541_vm6, %v1540_v31, %v2524_v57  ;;  %v3886_v21 = vsel %vm1541_vm6, %v1539_v40, %v2523_v59  ;;  %v3924_v57 = vpack.i.bf16 %v3494_v63, %v3485_v44  ;;  %v3926_v59 = vld [vmem:[#allocation2 + $0x180] sm:$0xff]  ;;  %v3010_v31 = vld [vmem:[#allocation2 + $0x8] sm:$0xff]  ;;  %v2449_v7 = vunpack.i.h.bf16 %v3804_v46 }
  0xe9   : > { %4625 = vst [vmem:[#allocation9_spill] sm:$0xff] %v3883_v13  ;;  %4626 = vst [vmem:[#allocation10_spill] sm:$0xff] %v3886_v21  ;;  %v3890_v50 = vpop.permute.xlu1 %2531  ;;  %v1510_v40 = vsel %vm372_vm0, %v3010_v31, %v2369_v52  ;;  %v3939_v44 = vld [vmem:[#allocation2 + $0x188] sm:$0xff]  ;;  %v3011_v63 = vld [vmem:[#allocation2] sm:$0xff]  ;;  %v2448_v52 = vunpack.i.l.bf16 %v3804_v46  ;;  %v2453_v13 = vunpack.i.l.bf16 %v3811_v60  ;;  %v2529_v21 = vunpack.i.h.bf16 %v3878_v17 }
  0xea   : > { %2816 = vrot.lane.b32.xlu0 %v3633_v27, %s3054_s17  ;;  %v1509_v0 = vsel %vm372_vm0, %v3011_v63, %v2368_v33  ;;  %v2528_v51 = vunpack.i.l.bf16 %v3878_v17  ;;  %v2534_v17 = vunpack.i.h.bf16 %v3890_v50  ;;  %v1543_v63 = vsel %vm1541_vm6, %v1510_v40, %v2449_v7 }
  0xeb   : > { %2821 = vrot.lane.b32.xlu1 %v3635_v53, %s3054_s17  ;;  %v1542_v33 = vsel %vm1541_vm6, %v1509_v0, %v2448_v52 }
  0xec   : > { %v3892_v34 = vpop.permute.xlu0 %2536 }
  0xed   : > { %v3899_v1 = vpop.permute.xlu1 %2541 }
  0xee   : > { %2826 = vrot.lane.b32.xlu0 %v2800_v35, %s3049_s6  ;;  %v3920_v35 = vpack.i.bf16 %v3481_v58, %v3470_v2  ;;  %v3941_v2 = vld [vmem:[#allocation2 + $0x190] sm:$0x3] }
  0xef   : > { %2831 = vrot.lane.b32.xlu1 %v2830_v43, %s3049_s6 }
  0xf0   : > { %v3901_v18 = vpop.permute.xlu0 %2546 }
  0xf1   : > { %v3906_v27 = vpop.permute.xlu1 %2551 }
  0xf2   : > { %2836 = vrot.lane.b32.xlu0 %v4624_v15, %s3050_s9  ;;  %v2373_v15 = vunpack.i.l.bf16 %v3745_v25 }
  0xf3   : > { %2841 = vrot.lane.b32.xlu1 %v3500_v20, %s3050_s9 }
  0xf4   : > { %v3909_v8 = vpop.permute.xlu0 %2556  ;;  %v1511_v49 = vsel %vm372_vm0, %v3013_v45, %v2373_v15  ;;  %v1575_v15 = vsel %vm1574_vm7, %v1542_v33, %v2528_v51 }
  0xf5   : > { %v3916_v38 = vpop.permute.xlu1 %2561  ;;  %v2559_v31 = vunpack.i.h.bf16 %v3909_v8 }
  0xf6   : > { %2846 = vrot.lane.b32.xlu0 %v3635_v53, %s3051_s12  ;;  %v2374_v53 = vunpack.i.h.bf16 %v3745_v25  ;;  %v2454_v25 = vunpack.i.h.bf16 %v3811_v60  ;;  %v2564_v40 = vunpack.i.h.bf16 %v3916_v38  ;;  %v2563_v0 = vunpack.i.l.bf16 %v3916_v38 }
  0xf7   : > { %2851 = vrot.lane.b32.xlu1 %v3639_v56, %s3051_s12 }
  0xf8   : > { %v3935_v58 = vpop.permute.xlu0 %2566  ;;  %v1512_v60 = vsel %vm372_vm0, %v3012_v42, %v2374_v53  ;;  %v2558_v42 = vunpack.i.l.bf16 %v3909_v8  ;;  %v1544_v53 = vsel %vm1541_vm6, %v1511_v49, %v2453_v13 }
  0xf9   : > { %v2572_v5 = vpop.permute.xlu1 %2571  ;;  %v1545_v45 = vsel %vm1541_vm6, %v1512_v60, %v2454_v25  ;;  %v2569_v7 = vunpack.i.h.bf16 %v3935_v58  ;;  %v2568_v8 = vunpack.i.l.bf16 %v3935_v58 }
  0xfa   : > { %2856 = vrot.lane.b32.xlu0 %v2830_v43, %s3052_s15  ;;  %v2533_v43 = vunpack.i.l.bf16 %v3890_v50  ;;  %v1576_v50 = vsel %vm1574_vm7, %v1543_v63, %v2529_v21  ;;  %v1578_v13 = vsel %vm1574_vm7, %v1545_v45, %v2534_v17  ;;  %v2574_v51 = vunpack.i.h.bf16 %v2572_v5 }
  0xfb   : > { %2861 = vrot.lane.b32.xlu1 %v3920_v35, %s3052_s15  ;;  %v2573_v52 = vunpack.i.l.bf16 %v2572_v5  ;;  %v1609_v25 = vsel %vm1607_vm8, %v1576_v50, %v2559_v31 }
  0xfc   : > { %v2577_v36 = vpop.permute.xlu0 %2576  ;;  %v1577_v49 = vsel %vm1574_vm7, %v1544_v53, %v2533_v43  ;;  %v1611_v43 = vsel %vm1607_vm8, %v1578_v13, %v2564_v40 }
  0xfd   : > { %v2582_v46 = vpop.permute.xlu1 %2581  ;;  %v2579_v38 = vunpack.i.h.bf16 %v2577_v36  ;;  %v2578_v33 = vunpack.i.l.bf16 %v2577_v36  ;;  %v1610_v5 = vsel %vm1607_vm8, %v1577_v49, %v2563_v0  ;;  %v1644_v36 = vsel %vm1640_vm9, %v1611_v43, %v2574_v51 }
  0xfe   : > { %2866 = vrot.lane.b32.xlu0 %v3500_v20, %s3053_s16  ;;  %v1608_v20 = vsel %vm1607_vm8, %v1575_v15, %v2558_v42  ;;  %v2584_v63 = vunpack.i.h.bf16 %v2582_v46  ;;  %v2583_v60 = vunpack.i.l.bf16 %v2582_v46  ;;  %v1642_v42 = vsel %vm1640_vm9, %v1609_v25, %v2569_v7 }
  0xff   : > { %2871 = vrot.lane.b32.xlu1 %v3517_v32, %s3053_s16  ;;  %v1641_v53 = vsel %vm1640_vm9, %v1608_v20, %v2568_v8  ;;  %v1643_v31 = vsel %vm1640_vm9, %v1610_v5, %v2573_v52  ;;  %v1675_v50 = vsel %vm1673_vm10, %v1642_v42, %v2579_v38  ;;  %v726_v5 = vrot.slane %v3941_v2, 2 }
 0x100   : > { %v2587_v21 = vpop.permute.xlu0 %2586  ;;  %v1676_v8 = vsel %vm1673_vm10, %v1643_v31, %v2583_v60  ;;  %v1677_v7 = vsel %vm1673_vm10, %v1644_v36, %v2584_v63  ;;  %v4020_v42 = vpack.i.bf16 %v3939_v44, %v3926_v59  ;;  %v2384_v31 = vunpack.i.h.bf16 %v3749_v62 }
 0x101   : > { %v2589_v58 = vunpack.i.h.bf16 %v2587_v21  ;;  %v2588_v41 = vunpack.i.l.bf16 %v2587_v21  ;;  %v2592_v17 = vpop.permute.xlu1 %2591  ;;  %v2383_v36 = vunpack.i.l.bf16 %v3749_v62  ;;  %v4631_v62 = vrot.slane %v3941_v2, 1 }
 0x102   : > { %2876 = vrot.lane.b32.xlu0 %v3639_v56, %s3054_s17  ;;  %v2594_v45 = vunpack.i.h.bf16 %v2592_v17  ;;  %v2593_v46 = vunpack.i.l.bf16 %v2592_v17  ;;  %v1674_v56 = vsel %vm1673_vm10, %v1641_v53, %v2578_v33  ;;  %v724_v17 = vrot.slane %v3939_v44, 2 }
 0x103   : > { %2881 = vrot.lane.b32.xlu1 %v3644_v39, %s3054_s17  ;;  %v1707_v13 = vsel %vm1706_vm11, %v1674_v56, %v2588_v41  ;;  %v1708_v51 = vsel %vm1706_vm11, %v1675_v50, %v2589_v58  ;;  %v723_v41 = vrot.slane %v3926_v59, 2  ;;  %v4629_v56 = vunpack.i.h.bf16 %v3741_v22 }
 0x104   : > { %v2597_v15 = vpop.permute.xlu0 %2596  ;;  %v1709_v38 = vsel %vm1706_vm11, %v1676_v8, %v2593_v46  ;;  %v1710_v33 = vsel %vm1706_vm11, %v1677_v7, %v2594_v45  ;;  %v4627_v45 = vrot.slane %v3939_v44, 1  ;;  %v4628_v46 = vrot.slane %v3926_v59, 1 }
 0x105   : > { %v2599_v0 = vunpack.i.h.bf16 %v2597_v15  ;;  %v2598_v40 = vunpack.i.l.bf16 %v2597_v15  ;;  %v2602_v49 = vpop.permute.xlu1 %2601  ;;  %v2464_v2 = vunpack.i.h.bf16 %v3818_v54  ;;  %v2463_v44 = vunpack.i.l.bf16 %v3818_v54 }
 0x106   : > { %2886 = vrot.lane.b32.xlu0 %v3920_v35, %s3049_s6  ;;  %v2604_v52 = vunpack.i.h.bf16 %v2602_v49  ;;  %v2603_v21 = vunpack.i.l.bf16 %v2602_v49  ;;  %v4029_v15 = vsel %vm553_vm3, %v4628_v46, %v4627_v45  ;;  %v4632_v59 = vmov %v4627_v45 }
 0x107   : > { %v1740_v20 = vsel %vm1739_vm12, %v1707_v13, %v2598_v40  ;;  %v1741_v25 = vsel %vm1739_vm12, %v1708_v51, %v2599_v0  ;;  %2891 = vrot.lane.b32.xlu1 %v3924_v57, %s3049_s6  ;;  %v3015_v0 = vld [vmem:[#allocation2 + $0x30] sm:$0xff]  ;;  %v4630_v40 = vunpack.i.l.bf16 %v3741_v22  ;;  %v4047_v49 = vsel %vm553_vm3, %v4632_v59, %v4631_v62 }
 0x108   : > { %v4004_v60 = vpop.permute.xlu0 %2606  ;;  %v1772_v35 = vpack.c.bf16 %v1741_v25, %v1740_v20  ;;  %v1742_v63 = vsel %vm1739_vm12, %v1709_v38, %v2603_v21  ;;  %v1743_v58 = vsel %vm1739_vm12, %v1710_v33, %v2604_v52  ;;  %v2459_v13 = vunpack.i.h.bf16 %v3813_v61  ;;  %v4057_v21 = vld [vmem:[#allocation2 + $0x198] sm:$0xff]  ;;  %v4059_v20 = vld [vmem:[#allocation2 + $0x1a0] sm:$0xff]  ;;  %v3016_v33 = vld [vmem:[#allocation2 + $0x50] sm:$0xff] }
 0x109   : > { %v1773_v43 = vpack.c.bf16 %v1743_v58, %v1742_v63  ;;  %v4016_v53 = vpop.permute.xlu1 %2611  ;;  %v1513_v8 = vsel %vm372_vm0, %v3015_v0, %v4630_v40  ;;  %v2458_v22 = vunpack.i.l.bf16 %v3813_v61  ;;  %v4052_v51 = vsel %vm634_vm4, %v723_v41, %v724_v17  ;;  %v3017_v41 = vld [vmem:[#allocation2 + $0x48] sm:$0xff] }
 0x10a   : > { %2896 = vrot.lane.b32.xlu0 %v3517_v32, %s3050_s9  ;;  %2308 = vmatprep.mubr.msk.bf16.mxu0 %vm1809_vm13, %v1772_v35  ;;  %v3014_v32 = vld [vmem:[#allocation2 + $0x38] sm:$0xff]  ;;  %v4055_v52 = vsel %vm634_vm4, %v724_v17, %v726_v5  ;;  %v2539_v25 = vunpack.i.h.bf16 %v3892_v34  ;;  %v2538_v38 = vunpack.i.l.bf16 %v3892_v34  ;;  %v1516_v35 = vsel %vm372_vm0, %v3016_v33, %v2384_v31 }
 0x10b   : > { %v1514_v50 = vsel %vm372_vm0, %v3014_v32, %v4629_v56  ;;  %2901 = vrot.lane.b32.xlu1 %v3522_v28, %s3050_s9  ;;  %2309 = vmatmul.mubr.msk.bf16.vlgmr.msra.gmra.mrb[0].mxu0 %vm1809_vm13, %v1773_v43  ;;  %v1515_v63 = vsel %vm372_vm0, %v3017_v41, %v2383_v36  ;;  %v2389_v58 = vunpack.i.h.bf16 %v3753_v16  ;;  %v2388_v17 = vunpack.i.l.bf16 %v3753_v16 }
 0x10c   : > { %v4037_v7 = vpop.permute.xlu0 %2616  ;;  %v2544_v54 = vunpack.i.h.bf16 %v3899_v1  ;;  %v2543_v5 = vunpack.i.l.bf16 %v3899_v1  ;;  %v731_v34 = vrot.slane %v4057_v21, 1  ;;  %v1547_v31 = vsel %vm1541_vm6, %v1514_v50, %v2459_v13 }
 0x10d   : > { %v2622_v61 = vpop.permute.xlu1 %2621  ;;  %v1546_v36 = vsel %vm1541_vm6, %v1513_v8, %v2458_v22  ;;  %v2609_v45 = vunpack.i.h.bf16 %v4004_v60  ;;  %v2608_v46 = vunpack.i.l.bf16 %v4004_v60  ;;  %v1549_v32 = vsel %vm1541_vm6, %v1516_v35, %v2464_v2 }
 0x10e   : > { %2906 = vrot.lane.b32.xlu0 %v3644_v39, %s3051_s12  ;;  %v732_v39 = vrot.slane %v4059_v20, 1  ;;  %v1548_v1 = vsel %vm1541_vm6, %v1515_v63, %v2463_v44  ;;  %v1579_v56 = vsel %vm1574_vm7, %v1546_v36, %v2538_v38  ;;  %v1580_v0 = vsel %vm1574_vm7, %v1547_v31, %v2539_v25 }
 0x10f   : > { %2911 = vrot.lane.b32.xlu1 %v3659_v9, %s3051_s12  ;;  %v2614_v50 = vunpack.i.h.bf16 %v4016_v53  ;;  %v2613_v8 = vunpack.i.l.bf16 %v4016_v53  ;;  %v2619_v62 = vunpack.i.h.bf16 %v4037_v7  ;;  %v2618_v60 = vunpack.i.l.bf16 %v4037_v7 }
 0x110   : > { %v2627_v43 = vpop.permute.xlu0 %2626  ;;  %v1581_v59 = vsel %vm1574_vm7, %v1548_v1, %v2543_v5  ;;  %v1582_v13 = vsel %vm1574_vm7, %v1549_v32, %v2544_v54  ;;  %v2624_v22 = vunpack.i.h.bf16 %v2622_v61  ;;  %v2623_v2 = vunpack.i.l.bf16 %v2622_v61 }
 0x111   : > { %v2632_v40 = vpop.permute.xlu1 %2631  ;;  %v1613_v25 = vsel %vm1607_vm8, %v1580_v0, %v2609_v45  ;;  %v2629_v38 = vunpack.i.h.bf16 %v2627_v43  ;;  %v2628_v53 = vunpack.i.l.bf16 %v2627_v43  ;;  %v1614_v61 = vsel %vm1607_vm8, %v1581_v59, %v2613_v8 }
 0x112   : > { %2916 = vrot.lane.b32.xlu0 %v3924_v57, %s3052_s15  ;;  %v1612_v57 = vsel %vm1607_vm8, %v1579_v56, %v2608_v46  ;;  %v2634_v33 = vunpack.i.h.bf16 %v2632_v40  ;;  %v2633_v35 = vunpack.i.l.bf16 %v2632_v40  ;;  %v1615_v54 = vsel %vm1607_vm8, %v1582_v13, %v2614_v50  ;;  %v504_v40 = vld [vmem:[#allocation2 + $0x1a8] sm:$0x3] }
 0x113   : > { %2921 = vrot.lane.b32.xlu1 %v3930_v47, %s3052_s15  ;;  %v1645_v5 = vsel %vm1640_vm9, %v1612_v57, %v2618_v60  ;;  %v1646_v31 = vsel %vm1640_vm9, %v1613_v25, %v2619_v62  ;;  %v1647_v36 = vsel %vm1640_vm9, %v1614_v61, %v2623_v2  ;;  %v1648_v43 = vsel %vm1640_vm9, %v1615_v54, %v2624_v22 }
 0x114   : > { %v2637_v44 = vpop.permute.xlu0 %2636  ;;  %v1679_v1 = vsel %vm1673_vm10, %v1646_v31, %v2629_v38  ;;  %v1680_v50 = vsel %vm1673_vm10, %v1647_v36, %v2633_v35  ;;  %v1681_v8 = vsel %vm1673_vm10, %v1648_v43, %v2634_v33  ;;  %v734_v33 = vrot.slane %v504_v40, 1  ;;  %v3019_v31 = vld [vmem:[#allocation2 + $0x60] sm:$0xff] }
 0x115   : > { %v2639_v41 = vunpack.i.h.bf16 %v2637_v44  ;;  %v2638_v7 = vunpack.i.l.bf16 %v2637_v44  ;;  %v2642_v63 = vpop.permute.xlu1 %2641  ;;  %v737_v36 = vrot.slane %v4059_v20, 2  ;;  %v4156_v16 = vsel %vm553_vm3, %v731_v34, %v732_v39 }
 0x116   : > { %2926 = vrot.lane.b32.xlu0 %v3522_v28, %s3053_s16  ;;  %v2644_v45 = vunpack.i.h.bf16 %v2642_v63  ;;  %v2643_v46 = vunpack.i.l.bf16 %v2642_v63  ;;  %v1678_v28 = vsel %vm1673_vm10, %v1645_v5, %v2628_v53  ;;  %v4139_v5 = vpack.i.bf16 %v4055_v52, %v4052_v51 }
 0x117   : > { %2931 = vrot.lane.b32.xlu1 %v3535_v14, %s3053_s16  ;;  %v1711_v62 = vsel %vm1706_vm11, %v1678_v28, %v2638_v7  ;;  %v1712_v60 = vsel %vm1706_vm11, %v1679_v1, %v2639_v41  ;;  %v4127_v41 = vpack.i.bf16 %v4047_v49, %v4029_v15  ;;  %v3018_v7 = vld [vmem:[#allocation2 + $0x68] sm:$0xff]  ;;  %v1517_v15 = vsel %vm372_vm0, %v3019_v31, %v2388_v17  ;;  %v3020_v1 = vld [vmem:[#allocation2 + $0x80] sm:$0xff] }
 0x118   : > { %v2647_v32 = vpop.permute.xlu0 %2646  ;;  %v1713_v57 = vsel %vm1706_vm11, %v1680_v50, %v2643_v46  ;;  %v1714_v25 = vsel %vm1706_vm11, %v1681_v8, %v2644_v45  ;;  %v1518_v63 = vsel %vm372_vm0, %v3018_v7, %v2389_v58  ;;  %v2394_v49 = vunpack.i.h.bf16 %v3759_v26 }
 0x119   : > { %v2649_v56 = vunpack.i.h.bf16 %v2647_v32  ;;  %v2648_v0 = vunpack.i.l.bf16 %v2647_v32  ;;  %v2652_v59 = vpop.permute.xlu1 %2651  ;;  %v2393_v58 = vunpack.i.l.bf16 %v3759_v26  ;;  %v736_v51 = vrot.slane %v4057_v21, 2 }
 0x11a   : > { %2936 = vrot.lane.b32.xlu0 %v3659_v9, %s3054_s17  ;;  %v2654_v2 = vunpack.i.h.bf16 %v2652_v59  ;;  %v2653_v44 = vunpack.i.l.bf16 %v2652_v59  ;;  %v4161_v26 = vsel %vm553_vm3, %v732_v39, %v734_v33  ;;  %v739_v52 = vrot.slane %v504_v40, 2 }
 0x11b   : > { %v1744_v13 = vsel %vm1739_vm12, %v1711_v62, %v2648_v0  ;;  %v1745_v22 = vsel %vm1739_vm12, %v1712_v60, %v2649_v56  ;;  %2941 = vrot.lane.b32.xlu1 %v3663_v48, %s3054_s17  ;;  %v2469_v17 = vunpack.i.h.bf16 %v3820_v3  ;;  %v2468_v43 = vunpack.i.l.bf16 %v3820_v3  ;;  %v3021_v0 = vld [vmem:[#allocation2 + $0x78] sm:$0xff] }
 0x11c   : > { %v1774_v38 = vpack.c.bf16 %v1745_v22, %v1744_v13  ;;  %v4119_v53 = vpop.permute.xlu0 %2656  ;;  %v1746_v9 = vsel %vm1739_vm12, %v1713_v57, %v2653_v44  ;;  %v1747_v35 = vsel %vm1739_vm12, %v1714_v25, %v2654_v2  ;;  %v2980_v45 = vpack.i.bf16 %v4059_v20, %v4057_v21 }
 0x11d   : > { %v1775_v61 = vpack.c.bf16 %v1747_v35, %v1746_v9  ;;  %v4135_v54 = vpop.permute.xlu1 %2661  ;;  %v2474_v46 = vunpack.i.h.bf16 %v3826_v4  ;;  %v2473_v32 = vunpack.i.l.bf16 %v3826_v4  ;;  %v2549_v34 = vunpack.i.h.bf16 %v3901_v18 }
 0x11e   : > { %2946 = vrot.lane.b32.xlu0 %v3930_v47, %s3049_s6  ;;  %2312 = vmatprep.mubr.msk.bf16.mxu0 %vm1809_vm13, %v1774_v38  ;;  %v2548_v28 = vunpack.i.l.bf16 %v3901_v18  ;;  %v1520_v56 = vsel %vm372_vm0, %v3020_v1, %v2394_v49  ;;  %v1519_v3 = vsel %vm372_vm0, %v3021_v0, %v2393_v58  ;;  %v2990_v21 = vpack.i.bf16 %v4161_v26, %v4156_v16 }
 0x11f   : > { %2951 = vrot.lane.b32.xlu1 %v4020_v42, %s3049_s6  ;;  %2313 = vmatmul.mubr.msk.bf16.gmra.mrb[4].mxu0 %vm1809_vm13, %v1775_v61  ;;  %v2554_v20 = vunpack.i.h.bf16 %v3906_v27  ;;  %v2553_v4 = vunpack.i.l.bf16 %v3906_v27  ;;  %v4185_v18 = vsel %vm634_vm4, %v737_v36, %v739_v52  ;;  %v1550_v50 = vsel %vm1541_vm6, %v1517_v15, %v2468_v43 }
 0x120   : > { %v2667_v47 = vpop.permute.xlu0 %2666  ;;  %v1551_v8 = vsel %vm1541_vm6, %v1518_v63, %v2469_v17  ;;  %v2659_v62 = vunpack.i.h.bf16 %v4119_v53  ;;  %v2658_v60 = vunpack.i.l.bf16 %v4119_v53  ;;  %v1553_v27 = vsel %vm1541_vm6, %v1520_v56, %v2474_v46 }
 0x121   : > { %v2672_v39 = vpop.permute.xlu1 %2671  ;;  %v1552_v59 = vsel %vm1541_vm6, %v1519_v3, %v2473_v32  ;;  %v1583_v13 = vsel %vm1574_vm7, %v1550_v50, %v2548_v28  ;;  %v1584_v22 = vsel %vm1574_vm7, %v1551_v8, %v2549_v34  ;;  %v2664_v44 = vunpack.i.h.bf16 %v4135_v54 }
 0x122   : > { %2956 = vrot.lane.b32.xlu0 %v3535_v14, %s3050_s9  ;;  %v4182_v14 = vsel %vm634_vm4, %v736_v51, %v737_v36  ;;  %v2663_v57 = vunpack.i.l.bf16 %v4135_v54  ;;  %v2669_v25 = vunpack.i.h.bf16 %v2667_v47  ;;  %v2668_v38 = vunpack.i.l.bf16 %v2667_v47 }
 0x123   : > { %2961 = vrot.lane.b32.xlu1 %v4127_v41, %s3050_s9  ;;  %v1585_v53 = vsel %vm1574_vm7, %v1552_v59, %v2553_v4  ;;  %v1586_v33 = vsel %vm1574_vm7, %v1553_v27, %v2554_v20  ;;  %v2674_v9 = vunpack.i.h.bf16 %v2672_v39  ;;  %v2673_v35 = vunpack.i.l.bf16 %v2672_v39 }
 0x124   : > { %v2677_v40 = vpop.permute.xlu0 %2676  ;;  %v1616_v63 = vsel %vm1607_vm8, %v1583_v13, %v2658_v60  ;;  %v1618_v47 = vsel %vm1607_vm8, %v1585_v53, %v2663_v57  ;;  %v1619_v51 = vsel %vm1607_vm8, %v1586_v33, %v2664_v44  ;;  %v2399_v26 = vunpack.i.h.bf16 %v3763_v29 }
 0x125   : > { %v2682_v2 = vpop.permute.xlu1 %2681  ;;  %v2679_v61 = vunpack.i.h.bf16 %v2677_v40  ;;  %v2678_v31 = vunpack.i.l.bf16 %v2677_v40  ;;  %v1649_v52 = vsel %vm1640_vm9, %v1616_v63, %v2668_v38  ;;  %v1651_v43 = vsel %vm1640_vm9, %v1618_v47, %v2673_v35 }
 0x126   : > { %2966 = vrot.lane.b32.xlu0 %v3663_v48, %s3051_s12  ;;  %v1617_v48 = vsel %vm1607_vm8, %v1584_v22, %v2659_v62  ;;  %v2684_v15 = vunpack.i.h.bf16 %v2682_v2  ;;  %v2683_v54 = vunpack.i.l.bf16 %v2682_v2  ;;  %v1652_v46 = vsel %vm1640_vm9, %v1619_v51, %v2674_v9 }
 0x127   : > { %2971 = vrot.lane.b32.xlu1 %v4139_v5, %s3051_s12  ;;  %v1650_v17 = vsel %vm1640_vm9, %v1617_v48, %v2669_v25  ;;  %v2478_v53 = vunpack.i.l.bf16 %v3828_v6  ;;  %v2484_v33 = vunpack.i.h.bf16 %v3835_v12  ;;  %v2483_v9 = vunpack.i.l.bf16 %v3835_v12  ;;  %v3022_v48 = vld [vmem:[#allocation2 + $0x98] sm:$0xff] }
 0x128   : > { %v2687_v7 = vpop.permute.xlu0 %2686  ;;  %v1683_v39 = vsel %vm1673_vm10, %v1650_v17, %v2679_v61  ;;  %v1684_v0 = vsel %vm1673_vm10, %v1651_v43, %v2683_v54  ;;  %v1685_v3 = vsel %vm1673_vm10, %v1652_v46, %v2684_v15  ;;  %v1522_v61 = vsel %vm372_vm0, %v3022_v48, %v2399_v26  ;;  %v3024_v15 = vld [vmem:[#allocation2 + $0xb0] sm:$0xff]  ;;  %v3025_v54 = vld [vmem:[#allocation2 + $0xa8] sm:$0xff] }
 0x129   : > { %v2689_v49 = vunpack.i.h.bf16 %v2687_v7  ;;  %v2688_v58 = vunpack.i.l.bf16 %v2687_v7  ;;  %v2692_v36 = vpop.permute.xlu1 %2691 }
 0x12a   : > { %2976 = vrot.lane.b32.xlu0 %v4020_v42, %s3052_s15  ;;  %v2694_v32 = vunpack.i.h.bf16 %v2692_v36  ;;  %v2693_v34 = vunpack.i.l.bf16 %v2692_v36  ;;  %v1682_v42 = vsel %vm1673_vm10, %v1649_v52, %v2678_v31 }
 0x12b   : > { %2981 = vrot.lane.b32.xlu1 %v2980_v45, %s3052_s15  ;;  %v1715_v20 = vsel %vm1706_vm11, %v1682_v42, %v2688_v58  ;;  %v1716_v4 = vsel %vm1706_vm11, %v1683_v39, %v2689_v49 }
 0x12c   : > { %v2697_v28 = vpop.permute.xlu0 %2696  ;;  %v1717_v60 = vsel %vm1706_vm11, %v1684_v0, %v2693_v34  ;;  %v1718_v27 = vsel %vm1706_vm11, %v1685_v3, %v2694_v32 }
 0x12d   : > { %v2699_v1 = vunpack.i.h.bf16 %v2697_v28  ;;  %v2698_v56 = vunpack.i.l.bf16 %v2697_v28  ;;  %v2702_v40 = vpop.permute.xlu1 %2701 }
 0x12e   : > { %2986 = vrot.lane.b32.xlu0 %v4127_v41, %s3053_s16  ;;  %v2704_v8 = vunpack.i.h.bf16 %v2702_v40  ;;  %v2703_v62 = vunpack.i.l.bf16 %v2702_v40  ;;  %v3000_v41 = vpack.i.bf16 %v4185_v18, %v4182_v14  ;;  %v2404_v14 = vunpack.i.h.bf16 %v3771_v37 }
 0x12f   : > { %v1748_v45 = vsel %vm1739_vm12, %v1715_v20, %v2698_v56  ;;  %v1749_v50 = vsel %vm1739_vm12, %v1716_v4, %v2699_v1  ;;  %2991 = vrot.lane.b32.xlu1 %v2990_v21, %s3053_s16  ;;  %v2398_v21 = vunpack.i.l.bf16 %v3763_v29  ;;  %v2403_v18 = vunpack.i.l.bf16 %v3771_v37  ;;  %v3023_v29 = vld [vmem:[#allocation2 + $0x90] sm:$0xff] }
 0x130   : > { %v1776_v59 = vpack.c.bf16 %v1749_v50, %v1748_v45  ;;  %v2707_v13 = vpop.permute.xlu0 %2706  ;;  %v1750_v22 = vsel %vm1739_vm12, %v1717_v60, %v2703_v62  ;;  %v1751_v2 = vsel %vm1739_vm12, %v1718_v27, %v2704_v8  ;;  %v1524_v37 = vsel %vm372_vm0, %v3024_v15, %v2404_v14 }
 0x131   : > { %v1777_v44 = vpack.c.bf16 %v1751_v2, %v1750_v22  ;;  %v2712_v57 = vpop.permute.xlu1 %2711  ;;  %v2709_v35 = vunpack.i.h.bf16 %v2707_v13  ;;  %v2708_v7 = vunpack.i.l.bf16 %v2707_v13  ;;  %v1521_v31 = vsel %vm372_vm0, %v3023_v29, %v2398_v21 }
 0x132   : > { %2996 = vrot.lane.b32.xlu0 %v4139_v5, %s3054_s17  ;;  %2316 = vmatprep.mubr.msk.bf16.mxu0 %vm1809_vm13, %v1776_v59  ;;  %v2479_v5 = vunpack.i.h.bf16 %v3828_v6  ;;  %v1523_v49 = vsel %vm372_vm0, %v3025_v54, %v2403_v18  ;;  %v2714_v6 = vunpack.i.h.bf16 %v2712_v57  ;;  %v2713_v58 = vunpack.i.l.bf16 %v2712_v57 }
 0x133   : > { %3001 = vrot.lane.b32.xlu1 %v3000_v41, %s3054_s17  ;;  %2317 = vmatmul.mubr.msk.bf16.gmra.mrb[8].mxu0 %vm1809_vm13, %v1777_v44  ;;  %v1554_v12 = vsel %vm1541_vm6, %v1521_v31, %v2478_v53  ;;  %v1557_v17 = vsel %vm1541_vm6, %v1524_v37, %v2484_v33  ;;  %v1556_v43 = vsel %vm1541_vm6, %v1523_v49, %v2483_v9 }
 0x134   : > { %v2717_v25 = vpop.permute.xlu0 %2716  ;;  %v1555_v47 = vsel %vm1541_vm6, %v1522_v61, %v2479_v5  ;;  %v1587_v46 = vsel %vm1574_vm7, %v1554_v12, %v2708_v7  ;;  %v1589_v56 = vsel %vm1574_vm7, %v1556_v43, %v2713_v58  ;;  %v1590_v0 = vsel %vm1574_vm7, %v1557_v17, %v2714_v6 }
 0x135   : > { %v2722_v16 = vpop.permute.xlu1 %2721  ;;  %v2719_v51 = vunpack.i.h.bf16 %v2717_v25  ;;  %v2718_v52 = vunpack.i.l.bf16 %v2717_v25  ;;  %v1588_v32 = vsel %vm1574_vm7, %v1555_v47, %v2709_v35  ;;  %v2414_v17 = vunpack.i.h.bf16 %v3780_v30 }
 0x136   : > { %v2724_v28 = vunpack.i.h.bf16 %v2722_v16  ;;  %v2723_v42 = vunpack.i.l.bf16 %v2722_v16  ;;  %v2413_v43 = vunpack.i.l.bf16 %v3780_v30 }
 0x137   : > { %v1620_v40 = vsel %vm1607_vm8, %v1587_v46, %v2718_v52  ;;  %v1621_v45 = vsel %vm1607_vm8, %v1588_v32, %v2719_v51  ;;  %v2409_v51 = vunpack.i.h.bf16 %v3774_v24  ;;  %v2408_v52 = vunpack.i.l.bf16 %v3774_v24  ;;  %v3027_v24 = vld [vmem:[#allocation2 + $0xc0] sm:$0xff] }
 0x138   : > { %v2727_v38 = vpop.permute.xlu0 %2726  ;;  %v1622_v41 = vsel %vm1607_vm8, %v1589_v56, %v2723_v42  ;;  %v1623_v22 = vsel %vm1607_vm8, %v1590_v0, %v2724_v28  ;;  %v2489_v32 = vunpack.i.h.bf16 %v3837_v55  ;;  %v2494_v28 = vunpack.i.h.bf16 %v3842_v10  ;;  %v3026_v0 = vld [vmem:[#allocation2 + $0xc8] sm:$0xff] }
 0x139   : > { %v2732_v63 = vpop.permute.xlu1 %2731  ;;  %v2729_v39 = vunpack.i.h.bf16 %v2727_v38  ;;  %v2728_v1 = vunpack.i.l.bf16 %v2727_v38  ;;  %v2493_v42 = vunpack.i.l.bf16 %v3842_v10 }
 0x13a   : > { %v2734_v3 = vunpack.i.h.bf16 %v2732_v63  ;;  %v2733_v20 = vunpack.i.l.bf16 %v2732_v63 }
 0x13b   : > { %v1653_v2 = vsel %vm1640_vm9, %v1620_v40, %v2728_v1  ;;  %v1654_v44 = vsel %vm1640_vm9, %v1621_v45, %v2729_v39  ;;  %v3029_v40 = vld [vmem:[#allocation2 + $0xd8] sm:$0xff] }
 0x13c   : > { %v2737_v36 = vpop.permute.xlu0 %2736  ;;  %v1655_v57 = vsel %vm1640_vm9, %v1622_v41, %v2733_v20  ;;  %v1656_v25 = vsel %vm1640_vm9, %v1623_v22, %v2734_v3  ;;  %v1526_v3 = vsel %vm372_vm0, %v3026_v0, %v2409_v51  ;;  %v1525_v20 = vsel %vm372_vm0, %v3027_v24, %v2408_v52 }
 0x13d   : > { %v2742_v34 = vpop.permute.xlu1 %2741  ;;  %v2739_v50 = vunpack.i.h.bf16 %v2737_v36  ;;  %v2738_v8 = vunpack.i.l.bf16 %v2737_v36  ;;  %v1527_v45 = vsel %vm372_vm0, %v3029_v40, %v2413_v43 }
 0x13e   : > { %v2744_v62 = vunpack.i.h.bf16 %v2742_v34  ;;  %v2743_v60 = vunpack.i.l.bf16 %v2742_v34  ;;  %v2488_v34 = vunpack.i.l.bf16 %v3837_v55 }
 0x13f   : > { %v1686_v14 = vsel %vm1673_vm10, %v1653_v2, %v2738_v8  ;;  %v1687_v18 = vsel %vm1673_vm10, %v1654_v44, %v2739_v50 }
 0x140   : > { %v2747_v4 = vpop.permute.xlu0 %2746  ;;  %v1688_v53 = vsel %vm1673_vm10, %v1655_v57, %v2743_v60  ;;  %v1689_v33 = vsel %vm1673_vm10, %v1656_v25, %v2744_v62  ;;  %v1558_v10 = vsel %vm1541_vm6, %v1525_v20, %v2488_v34  ;;  %v1559_v62 = vsel %vm1541_vm6, %v1526_v3, %v2489_v32 }
 0x141   : > { %v2749_v27 = vunpack.i.h.bf16 %v2747_v4  ;;  %v2748_v59 = vunpack.i.l.bf16 %v2747_v4  ;;  %v2752_v13 = vpop.permute.xlu1 %2751  ;;  %v3028_v4 = vld [vmem:[#allocation2 + $0xe0] sm:$0xff] }
 0x142   : > { %v2754_v16 = vunpack.i.h.bf16 %v2752_v13  ;;  %v2753_v26 = vunpack.i.l.bf16 %v2752_v13  ;;  %v1528_v30 = vsel %vm372_vm0, %v3028_v4, %v2414_v17  ;;  %v1560_v13 = vsel %vm1541_vm6, %v1527_v45, %v2493_v42 }
 0x143   : > { %v1719_v9 = vsel %vm1706_vm11, %v1686_v14, %v2748_v59  ;;  %v1720_v35 = vsel %vm1706_vm11, %v1687_v18, %v2749_v27  ;;  %v1561_v59 = vsel %vm1541_vm6, %v1528_v30, %v2494_v28 }
 0x144   : > { %v2757_v21 = vpop.permute.xlu0 %2756  ;;  %v1721_v31 = vsel %vm1706_vm11, %v1688_v53, %v2753_v26  ;;  %v1722_v15 = vsel %vm1706_vm11, %v1689_v33, %v2754_v16 }
 0x145   : > { %v2759_v38 = vunpack.i.h.bf16 %v2757_v21  ;;  %v2758_v5 = vunpack.i.l.bf16 %v2757_v21  ;;  %v2762_v7 = vpop.permute.xlu1 %2761 }
 0x146   : > { %v2764_v61 = vunpack.i.h.bf16 %v2762_v7  ;;  %v2763_v29 = vunpack.i.l.bf16 %v2762_v7 }
 0x147   : > { %v1752_v63 = vsel %vm1739_vm12, %v1719_v9, %v2758_v5  ;;  %v1753_v48 = vsel %vm1739_vm12, %v1720_v35, %v2759_v38 }
 0x148   : > { %v1778_v37 = vpack.c.bf16 %v1753_v48, %v1752_v63  ;;  %v2767_v54 = vpop.permute.xlu0 %2766  ;;  %v1754_v49 = vsel %vm1739_vm12, %v1721_v31, %v2763_v29  ;;  %v1755_v6 = vsel %vm1739_vm12, %v1722_v15, %v2764_v61 }
 0x149   : > { %v1779_v58 = vpack.c.bf16 %v1755_v6, %v1754_v49  ;;  %v2772_v36 = vpop.permute.xlu1 %2771  ;;  %v2769_v39 = vunpack.i.h.bf16 %v2767_v54  ;;  %v2768_v1 = vunpack.i.l.bf16 %v2767_v54 }
 0x14a   : > { %2320 = vmatprep.mubr.msk.bf16.mxu0 %vm1809_vm13, %v1778_v37  ;;  %v2774_v55 = vunpack.i.h.bf16 %v2772_v36  ;;  %v2773_v50 = vunpack.i.l.bf16 %v2772_v36 }
 0x14b   : > { %2321 = vmatmul.mubr.msk.bf16.gmra.mrb[12].mxu0 %vm1809_vm13, %v1779_v58  ;;  %v1591_v41 = vsel %vm1574_vm7, %v1558_v10, %v2768_v1  ;;  %v1592_v22 = vsel %vm1574_vm7, %v1559_v62, %v2769_v39  ;;  %v2424_v10 = vunpack.i.h.bf16 %v3791_v23  ;;  %v2423_v62 = vunpack.i.l.bf16 %v3791_v23 }
 0x14c   : > { %v2777_v12 = vpop.permute.xlu0 %2776  ;;  %v1593_v26 = vsel %vm1574_vm7, %v1560_v13, %v2773_v50  ;;  %v1594_v21 = vsel %vm1574_vm7, %v1561_v59, %v2774_v55  ;;  %v2419_v50 = vunpack.i.h.bf16 %v3784_v11  ;;  %v2498_v59 = vunpack.i.l.bf16 %v3844_v19  ;;  %v4633_v13 = vld [vmem:[#allocation6_spill] sm:$0xff] }
 0x14d   : > { %v2782_v47 = vpop.permute.xlu1 %2781  ;;  %v2779_v60 = vunpack.i.h.bf16 %v2777_v12  ;;  %v2778_v27 = vunpack.i.l.bf16 %v2777_v12 }
 0x14e   : > { %v2784_v44 = vunpack.i.h.bf16 %v2782_v47  ;;  %v2783_v57 = vunpack.i.l.bf16 %v2782_v47 }
 0x14f   : > { %v1624_v5 = vsel %vm1607_vm8, %v1591_v41, %v2778_v27  ;;  %v1625_v53 = vsel %vm1607_vm8, %v1592_v22, %v2779_v60  ;;  %v2499_v27 = vunpack.i.h.bf16 %v3844_v19  ;;  %v2504_v41 = vunpack.i.h.bf16 %v4633_v13 }
 0x150   : > { %v2787_v46 = vpop.permute.xlu0 %2786  ;;  %v1626_v29 = vsel %vm1607_vm8, %v1593_v26, %v2783_v57  ;;  %v1627_v31 = vsel %vm1607_vm8, %v1594_v21, %v2784_v44  ;;  %v2503_v22 = vunpack.i.l.bf16 %v4633_v13  ;;  %v3032_v21 = vld [vmem:[#allocation2 + $0x110] sm:$0xff] }
 0x151   : > { %v2792_v56 = vpop.permute.xlu1 %2791  ;;  %v2789_v25 = vunpack.i.h.bf16 %v2787_v46  ;;  %v2788_v16 = vunpack.i.l.bf16 %v2787_v46  ;;  %v1532_v23 = vsel %vm372_vm0, %v3032_v21, %v2424_v10 }
 0x152   : > { %v2794_v14 = vunpack.i.h.bf16 %v2792_v56  ;;  %v2793_v18 = vunpack.i.l.bf16 %v2792_v56 }
 0x153   : > { %v1657_v15 = vsel %vm1640_vm9, %v1624_v5, %v2788_v16  ;;  %v1658_v37 = vsel %vm1640_vm9, %v1625_v53, %v2789_v25  ;;  %v3030_v25 = vld [vmem:[#allocation2 + $0xf8] sm:$0xff] }
 0x154   : > { %v2797_v8 = vpop.permute.xlu0 %2796  ;;  %v1659_v54 = vsel %vm1640_vm9, %v1626_v29, %v2793_v18  ;;  %v1660_v49 = vsel %vm1640_vm9, %v1627_v31, %v2794_v14  ;;  %v1530_v16 = vsel %vm372_vm0, %v3030_v25, %v2419_v50  ;;  %v3033_v14 = vld [vmem:[#allocation2 + $0x108] sm:$0xff] }
 0x155   : > { %v2802_v2 = vpop.permute.xlu1 %2801  ;;  %v2799_v33 = vunpack.i.h.bf16 %v2797_v8  ;;  %v2798_v9 = vunpack.i.l.bf16 %v2797_v8  ;;  %v2418_v8 = vunpack.i.l.bf16 %v3784_v11  ;;  %v3031_v11 = vld [vmem:[#allocation2 + $0xf0] sm:$0xff]  ;;  %v1531_v18 = vsel %vm372_vm0, %v3033_v14, %v2423_v62  ;;  %v4634_v14 = vld [vmem:[#allocation18_spill] sm:$0xff] }
 0x156   : > { %v2804_v35 = vunpack.i.h.bf16 %v2802_v2  ;;  %v2803_v7 = vunpack.i.l.bf16 %v2802_v2 }
 0x157   : > { %v1690_v12 = vsel %vm1673_vm10, %v1657_v15, %v2798_v9  ;;  %v1691_v47 = vsel %vm1673_vm10, %v1658_v37, %v2799_v33  ;;  %v1529_v26 = vsel %vm372_vm0, %v3031_v11, %v2418_v8  ;;  %v1563_v33 = vsel %vm1541_vm6, %v1530_v16, %v2499_v27 }
 0x158   : > { %v2807_v38 = vpop.permute.xlu0 %2806  ;;  %v1692_v17 = vsel %vm1673_vm10, %v1659_v54, %v2803_v7  ;;  %v1693_v43 = vsel %vm1673_vm10, %v1660_v49, %v2804_v35  ;;  %v1562_v53 = vsel %vm1541_vm6, %v1529_v26, %v2498_v59  ;;  %v1565_v7 = vsel %vm1541_vm6, %v1532_v23, %v2504_v41 }
 0x159   : > { %v2809_v63 = vunpack.i.h.bf16 %v2807_v38  ;;  %v2808_v48 = vunpack.i.l.bf16 %v2807_v38  ;;  %v2812_v61 = vpop.permute.xlu1 %2811 }
 0x15a   : > { %v2814_v6 = vunpack.i.h.bf16 %v2812_v61  ;;  %v2813_v58 = vunpack.i.l.bf16 %v2812_v61 }
 0x15b   : > { %v1723_v32 = vsel %vm1706_vm11, %v1690_v12, %v2808_v48  ;;  %v1724_v34 = vsel %vm1706_vm11, %v1691_v47, %v2809_v63  ;;  %v1564_v63 = vsel %vm1541_vm6, %v1531_v18, %v2503_v22  ;;  %v2429_v18 = vunpack.i.h.bf16 %v4634_v14 }
 0x15c   : > { %v2817_v36 = vpop.permute.xlu0 %2816  ;;  %v1725_v56 = vsel %vm1706_vm11, %v1692_v17, %v2813_v58  ;;  %v1726_v0 = vsel %vm1706_vm11, %v1693_v43, %v2814_v6 }
 0x15d   : > { %v2819_v51 = vunpack.i.h.bf16 %v2817_v36  ;;  %v2818_v52 = vunpack.i.l.bf16 %v2817_v36  ;;  %v2822_v46 = vpop.permute.xlu1 %2821 }
 0x15e   : > { %v2824_v28 = vunpack.i.h.bf16 %v2822_v46  ;;  %v2823_v42 = vunpack.i.l.bf16 %v2822_v46 }
 0x15f   : > { %v1756_v39 = vsel %vm1739_vm12, %v1723_v32, %v2818_v52  ;;  %v1757_v1 = vsel %vm1739_vm12, %v1724_v34, %v2819_v51 }
 0x160   : > { %v2827_v3 = vpop.permute.xlu0 %2826  ;;  %v1780_v24 = vpack.c.bf16 %v1757_v1, %v1756_v39  ;;  %v1758_v20 = vsel %vm1739_vm12, %v1725_v56, %v2823_v42  ;;  %v1759_v4 = vsel %vm1739_vm12, %v1726_v0, %v2824_v28 }
 0x161   : > { %v1781_v30 = vpack.c.bf16 %v1759_v4, %v1758_v20  ;;  %v2832_v40 = vpop.permute.xlu1 %2831  ;;  %v2829_v2 = vunpack.i.h.bf16 %v2827_v3  ;;  %v2828_v44 = vunpack.i.l.bf16 %v2827_v3 }
 0x162   : > { %2324 = vmatprep.mubr.msk.bf16.mxu1 %vm1809_vm13, %v1780_v24  ;;  %v2834_v19 = vunpack.i.h.bf16 %v2832_v40  ;;  %v2833_v38 = vunpack.i.l.bf16 %v2832_v40 }
 0x163   : > { %2325 = vmatmul.mubr.msk.bf16.vlgmr.msra.gmra.mrb[0].mxu1 %vm1809_vm13, %v1781_v30  ;;  %v1595_v48 = vsel %vm1574_vm7, %v1562_v53, %v2828_v44  ;;  %v1596_v61 = vsel %vm1574_vm7, %v1563_v33, %v2829_v2 }
 0x164   : > { %v2837_v45 = vpop.permute.xlu0 %2836  ;;  %v1597_v49 = vsel %vm1574_vm7, %v1564_v63, %v2833_v38  ;;  %v1598_v6 = vsel %vm1574_vm7, %v1565_v7, %v2834_v19  ;;  %v2428_v19 = vunpack.i.l.bf16 %v4634_v14  ;;  %v4635_v38 = vld [vmem:[#allocation5_spill] sm:$0xff]  ;;  %v4637_v63 = vld [vmem:[#allocation4_spill] sm:$0xff] }
 0x165   : > { %v2842_v55 = vpop.permute.xlu1 %2841  ;;  %v2839_v9 = vunpack.i.h.bf16 %v2837_v45  ;;  %v2838_v35 = vunpack.i.l.bf16 %v2837_v45  ;;  %v2433_v53 = vunpack.i.l.bf16 %v4635_v38 }
 0x166   : > { %v2844_v31 = vunpack.i.h.bf16 %v2842_v55  ;;  %v2843_v15 = vunpack.i.l.bf16 %v2842_v55 }
 0x167   : > { %v1628_v47 = vsel %vm1607_vm8, %v1595_v48, %v2838_v35  ;;  %v1629_v51 = vsel %vm1607_vm8, %v1596_v61, %v2839_v9  ;;  %v4636_v9 = vld [vmem:[#allocation3_spill] sm:$0xff]  ;;  %v2514_v48 = vunpack.i.h.bf16 %v4637_v63  ;;  %v2513_v61 = vunpack.i.l.bf16 %v4637_v63 }
 0x168   : > { %v2847_v60 = vpop.permute.xlu0 %2846  ;;  %v1630_v42 = vsel %vm1607_vm8, %v1597_v49, %v2843_v15  ;;  %v1631_v39 = vsel %vm1607_vm8, %v1598_v6, %v2844_v31  ;;  %v2509_v35 = vunpack.i.h.bf16 %v4636_v9  ;;  %v2508_v7 = vunpack.i.l.bf16 %v4636_v9  ;;  %v3035_v49 = vld [vmem:[#allocation2 + $0x120] sm:$0xff] }
 0x169   : > { %v2852_v57 = vpop.permute.xlu1 %2851  ;;  %v2849_v37 = vunpack.i.h.bf16 %v2847_v60  ;;  %v2848_v54 = vunpack.i.l.bf16 %v2847_v60  ;;  %v1533_v6 = vsel %vm372_vm0, %v3035_v49, %v2428_v19 }
 0x16a   : > { %v2854_v58 = vunpack.i.h.bf16 %v2852_v57  ;;  %v2853_v36 = vunpack.i.l.bf16 %v2852_v57 }
 0x16b   : > { %v1661_v1 = vsel %vm1640_vm9, %v1628_v47, %v2848_v54  ;;  %v1662_v56 = vsel %vm1640_vm9, %v1629_v51, %v2849_v37  ;;  %v3034_v37 = vld [vmem:[#allocation2 + $0x128] sm:$0xff] }
 0x16c   : > { %v2857_v5 = vpop.permute.xlu0 %2856  ;;  %v1663_v0 = vsel %vm1640_vm9, %v1630_v42, %v2853_v36  ;;  %v1664_v3 = vsel %vm1640_vm9, %v1631_v39, %v2854_v58  ;;  %v1534_v54 = vsel %vm372_vm0, %v3034_v37, %v2429_v18  ;;  %v3036_v58 = vld [vmem:[#allocation2 + $0x140] sm:$0xff] }
 0x16d   : > { %v2862_v29 = vpop.permute.xlu1 %2861  ;;  %v2859_v52 = vunpack.i.h.bf16 %v2857_v5  ;;  %v2858_v17 = vunpack.i.l.bf16 %v2857_v5  ;;  %v2434_v5 = vunpack.i.h.bf16 %v4635_v38 }
 0x16e   : > { %v2864_v43 = vunpack.i.h.bf16 %v2862_v29  ;;  %v2863_v46 = vunpack.i.l.bf16 %v2862_v29 }
 0x16f   : > { %v1694_v30 = vsel %vm1673_vm10, %v1661_v1, %v2858_v17  ;;  %v1695_v40 = vsel %vm1673_vm10, %v1662_v56, %v2859_v52  ;;  %v1536_v36 = vsel %vm372_vm0, %v3036_v58, %v2434_v5 }
 0x170   : > { %v2867_v12 = vpop.permute.xlu0 %2866  ;;  %v1696_v50 = vsel %vm1673_vm10, %v1663_v0, %v2863_v46  ;;  %v1697_v8 = vsel %vm1673_vm10, %v1664_v3, %v2864_v43  ;;  %v1566_v43 = vsel %vm1541_vm6, %v1533_v6, %v2508_v7  ;;  %v1567_v46 = vsel %vm1541_vm6, %v1534_v54, %v2509_v35 }
 0x171   : > { %v2869_v32 = vunpack.i.h.bf16 %v2867_v12  ;;  %v2868_v34 = vunpack.i.l.bf16 %v2867_v12  ;;  %v2872_v28 = vpop.permute.xlu1 %2871  ;;  %v3037_v12 = vld [vmem:[#allocation2 + $0x138] sm:$0xff] }
 0x172   : > { %v2874_v24 = vunpack.i.h.bf16 %v2872_v28  ;;  %v2873_v20 = vunpack.i.l.bf16 %v2872_v28  ;;  %v1535_v47 = vsel %vm372_vm0, %v3037_v12, %v2433_v53  ;;  %v1569_v28 = vsel %vm1541_vm6, %v1536_v36, %v2514_v48 }
 0x173   : > { %v1727_v10 = vsel %vm1706_vm11, %v1694_v30, %v2868_v34  ;;  %v1728_v62 = vsel %vm1706_vm11, %v1695_v40, %v2869_v32  ;;  %v1568_v42 = vsel %vm1541_vm6, %v1535_v47, %v2513_v61 }
 0x174   : > { %v2877_v4 = vpop.permute.xlu0 %2876  ;;  %v1729_v22 = vsel %vm1706_vm11, %v1696_v50, %v2873_v20  ;;  %v1730_v2 = vsel %vm1706_vm11, %v1697_v8, %v2874_v24 }
 0x175   : > { %v2879_v45 = vunpack.i.h.bf16 %v2877_v4  ;;  %v2878_v55 = vunpack.i.l.bf16 %v2877_v4  ;;  %v2882_v60 = vpop.permute.xlu1 %2881 }
 0x176   : > { %v2884_v13 = vunpack.i.h.bf16 %v2882_v60  ;;  %v2883_v41 = vunpack.i.l.bf16 %v2882_v60 }
 0x177   : > { %v1760_v27 = vsel %vm1739_vm12, %v1727_v10, %v2878_v55  ;;  %v1761_v59 = vsel %vm1739_vm12, %v1728_v62, %v2879_v45 }
 0x178   : > { %v1782_v44 = vpack.c.bf16 %v1761_v59, %v1760_v27  ;;  %v2887_v57 = vpop.permute.xlu0 %2886  ;;  %v1762_v25 = vsel %vm1739_vm12, %v1729_v22, %v2883_v41  ;;  %v1763_v16 = vsel %vm1739_vm12, %v1730_v2, %v2884_v13 }
 0x179   : > { %v1783_v11 = vpack.c.bf16 %v1763_v16, %v1762_v25  ;;  %v2892_v26 = vpop.permute.xlu1 %2891  ;;  %v2889_v29 = vunpack.i.h.bf16 %v2887_v57  ;;  %v2888_v31 = vunpack.i.l.bf16 %v2887_v57 }
 0x17a   : > { %2328 = vmatprep.mubr.msk.bf16.mxu1 %vm1809_vm13, %v1782_v44  ;;  %v2894_v51 = vunpack.i.h.bf16 %v2892_v26  ;;  %v2893_v52 = vunpack.i.l.bf16 %v2892_v26 }
 0x17b   : > { %2329 = vmatmul.mubr.msk.bf16.gmra.mrb[4].mxu1 %vm1809_vm13, %v1783_v11  ;;  %v1599_v39 = vsel %vm1574_vm7, %v1566_v43, %v2888_v31  ;;  %v1600_v1 = vsel %vm1574_vm7, %v1567_v46, %v2889_v29 }
 0x17c   : > { %v2897_v21 = vpop.permute.xlu0 %2896  ;;  %v1601_v4 = vsel %vm1574_vm7, %v1568_v42, %v2893_v52  ;;  %v1602_v30 = vsel %vm1574_vm7, %v1569_v28, %v2894_v51  ;;  %v4638_v28 = vld [vmem:[#allocation8_spill] sm:$0xff] }
 0x17d   : > { %v2902_v23 = vpop.permute.xlu1 %2901  ;;  %v2899_v32 = vunpack.i.h.bf16 %v2897_v21  ;;  %v2898_v34 = vunpack.i.l.bf16 %v2897_v21 }
 0x17e   : > { %v2904_v0 = vunpack.i.h.bf16 %v2902_v23  ;;  %v2903_v3 = vunpack.i.l.bf16 %v2902_v23 }
 0x17f   : > { %v1632_v50 = vsel %vm1607_vm8, %v1599_v39, %v2898_v34  ;;  %v1633_v8 = vsel %vm1607_vm8, %v1600_v1, %v2899_v32  ;;  %v4639_v39 = vld [vmem:[#allocation7_spill] sm:$0xff] }
 0x180   : > { %v2907_v33 = vpop.permute.xlu0 %2906  ;;  %v1634_v22 = vsel %vm1607_vm8, %v1601_v4, %v2903_v3  ;;  %v1635_v2 = vsel %vm1607_vm8, %v1602_v30, %v2904_v0  ;;  %v4640_v4 = vld [vmem:[#allocation10_spill] sm:$0xff] }
 0x181   : > { %v2912_v15 = vpop.permute.xlu1 %2911  ;;  %v2909_v24 = vunpack.i.h.bf16 %v2907_v33  ;;  %v2908_v20 = vunpack.i.l.bf16 %v2907_v33 }
 0x182   : > { %v2914_v40 = vunpack.i.h.bf16 %v2912_v15  ;;  %v2913_v45 = vunpack.i.l.bf16 %v2912_v15 }
 0x183   : > { %v1665_v44 = vsel %vm1640_vm9, %v1632_v50, %v2908_v20  ;;  %v1666_v57 = vsel %vm1640_vm9, %v1633_v8, %v2909_v24 }
 0x184   : > { %v2917_v17 = vpop.permute.xlu0 %2916  ;;  %v1667_v25 = vsel %vm1640_vm9, %v1634_v22, %v2913_v45  ;;  %v1668_v16 = vsel %vm1640_vm9, %v1635_v2, %v2914_v40  ;;  %v4641_v40 = vld [vmem:[#allocation9_spill] sm:$0xff] }
 0x185   : > { %v2922_v56 = vpop.permute.xlu1 %2921  ;;  %v2919_v10 = vunpack.i.h.bf16 %v2917_v17  ;;  %v2918_v62 = vunpack.i.l.bf16 %v2917_v17 }
 0x186   : > { %v2924_v60 = vunpack.i.h.bf16 %v2922_v56  ;;  %v2923_v27 = vunpack.i.l.bf16 %v2922_v56 }
 0x187   : > { %v1698_v23 = vsel %vm1673_vm10, %v1665_v44, %v2918_v62  ;;  %v1699_v14 = vsel %vm1673_vm10, %v1666_v57, %v2919_v10 }
 0x188   : > { %v2927_v55 = vpop.permute.xlu0 %2926  ;;  %v1700_v38 = vsel %vm1673_vm10, %v1667_v25, %v2923_v27  ;;  %v1701_v5 = vsel %vm1673_vm10, %v1668_v16, %v2924_v60 }
 0x189   : > { %v2929_v59 = vunpack.i.h.bf16 %v2927_v55  ;;  %v2928_v13 = vunpack.i.l.bf16 %v2927_v55  ;;  %v2932_v41 = vpop.permute.xlu1 %2931 }
 0x18a   : > { %v2934_v11 = vunpack.i.h.bf16 %v2932_v41  ;;  %v2933_v26 = vunpack.i.l.bf16 %v2932_v41 }
 0x18b   : > { %v1731_v53 = vsel %vm1706_vm11, %v1698_v23, %v2928_v13  ;;  %v1732_v33 = vsel %vm1706_vm11, %v1699_v14, %v2929_v59 }
 0x18c   : > { %v2937_v21 = vpop.permute.xlu0 %2936  ;;  %v1733_v61 = vsel %vm1706_vm11, %v1700_v38, %v2933_v26  ;;  %v1734_v29 = vsel %vm1706_vm11, %v1701_v5, %v2934_v11 }
 0x18d   : > { %v2939_v18 = vunpack.i.h.bf16 %v2937_v21  ;;  %v2938_v19 = vunpack.i.l.bf16 %v2937_v21  ;;  %v2942_v9 = vpop.permute.xlu1 %2941 }
 0x18e   : > { %v2944_v63 = vunpack.i.h.bf16 %v2942_v9  ;;  %v2943_v48 = vunpack.i.l.bf16 %v2942_v9 }
 0x18f   : > { %v1764_v35 = vsel %vm1739_vm12, %v1731_v53, %v2938_v19  ;;  %v1765_v7 = vsel %vm1739_vm12, %v1732_v33, %v2939_v18 }
 0x190   : > { %v1784_v31 = vpack.c.bf16 %v1765_v7, %v1764_v35  ;;  %v2947_v15 = vpop.permute.xlu0 %2946  ;;  %v1766_v37 = vsel %vm1739_vm12, %v1733_v61, %v2943_v48  ;;  %v1767_v54 = vsel %vm1739_vm12, %v1734_v29, %v2944_v63 }
 0x191   : > { %v1785_v49 = vpack.c.bf16 %v1767_v54, %v1766_v37  ;;  %v2952_v6 = vpop.permute.xlu1 %2951  ;;  %v2949_v47 = vunpack.i.h.bf16 %v2947_v15  ;;  %v2948_v51 = vunpack.i.l.bf16 %v2947_v15 }
 0x192   : > { %2332 = vmatprep.mubr.msk.bf16.mxu1 %vm1809_vm13, %v1784_v31  ;;  %v2954_v17 = vunpack.i.h.bf16 %v2952_v6  ;;  %v2953_v43 = vunpack.i.l.bf16 %v2952_v6 }
 0x193   : > { %2333 = vmatmul.mubr.msk.bf16.gmra.mrb[8].mxu1 %vm1809_vm13, %v1785_v49  ;;  %v1603_v42 = vsel %vm1574_vm7, %v4638_v28, %v2948_v51  ;;  %v1604_v1 = vsel %vm1574_vm7, %v4639_v39, %v2949_v47 }
 0x194   : > { %v2957_v58 = vpop.permute.xlu0 %2956  ;;  %v1605_v30 = vsel %vm1574_vm7, %v4640_v4, %v2953_v43  ;;  %v1606_v45 = vsel %vm1574_vm7, %v4641_v40, %v2954_v17 }
 0x195   : > { %v2962_v36 = vpop.permute.xlu1 %2961  ;;  %v2959_v32 = vunpack.i.h.bf16 %v2957_v58  ;;  %v2958_v34 = vunpack.i.l.bf16 %v2957_v58  ;;  %v4440_v58 = vld [vmem:[%s4547_s2] ss:$0 sm:$0xff] }
 0x196   : > { %v2964_v0 = vunpack.i.h.bf16 %v2962_v36  ;;  %v2963_v3 = vunpack.i.l.bf16 %v2962_v36 }
 0x197   : > { %v1636_v10 = vsel %vm1607_vm8, %v1603_v42, %v2958_v34  ;;  %v1637_v62 = vsel %vm1607_vm8, %v1604_v1, %v2959_v32 }
 0x198   : > { %v2967_v12 = vpop.permute.xlu0 %2966  ;;  %v1638_v44 = vsel %vm1607_vm8, %v1605_v30, %v2963_v3  ;;  %v1639_v57 = vsel %vm1607_vm8, %v1606_v45, %v2964_v0 }
 0x199   : > { %v2972_v52 = vpop.permute.xlu1 %2971  ;;  %v2969_v24 = vunpack.i.h.bf16 %v2967_v12  ;;  %v2968_v20 = vunpack.i.l.bf16 %v2967_v12 }
 0x19a   : > { %v2974_v55 = vunpack.i.h.bf16 %v2972_v52  ;;  %v2973_v50 = vunpack.i.l.bf16 %v2972_v52 }
 0x19b   : > { %v1669_v25 = vsel %vm1640_vm9, %v1636_v10, %v2968_v20  ;;  %v1670_v16 = vsel %vm1640_vm9, %v1637_v62, %v2969_v24 }
 0x19c   : > { %v2977_v46 = vpop.permute.xlu0 %2976  ;;  %v1671_v11 = vsel %vm1640_vm9, %v1638_v44, %v2973_v50  ;;  %v1672_v26 = vsel %vm1640_vm9, %v1639_v57, %v2974_v55 }
 0x19d   : > { %v2982_v56 = vpop.permute.xlu1 %2981  ;;  %v2979_v60 = vunpack.i.h.bf16 %v2977_v46  ;;  %v2978_v27 = vunpack.i.l.bf16 %v2977_v46 }
 0x19e   : > { %v2984_v59 = vunpack.i.h.bf16 %v2982_v56  ;;  %v2983_v13 = vunpack.i.l.bf16 %v2982_v56 }
 0x19f   : > { %v1702_v18 = vsel %vm1673_vm10, %v1669_v25, %v2978_v27  ;;  %v1703_v19 = vsel %vm1673_vm10, %v1670_v16, %v2979_v60 }
 0x1a0   : > { %v2987_v8 = vpop.permute.xlu0 %2986  ;;  %v1704_v53 = vsel %vm1673_vm10, %v1671_v11, %v2983_v13  ;;  %v1705_v33 = vsel %vm1673_vm10, %v1672_v26, %v2984_v59 }
 0x1a1   : > { %v2989_v41 = vunpack.i.h.bf16 %v2987_v8  ;;  %v2988_v22 = vunpack.i.l.bf16 %v2987_v8  ;;  %v2992_v2 = vpop.permute.xlu1 %2991 }
 0x1a2   : > { %v2994_v21 = vunpack.i.h.bf16 %v2992_v2  ;;  %v2993_v23 = vunpack.i.l.bf16 %v2992_v2 }
 0x1a3   : > { %v1735_v9 = vsel %vm1706_vm11, %v1702_v18, %v2988_v22  ;;  %v1736_v35 = vsel %vm1706_vm11, %v1703_v19, %v2989_v41 }
 0x1a4   : > { %v2997_v14 = vpop.permute.xlu0 %2996  ;;  %v1737_v31 = vsel %vm1706_vm11, %v1704_v53, %v2993_v23  ;;  %v1738_v15 = vsel %vm1706_vm11, %v1705_v33, %v2994_v21 }
 0x1a5   : > { %v2999_v38 = vunpack.i.h.bf16 %v2997_v14  ;;  %v2998_v5 = vunpack.i.l.bf16 %v2997_v14  ;;  %v3002_v7 = vpop.permute.xlu1 %3001 }
 0x1a6   : > { %v3004_v61 = vunpack.i.h.bf16 %v3002_v7  ;;  %v3003_v29 = vunpack.i.l.bf16 %v3002_v7 }
 0x1a7   : > { %v1768_v63 = vsel %vm1739_vm12, %v1735_v9, %v2998_v5  ;;  %v1769_v48 = vsel %vm1739_vm12, %v1736_v35, %v2999_v38 }
 0x1a8   : > { %v1786_v37 = vpack.c.bf16 %v1769_v48, %v1768_v63  ;;  %v1770_v54 = vsel %vm1739_vm12, %v1737_v31, %v3003_v29  ;;  %v1771_v49 = vsel %vm1739_vm12, %v1738_v15, %v3004_v61 }
 0x1a9   : > { %v1787_v6 = vpack.c.bf16 %v1771_v49, %v1770_v54 }
 0x1aa   : > { %2336 = vmatprep.mubr.msk.bf16.mxu1 %vm1809_vm13, %v1786_v37 }
 0x1ab   : > { %2337 = vmatmul.mubr.msk.bf16.gmra.mrb[12].mxu1 %vm1809_vm13, %v1787_v6 }
 0x1de   : > { %v2310_v36 = vpop.f32.mrb[0].mxu0 }
 0x1df   : > { %v1896_v12 = vpop.f32.mrb[1].mxu0  ;;  %v1905_v47 = vadd.f32 %v2310_v36, %v4440_v58 }
 0x1e0   : > { %v1897_v51 = vadd.f32 %v4440_v58, %v1896_v12  ;;  %v2311_v52 = vpop.f32.mrb[2].mxu0 }
 0x1e1   : > { %v1899_v17 = vpop.f32.mrb[3].mxu0  ;;  %v1908_v46 = vadd.f32 %v2311_v52, %v4440_v58  ;;  %v2094_v34 = vmul.f32 %v1905_v47, %v1905_v47  ;;  %v2026_v56 = vsel %vm1739_vm12, %v1905_v47, 0.0 }
 0x1e2   : > { %v2092_v43 = vmul.f32 %v1897_v51, %v1897_v51  ;;  %v1900_v32 = vadd.f32 %v4440_v58, %v1899_v17  ;;  %v2023_v28 = vsel %vm1739_vm12, %v1897_v51, 0.0 }
 0x1e3   : > { %v2095_v3 = vmul.f32 %v1908_v46, %v1908_v46  ;;  %v2127_v30 = vsel %vm1739_vm12, %v2094_v34, 0.0  ;;  %v2028_v40 = vsel %vm1739_vm12, %v1908_v46, 0.0 }
 0x1e4   : > { %v2024_v42 = vsel %vm1739_vm12, %v1900_v32, 0.0  ;;  %v2093_v39 = vmul.f32 %v1900_v32, %v1900_v32  ;;  %v2124_v0 = vsel %vm1739_vm12, %v2092_v43, 0.0 }
 0x1e5   : > { %v2025_v1 = vadd.f32 %v2024_v42, %v2023_v28  ;;  %v2129_v50 = vsel %vm1739_vm12, %v2095_v3, 0.0 }
 0x1e6   : > { %v2125_v24 = vsel %vm1739_vm12, %v2093_v39, 0.0 }
 0x1e7   : > { %v2027_v20 = vadd.f32 %v2026_v56, %v2025_v1  ;;  %v2126_v4 = vadd.f32 %v2125_v24, %v2124_v0 }
 0x1e9   : > { %v2128_v45 = vadd.f32 %v2127_v30, %v2126_v4  ;;  %v2029_v55 = vadd.f32 %v2028_v40, %v2027_v20 }
 0x1eb   : > { %v2130_v8 = vadd.f32 %v2129_v50, %v2128_v45 }
 0x1f2   : > { %v2314_v10 = vpop.f32.mrb[4].mxu0 }
 0x1f3   : > { %v1912_v62 = vpop.f32.mrb[5].mxu0  ;;  %v1921_v60 = vadd.f32 %v2314_v10, %v4440_v58 }
 0x1f4   : > { %v1913_v27 = vadd.f32 %v4440_v58, %v1912_v62  ;;  %v2315_v59 = vpop.f32.mrb[6].mxu0 }
 0x1f5   : > { %v1915_v13 = vpop.f32.mrb[7].mxu0  ;;  %v1924_v2 = vadd.f32 %v2315_v59, %v4440_v58  ;;  %v2098_v25 = vmul.f32 %v1921_v60, %v1921_v60  ;;  %v2034_v14 = vsel %vm1739_vm12, %v1921_v60, 0.0 }
 0x1f6   : > { %v2030_v41 = vsel %vm1739_vm12, %v1913_v27, 0.0  ;;  %v2096_v22 = vmul.f32 %v1913_v27, %v1913_v27  ;;  %v1916_v44 = vadd.f32 %v4440_v58, %v1915_v13 }
 0x1f7   : > { %v2031_v57 = vadd.f32 %v2030_v41, %v2029_v55  ;;  %v2099_v18 = vmul.f32 %v1924_v2, %v1924_v2  ;;  %v2135_v53 = vsel %vm1739_vm12, %v2098_v25, 0.0  ;;  %v2036_v33 = vsel %vm1739_vm12, %v1924_v2, 0.0 }
 0x1f8   : > { %v2131_v16 = vsel %vm1739_vm12, %v2096_v22, 0.0  ;;  %v2032_v11 = vsel %vm1739_vm12, %v1916_v44, 0.0  ;;  %v2097_v26 = vmul.f32 %v1916_v44, %v1916_v44 }
 0x1f9   : > { %v2132_v21 = vadd.f32 %v2131_v16, %v2130_v8  ;;  %v2033_v23 = vadd.f32 %v2032_v11, %v2031_v57  ;;  %v2137_v7 = vsel %vm1739_vm12, %v2099_v18, 0.0 }
 0x1fa   : > { %v2133_v19 = vsel %vm1739_vm12, %v2097_v26, 0.0 }
 0x1fb   : > { %v2035_v38 = vadd.f32 %v2034_v14, %v2033_v23  ;;  %v2134_v5 = vadd.f32 %v2133_v19, %v2132_v21 }
 0x1fd   : > { %v2136_v9 = vadd.f32 %v2135_v53, %v2134_v5  ;;  %v2037_v35 = vadd.f32 %v2036_v33, %v2035_v38 }
 0x1ff   : > { %v2138_v63 = vadd.f32 %v2137_v7, %v2136_v9 }
 0x206   : > { %v2318_v48 = vpop.f32.mrb[8].mxu0 }
 0x207   : > { %v1928_v61 = vpop.f32.mrb[9].mxu0  ;;  %v1937_v29 = vadd.f32 %v2318_v48, %v4440_v58 }
 0x208   : > { %v1929_v31 = vadd.f32 %v4440_v58, %v1928_v61  ;;  %v2319_v15 = vpop.f32.mrb[10].mxu0 }
 0x209   : > { %v1931_v37 = vpop.f32.mrb[11].mxu0  ;;  %v1940_v6 = vadd.f32 %v2319_v15, %v4440_v58  ;;  %v2102_v47 = vmul.f32 %v1937_v29, %v1937_v29  ;;  %v2042_v32 = vsel %vm1739_vm12, %v1937_v29, 0.0 }
 0x20a   : > { %v2038_v54 = vsel %vm1739_vm12, %v1929_v31, 0.0  ;;  %v2100_v49 = vmul.f32 %v1929_v31, %v1929_v31  ;;  %v1932_v36 = vadd.f32 %v4440_v58, %v1931_v37 }
 0x20b   : > { %v2039_v12 = vadd.f32 %v2038_v54, %v2037_v35  ;;  %v2103_v34 = vmul.f32 %v1940_v6, %v1940_v6  ;;  %v2143_v1 = vsel %vm1739_vm12, %v2102_v47, 0.0  ;;  %v2044_v56 = vsel %vm1739_vm12, %v1940_v6, 0.0 }
 0x20c   : > { %v2139_v51 = vsel %vm1739_vm12, %v2100_v49, 0.0  ;;  %v2040_v52 = vsel %vm1739_vm12, %v1932_v36, 0.0  ;;  %v2101_v17 = vmul.f32 %v1932_v36, %v1932_v36 }
 0x20d   : > { %v2140_v43 = vadd.f32 %v2139_v51, %v2138_v63  ;;  %v2041_v46 = vadd.f32 %v2040_v52, %v2039_v12  ;;  %v2145_v24 = vsel %vm1739_vm12, %v2103_v34, 0.0 }
 0x20e   : > { %v2141_v28 = vsel %vm1739_vm12, %v2101_v17, 0.0 }
 0x20f   : > { %v2043_v42 = vadd.f32 %v2042_v32, %v2041_v46  ;;  %v2142_v39 = vadd.f32 %v2141_v28, %v2140_v43 }
 0x211   : > { %v2144_v0 = vadd.f32 %v2143_v1, %v2142_v39  ;;  %v2045_v3 = vadd.f32 %v2044_v56, %v2043_v42 }
 0x213   : > { %v2146_v20 = vadd.f32 %v2145_v24, %v2144_v0 }
 0x21e   : > { %v2322_v4 = vpop.f32.mrb[12].mxu0 }
 0x21f   : > { %v1944_v30 = vpop.f32.mrb[13].mxu0  ;;  %v1953_v40 = vadd.f32 %v2322_v4, %v4440_v58 }
 0x220   : > { %v1945_v45 = vadd.f32 %v4440_v58, %v1944_v30  ;;  %v2323_v55 = vpop.f32.mrb[14].mxu0 }
 0x221   : > { %v1947_v50 = vpop.f32.mrb[15].mxu0  ;;  %v1956_v62 = vadd.f32 %v2323_v55, %v4440_v58  ;;  %v2106_v59 = vmul.f32 %v1953_v40, %v1953_v40  ;;  %v2050_v57 = vsel %vm1739_vm12, %v1953_v40, 0.0 }
 0x222   : > { %v2046_v8 = vsel %vm1739_vm12, %v1945_v45, 0.0  ;;  %v2104_v10 = vmul.f32 %v1945_v45, %v1945_v45  ;;  %v1948_v60 = vadd.f32 %v4440_v58, %v1947_v50 }
 0x223   : > { %v2047_v27 = vadd.f32 %v2046_v8, %v2045_v3  ;;  %v2107_v25 = vmul.f32 %v1956_v62, %v1956_v62  ;;  %v2151_v21 = vsel %vm1739_vm12, %v2106_v59, 0.0  ;;  %v2052_v23 = vsel %vm1739_vm12, %v1956_v62, 0.0 }
 0x224   : > { %v2147_v13 = vsel %vm1739_vm12, %v2104_v10, 0.0  ;;  %v2048_v41 = vsel %vm1739_vm12, %v1948_v60, 0.0  ;;  %v2105_v22 = vmul.f32 %v1948_v60, %v1948_v60 }
 0x225   : > { %v2148_v2 = vadd.f32 %v2147_v13, %v2146_v20  ;;  %v2049_v44 = vadd.f32 %v2048_v41, %v2047_v27  ;;  %v2153_v19 = vsel %vm1739_vm12, %v2107_v25, 0.0 }
 0x226   : > { %v2149_v16 = vsel %vm1739_vm12, %v2105_v22, 0.0 }
 0x227   : > { %v2051_v11 = vadd.f32 %v2050_v57, %v2049_v44  ;;  %v2150_v26 = vadd.f32 %v2149_v16, %v2148_v2 }
 0x229   : > { %v2152_v14 = vadd.f32 %v2151_v21, %v2150_v26  ;;  %v2053_v18 = vadd.f32 %v2052_v23, %v2051_v11 }
 0x22b   : > { %v2154_v38 = vadd.f32 %v2153_v19, %v2152_v14 }
 0x236   : > { %v2326_v5 = vpop.f32.mrb[0].mxu1 }
 0x237   : > { %v1960_v53 = vpop.f32.mrb[1].mxu1  ;;  %v1969_v33 = vadd.f32 %v2326_v5, %v4440_v58 }
 0x238   : > { %v1961_v9 = vadd.f32 %v4440_v58, %v1960_v53  ;;  %v2327_v35 = vpop.f32.mrb[2].mxu1 }
 0x239   : > { %v1963_v7 = vpop.f32.mrb[3].mxu1  ;;  %v1972_v61 = vadd.f32 %v2327_v35, %v4440_v58  ;;  %v2110_v15 = vmul.f32 %v1969_v33, %v1969_v33  ;;  %v2058_v12 = vsel %vm1739_vm12, %v1969_v33, 0.0 }
 0x23a   : > { %v2054_v63 = vsel %vm1739_vm12, %v1961_v9, 0.0  ;;  %v2108_v48 = vmul.f32 %v1961_v9, %v1961_v9  ;;  %v1964_v29 = vadd.f32 %v4440_v58, %v1963_v7 }
 0x23b   : > { %v2055_v31 = vadd.f32 %v2054_v63, %v2053_v18  ;;  %v2111_v47 = vmul.f32 %v1972_v61, %v1972_v61  ;;  %v2159_v43 = vsel %vm1739_vm12, %v2110_v15, 0.0  ;;  %v2060_v46 = vsel %vm1739_vm12, %v1972_v61, 0.0 }
 0x23c   : > { %v2155_v37 = vsel %vm1739_vm12, %v2108_v48, 0.0  ;;  %v2056_v54 = vsel %vm1739_vm12, %v1964_v29, 0.0  ;;  %v2109_v49 = vmul.f32 %v1964_v29, %v1964_v29 }
 0x23d   : > { %v2156_v6 = vadd.f32 %v2155_v37, %v2154_v38  ;;  %v2057_v36 = vadd.f32 %v2056_v54, %v2055_v31  ;;  %v2161_v28 = vsel %vm1739_vm12, %v2111_v47, 0.0 }
 0x23e   : > { %v2157_v51 = vsel %vm1739_vm12, %v2109_v49, 0.0 }
 0x23f   : > { %v2059_v52 = vadd.f32 %v2058_v12, %v2057_v36  ;;  %v2158_v17 = vadd.f32 %v2157_v51, %v2156_v6 }
 0x241   : > { %v2160_v32 = vadd.f32 %v2159_v43, %v2158_v17  ;;  %v2061_v34 = vadd.f32 %v2060_v46, %v2059_v52 }
 0x243   : > { %v2162_v42 = vadd.f32 %v2161_v28, %v2160_v32 }
 0x24e   : > { %v2330_v39 = vpop.f32.mrb[4].mxu1 }
 0x24f   : > { %v1976_v1 = vpop.f32.mrb[5].mxu1  ;;  %v1985_v56 = vadd.f32 %v2330_v39, %v4440_v58 }
 0x250   : > { %v1977_v0 = vadd.f32 %v4440_v58, %v1976_v1  ;;  %v2331_v3 = vpop.f32.mrb[6].mxu1 }
 0x251   : > { %v1979_v24 = vpop.f32.mrb[7].mxu1  ;;  %v1988_v30 = vadd.f32 %v2331_v3, %v4440_v58  ;;  %v2114_v55 = vmul.f32 %v1985_v56, %v1985_v56  ;;  %v2066_v27 = vsel %vm1739_vm12, %v1985_v56, 0.0 }
 0x252   : > { %v2062_v20 = vsel %vm1739_vm12, %v1977_v0, 0.0  ;;  %v2112_v4 = vmul.f32 %v1977_v0, %v1977_v0  ;;  %v1980_v40 = vadd.f32 %v4440_v58, %v1979_v24 }
 0x253   : > { %v2063_v45 = vadd.f32 %v2062_v20, %v2061_v34  ;;  %v2115_v59 = vmul.f32 %v1988_v30, %v1988_v30  ;;  %v2167_v2 = vsel %vm1739_vm12, %v2114_v55, 0.0  ;;  %v2068_v44 = vsel %vm1739_vm12, %v1988_v30, 0.0 }
 0x254   : > { %v2163_v50 = vsel %vm1739_vm12, %v2112_v4, 0.0  ;;  %v2064_v8 = vsel %vm1739_vm12, %v1980_v40, 0.0  ;;  %v2113_v10 = vmul.f32 %v1980_v40, %v1980_v40 }
 0x255   : > { %v2164_v62 = vadd.f32 %v2163_v50, %v2162_v42  ;;  %v2065_v60 = vadd.f32 %v2064_v8, %v2063_v45  ;;  %v2169_v16 = vsel %vm1739_vm12, %v2115_v59, 0.0 }
 0x256   : > { %v2165_v13 = vsel %vm1739_vm12, %v2113_v10, 0.0 }
 0x257   : > { %v2067_v41 = vadd.f32 %v2066_v27, %v2065_v60  ;;  %v2166_v22 = vadd.f32 %v2165_v13, %v2164_v62 }
 0x259   : > { %v2168_v57 = vadd.f32 %v2167_v2, %v2166_v22  ;;  %v2069_v25 = vadd.f32 %v2068_v44, %v2067_v41 }
 0x25b   : > { %v2170_v11 = vadd.f32 %v2169_v16, %v2168_v57 }
 0x266   : > { %v2334_v26 = vpop.f32.mrb[8].mxu1 }
 0x267   : > { %v1992_v21 = vpop.f32.mrb[9].mxu1  ;;  %v2001_v23 = vadd.f32 %v2334_v26, %v4440_v58 }
 0x268   : > { %v1993_v14 = vadd.f32 %v4440_v58, %v1992_v21  ;;  %v2335_v18 = vpop.f32.mrb[10].mxu1 }
 0x269   : > { %v1995_v19 = vpop.f32.mrb[11].mxu1  ;;  %v2004_v53 = vadd.f32 %v2335_v18, %v4440_v58  ;;  %v2118_v35 = vmul.f32 %v2001_v23, %v2001_v23  ;;  %v2074_v31 = vsel %vm1739_vm12, %v2001_v23, 0.0 }
 0x26a   : > { %v2070_v38 = vsel %vm1739_vm12, %v1993_v14, 0.0  ;;  %v2116_v5 = vmul.f32 %v1993_v14, %v1993_v14  ;;  %v1996_v33 = vadd.f32 %v4440_v58, %v1995_v19 }
 0x26b   : > { %v2071_v9 = vadd.f32 %v2070_v38, %v2069_v25  ;;  %v2119_v15 = vmul.f32 %v2004_v53, %v2004_v53  ;;  %v2175_v6 = vsel %vm1739_vm12, %v2118_v35, 0.0  ;;  %v2076_v36 = vsel %vm1739_vm12, %v2004_v53, 0.0 }
 0x26c   : > { %v2171_v7 = vsel %vm1739_vm12, %v2116_v5, 0.0  ;;  %v2072_v63 = vsel %vm1739_vm12, %v1996_v33, 0.0  ;;  %v2117_v48 = vmul.f32 %v1996_v33, %v1996_v33 }
 0x26d   : > { %v2172_v61 = vadd.f32 %v2171_v7, %v2170_v11  ;;  %v2073_v29 = vadd.f32 %v2072_v63, %v2071_v9  ;;  %v2177_v51 = vsel %vm1739_vm12, %v2119_v15, 0.0 }
 0x26e   : > { %v2173_v37 = vsel %vm1739_vm12, %v2117_v48, 0.0 }
 0x26f   : > { %v2075_v54 = vadd.f32 %v2074_v31, %v2073_v29  ;;  %v2174_v49 = vadd.f32 %v2173_v37, %v2172_v61 }
 0x271   : > { %v2176_v12 = vadd.f32 %v2175_v6, %v2174_v49  ;;  %v2077_v47 = vadd.f32 %v2076_v36, %v2075_v54 }
 0x273   : > { %v2178_v52 = vadd.f32 %v2177_v51, %v2176_v12 }
 0x27e   : > { %v2338_v17 = vpop.f32.mrb[12].mxu1 }
 0x27f   : > { %v2008_v43 = vpop.f32.mrb[13].mxu1  ;;  %v2017_v46 = vadd.f32 %v2338_v17, %v4440_v58 }
 0x280   : > { %v2009_v32 = vadd.f32 %v4440_v58, %v2008_v43  ;;  %v2339_v34 = vpop.f32.mrb[14].mxu1 }
 0x281   : > { %v2011_v28 = vpop.f32.mrb[15].mxu1  ;;  %v2020_v1 = vadd.f32 %v2339_v34, %v4440_v58  ;;  %v2122_v3 = vmul.f32 %v2017_v46, %v2017_v46  ;;  %v2082_v45 = vsel %vm1739_vm12, %v2017_v46, 0.0 }
 0x282   : > { %v2078_v42 = vsel %vm1739_vm12, %v2009_v32, 0.0  ;;  %v2120_v39 = vmul.f32 %v2009_v32, %v2009_v32  ;;  %v2012_v56 = vadd.f32 %v4440_v58, %v2011_v28 }
 0x283   : > { %v2079_v0 = vadd.f32 %v2078_v42, %v2077_v47  ;;  %v2123_v55 = vmul.f32 %v2020_v1, %v2020_v1  ;;  %v2183_v62 = vsel %vm1739_vm12, %v2122_v3, 0.0  ;;  %v2084_v58 = vsel %vm1739_vm12, %v2020_v1, 0.0 }
 0x284   : > { %v2179_v24 = vsel %vm1739_vm12, %v2120_v39, 0.0  ;;  %v2080_v20 = vsel %vm1739_vm12, %v2012_v56, 0.0  ;;  %v2121_v4 = vmul.f32 %v2012_v56, %v2012_v56 }
 0x285   : > { %v2180_v30 = vadd.f32 %v2179_v24, %v2178_v52  ;;  %v2081_v40 = vadd.f32 %v2080_v20, %v2079_v0  ;;  %v2185_v59 = vsel %vm1739_vm12, %v2123_v55, 0.0 }
 0x286   : > { %v2181_v50 = vsel %vm1739_vm12, %v2121_v4, 0.0 }
 0x287   : > { %v2083_v8 = vadd.f32 %v2082_v45, %v2081_v40  ;;  %v2182_v10 = vadd.f32 %v2181_v50, %v2180_v30 }
 0x289   : > { %v2085_v60 = vadd.f32 %v2084_v58, %v2083_v8  ;;  %v2184_v27 = vadd.f32 %v2183_v62, %v2182_v10 }
 0x28b   : > { %v2086_v13 = vrot.slane %v2085_v60, 4  ;;  %v2186_v41 = vadd.f32 %v2185_v59, %v2184_v27 }
 0x28d   : > { %v2087_v22 = vadd.f32 %v2086_v13, %v2085_v60  ;;  %v2187_v2 = vrot.slane %v2186_v41, 4 }
 0x28f   : > { %v2088_v44 = vrot.slane %v2087_v22, 2  ;;  %v2188_v57 = vadd.f32 %v2187_v2, %v2186_v41 }
 0x291   : > { %v2089_v25 = vadd.f32 %v2088_v44, %v2087_v22  ;;  %v2189_v16 = vrot.slane %v2188_v57, 2 }
 0x293   : > { %v2090_v11 = vrot.slane %v2089_v25, 1  ;;  %v2190_v26 = vadd.f32 %v2189_v16, %v2188_v57 }
 0x295   : > { %v2191_v21 = vrot.slane %v2190_v26, 1  ;;  %v2091_v23 = vadd.f32 %v2090_v11, %v2089_v25 }
 0x297   : > { %v2192_v14 = vadd.f32 %v2191_v21, %v2190_v26 }
 0x299   : > { %v2194_v18 = vsel %vm2193_vm14, %v2091_v23, %v2192_v14 }
 0x29a   : > { %2196 = vst.msk [vmem:[%s222_s29] sm:$0x3] %vm2195_vm15, %v2194_v18 }
 0x29b PF: > { %s15_s18 = sadd.s32 1, %s3044_s18  }
 0x29c   : > { %p12_p4 = scmp.ge.s32.totalorder %s15_s18, 4  }
 0x29e   :  { %14 = sbr.rel (!%p12_p4) target bundleno = 1 (0x1), region = 72 }

// kernel: resnet_block_up.3
= control target key start
LH: loop header
LB: loop body
LE: loop exit
PB: predicated region body
PF: predicated region fallthrough
CT: control target
= control target key end

     0   :  { %s5963_s30 = smov 0   ;;  %s9114_s0 = inlined_call_operand.vmem [shape: f32[2,16,16,4], index: 0, kind: input, shape index: {}]   ;;  %s9115_s1 = inlined_call_operand.vmem [shape: bf16[36,32], index: 1, kind: input, shape index: {}]   ;;  %s9116_s2 = inlined_call_operand.vmem [shape: f32[1,32], index: 2, kind: input, shape index: {}]   ;;  %s9117_s3 = inlined_call_operand.vmem [shape: f32[1,4], index: 3, kind: input, shape index: {}]   ;;  %s9118_s4 = inlined_call_operand.vmem [shape: f32[1,4], index: 4, kind: input, shape index: {}]   ;;  %s9119_s5 = inlined_call_operand.vmem [shape: f32[1,32], index: 5, kind: input, shape index: {}]   ;;  %s9120_s6 = inlined_call_operand.vmem [shape: f32[1,32], index: 6, kind: input, shape index: {}]   ;;  %s9121_s7 = inlined_call_operand.vmem [shape: bf16[292,128], index: 7, kind: input, shape index: {}]   ;;  %s9122_s8 = inlined_call_operand.vmem [shape: f32[1,128], index: 8, kind: input, shape index: {}]   ;;  %s9123_s9 = inlined_call_operand.vmem [shape: f32[2,16,16,128], index: 9, kind: output, shape index: {}]  }
   0x1 LB: > { %s4266_s10 = sadd.s32 4294967295, %s5900_s30   ;;  %p4270_p0 = scmp.ge.s32.totalorder %s5900_s30, 1  ;;  %s5900_s30 = sphi %s5963_s30, %s19_s30  }
   0x2   : > { %p287_p1 = scmp.lt.s32.totalorder %s5900_s30, 3 }
   0x4   : > { %p288_p2 = pnand %p4270_p0, %p287_p1 }
   0x6   : > { %291 = sbr.rel (%p288_p2) target bundleno = 1093 (0x445), region = 56 }
   0xd   : > { %vm482_vm0 = vcmask 31744   ;;  %vm485_vm1 = vcmask 25600   ;;  %vm491_vm2 = vcmask 24576   ;;  %p5973_p3 = scmp.lt.s32.totalorder %s4266_s10, 1  ;;  %v9124_v0 = vmov 0.0   ;;  %s5903_s20 = smov 4  }
   0xe   : > { %483 = vst.msk [vmem:[#allocation2] sm:$0xff] %vm482_vm0, %v9124_v0  ;;  %484 = vst.msk [vmem:[#allocation2 + $0x8] sm:$0xff] %vm482_vm0, %v9124_v0  ;;  %v6068_v1 = vld [vmem:[%s9117_s3] ss:$0 sm:$0xff]  ;;  %vm663_vm3 = vcmask 1046528   ;;  %vm744_vm4 = vcmask 1045504  }
   0xf   : > { %486 = vst.msk [vmem:[#allocation2 + $0x10] sm:$0x3] %vm485_vm1, %v9124_v0  ;;  %490 = vst.msk [vmem:[#allocation2 + $0x1a8] sm:$0x3] %vm485_vm1, %v9124_v0  ;;  %s9357_s10 = smov (!%p5973_p3, %s4266_s10), 1  ;;  %s5904_s21 = smov 8  }
  0x10   : > { %488 = vst.msk [vmem:[#allocation2 + $0x198] sm:$0xff] %vm482_vm0, %v9124_v0  ;;  %489 = vst.msk [vmem:[#allocation2 + $0x1a0] sm:$0xff] %vm482_vm0, %v9124_v0  ;;  %s4337_s14 = sshll.u32 %s9357_s10, 8  ;;  %v6074_v2 = vld [vmem:[%s9118_s4] ss:$0 sm:$0xff]  ;;  %s5905_s22 = smov 12  }
  0x11   : > { %493 = vst.msk [vmem:[#allocation2 + $0x18] sm:$0x1] %vm491_vm2, %v9124_v0  ;;  %494 = vst.msk [vmem:[#allocation2 + $0x30] sm:$0x1] %vm491_vm2, %v9124_v0  ;;  %s6081_s19 = scalar_lea.vmem %s9114_s0, %s4337_s14  ;;  %s5906_s23 = smov 16   ;;  %vm1849_vm5 = vcmask 261120  }
  0x12   : > { %495 = vst.msk [vmem:[#allocation2 + $0x48] sm:$0x1] %vm491_vm2, %v9124_v0  ;;  %496 = vst.msk [vmem:[#allocation2 + $0x60] sm:$0x1] %vm491_vm2, %v9124_v0  ;;  %v336_v3 = vld [vmem:[%s6081_s19 + $0x10] sm:$0xff]  ;;  %v337_v4 = vld [vmem:[%s6081_s19 + $0x18] sm:$0xff]  ;;  %s9030_s18 = scalar_lea.vmem %s9123_s9, %s4337_s14 }
  0x13   : > { %497 = vst.msk [vmem:[#allocation2 + $0x78] sm:$0x1] %vm491_vm2, %v9124_v0  ;;  %498 = vst.msk [vmem:[#allocation2 + $0x90] sm:$0x1] %vm491_vm2, %v9124_v0  ;;  %v334_v5 = vld [vmem:[%s6081_s19] sm:$0xff]  ;;  %v382_v6 = vmul.f32 %v6068_v1, %v336_v3  ;;  %v383_v7 = vmul.f32 %v6068_v1, %v337_v4  ;;  %v335_v8 = vld [vmem:[%s6081_s19 + $0x8] sm:$0xff] }
  0x14   : > { %499 = vst.msk [vmem:[#allocation2 + $0xa8] sm:$0x1] %vm491_vm2, %v9124_v0  ;;  %500 = vst.msk [vmem:[#allocation2 + $0xc0] sm:$0x1] %vm491_vm2, %v9124_v0  ;;  %v380_v9 = vmul.f32 %v6068_v1, %v334_v5  ;;  %v338_v10 = vld [vmem:[%s6081_s19 + $0x20] sm:$0xff]  ;;  %v339_v11 = vld [vmem:[%s6081_s19 + $0x28] sm:$0xff]  ;;  %v381_v13 = vmul.f32 %v6068_v1, %v335_v8 }
  0x15   : > { %501 = vst.msk [vmem:[#allocation2 + $0xd8] sm:$0x1] %vm491_vm2, %v9124_v0  ;;  %502 = vst.msk [vmem:[#allocation2 + $0xf0] sm:$0x1] %vm491_vm2, %v9124_v0  ;;  %v6092_v12 = vld [vmem:[#allocation2 + $0x8] sm:$0xff]  ;;  %v384_v14 = vmul.f32 %v6068_v1, %v338_v10  ;;  %v385_v15 = vmul.f32 %v6068_v1, %v339_v11  ;;  %v420_v19 = vadd.f32 %v6074_v2, %v382_v6  ;;  %v340_v25 = vld [vmem:[%s6081_s19 + $0x30] sm:$0xff] }
  0x16   : > { %503 = vst.msk [vmem:[#allocation2 + $0x108] sm:$0x1] %vm491_vm2, %v9124_v0  ;;  %504 = vst.msk [vmem:[#allocation2 + $0x120] sm:$0x1] %vm491_vm2, %v9124_v0  ;;  %v665_v18 = vrot.slane %v6092_v12, 1  ;;  %v421_v20 = vadd.f32 %v6074_v2, %v383_v7  ;;  %v418_v21 = vadd.f32 %v6074_v2, %v380_v9  ;;  %v419_v24 = vadd.f32 %v6074_v2, %v381_v13  ;;  %v341_v26 = vld [vmem:[%s6081_s19 + $0x38] sm:$0xff] }
  0x17   : > { %505 = vst.msk [vmem:[#allocation2 + $0x138] sm:$0x1] %vm491_vm2, %v9124_v0  ;;  %506 = vst.msk [vmem:[#allocation2 + $0x150] sm:$0x1] %vm491_vm2, %v9124_v0  ;;  %v452_v27 = vmax.f32 %v420_v19, 0.0  ;;  %v422_v30 = vadd.f32 %v6074_v2, %v384_v14  ;;  %v342_v31 = vld [vmem:[%s6081_s19 + $0x40] sm:$0xff]  ;;  %v423_v37 = vadd.f32 %v6074_v2, %v385_v15  ;;  %v386_v42 = vmul.f32 %v6068_v1, %v340_v25 }
  0x18   : > { %507 = vst.msk [vmem:[#allocation2 + $0x168] sm:$0x1] %vm491_vm2, %v9124_v0  ;;  %508 = vst.msk [vmem:[#allocation2 + $0x180] sm:$0x1] %vm491_vm2, %v9124_v0  ;;  %v453_v28 = vmax.f32 %v421_v20, 0.0  ;;  %v450_v29 = vmax.f32 %v418_v21, 0.0  ;;  %v387_v43 = vmul.f32 %v6068_v1, %v341_v26  ;;  %v388_v46 = vmul.f32 %v6068_v1, %v342_v31 }
  0x19   : > { %511 = vst.msk [vmem:[#allocation2 + $0x29] sm:$0x1] %vm491_vm2, %v9124_v0  ;;  %512 = vst.msk [vmem:[#allocation2 + $0x41] sm:$0x1] %vm491_vm2, %v9124_v0  ;;  %v343_v32 = vld [vmem:[%s6081_s19 + $0x48] sm:$0xff]  ;;  %v344_v33 = vld [vmem:[%s6081_s19 + $0x50] sm:$0xff]  ;;  %v424_v49 = vadd.f32 %v6074_v2, %v386_v42 }
  0x1a   : > { %513 = vst.msk [vmem:[#allocation2 + $0x59] sm:$0x1] %vm491_vm2, %v9124_v0  ;;  %514 = vst.msk [vmem:[#allocation2 + $0x71] sm:$0x1] %vm491_vm2, %v9124_v0  ;;  %v451_v36 = vmax.f32 %v419_v24, 0.0  ;;  %v345_v38 = vld [vmem:[%s6081_s19 + $0x58] sm:$0xff]  ;;  %v389_v47 = vmul.f32 %v6068_v1, %v343_v32  ;;  %v390_v48 = vmul.f32 %v6068_v1, %v344_v33  ;;  %v425_v50 = vadd.f32 %v6074_v2, %v387_v43 }
  0x1b   : > { %515 = vst.msk [vmem:[#allocation2 + $0x89] sm:$0x1] %vm491_vm2, %v9124_v0  ;;  %516 = vst.msk [vmem:[#allocation2 + $0xa1] sm:$0x1] %vm491_vm2, %v9124_v0  ;;  %v346_v39 = vld [vmem:[%s6081_s19 + $0x60] sm:$0xff]  ;;  %v454_v41 = vmax.f32 %v422_v30, 0.0  ;;  %v391_v51 = vmul.f32 %v6068_v1, %v345_v38  ;;  %v426_v53 = vadd.f32 %v6074_v2, %v388_v46 }
  0x1c   : > { %517 = vst.msk [vmem:[#allocation2 + $0xb9] sm:$0x1] %vm491_vm2, %v9124_v0  ;;  %518 = vst.msk [vmem:[#allocation2 + $0xd1] sm:$0x1] %vm491_vm2, %v9124_v0  ;;  %v347_v44 = vld [vmem:[%s6081_s19 + $0x68] sm:$0xff]  ;;  %v455_v45 = vmax.f32 %v423_v37, 0.0  ;;  %v392_v52 = vmul.f32 %v6068_v1, %v346_v39  ;;  %v427_v54 = vadd.f32 %v6074_v2, %v389_v47  ;;  %v428_v55 = vadd.f32 %v6074_v2, %v390_v48 }
  0x1d   : > { %519 = vst.msk [vmem:[#allocation2 + $0xe9] sm:$0x1] %vm491_vm2, %v9124_v0  ;;  %520 = vst.msk [vmem:[#allocation2 + $0x101] sm:$0x1] %vm491_vm2, %v9124_v0  ;;  %v393_v56 = vmul.f32 %v6068_v1, %v347_v44  ;;  %v348_v57 = vld [vmem:[%s6081_s19 + $0x70] sm:$0xff]  ;;  %v349_v58 = vld [vmem:[%s6081_s19 + $0x78] sm:$0xff]  ;;  %v429_v61 = vadd.f32 %v6074_v2, %v391_v51 }
  0x1e   : > { %521 = vst.msk [vmem:[#allocation2 + $0x119] sm:$0x1] %vm491_vm2, %v9124_v0  ;;  %522 = vst.msk [vmem:[#allocation2 + $0x131] sm:$0x1] %vm491_vm2, %v9124_v0  ;;  %v456_v59 = vmax.f32 %v424_v49, 0.0  ;;  %v457_v60 = vmax.f32 %v425_v50, 0.0  ;;  %v430_v62 = vadd.f32 %v6074_v2, %v392_v52  ;;  %v394_v11 = vmul.f32 %v6068_v1, %v348_v57 }
  0x1f   : > { %523 = vst.msk [vmem:[#allocation2 + $0x149] sm:$0x1] %vm491_vm2, %v9124_v0  ;;  %524 = vst.msk [vmem:[#allocation2 + $0x161] sm:$0x1] %vm491_vm2, %v9124_v0  ;;  %v350_v63 = vld [vmem:[%s6081_s19 + $0x80] sm:$0xff]  ;;  %v351_v3 = vld [vmem:[%s6081_s19 + $0x88] sm:$0xff]  ;;  %v431_v7 = vadd.f32 %v6074_v2, %v393_v56  ;;  %v395_v13 = vmul.f32 %v6068_v1, %v349_v58 }
  0x20   : > { %525 = vst.msk [vmem:[#allocation2 + $0x179] sm:$0x1] %vm491_vm2, %v9124_v0  ;;  %526 = vst.msk [vmem:[#allocation2 + $0x191] sm:$0x1] %vm491_vm2, %v9124_v0  ;;  %v458_v4 = vmax.f32 %v426_v53, 0.0  ;;  %v459_v5 = vmax.f32 %v427_v54, 0.0  ;;  %v396_v20 = vmul.f32 %v6068_v1, %v350_v63  ;;  %v397_v21 = vmul.f32 %v6068_v1, %v351_v3 }
  0x21   : > { %492 = vst.msk [vmem:[#allocation2] sm:$0x1] %vm491_vm2, %v9124_v0  ;;  %510 = vst.msk [vmem:[#allocation2 + $0x11] sm:$0x1] %vm491_vm2, %v9124_v0  ;;  %v460_v6 = vmax.f32 %v428_v55, 0.0  ;;  %v352_v8 = vld [vmem:[%s6081_s19 + $0x90] sm:$0xff]  ;;  %v432_v32 = vadd.f32 %v6074_v2, %v394_v11  ;;  %v433_v33 = vadd.f32 %v6074_v2, %v395_v13 }
  0x22   : > { %527 = vst.msk [vmem:[#allocation2 + $0x1a9] sm:$0x1] %vm491_vm2, %v9124_v0  ;;  %509 = vst.msk [vmem:[#allocation2 + $0x198] sm:$0x1] %vm491_vm2, %v9124_v0  ;;  %v461_v9 = vmax.f32 %v429_v61, 0.0  ;;  %v462_v10 = vmax.f32 %v430_v62, 0.0  ;;  %v434_v48 = vadd.f32 %v6074_v2, %v396_v20  ;;  %v435_v55 = vadd.f32 %v6074_v2, %v397_v21 }
  0x23   : > { %9205 = vst [vmem:[#allocation4_spill] sm:$0xff] %v6074_v2  ;;  %531 = vst.msk [vmem:[#allocation2 + $0x31] sm:$0xff] %vm482_vm0, %v452_v27  ;;  %v463_v19 = vmax.f32 %v431_v7, 0.0  ;;  %v6173_v27 = vmul.f32 %v6068_v1, %v352_v8  ;;  %v464_v46 = vmax.f32 %v432_v32, 0.0  ;;  %v465_v47 = vmax.f32 %v433_v33, 0.0  ;;  %v355_v32 = vld [vmem:[%s6081_s19 + $0xa8] sm:$0xff] }
  0x24   : > { %532 = vst.msk [vmem:[#allocation2 + $0x39] sm:$0xff] %vm482_vm0, %v453_v28  ;;  %529 = vst.msk [vmem:[#allocation2 + $0x19] sm:$0xff] %vm482_vm0, %v450_v29  ;;  %s5907_s28 = smov 20   ;;  %vm1968_vm6 = vcmask 1041408   ;;  %s5908_s12 = smov 24   ;;  %vm1651_vm7 = vcmask 64512  }
  0x25   : > { %530 = vst.msk [vmem:[#allocation2 + $0x21] sm:$0xff] %vm482_vm0, %v451_v36  ;;  %533 = vst.msk [vmem:[#allocation2 + $0x49] sm:$0xff] %vm482_vm0, %v454_v41  ;;  %s5909_s13 = smov 28   ;;  %s5910_s15 = smov 32   ;;  %vm1684_vm8 = vcmask 97280   ;;  %vm1717_vm9 = vcmask 130048  }
  0x26   : > { %534 = vst.msk [vmem:[#allocation2 + $0x51] sm:$0xff] %vm482_vm0, %v455_v45  ;;  %535 = vst.msk [vmem:[#allocation2 + $0x61] sm:$0xff] %vm482_vm0, %v456_v59  ;;  %vm2245_vm10 = vcmask 254976   ;;  %vm2251_vm11 = vcmask 253952   ;;  %vm1750_vm12 = vcmask 162816   ;;  %vm1783_vm13 = vcmask 195584  }
  0x27   : > { %536 = vst.msk [vmem:[#allocation2 + $0x69] sm:$0xff] %vm482_vm0, %v457_v60  ;;  %537 = vst.msk [vmem:[#allocation2 + $0x79] sm:$0xff] %vm482_vm0, %v458_v4  ;;  %vm1816_vm14 = vcmask 228352   ;;  %vm1919_vm15 = vcmask 293888   ;;  %s5911_s16 = smov 64   ;;  %s5912_s24 = smov 96  }
  0x28   : > { %v6097_v16 = vld [vmem:[#allocation2] sm:$0xff]  ;;  %v6099_v17 = vld [vmem:[#allocation2 + $0x10] sm:$0x3]  ;;  %538 = vst.msk [vmem:[#allocation2 + $0x81] sm:$0xff] %vm482_vm0, %v459_v5  ;;  %539 = vst.msk [vmem:[#allocation2 + $0x91] sm:$0xff] %vm482_vm0, %v460_v6  ;;  %vm3442_vm1 = vcmask 785408  }
  0x29   : > { %v664_v22 = vrot.slane %v6097_v16, 1  ;;  %v667_v23 = vrot.slane %v6099_v17, 1  ;;  %540 = vst.msk [vmem:[#allocation2 + $0x99] sm:$0xff] %vm482_vm0, %v461_v9  ;;  %541 = vst.msk [vmem:[#allocation2 + $0xa9] sm:$0xff] %vm482_vm0, %v462_v10 }
  0x2a   : > { %v6152_v14 = vld [vmem:[#allocation2 + $0x30] sm:$0xff]  ;;  %542 = vst.msk [vmem:[#allocation2 + $0xb1] sm:$0xff] %vm482_vm0, %v463_v19  ;;  %543 = vst.msk [vmem:[#allocation2 + $0xc1] sm:$0xff] %vm482_vm0, %v464_v46  ;;  %v358_v46 = vld [vmem:[%s6081_s19 + $0xc0] sm:$0xff] }
  0x2b   : > { %v666_v34 = vsel %vm663_vm3, %v664_v22, %v665_v18  ;;  %v668_v35 = vsel %vm663_vm3, %v665_v18, %v667_v23  ;;  %9206 = vst [vmem:[#allocation5_spill] sm:$0xff] %v6152_v14  ;;  %v6154_v15 = vld [vmem:[#allocation2 + $0x38] sm:$0xff]  ;;  %v6156_v18 = vld [vmem:[#allocation2 + $0x40] sm:$0x3]  ;;  %v674_v22 = vrot.slane %v6152_v14, 1  ;;  %544 = vst.msk [vmem:[#allocation2 + $0xc9] sm:$0xff] %vm482_vm0, %v465_v47 }
  0x2c   : > { %v4586_v40 = vpack.i.bf16 %v668_v35, %v666_v34  ;;  %9207 = vst [vmem:[#allocation6_spill] sm:$0xff] %v6154_v15  ;;  %v675_v23 = vrot.slane %v6154_v15, 1  ;;  %v677_v24 = vrot.slane %v6156_v18, 1  ;;  %v6166_v25 = vld [vmem:[#allocation2 + $0x18] sm:$0xff]  ;;  %v6168_v26 = vld [vmem:[#allocation2 + $0x20] sm:$0xff]  ;;  %v6179_v31 = vld [vmem:[#allocation2 + $0x48] sm:$0xff] }
  0x2d   : > { %9208 = vst [vmem:[#allocation7_spill] sm:$0xff] %v6166_v25  ;;  %9209 = vst [vmem:[#allocation8_spill] sm:$0xff] %v6168_v26  ;;  %v6175_v28 = vld [vmem:[#allocation2 + $0x28] sm:$0x3]  ;;  %v669_v29 = vrot.slane %v6166_v25, 1  ;;  %v670_v30 = vrot.slane %v6168_v26, 1 }
  0x2e   : > { %4587 = vrot.lane.b32.xlu0 %v4586_v40, %s5903_s20  ;;  %v676_v34 = vsel %vm663_vm3, %v674_v22, %v675_v23  ;;  %v678_v35 = vsel %vm663_vm3, %v675_v23, %v677_v24  ;;  %v672_v36 = vrot.slane %v6175_v28, 1  ;;  %v6187_v37 = vld [vmem:[#allocation2 + $0x50] sm:$0xff]  ;;  %v6189_v38 = vld [vmem:[#allocation2 + $0x58] sm:$0x3]  ;;  %v679_v39 = vrot.slane %v6179_v31, 1  ;;  %v6206_v52 = vld [vmem:[#allocation2 + $0x60] sm:$0xff] }
  0x2f   : > { %v353_v40 = vld [vmem:[%s6081_s19 + $0x98] sm:$0xff]  ;;  %v6193_v41 = vpack.i.bf16 %v678_v35, %v676_v34  ;;  %v671_v42 = vsel %vm663_vm3, %v669_v29, %v670_v30  ;;  %v680_v43 = vrot.slane %v6187_v37, 1  ;;  %v682_v44 = vrot.slane %v6189_v38, 1  ;;  %v6208_v53 = vld [vmem:[#allocation2 + $0x68] sm:$0xff]  ;;  %v6210_v54 = vld [vmem:[#allocation2 + $0x70] sm:$0x3] }
  0x30   : > { %v673_v45 = vsel %vm663_vm3, %v670_v30, %v672_v36  ;;  %v684_v57 = vrot.slane %v6206_v52, 1  ;;  %v685_v58 = vrot.slane %v6208_v53, 1  ;;  %v687_v59 = vrot.slane %v6210_v54, 1  ;;  %v6218_v60 = vld [vmem:[#allocation2 + $0x78] sm:$0xff]  ;;  %v6220_v61 = vld [vmem:[#allocation2 + $0x80] sm:$0xff]  ;;  %v6222_v62 = vld [vmem:[#allocation2 + $0x90] sm:$0xff] }
  0x31   : > { %9210 = vst [vmem:[#allocation9_spill] sm:$0xff] %v6193_v41  ;;  %4597 = vrot.lane.b32.xlu1 %v6193_v41, %s5903_s20  ;;  %v6202_v49 = vpack.i.bf16 %v673_v45, %v671_v42  ;;  %v681_v50 = vsel %vm663_vm3, %v679_v39, %v680_v43  ;;  %v683_v51 = vsel %vm663_vm3, %v680_v43, %v682_v44  ;;  %v6228_v63 = vld [vmem:[#allocation2 + $0x88] sm:$0x3]  ;;  %v689_v3 = vrot.slane %v6218_v60, 1  ;;  %v6232_v5 = vld [vmem:[#allocation2 + $0x98] sm:$0xff]  ;;  %v6244_v20 = vld [vmem:[#allocation2 + $0xb0] sm:$0xff] }
  0x32   : > { %v6213_v56 = vpack.i.bf16 %v683_v51, %v681_v50  ;;  %v690_v4 = vrot.slane %v6220_v61, 1  ;;  %v694_v6 = vrot.slane %v6222_v62, 1  ;;  %v399_v7 = vmul.f32 %v6068_v1, %v353_v40  ;;  %v6239_v11 = vld [vmem:[#allocation2 + $0xa0] sm:$0x3]  ;;  %v6242_v19 = vld [vmem:[#allocation2 + $0xa8] sm:$0xff]  ;;  %v356_v39 = vld [vmem:[%s6081_s19 + $0xb0] sm:$0xff] }
  0x33   : > { %9211 = vst [vmem:[#allocation10_spill] sm:$0xff] %v6202_v49  ;;  %4592 = vrot.lane.b32.xlu0 %v6202_v49, %s5903_s20  ;;  %v686_v8 = vsel %vm663_vm3, %v684_v57, %v685_v58  ;;  %v688_v9 = vsel %vm663_vm3, %v685_v58, %v687_v59  ;;  %v692_v10 = vrot.slane %v6228_v63, 1  ;;  %v695_v13 = vrot.slane %v6232_v5, 1  ;;  %v6252_v24 = vld [vmem:[#allocation2 + $0xb8] sm:$0x3]  ;;  %v354_v30 = vld [vmem:[%s6081_s19 + $0xa0] sm:$0xff] }
  0x34   : > { %9212 = vst [vmem:[#allocation11_spill] sm:$0xff] %v6213_v56  ;;  %v6248_v21 = vpack.i.bf16 %v688_v9, %v686_v8  ;;  %v691_v22 = vsel %vm663_vm3, %v689_v3, %v690_v4  ;;  %v697_v23 = vrot.slane %v6239_v11, 1  ;;  %v699_v29 = vrot.slane %v6242_v19, 1  ;;  %v357_v45 = vld [vmem:[%s6081_s19 + $0xb8] sm:$0xff]  ;;  %v6283_v59 = vld [vmem:[#allocation2 + $0xd0] sm:$0x3] }
  0x35   : > { %4602 = vrot.lane.b32.xlu1 %v6213_v56, %s5903_s20  ;;  %v693_v33 = vsel %vm663_vm3, %v690_v4, %v692_v10  ;;  %v696_v34 = vsel %vm663_vm3, %v694_v6, %v695_v13  ;;  %v700_v35 = vrot.slane %v6244_v20, 1  ;;  %v702_v36 = vrot.slane %v6252_v24, 1  ;;  %v359_v6 = vld [vmem:[%s6081_s19 + $0xc8] sm:$0xff]  ;;  %v360_v8 = vld [vmem:[%s6081_s19 + $0xd0] sm:$0xff] }
  0x36   : > { %9213 = vst [vmem:[#allocation12_spill] sm:$0xff] %v6248_v21  ;;  %v6264_v40 = vpack.i.bf16 %v693_v33, %v691_v22  ;;  %v698_v42 = vsel %vm663_vm3, %v695_v13, %v697_v23  ;;  %v466_v43 = vmax.f32 %v434_v48, 0.0  ;;  %v467_v44 = vmax.f32 %v435_v55, 0.0  ;;  %v6279_v48 = vld [vmem:[#allocation2 + $0xc0] sm:$0xff]  ;;  %v6281_v55 = vld [vmem:[#allocation2 + $0xc8] sm:$0xff]  ;;  %v361_v23 = vld [vmem:[%s6081_s19 + $0xd8] sm:$0xff] }
  0x37   : > { %4607 = vrot.lane.b32.xlu0 %v6248_v21, %s5903_s20  ;;  %v6269_v47 = vpack.i.bf16 %v698_v42, %v696_v34  ;;  %v701_v50 = vsel %vm663_vm3, %v699_v29, %v700_v35  ;;  %v703_v51 = vsel %vm663_vm3, %v700_v35, %v702_v36  ;;  %v436_v57 = vadd.f32 %v6074_v2, %v6173_v27  ;;  %v362_v29 = vld [vmem:[%s6081_s19 + $0xe0] sm:$0xff]  ;;  %v363_v34 = vld [vmem:[%s6081_s19 + $0xe8] sm:$0xff] }
  0x38   : > { %9214 = vst [vmem:[#allocation13_spill] sm:$0xff] %v6264_v40  ;;  %v6277_v58 = vpack.i.bf16 %v703_v51, %v701_v50  ;;  %545 = vst.msk [vmem:[#allocation2 + $0xd9] sm:$0xff] %vm482_vm0, %v466_v43  ;;  %v437_v3 = vadd.f32 %v6074_v2, %v399_v7  ;;  %v400_v27 = vmul.f32 %v6068_v1, %v354_v30  ;;  %v704_v9 = vrot.slane %v6279_v48, 1 }
  0x39   : > { %9215 = vst [vmem:[#allocation14_spill] sm:$0xff] %v6269_v47  ;;  %4612 = vrot.lane.b32.xlu1 %v6264_v40, %s5903_s20  ;;  %546 = vst.msk [vmem:[#allocation2 + $0xe1] sm:$0xff] %vm482_vm0, %v467_v44  ;;  %v401_v4 = vmul.f32 %v6068_v1, %v355_v32  ;;  %v705_v10 = vrot.slane %v6281_v55, 1  ;;  %v707_v13 = vrot.slane %v6283_v59, 1  ;;  %v468_v22 = vmax.f32 %v436_v57, 0.0 }
  0x3a   : > { %9216 = vst [vmem:[#allocation15_spill] sm:$0xff] %v6277_v58  ;;  %v469_v7 = vmax.f32 %v437_v3, 0.0  ;;  %v438_v33 = vadd.f32 %v6074_v2, %v400_v27  ;;  %v402_v32 = vmul.f32 %v6068_v1, %v356_v39  ;;  %v403_v42 = vmul.f32 %v6068_v1, %v357_v45 }
  0x3b   : > { %4617 = vrot.lane.b32.xlu0 %v6269_v47, %s5903_s20  ;;  %v439_v30 = vadd.f32 %v6074_v2, %v401_v4  ;;  %v706_v35 = vsel %vm663_vm3, %v704_v9, %v705_v10  ;;  %v708_v36 = vsel %vm663_vm3, %v705_v10, %v707_v13  ;;  %547 = vst.msk [vmem:[#allocation2 + $0xf1] sm:$0xff] %vm482_vm0, %v468_v22 }
  0x3c   : > { %v404_v43 = vmul.f32 %v6068_v1, %v358_v46  ;;  %v6310_v44 = vpack.i.bf16 %v708_v36, %v706_v35  ;;  %548 = vst.msk [vmem:[#allocation2 + $0xf9] sm:$0xff] %vm482_vm0, %v469_v7  ;;  %v470_v50 = vmax.f32 %v438_v33, 0.0  ;;  %v440_v51 = vadd.f32 %v6074_v2, %v402_v32 }
  0x3d   : > { %4622 = vrot.lane.b32.xlu1 %v6277_v58, %s5903_s20  ;;  %v471_v39 = vmax.f32 %v439_v30, 0.0  ;;  %v441_v57 = vadd.f32 %v6074_v2, %v403_v42  ;;  %v405_v3 = vmul.f32 %v6068_v1, %v359_v6  ;;  %v406_v45 = vmul.f32 %v6068_v1, %v360_v8 }
  0x3e   : > { %9217 = vst [vmem:[#allocation16_spill] sm:$0xff] %v6310_v44  ;;  %v442_v27 = vadd.f32 %v6074_v2, %v404_v43  ;;  %549 = vst.msk [vmem:[#allocation2 + $0x109] sm:$0xff] %vm482_vm0, %v470_v50  ;;  %v472_v46 = vmax.f32 %v440_v51, 0.0  ;;  %v407_v4 = vmul.f32 %v6068_v1, %v361_v23  ;;  %v408_v9 = vmul.f32 %v6068_v1, %v362_v29 }
  0x3f   : > { %4627 = vrot.lane.b32.xlu0 %v6310_v44, %s5903_s20  ;;  %550 = vst.msk [vmem:[#allocation2 + $0x111] sm:$0xff] %vm482_vm0, %v471_v39  ;;  %v409_v10 = vmul.f32 %v6068_v1, %v363_v34  ;;  %v6325_v13 = vld [vmem:[#allocation2 + $0xd8] sm:$0xff]  ;;  %v473_v8 = vmax.f32 %v441_v57, 0.0  ;;  %v443_v7 = vadd.f32 %v6074_v2, %v405_v3  ;;  %v444_v30 = vadd.f32 %v6074_v2, %v406_v45 }
  0x40   : > { %v6327_v6 = vld [vmem:[#allocation2 + $0xe0] sm:$0xff]  ;;  %v6329_v22 = vld [vmem:[#allocation2 + $0xe8] sm:$0x3]  ;;  %v474_v33 = vmax.f32 %v442_v27, 0.0  ;;  %v709_v32 = vrot.slane %v6325_v13, 1  ;;  %551 = vst.msk [vmem:[#allocation2 + $0x121] sm:$0xff] %vm482_vm0, %v472_v46  ;;  %v445_v34 = vadd.f32 %v6074_v2, %v407_v4  ;;  %v446_v42 = vadd.f32 %v6074_v2, %v408_v9 }
  0x41   : > { %v710_v23 = vrot.slane %v6327_v6, 1  ;;  %v712_v29 = vrot.slane %v6329_v22, 1  ;;  %552 = vst.msk [vmem:[#allocation2 + $0x129] sm:$0xff] %vm482_vm0, %v473_v8  ;;  %v475_v35 = vmax.f32 %v443_v7, 0.0  ;;  %v476_v36 = vmax.f32 %v444_v30, 0.0 }
  0x42   : > { %553 = vst.msk [vmem:[#allocation2 + $0x139] sm:$0xff] %vm482_vm0, %v474_v33  ;;  %v447_v43 = vadd.f32 %v6074_v2, %v409_v10  ;;  %v6344_v51 = vld [vmem:[#allocation2 + $0xf0] sm:$0xff]  ;;  %v477_v57 = vmax.f32 %v445_v34, 0.0  ;;  %v478_v4 = vmax.f32 %v446_v42, 0.0  ;;  %v745_v7 = vrot.slane %v6097_v16, 2 }
  0x43   : > { %v711_v50 = vsel %vm663_vm3, %v709_v32, %v710_v23  ;;  %v713_v39 = vsel %vm663_vm3, %v710_v23, %v712_v29  ;;  %v6348_v27 = vld [vmem:[#allocation2 + $0xf8] sm:$0xff]  ;;  %v6350_v45 = vld [vmem:[#allocation2 + $0x100] sm:$0x3]  ;;  %v714_v46 = vrot.slane %v6344_v51, 1  ;;  %554 = vst.msk [vmem:[#allocation2 + $0x141] sm:$0xff] %vm482_vm0, %v475_v35  ;;  %555 = vst.msk [vmem:[#allocation2 + $0x151] sm:$0xff] %vm482_vm0, %v476_v36 }
  0x44   : > { %v6346_v3 = vpack.i.bf16 %v713_v39, %v711_v50  ;;  %v479_v9 = vmax.f32 %v447_v43, 0.0  ;;  %v715_v10 = vrot.slane %v6348_v27, 1  ;;  %v717_v8 = vrot.slane %v6350_v45, 1  ;;  %556 = vst.msk [vmem:[#allocation2 + $0x159] sm:$0xff] %vm482_vm0, %v477_v57  ;;  %557 = vst.msk [vmem:[#allocation2 + $0x169] sm:$0xff] %vm482_vm0, %v478_v4 }
  0x45   : > { %v746_v33 = vrot.slane %v6092_v12, 2  ;;  %v748_v30 = vrot.slane %v6099_v17, 2  ;;  %v6364_v23 = vld [vmem:[#allocation2 + $0x108] sm:$0xff]  ;;  %v750_v50 = vrot.slane %v6166_v25, 2  ;;  %v751_v39 = vrot.slane %v6168_v26, 2 }
  0x46   : > { %9218 = vst [vmem:[#allocation17_spill] sm:$0xff] %v6346_v3  ;;  %4632 = vrot.lane.b32.xlu1 %v6346_v3, %s5903_s20  ;;  %v6366_v29 = vld [vmem:[#allocation2 + $0x110] sm:$0xff]  ;;  %v6368_v34 = vld [vmem:[#allocation2 + $0x118] sm:$0x3]  ;;  %558 = vst.msk [vmem:[#allocation2 + $0x171] sm:$0xff] %vm482_vm0, %v479_v9  ;;  %v716_v16 = vsel %vm663_vm3, %v714_v46, %v715_v10  ;;  %v718_v12 = vsel %vm663_vm3, %v715_v10, %v717_v8  ;;  %v719_v17 = vrot.slane %v6364_v23, 1 }
  0x47   : > { %v720_v35 = vrot.slane %v6366_v29, 1  ;;  %v6376_v36 = vpack.i.bf16 %v718_v12, %v716_v16  ;;  %v722_v42 = vrot.slane %v6368_v34, 1  ;;  %v6379_v43 = vld [vmem:[#allocation2 + $0x120] sm:$0xff]  ;;  %v6392_v8 = vsel %vm744_vm4, %v745_v7, %v746_v33 }
  0x48   : > { %v6384_v4 = vld [vmem:[#allocation2 + $0x128] sm:$0xff]  ;;  %v6386_v46 = vld [vmem:[#allocation2 + $0x130] sm:$0x3]  ;;  %v724_v9 = vrot.slane %v6379_v43, 1  ;;  %v753_v16 = vrot.slane %v6175_v28, 2  ;;  %v749_v28 = vsel %vm744_vm4, %v746_v33, %v748_v30 }
  0x49   : > { %9219 = vst [vmem:[#allocation18_spill] sm:$0xff] %v6376_v36  ;;  %v721_v57 = vsel %vm663_vm3, %v719_v17, %v720_v35  ;;  %v6389_v10 = vld [vmem:[#allocation2 + $0x138] sm:$0xff]  ;;  %4637 = vrot.lane.b32.xlu0 %v6376_v36, %s5903_s20  ;;  %v723_v12 = vsel %vm663_vm3, %v720_v35, %v722_v42  ;;  %v725_v17 = vrot.slane %v6384_v4, 1  ;;  %v727_v0 = vrot.slane %v6386_v46, 1 }
  0x4a   : > { %v729_v32 = vrot.slane %v6389_v10, 1  ;;  %v6401_v3 = vpack.i.bf16 %v723_v12, %v721_v57  ;;  %v6403_v44 = vld [vmem:[#allocation2 + $0x140] sm:$0xff]  ;;  %v6405_v58 = vld [vmem:[#allocation2 + $0x148] sm:$0x3]  ;;  %v6407_v7 = vld [vmem:[#allocation2 + $0x150] sm:$0xff]  ;;  %v755_v36 = vrot.slane %v6152_v14, 2  ;;  %v754_v2 = vsel %vm744_vm4, %v751_v39, %v753_v16 }
  0x4b   : > { %v756_v35 = vrot.slane %v6154_v15, 2  ;;  %v726_v42 = vsel %vm663_vm3, %v724_v9, %v725_v17  ;;  %v728_v47 = vsel %vm663_vm3, %v725_v17, %v727_v0  ;;  %v730_v40 = vrot.slane %v6403_v44, 1  ;;  %v6416_v12 = vld [vmem:[#allocation2 + $0x158] sm:$0xff]  ;;  %v6418_v21 = vld [vmem:[#allocation2 + $0x160] sm:$0x3]  ;;  %v6427_v0 = vld [vmem:[#allocation2 + $0x168] sm:$0xff] }
  0x4c   : > { %9220 = vst [vmem:[#allocation19_spill] sm:$0xff] %v6401_v3  ;;  %v732_v57 = vrot.slane %v6405_v58, 1  ;;  %4642 = vrot.lane.b32.xlu1 %v6401_v3, %s5903_s20  ;;  %v6422_v33 = vpack.i.bf16 %v728_v47, %v726_v42  ;;  %v734_v30 = vrot.slane %v6407_v7, 1  ;;  %v735_v56 = vrot.slane %v6416_v12, 1 }
  0x4d   : > { %v737_v9 = vrot.slane %v6418_v21, 1  ;;  %v6429_v17 = vld [vmem:[#allocation2 + $0x170] sm:$0xff]  ;;  %v731_v41 = vsel %vm663_vm3, %v729_v32, %v730_v40  ;;  %v6433_v15 = vld [vmem:[#allocation2 + $0x178] sm:$0x3]  ;;  %v739_v3 = vrot.slane %v6427_v0, 1  ;;  %v770_v16 = vrot.slane %v6218_v60, 2 }
  0x4e   : > { %v733_v49 = vsel %vm663_vm3, %v730_v40, %v732_v57  ;;  %v740_v47 = vrot.slane %v6429_v17, 1  ;;  %4647 = vrot.lane.b32.xlu0 %v6422_v33, %s5903_s20  ;;  %v736_v14 = vsel %vm663_vm3, %v734_v30, %v735_v56  ;;  %v742_v25 = vrot.slane %v6433_v15, 1 }
  0x4f   : > { %v6439_v42 = vpack.i.bf16 %v733_v49, %v731_v41  ;;  %v738_v26 = vsel %vm663_vm3, %v735_v56, %v737_v9  ;;  %v752_v57 = vsel %vm744_vm4, %v750_v50, %v751_v39  ;;  %v757_v49 = vsel %vm744_vm4, %v755_v36, %v756_v35 }
  0x50   : > { %v6444_v32 = vpack.i.bf16 %v738_v26, %v736_v14  ;;  %v741_v40 = vsel %vm663_vm3, %v739_v3, %v740_v47  ;;  %v743_v41 = vsel %vm663_vm3, %v740_v47, %v742_v25  ;;  %v760_v30 = vrot.slane %v6179_v31, 2 }
  0x51   : > { %4652 = vrot.lane.b32.xlu1 %v6439_v42, %s5903_s20  ;;  %v761_v56 = vrot.slane %v6187_v37, 2  ;;  %v6455_v9 = vpack.i.bf16 %v743_v41, %v741_v40  ;;  %v9223_v14 = vrot.slane %v6156_v18, 2  ;;  %v763_v3 = vrot.slane %v6189_v38, 2 }
  0x52   : > { %9221 = vst [vmem:[#allocation20_spill] sm:$0xff] %v6444_v32  ;;  %v765_v50 = vrot.slane %v6206_v52, 2  ;;  %4657 = vrot.lane.b32.xlu0 %v6444_v32, %s5903_s20  ;;  %v4666_v25 = vpack.i.bf16 %v749_v28, %v6392_v8  ;;  %v766_v36 = vrot.slane %v6208_v53, 2  ;;  %v768_v39 = vrot.slane %v6210_v54, 2 }
  0x53   : > { %9222 = vst [vmem:[#allocation21_spill] sm:$0xff] %v6455_v9  ;;  %v759_v26 = vsel %vm744_vm4, %v756_v35, %v9223_v14  ;;  %v6468_v47 = vpack.i.bf16 %v754_v2, %v752_v57  ;;  %v771_v18 = vrot.slane %v6220_v61, 2  ;;  %v773_v35 = vrot.slane %v6228_v63, 2 }
  0x54   : > { %v6474_v38 = vpack.i.bf16 %v759_v26, %v757_v49  ;;  %v762_v40 = vsel %vm744_vm4, %v760_v30, %v761_v56  ;;  %v764_v8 = vsel %vm744_vm4, %v761_v56, %v763_v3  ;;  %v775_v28 = vrot.slane %v6222_v62, 2 }
  0x55   : > { %4662 = vrot.lane.b32.xlu1 %v6455_v9, %s5903_s20  ;;  %v767_v54 = vsel %vm744_vm4, %v765_v50, %v766_v36  ;;  %v769_v2 = vsel %vm744_vm4, %v766_v36, %v768_v39  ;;  %v776_v57 = vrot.slane %v6232_v5, 2  ;;  %v778_v41 = vrot.slane %v6239_v11, 2 }
  0x56   : > { %4667 = vrot.lane.b32.xlu0 %v4666_v25, %s5904_s21  ;;  %v772_v63 = vsel %vm744_vm4, %v770_v16, %v771_v18  ;;  %v774_v49 = vsel %vm744_vm4, %v771_v18, %v773_v35  ;;  %v780_v30 = vrot.slane %v6242_v19, 2  ;;  %v781_v56 = vrot.slane %v6244_v20, 2 }
  0x57   : > { %v783_v14 = vrot.slane %v6252_v24, 2  ;;  %v785_v26 = vrot.slane %v6279_v48, 2  ;;  %v786_v3 = vrot.slane %v6281_v55, 2  ;;  %v6493_v11 = vpack.i.bf16 %v764_v8, %v762_v40 }
  0x58   : > { %v788_v50 = vrot.slane %v6283_v59, 2  ;;  %v6496_v25 = vpack.i.bf16 %v769_v2, %v767_v54  ;;  %v6498_v36 = vpack.i.bf16 %v774_v49, %v772_v63  ;;  %v777_v39 = vsel %vm744_vm4, %v775_v28, %v776_v57 }
  0x59   : > { %4672 = vrot.lane.b32.xlu1 %v6468_v47, %s5904_s21  ;;  %v779_v16 = vsel %vm744_vm4, %v776_v57, %v778_v41  ;;  %v782_v24 = vsel %vm744_vm4, %v780_v30, %v781_v56  ;;  %v784_v18 = vsel %vm744_vm4, %v781_v56, %v783_v14  ;;  %v787_v35 = vsel %vm744_vm4, %v785_v26, %v786_v3 }
  0x5a   : > { %9224 = vst [vmem:[#allocation22_spill] sm:$0xff] %v6496_v25  ;;  %4677 = vrot.lane.b32.xlu0 %v6474_v38, %s5904_s21  ;;  %v790_v40 = vrot.slane %v6325_v13, 2  ;;  %v789_v59 = vsel %vm744_vm4, %v786_v3, %v788_v50  ;;  %v791_v8 = vrot.slane %v6327_v6, 2  ;;  %v793_v54 = vrot.slane %v6329_v22, 2 }
  0x5b   : > { %v795_v28 = vrot.slane %v6344_v51, 2  ;;  %v796_v2 = vrot.slane %v6348_v27, 2  ;;  %v798_v57 = vrot.slane %v6350_v45, 2  ;;  %v800_v41 = vrot.slane %v6364_v23, 2 }
  0x5c   : > { %v801_v63 = vrot.slane %v6366_v29, 2  ;;  %v803_v49 = vrot.slane %v6368_v34, 2  ;;  %v805_v30 = vrot.slane %v6379_v43, 2  ;;  %v806_v56 = vrot.slane %v6384_v4, 2 }
  0x5d   : > { %4682 = vrot.lane.b32.xlu1 %v6493_v11, %s5904_s21  ;;  %v6523_v22 = vpack.i.bf16 %v779_v16, %v777_v39  ;;  %v808_v14 = vrot.slane %v6386_v46, 2  ;;  %v6526_v26 = vpack.i.bf16 %v784_v18, %v782_v24  ;;  %v6528_v45 = vpack.i.bf16 %v789_v59, %v787_v35 }
  0x5e   : > { %4687 = vrot.lane.b32.xlu0 %v6496_v25, %s5904_s21  ;;  %v792_v3 = vsel %vm744_vm4, %v790_v40, %v791_v8  ;;  %v794_v34 = vsel %vm744_vm4, %v791_v8, %v793_v54  ;;  %v797_v50 = vsel %vm744_vm4, %v795_v28, %v796_v2  ;;  %v799_v25 = vsel %vm744_vm4, %v796_v2, %v798_v57  ;;  %v364_v2 = vld [vmem:[%s6081_s19 + $0xf0] sm:$0xff] }
  0x5f   : > { %v802_v39 = vsel %vm744_vm4, %v800_v41, %v801_v63  ;;  %v804_v46 = vsel %vm744_vm4, %v801_v63, %v803_v49  ;;  %v807_v16 = vsel %vm744_vm4, %v805_v30, %v806_v56  ;;  %v810_v24 = vrot.slane %v6389_v10, 2  ;;  %v365_v49 = vld [vmem:[%s6081_s19 + $0xf8] sm:$0xff] }
  0x60   : > { %v811_v18 = vrot.slane %v6403_v44, 2  ;;  %v809_v35 = vsel %vm744_vm4, %v806_v56, %v808_v14  ;;  %v813_v40 = vrot.slane %v6405_v58, 2  ;;  %v815_v59 = vrot.slane %v6407_v7, 2 }
  0x61   : > { %4692 = vrot.lane.b32.xlu1 %v6498_v36, %s5904_s21  ;;  %v816_v8 = vrot.slane %v6416_v12, 2  ;;  %v818_v54 = vrot.slane %v6418_v21, 2  ;;  %v6550_v28 = vpack.i.bf16 %v794_v34, %v792_v3  ;;  %v6553_v57 = vpack.i.bf16 %v799_v25, %v797_v50 }
  0x62   : > { %4697 = vrot.lane.b32.xlu0 %v6523_v22, %s5904_s21  ;;  %v6555_v41 = vpack.i.bf16 %v804_v46, %v802_v39  ;;  %v6557_v63 = vpack.i.bf16 %v809_v35, %v807_v16  ;;  %v812_v58 = vsel %vm744_vm4, %v810_v24, %v811_v18  ;;  %v814_v21 = vsel %vm744_vm4, %v811_v18, %v813_v40  ;;  %v9225_v39 = vld [vmem:[#allocation4_spill] sm:$0xff] }
  0x63   : > { %v817_v30 = vsel %vm744_vm4, %v815_v59, %v816_v8  ;;  %v820_v56 = vrot.slane %v6427_v0, 2  ;;  %v819_v14 = vsel %vm744_vm4, %v816_v8, %v818_v54  ;;  %v821_v25 = vrot.slane %v6429_v17, 2  ;;  %v9228_v8 = vld [vmem:[#allocation7_spill] sm:$0xff]  ;;  %v9229_v54 = vld [vmem:[#allocation8_spill] sm:$0xff] }
  0x64   : > { %v823_v3 = vrot.slane %v6433_v15, 2  ;;  %v410_v34 = vmul.f32 %v6068_v1, %v364_v2  ;;  %v411_v50 = vmul.f32 %v6068_v1, %v365_v49  ;;  %v6579_v18 = vpack.i.bf16 %v814_v21, %v812_v58  ;;  %v9230_v49 = vld [vmem:[#allocation5_spill] sm:$0xff]  ;;  %v9231_v58 = vld [vmem:[#allocation6_spill] sm:$0xff] }
  0x65   : > { %4702 = vrot.lane.b32.xlu1 %v6526_v26, %s5904_s21  ;;  %v6581_v15 = vpack.i.bf16 %v819_v14, %v817_v30  ;;  %v822_v40 = vsel %vm744_vm4, %v820_v56, %v821_v25  ;;  %v4746_v2 = vpack.i.bf16 %v9229_v54, %v9228_v8  ;;  %v4751_v21 = vpack.i.bf16 %v9231_v58, %v9230_v49  ;;  %v9236_v8 = vld [vmem:[#allocation9_spill] sm:$0xff]  ;;  %v9237_v54 = vld [vmem:[#allocation11_spill] sm:$0xff] }
  0x66   : > { %4707 = vrot.lane.b32.xlu0 %v6528_v45, %s5904_s21  ;;  %v448_v46 = vadd.f32 %v9225_v39, %v410_v34  ;;  %v449_v16 = vadd.f32 %v9225_v39, %v411_v50  ;;  %v824_v1 = vsel %vm744_vm4, %v821_v25, %v823_v3  ;;  %v4756_v3 = vpack.i.bf16 %v6187_v37, %v6179_v31  ;;  %v9239_v49 = vld [vmem:[#allocation13_spill] sm:$0xff] }
  0x67   : > { %9226 = vst [vmem:[#allocation4_spill] sm:$0xff] %v6581_v15  ;;  %v6591_v59 = vpack.i.bf16 %v824_v1, %v822_v40  ;;  %v6607_v39 = vpack.i.bf16 %v6208_v53, %v6206_v52  ;;  %v4771_v31 = vpack.i.bf16 %v6232_v5, %v6222_v62  ;;  %v6626_v52 = vpack.i.bf16 %v6244_v20, %v6242_v19  ;;  %v9235_v1 = vld [vmem:[#allocation10_spill] sm:$0xff] }
  0x68   : > { %v480_v24 = vmax.f32 %v448_v46, 0.0  ;;  %v481_v35 = vmax.f32 %v449_v16, 0.0  ;;  %v6631_v53 = vpack.i.bf16 %v6281_v55, %v6279_v48  ;;  %v6649_v62 = vpack.i.bf16 %v6366_v29, %v6364_v23 }
  0x69   : > { %4712 = vrot.lane.b32.xlu1 %v6550_v28, %s5904_s21  ;;  %9227 = vst [vmem:[#allocation23_spill] sm:$0xff] %v6591_v59  ;;  %v6655_v19 = vpack.i.bf16 %v6384_v4, %v6379_v43  ;;  %v6661_v20 = vpack.i.bf16 %v6403_v44, %v6389_v10  ;;  %v4811_v48 = vpack.i.bf16 %v6416_v12, %v6407_v7 }
  0x6a   : > { %4717 = vrot.lane.b32.xlu0 %v6553_v57, %s5904_s21  ;;  %559 = vst.msk [vmem:[#allocation2 + $0x181] sm:$0xff] %vm482_vm0, %v480_v24  ;;  %560 = vst.msk [vmem:[#allocation2 + $0x189] sm:$0xff] %vm482_vm0, %v481_v35  ;;  %v6616_v35 = vpack.i.bf16 %v6220_v61, %v6218_v60  ;;  %v6637_v60 = vpack.i.bf16 %v6327_v6, %v6325_v13  ;;  %v6643_v61 = vpack.i.bf16 %v6348_v27, %v6344_v51 }
  0x6b   : > { %v6671_v55 = vpack.i.bf16 %v6429_v17, %v6427_v0 }
  0x6d   : > { %4722 = vrot.lane.b32.xlu1 %v6555_v41, %s5904_s21  ;;  %9233 = vst [vmem:[#allocation8_spill] sm:$0xff] %v6671_v55 }
  0x6e   : > { %4727 = vrot.lane.b32.xlu0 %v6557_v63, %s5904_s21 }
  0x71   : > { %4732 = vrot.lane.b32.xlu1 %v6579_v18, %s5904_s21  ;;  %v609_v30 = vld [vmem:[#allocation2 + $0x180] sm:$0xff]  ;;  %v610_v56 = vld [vmem:[#allocation2 + $0x188] sm:$0xff]  ;;  %v611_v14 = vld [vmem:[#allocation2 + $0x190] sm:$0x3] }
  0x72   : > { %4737 = vrot.lane.b32.xlu0 %v6581_v15, %s5904_s21  ;;  %v828_v25 = vrot.slane %v609_v30, 1  ;;  %v829_v34 = vrot.slane %v610_v56, 1  ;;  %v831_v50 = vrot.slane %v611_v14, 1  ;;  %v6674_v40 = vpack.i.bf16 %v610_v56, %v609_v30 }
  0x74   : > { %v830_v46 = vsel %vm663_vm3, %v828_v25, %v829_v34  ;;  %v832_v16 = vsel %vm663_vm3, %v829_v34, %v831_v50  ;;  %9234 = vst [vmem:[#allocation5_spill] sm:$0xff] %v6674_v40  ;;  %v9241_v25 = vld [vmem:[#allocation15_spill] sm:$0xff]  ;;  %v833_v34 = vrot.slane %v609_v30, 2  ;;  %v834_v50 = vrot.slane %v610_v56, 2 }
  0x75   : > { %4742 = vrot.lane.b32.xlu1 %v6591_v59, %s5904_s21  ;;  %v6611_v24 = vpack.i.bf16 %v832_v16, %v830_v46  ;;  %v9242_v46 = vld [vmem:[#allocation16_spill] sm:$0xff]  ;;  %v9247_v56 = vld [vmem:[#allocation19_spill] sm:$0xff] }
  0x76   : > { %4747 = vrot.lane.b32.xlu0 %v4746_v2, %s5905_s22  ;;  %v9238_v2 = vld [vmem:[#allocation12_spill] sm:$0xff]  ;;  %v835_v59 = vsel %vm744_vm4, %v833_v34, %v834_v50 }
  0x77   : > { %9232 = vst [vmem:[#allocation7_spill] sm:$0xff] %v6611_v24  ;;  %v5786_v34 = vld [vmem:[%s9115_s1] sm:$0xff]  }
  0x78   : > { %4489 = vmatprep.subr.bf16.mxu0 %v5786_v34 }
  0x79   : > { %4752 = vrot.lane.b32.xlu1 %v4751_v21, %s5905_s22  ;;  %v9240_v21 = vld [vmem:[#allocation14_spill] sm:$0xff]  ;;  %4490 = vmatpush3.bf16.msra.mxu0 %v5786_v34 }
  0x7a   : > { %4757 = vrot.lane.b32.xlu0 %v4756_v3, %s5905_s22 }
  0x7d   : > { %4762 = vrot.lane.b32.xlu1 %v6607_v39, %s5905_s22 }
  0x7e   : > { %4767 = vrot.lane.b32.xlu0 %v6616_v35, %s5905_s22 }
  0x81   : > { %4772 = vrot.lane.b32.xlu1 %v4771_v31, %s5905_s22  ;;  %v836_v31 = vrot.slane %v611_v14, 2 }
  0x82   : > { %4777 = vrot.lane.b32.xlu0 %v6626_v52, %s5905_s22 }
  0x85   : > { %4782 = vrot.lane.b32.xlu1 %v6631_v53, %s5905_s22 }
  0x86   : > { %4787 = vrot.lane.b32.xlu0 %v6637_v60, %s5905_s22 }
  0x89   : > { %4792 = vrot.lane.b32.xlu1 %v6643_v61, %s5905_s22 }
  0x8a   : > { %4797 = vrot.lane.b32.xlu0 %v6649_v62, %s5905_s22 }
  0x8d   : > { %4802 = vrot.lane.b32.xlu1 %v6655_v19, %s5905_s22 }
  0x8e   : > { %4807 = vrot.lane.b32.xlu0 %v6661_v20, %s5905_s22 }
  0x91   : > { %4812 = vrot.lane.b32.xlu1 %v4811_v48, %s5905_s22  ;;  %v9243_v48 = vld [vmem:[#allocation17_spill] sm:$0xff] }
  0x92   : > { %4817 = vrot.lane.b32.xlu0 %v6671_v55, %s5905_s22  ;;  %v837_v55 = vsel %vm744_vm4, %v834_v50, %v836_v31  ;;  %v6742_v31 = vld [vmem:[#allocation2 + $0x30] sm:$0xff] }
  0x93   : > { %v6714_v15 = vpack.i.bf16 %v837_v55, %v835_v59  ;;  %v5787_v55 = vld [vmem:[%s9115_s1 + $0x8] sm:$0xff]  }
  0x94   : > { %4491 = vmatprep.subr.bf16.mxu0 %v5787_v55 }
  0x95   : > { %4822 = vrot.lane.b32.xlu1 %v6674_v40, %s5905_s22  ;;  %v9245_v40 = vld [vmem:[#allocation18_spill] sm:$0xff]  ;;  %9248 = vst [vmem:[#allocation9_spill] sm:$0xff] %v6714_v15  ;;  %4492 = vmatpush3.bf16.msra.mxu0 %v5787_v55 }
  0x96   : > { %4827 = vrot.lane.b32.xlu0 %v9235_v1, %s5906_s23  ;;  %v5788_v15 = vld [vmem:[%s9115_s1 + $0x10] ss:$0 sps:$4 sm:$0x33]  }
  0x97   : > { %4565 = vmatprep.subr.msk.bf16.mxu0 %vm1968_vm6, %v5788_v15  ;;  %v1970_v55 = vsel %vm1968_vm6, %v5788_v15, 0 }
  0x99   : > { %4832 = vrot.lane.b32.xlu1 %v9236_v8, %s5906_s23  ;;  %4494 = vmatpush3.bf16.msra.mxu0 %v1970_v55 }
  0x9a   : > { %4837 = vrot.lane.b32.xlu0 %v9237_v54, %s5906_s23 }
  0x9d   : > { %4842 = vrot.lane.b32.xlu1 %v9238_v2, %s5906_s23 }
  0x9e   : > { %4847 = vrot.lane.b32.xlu0 %v9239_v49, %s5906_s23 }
  0xa0   : > { %v6690_v58 = vpop.permute.xlu0 %4587 }
  0xa1   : > { %4852 = vrot.lane.b32.xlu1 %v9240_v21, %s5906_s23 }
  0xa2   : > { %4857 = vrot.lane.b32.xlu0 %v9241_v25, %s5906_s23 }
  0xa3   : > { %v6696_v3 = vpop.permute.xlu1 %4597 }
  0xa5   : > { %4862 = vrot.lane.b32.xlu1 %v9242_v46, %s5906_s23  ;;  %v6700_v16 = vpop.permute.xlu0 %4592 }
  0xa6   : > { %4867 = vrot.lane.b32.xlu0 %v9243_v48, %s5906_s23 }
  0xa7   : > { %v6704_v1 = vpop.permute.xlu1 %4602 }
  0xa8   : > { %9244 = vst [vmem:[#allocation6_spill] sm:$0xff] %v6704_v1 }
  0xa9   : > { %4872 = vrot.lane.b32.xlu1 %v9245_v40, %s5906_s23  ;;  %v6710_v30 = vpop.permute.xlu0 %4607 }
  0xaa   : > { %9246 = vst [vmem:[#allocation10_spill] sm:$0xff] %v6710_v30  ;;  %4877 = vrot.lane.b32.xlu0 %v9247_v56, %s5906_s23 }
  0xab   : > { %v6718_v14 = vpop.permute.xlu1 %4612 }
  0xac   : > { %9249 = vst [vmem:[#allocation11_spill] sm:$0xff] %v6718_v14  ;;  %v6760_v14 = vld [vmem:[#allocation2 + $0x48] sm:$0xff] }
  0xad   : > { %4882 = vrot.lane.b32.xlu1 %v6422_v33, %s5906_s23  ;;  %v6722_v1 = vpop.permute.xlu0 %4617  ;;  %9253 = vst [vmem:[#allocation14_spill] sm:$0xff] %v6760_v14 }
  0xae   : > { %4887 = vrot.lane.b32.xlu0 %v6439_v42, %s5906_s23  ;;  %9250 = vst [vmem:[#allocation12_spill] sm:$0xff] %v6722_v1  ;;  %v6744_v1 = vld [vmem:[#allocation2 + $0x38] sm:$0xff] }
  0xaf   : > { %v6731_v59 = vpop.permute.xlu1 %4622  ;;  %v4916_v34 = vpack.i.bf16 %v6744_v1, %v6742_v31 }
  0xb0   : > { %9251 = vst [vmem:[#allocation13_spill] sm:$0xff] %v6731_v59  ;;  %v9252_v59 = vmov 0.0  }
  0xb1   : > { %4892 = vrot.lane.b32.xlu1 %v6444_v32, %s5906_s23  ;;  %v6738_v50 = vpop.permute.xlu0 %4627  ;;  %2243 = vst.msk [vmem:[#allocation3] sm:$0xff] %vm1849_vm5, %v9252_v59  ;;  %2244 = vst.msk [vmem:[#allocation3 + $0x8] sm:$0xff] %vm1849_vm5, %v9252_v59 }
  0xb2   : > { %4897 = vrot.lane.b32.xlu0 %v6455_v9, %s5906_s23  ;;  %2248 = vst.msk [vmem:[#allocation3 + $0x198] sm:$0xff] %vm1849_vm5, %v9252_v59  ;;  %2249 = vst.msk [vmem:[#allocation3 + $0x1a0] sm:$0xff] %vm1849_vm5, %v9252_v59 }
  0xb5   : > { %4902 = vrot.lane.b32.xlu1 %v6611_v24, %s5906_s23  ;;  %v4921_v24 = vpack.i.bf16 %v6187_v37, %v6760_v14 }
  0xb6   : > { %4907 = vrot.lane.b32.xlu0 %v6468_v47, %s5907_s28 }
  0xb8   : > { %v6758_v47 = vpop.permute.xlu1 %4632 }
  0xb9   : > { %4912 = vrot.lane.b32.xlu1 %v6474_v38, %s5907_s28 }
  0xba   : > { %4917 = vrot.lane.b32.xlu0 %v4916_v34, %s5908_s12 }
  0xbb   : > { %v6770_v59 = vpop.permute.xlu0 %4637 }
  0xbd   : > { %4922 = vrot.lane.b32.xlu1 %v4921_v24, %s5908_s12 }
  0xbe   : > { %4927 = vrot.lane.b32.xlu0 %v9236_v8, %s5909_s13  ;;  %v6775_v37 = vpop.permute.xlu1 %4642 }
  0xc0   : > { %v6777_v9 = vpop.permute.xlu0 %4647 }
  0xc1   : > { %4932 = vrot.lane.b32.xlu1 %v9237_v54, %s5909_s13  ;;  %v9255_v54 = vld [vmem:[#allocation22_spill] sm:$0xff] }
  0xc2   : > { %4937 = vrot.lane.b32.xlu0 %v6474_v38, %s5910_s15 }
  0xc3   : > { %v6783_v15 = vpop.permute.xlu1 %4652 }
  0xc4   : > { %v6785_v34 = vpop.permute.xlu0 %4657 }
  0xc5   : > { %4942 = vrot.lane.b32.xlu1 %v6493_v11, %s5910_s15  ;;  %v4660_v14 = vunpack.i.h.bf16 %v6785_v34 }
  0xc6   : > { %4947 = vrot.lane.b32.xlu0 %v6493_v11, %s5907_s28 }
  0xc7   : > { %v6791_v24 = vpop.permute.xlu1 %4662 }
  0xc8   : > { %v6793_v8 = vpop.permute.xlu0 %4667 }
  0xc9   : > { %9254 = vst [vmem:[#allocation15_spill] sm:$0xff] %v6793_v8  ;;  %4952 = vrot.lane.b32.xlu1 %v9255_v54, %s5907_s28  ;;  %v5813_v8 = vld [vmem:[#allocation2 + $0xc0] sm:$0xff] }
  0xca   : > { %4957 = vrot.lane.b32.xlu0 %v6607_v39, %s5908_s12 }
  0xcb   : > { %v6799_v38 = vpop.permute.xlu1 %4672 }
  0xcc   : > { %9256 = vst [vmem:[#allocation16_spill] sm:$0xff] %v6799_v38  ;;  %v6801_v55 = vpop.permute.xlu0 %4677 }
  0xcd   : > { %9257 = vst [vmem:[#allocation17_spill] sm:$0xff] %v6801_v55  ;;  %4962 = vrot.lane.b32.xlu1 %v6616_v35, %s5908_s12  ;;  %v4639_v55 = vunpack.i.l.bf16 %v6770_v59 }
  0xce   : > { %4967 = vrot.lane.b32.xlu0 %v9238_v2, %s5909_s13  ;;  %v5811_v2 = vld [vmem:[#allocation2 + $0x90] sm:$0xff] }
  0xcf   : > { %v6807_v11 = vpop.permute.xlu1 %4682 }
  0xd0   : > { %9258 = vst [vmem:[#allocation18_spill] sm:$0xff] %v6807_v11  ;;  %v6809_v32 = vpop.permute.xlu0 %4687 }
  0xd1   : > { %9259 = vst [vmem:[#allocation19_spill] sm:$0xff] %v6809_v32  ;;  %4972 = vrot.lane.b32.xlu1 %v9239_v49, %s5909_s13  ;;  %v4996_v32 = vpack.i.bf16 %v6232_v5, %v5811_v2 }
  0xd2   : > { %4977 = vrot.lane.b32.xlu0 %v9255_v54, %s5910_s15 }
  0xd3   : > { %v6815_v39 = vpop.permute.xlu1 %4692 }
  0xd4   : > { %9260 = vst [vmem:[#allocation22_spill] sm:$0xff] %v6815_v39  ;;  %v6817_v38 = vpop.permute.xlu0 %4697 }
  0xd5   : > { %9261 = vst [vmem:[#allocation24_spill] sm:$0xff] %v6817_v38  ;;  %4982 = vrot.lane.b32.xlu1 %v6498_v36, %s5910_s15  ;;  %v4629_v38 = vunpack.i.l.bf16 %v6738_v50 }
  0xd6   : > { %4987 = vrot.lane.b32.xlu0 %v6498_v36, %s5907_s28 }
  0xd7   : > { %v6823_v35 = vpop.permute.xlu1 %4702 }
  0xd8   : > { %9262 = vst [vmem:[#allocation25_spill] sm:$0xff] %v6823_v35  ;;  %v6826_v11 = vpop.permute.xlu0 %4707  ;;  %v4630_v35 = vunpack.i.h.bf16 %v6738_v50 }
  0xd9   : > { %4992 = vrot.lane.b32.xlu1 %v6523_v22, %s5907_s28 }
  0xda   : > { %4997 = vrot.lane.b32.xlu0 %v4996_v32, %s5908_s12 }
  0xdb   : > { %v6831_v49 = vpop.permute.xlu1 %4712 }
  0xdc   : > { %v6833_v54 = vpop.permute.xlu0 %4717 }
  0xdd   : > { %5002 = vrot.lane.b32.xlu1 %v6626_v52, %s5908_s12 }
  0xde   : > { %5007 = vrot.lane.b32.xlu0 %v9240_v21, %s5909_s13 }
  0xdf   : > { %v6839_v36 = vpop.permute.xlu1 %4722 }
  0xe0   : > { %v6841_v5 = vpop.permute.xlu0 %4727 }
  0xe1   : > { %5012 = vrot.lane.b32.xlu1 %v9241_v25, %s5909_s13 }
  0xe2   : > { %5017 = vrot.lane.b32.xlu0 %v6523_v22, %s5910_s15 }
  0xe3   : > { %v6847_v32 = vpop.permute.xlu1 %4732 }
  0xe4   : > { %v6849_v2 = vpop.permute.xlu0 %4737 }
  0xe5   : > { %5022 = vrot.lane.b32.xlu1 %v6526_v26, %s5910_s15 }
  0xe6   : > { %5027 = vrot.lane.b32.xlu0 %v6526_v26, %s5907_s28 }
  0xe7   : > { %v6855_v52 = vpop.permute.xlu1 %4742 }
  0xe8   : > { %v6857_v21 = vpop.permute.xlu0 %4747 }
  0xe9   : > { %9263 = vst [vmem:[#allocation26_spill] sm:$0xff] %v6857_v21  ;;  %5032 = vrot.lane.b32.xlu1 %v6528_v45, %s5907_s28 }
  0xea   : > { %5037 = vrot.lane.b32.xlu0 %v6631_v53, %s5908_s12  ;;  %v4635_v53 = vunpack.i.h.bf16 %v6758_v47 }
  0xeb   : > { %v6863_v22 = vpop.permute.xlu1 %4752 }
  0xec   : > { %9264 = vst [vmem:[#allocation27_spill] sm:$0xff] %v6863_v22  ;;  %v6865_v25 = vpop.permute.xlu0 %4757  ;;  %v4654_v22 = vunpack.i.l.bf16 %v6783_v15 }
  0xed   : > { %9265 = vst [vmem:[#allocation28_spill] sm:$0xff] %v6865_v25  ;;  %5042 = vrot.lane.b32.xlu1 %v6637_v60, %s5908_s12  ;;  %v4634_v25 = vunpack.i.l.bf16 %v6758_v47  ;;  %v4640_v60 = vunpack.i.h.bf16 %v6770_v59  ;;  %v4655_v47 = vunpack.i.h.bf16 %v6783_v15  ;;  %v5812_v59 = vld [vmem:[#allocation2 + $0xc8] sm:$0xff] }
  0xee   : > { %5047 = vrot.lane.b32.xlu0 %v9242_v46, %s5909_s13  ;;  %v4645_v46 = vunpack.i.h.bf16 %v6775_v37  ;;  %v1636_v21 = vsel %vm482_vm0, %v5812_v59, %v4630_v35  ;;  %v4710_v59 = vunpack.i.h.bf16 %v6826_v11 }
  0xef   : > { %v6871_v26 = vpop.permute.xlu1 %4762  ;;  %v1637_v15 = vsel %vm482_vm0, %v6325_v13, %v4634_v25  ;;  %v1640_v35 = vsel %vm482_vm0, %v6348_v27, %v4640_v60  ;;  %v6925_v27 = vsel %vm482_vm0, %v6403_v44, %v4655_v47  ;;  %v4665_v44 = vunpack.i.h.bf16 %v6791_v24 }
  0xf0   : > { %9266 = vst [vmem:[#allocation29_spill] sm:$0xff] %v6871_v26  ;;  %v6875_v39 = vpop.permute.xlu0 %4767  ;;  %v4644_v26 = vunpack.i.l.bf16 %v6775_v37  ;;  %v1635_v37 = vsel %vm482_vm0, %v5813_v8, %v4629_v38  ;;  %v1639_v8 = vsel %vm482_vm0, %v6344_v51, %v4639_v55  ;;  %v4719_v25 = vunpack.i.l.bf16 %v6833_v54 }
  0xf1   : > { %9267 = vst [vmem:[#allocation30_spill] sm:$0xff] %v6875_v39  ;;  %5052 = vrot.lane.b32.xlu1 %v9243_v48, %s5909_s13  ;;  %v4650_v48 = vunpack.i.h.bf16 %v6777_v9  ;;  %v4649_v39 = vunpack.i.l.bf16 %v6777_v9  ;;  %v1638_v9 = vsel %vm482_vm0, %v6327_v6, %v4635_v53 }
  0xf2   : > { %5057 = vrot.lane.b32.xlu0 %v6528_v45, %s5910_s15  ;;  %v4659_v45 = vunpack.i.l.bf16 %v6785_v34  ;;  %v1642_v34 = vsel %vm482_vm0, %v6366_v29, %v4645_v46  ;;  %v1641_v38 = vsel %vm482_vm0, %v6364_v23, %v4644_v26  ;;  %v6929_v23 = vsel %vm482_vm0, %v6389_v10, %v4654_v22 }
  0xf3   : > { %v6887_v50 = vpop.permute.xlu1 %4772  ;;  %v1644_v6 = vsel %vm482_vm0, %v6384_v4, %v4650_v48  ;;  %v1643_v51 = vsel %vm482_vm0, %v6379_v43, %v4649_v39  ;;  %v6933_v29 = vsel %vm482_vm0, %v6416_v12, %v4660_v14  ;;  %v4715_v4 = vunpack.i.h.bf16 %v6831_v49 }
  0xf4   : > { %v6897_v30 = vpop.permute.xlu0 %4777  ;;  %v4714_v43 = vunpack.i.l.bf16 %v6831_v49  ;;  %v4664_v10 = vunpack.i.l.bf16 %v6791_v24  ;;  %v1669_v22 = vsel %vm1651_vm7, %v1636_v21, %v4710_v59  ;;  %v4725_v48 = vunpack.i.h.bf16 %v6839_v36 }
  0xf5   : > { %9268 = vst [vmem:[#allocation31_spill] sm:$0xff] %v6897_v30  ;;  %5062 = vrot.lane.b32.xlu1 %v6550_v28, %s5910_s15  ;;  %v4709_v30 = vunpack.i.l.bf16 %v6826_v11 }
  0xf6   : > { %5067 = vrot.lane.b32.xlu0 %v6550_v28, %s5907_s28  ;;  %v6937_v28 = vsel %vm482_vm0, %v6407_v7, %v4659_v45  ;;  %v4720_v7 = vunpack.i.h.bf16 %v6833_v54  ;;  %v1670_v21 = vsel %vm1651_vm7, %v1637_v15, %v4714_v43  ;;  %v4724_v54 = vunpack.i.l.bf16 %v6839_v36 }
  0xf7   : > { %v6917_v13 = vpop.permute.xlu1 %4782  ;;  %v1668_v14 = vsel %vm1651_vm7, %v1635_v37, %v4709_v30  ;;  %v1671_v30 = vsel %vm1651_vm7, %v1638_v9, %v4715_v4  ;;  %v1672_v9 = vsel %vm1651_vm7, %v1639_v8, %v4719_v25  ;;  %v4730_v4 = vunpack.i.h.bf16 %v6841_v5 }
  0xf8   : > { %v4788_v55 = vpop.permute.xlu0 %4787  ;;  %v1673_v15 = vsel %vm1651_vm7, %v1640_v35, %v4720_v7  ;;  %v4729_v36 = vunpack.i.l.bf16 %v6841_v5  ;;  %v1675_v8 = vsel %vm1651_vm7, %v1642_v34, %v4725_v48  ;;  %v1674_v35 = vsel %vm1651_vm7, %v1641_v38, %v4724_v54 }
  0xf9   : > { %5072 = vrot.lane.b32.xlu1 %v6553_v57, %s5907_s28  ;;  %v4790_v11 = vunpack.i.h.bf16 %v4788_v55  ;;  %v4789_v39 = vunpack.i.l.bf16 %v4788_v55  ;;  %v4734_v5 = vunpack.i.l.bf16 %v6847_v32  ;;  %v1677_v38 = vsel %vm1651_vm7, %v1644_v6, %v4730_v4 }
  0xfa   : > { %5077 = vrot.lane.b32.xlu0 %v6643_v61, %s5908_s12  ;;  %v1676_v34 = vsel %vm1651_vm7, %v1643_v51, %v4729_v36  ;;  %v4744_v54 = vunpack.i.l.bf16 %v6855_v52 }
  0xfb   : > { %v4793_v49 = vpop.permute.xlu1 %4792  ;;  %v6952_v26 = vsel %vm1684_vm8, %v1668_v14, %v4789_v39  ;;  %v6955_v53 = vsel %vm1684_vm8, %v1669_v22, %v4790_v11  ;;  %v4735_v14 = vunpack.i.h.bf16 %v6847_v32  ;;  %v4739_v32 = vunpack.i.l.bf16 %v6849_v2 }
  0xfc   : > { %v4795_v60 = vunpack.i.h.bf16 %v4793_v49  ;;  %v4794_v46 = vunpack.i.l.bf16 %v4793_v49  ;;  %v4798_v47 = vpop.permute.xlu0 %4797  ;;  %v1678_v6 = vsel %vm1651_vm7, %v6929_v23, %v4734_v5 }
  0xfd   : > { %5082 = vrot.lane.b32.xlu1 %v6649_v62, %s5908_s12  ;;  %v4800_v45 = vunpack.i.h.bf16 %v4798_v47  ;;  %v4799_v59 = vunpack.i.l.bf16 %v4798_v47  ;;  %v1679_v51 = vsel %vm1651_vm7, %v6925_v27, %v4735_v14  ;;  %v1650_v27 = vsel %vm482_vm0, %v6429_v17, %v4665_v44 }
  0xfe   : > { %v6964_v61 = vsel %vm1684_vm8, %v1670_v21, %v4794_v46  ;;  %v6967_v37 = vsel %vm1684_vm8, %v1671_v30, %v4795_v60  ;;  %5087 = vrot.lane.b32.xlu0 %v9245_v40, %s5909_s13  ;;  %v4740_v60 = vunpack.i.h.bf16 %v6849_v2  ;;  %v4745_v2 = vunpack.i.h.bf16 %v6855_v52 }
  0xff   : > { %v4803_v62 = vpop.permute.xlu1 %4802  ;;  %v6976_v43 = vsel %vm1684_vm8, %v1672_v9, %v4799_v59  ;;  %v6979_v55 = vsel %vm1684_vm8, %v1673_v15, %v4800_v45  ;;  %v1649_v52 = vsel %vm482_vm0, %v6427_v0, %v4664_v10  ;;  %v1680_v23 = vsel %vm1651_vm7, %v6937_v28, %v4739_v32 }
 0x100   : > { %v4805_v11 = vunpack.i.h.bf16 %v4803_v62  ;;  %v4804_v39 = vunpack.i.l.bf16 %v4803_v62  ;;  %v4808_v22 = vpop.permute.xlu0 %4807  ;;  %v1681_v15 = vsel %vm1651_vm7, %v6933_v29, %v4740_v60  ;;  %v1683_v0 = vsel %vm1651_vm7, %v1650_v27, %v4745_v2  ;;  %v5816_v60 = vld [vmem:[#allocation2] sm:$0xff] }
 0x101   : > { %5092 = vrot.lane.b32.xlu1 %v9247_v56, %s5909_s13  ;;  %v4810_v25 = vunpack.i.h.bf16 %v4808_v22  ;;  %v4809_v49 = vunpack.i.l.bf16 %v4808_v22  ;;  %v1682_v10 = vsel %vm1651_vm7, %v1649_v52, %v4744_v54  ;;  %v4589_v14 = vunpack.i.l.bf16 %v6690_v58  ;;  %v5818_v54 = vld [vmem:[#allocation2 + $0x18] sm:$0xff]  ;;  %v9271_v52 = vld [vmem:[#allocation10_spill] sm:$0xff] }
 0x102   : > { %v6988_v40 = vsel %vm1684_vm8, %v1674_v35, %v4804_v39  ;;  %v6991_v7 = vsel %vm1684_vm8, %v1675_v8, %v4805_v11  ;;  %5097 = vrot.lane.b32.xlu0 %v6553_v57, %s5910_s15  ;;  %v4590_v35 = vunpack.i.h.bf16 %v6690_v58  ;;  %v4594_v22 = vunpack.i.l.bf16 %v6700_v16 }
 0x103   : > { %v4813_v56 = vpop.permute.xlu1 %4812  ;;  %v7000_v46 = vsel %vm1684_vm8, %v1676_v34, %v4809_v49  ;;  %v7003_v30 = vsel %vm1684_vm8, %v1677_v38, %v4810_v25  ;;  %v5814_v49 = vld [vmem:[#allocation2 + $0x150] sm:$0xff]  ;;  %v5815_v34 = vld [vmem:[#allocation2 + $0x8] sm:$0xff]  ;;  %v7091_v32 = vsel %vm482_vm0, %v5816_v60, %v4589_v14 }
 0x104   : > { %v4815_v21 = vunpack.i.h.bf16 %v4813_v56  ;;  %v4814_v48 = vunpack.i.l.bf16 %v4813_v56  ;;  %v4818_v57 = vpop.permute.xlu0 %4817  ;;  %v7088_v38 = vsel %vm482_vm0, %v5815_v34, %v4590_v35  ;;  %v7095_v56 = vld [vmem:[#allocation2 + $0x1a0] sm:$0xff]  ;;  %v9272_v14 = vld [vmem:[#allocation14_spill] sm:$0xff]  ;;  %v5820_v34 = vld [vmem:[#allocation2 + $0x68] sm:$0xff] }
 0x105   : > { %5102 = vrot.lane.b32.xlu1 %v6555_v41, %s5910_s15  ;;  %v4820_v59 = vunpack.i.h.bf16 %v4818_v57  ;;  %v4819_v9 = vunpack.i.l.bf16 %v4818_v57  ;;  %v7112_v57 = vsel %vm482_vm0, %v5818_v54, %v4594_v22  ;;  %v847_v22 = vrot.slane %v7095_v56, 2 }
 0x106   : > { %v7014_v47 = vsel %vm1684_vm8, %v1678_v6, %v4814_v48  ;;  %v7017_v45 = vsel %vm1684_vm8, %v1679_v51, %v4815_v21  ;;  %5107 = vrot.lane.b32.xlu0 %v6555_v41, %s5907_s28  ;;  %v9270_v51 = vld [vmem:[#allocation4_spill] sm:$0xff] }
 0x107   : > { %v4823_v4 = vpop.permute.xlu1 %4822  ;;  %v7034_v36 = vsel %vm1684_vm8, %v1680_v23, %v4819_v9  ;;  %v7037_v17 = vsel %vm1684_vm8, %v1681_v15, %v4820_v59  ;;  %v5817_v6 = vld [vmem:[#allocation2 + $0x20] sm:$0xff]  ;;  %v7114_v9 = vld [vmem:[#allocation2 + $0x1a8] sm:$0x3]  ;;  %v4610_v23 = vunpack.i.h.bf16 %v9271_v52 }
 0x108   : > { %v4825_v24 = vunpack.i.h.bf16 %v4823_v4  ;;  %v4824_v44 = vunpack.i.l.bf16 %v4823_v4  ;;  %v7041_v28 = vpop.permute.xlu0 %4827  ;;  %v842_v4 = vrot.slane %v7095_v56, 1 }
 0x109   : > { %5112 = vrot.lane.b32.xlu1 %v6557_v63, %s5907_s28  ;;  %v7149_v60 = vsel %vm482_vm0, %v5820_v34, %v4610_v23 }
 0x10a   : > { %v7046_v41 = vsel %vm1684_vm8, %v1682_v10, %v4824_v44  ;;  %v7049_v29 = vsel %vm1684_vm8, %v1683_v0, %v4825_v24  ;;  %5117 = vrot.lane.b32.xlu0 %v6655_v19, %s5908_s12 }
 0x10b   : > { %v7053_v62 = vpop.permute.xlu1 %4832 }
 0x10c   : > { %v7055_v11 = vpop.permute.xlu0 %4837 }
 0x10d   : > { %5122 = vrot.lane.b32.xlu1 %v6661_v20, %s5908_s12  ;;  %v4600_v20 = vunpack.i.h.bf16 %v6696_v3 }
 0x10e   : > { %5127 = vrot.lane.b32.xlu0 %v6422_v33, %s5909_s13  ;;  %v4599_v33 = vunpack.i.l.bf16 %v6696_v3  ;;  %v5156_v3 = vpack.i.bf16 %v6416_v12, %v5814_v49 }
 0x10f   : > { %v7061_v39 = vpop.permute.xlu1 %4842 }
 0x110   : > { %v7063_v8 = vpop.permute.xlu0 %4847  ;;  %v7103_v21 = vsel %vm482_vm0, %v6742_v31, %v4599_v33  ;;  %v5819_v31 = vld [vmem:[#allocation2 + $0x50] sm:$0xff] }
 0x111   : > { %5132 = vrot.lane.b32.xlu1 %v6439_v42, %s5909_s13  ;;  %v4595_v42 = vunpack.i.h.bf16 %v6700_v16  ;;  %v7093_v16 = vld [vmem:[#allocation2 + $0x198] sm:$0xff] }
 0x112   : > { %5137 = vrot.lane.b32.xlu0 %v6557_v63, %s5910_s15  ;;  %v9269_v63 = vld [vmem:[#allocation6_spill] sm:$0xff]  ;;  %v841_v24 = vrot.slane %v7093_v16, 1 }
 0x113   : > { %v7069_v19 = vpop.permute.xlu1 %4852  ;;  %v4605_v25 = vunpack.i.h.bf16 %v9269_v63  ;;  %v4604_v12 = vunpack.i.l.bf16 %v9269_v63  ;;  %v7109_v2 = vsel %vm482_vm0, %v5817_v6, %v4595_v42  ;;  %v9273_v42 = vld [vmem:[#allocation8_spill] sm:$0xff]  ;;  %v846_v63 = vrot.slane %v7093_v16, 2 }
 0x114   : > { %v7075_v5 = vpop.permute.xlu0 %4857  ;;  %v7155_v54 = vsel %vm663_vm3, %v841_v24, %v842_v4 }
 0x115   : > { %5142 = vrot.lane.b32.xlu1 %v6579_v18, %s5910_s15  ;;  %v7117_v27 = vsel %vm482_vm0, %v5819_v31, %v4605_v25 }
 0x116   : > { %5147 = vrot.lane.b32.xlu0 %v6579_v18, %s5907_s28  ;;  %v7099_v18 = vsel %vm482_vm0, %v6744_v1, %v4600_v20  ;;  %v7133_v20 = vsel %vm482_vm0, %v9272_v14, %v4604_v12  ;;  %v4609_v12 = vunpack.i.l.bf16 %v9271_v52  ;;  %v9276_v14 = vmov 0.0  }
 0x117   : > { %v7084_v58 = vpop.permute.xlu1 %4862  ;;  %2246 = vst.msk [vmem:[#allocation3 + $0x10] sm:$0x3] %vm2245_vm10, %v9276_v14  ;;  %2250 = vst.msk [vmem:[#allocation3 + $0x1a8] sm:$0x3] %vm2245_vm10, %v9276_v14 }
 0x118   : > { %v4868_v48 = vpop.permute.xlu0 %4867  ;;  %2252 = vst.msk [vmem:[#allocation3] sm:$0x1] %vm2251_vm11, %v9276_v14  ;;  %2253 = vst.msk [vmem:[#allocation3 + $0x18] sm:$0x1] %vm2251_vm11, %v9276_v14 }
 0x119   : > { %5152 = vrot.lane.b32.xlu1 %v9270_v51, %s5907_s28  ;;  %v4870_v1 = vunpack.i.h.bf16 %v4868_v48  ;;  %v4869_v59 = vunpack.i.l.bf16 %v4868_v48  ;;  %v9274_v48 = vld [vmem:[#allocation20_spill] sm:$0xff]  ;;  %2254 = vst.msk [vmem:[#allocation3 + $0x30] sm:$0x1] %vm2251_vm11, %v9276_v14  ;;  %2255 = vst.msk [vmem:[#allocation3 + $0x48] sm:$0x1] %vm2251_vm11, %v9276_v14 }
 0x11a   : > { %5157 = vrot.lane.b32.xlu0 %v5156_v3, %s5908_s12  ;;  %2256 = vst.msk [vmem:[#allocation3 + $0x60] sm:$0x1] %vm2251_vm11, %v9276_v14  ;;  %2257 = vst.msk [vmem:[#allocation3 + $0x78] sm:$0x1] %vm2251_vm11, %v9276_v14 }
 0x11b   : > { %v4873_v15 = vpop.permute.xlu1 %4872  ;;  %v7125_v44 = vsel %vm1717_vm9, %v6952_v26, %v4869_v59  ;;  %v7129_v0 = vsel %vm1717_vm9, %v6955_v53, %v4870_v1  ;;  %v844_v26 = vrot.slane %v7114_v9, 1  ;;  %2258 = vst.msk [vmem:[#allocation3 + $0x90] sm:$0x1] %vm2251_vm11, %v9276_v14  ;;  %2259 = vst.msk [vmem:[#allocation3 + $0xa8] sm:$0x1] %vm2251_vm11, %v9276_v14 }
 0x11c   : > { %v4875_v10 = vunpack.i.h.bf16 %v4873_v15  ;;  %v4874_v35 = vunpack.i.l.bf16 %v4873_v15  ;;  %v4878_v33 = vpop.permute.xlu0 %4877  ;;  %v9275_v15 = vld [vmem:[#allocation21_spill] sm:$0xff]  ;;  %2260 = vst.msk [vmem:[#allocation3 + $0xc0] sm:$0x1] %vm2251_vm11, %v9276_v14  ;;  %2261 = vst.msk [vmem:[#allocation3 + $0xd8] sm:$0x1] %vm2251_vm11, %v9276_v14 }
 0x11d   : > { %5162 = vrot.lane.b32.xlu1 %v9273_v42, %s5908_s12  ;;  %v4880_v49 = vunpack.i.h.bf16 %v4878_v33  ;;  %v4879_v3 = vunpack.i.l.bf16 %v4878_v33  ;;  %2262 = vst.msk [vmem:[#allocation3 + $0xf0] sm:$0x1] %vm2251_vm11, %v9276_v14  ;;  %2263 = vst.msk [vmem:[#allocation3 + $0x108] sm:$0x1] %vm2251_vm11, %v9276_v14  ;;  %v9278_v33 = vld [vmem:[#allocation16_spill] sm:$0xff] }
 0x11e   : > { %v7142_v53 = vsel %vm1717_vm9, %v6964_v61, %v4874_v35  ;;  %v7146_v25 = vsel %vm1717_vm9, %v6967_v37, %v4875_v10  ;;  %5167 = vrot.lane.b32.xlu0 %v9274_v48, %s5909_s13  ;;  %v849_v61 = vrot.slane %v7114_v9, 2  ;;  %v7169_v10 = vsel %vm663_vm3, %v842_v4, %v844_v26  ;;  %2264 = vst.msk [vmem:[#allocation3 + $0x120] sm:$0x1] %vm2251_vm11, %v9276_v14  ;;  %v5821_v48 = vld [vmem:[#allocation2 + $0x60] sm:$0xff] }
 0x11f   : > { %v4883_v6 = vpop.permute.xlu1 %4882  ;;  %v7160_v37 = vsel %vm1717_vm9, %v6976_v43, %v4879_v3  ;;  %v7164_v1 = vsel %vm1717_vm9, %v6979_v55, %v4880_v49  ;;  %v7174_v9 = vsel %vm744_vm4, %v846_v63, %v847_v22  ;;  %2265 = vst.msk [vmem:[#allocation3 + $0x138] sm:$0x1] %vm2251_vm11, %v9276_v14  ;;  %2266 = vst.msk [vmem:[#allocation3 + $0x150] sm:$0x1] %vm2251_vm11, %v9276_v14  ;;  %v4674_v42 = vunpack.i.l.bf16 %v9278_v33 }
 0x120   : > { %v4885_v59 = vunpack.i.h.bf16 %v4883_v6  ;;  %v4884_v31 = vunpack.i.l.bf16 %v4883_v6  ;;  %v4888_v23 = vpop.permute.xlu0 %4887  ;;  %2267 = vst.msk [vmem:[#allocation3 + $0x168] sm:$0x1] %vm2251_vm11, %v9276_v14  ;;  %2268 = vst.msk [vmem:[#allocation3 + $0x180] sm:$0x1] %vm2251_vm11, %v9276_v14  ;;  %v7262_v26 = vsel %vm744_vm4, %v847_v22, %v849_v61  ;;  %v7279_v22 = vsel %vm482_vm0, %v5821_v48, %v4609_v12 }
 0x121   : > { %5172 = vrot.lane.b32.xlu1 %v9275_v15, %s5909_s13  ;;  %v4890_v24 = vunpack.i.h.bf16 %v4888_v23  ;;  %v4889_v35 = vunpack.i.l.bf16 %v4888_v23  ;;  %2269 = vst.msk [vmem:[#allocation3 + $0x198] sm:$0x1] %vm2251_vm11, %v9276_v14  ;;  %2271 = vst.msk [vmem:[#allocation3 + $0x29] sm:$0x1] %vm2251_vm11, %v9276_v14  ;;  %v4675_v6 = vunpack.i.h.bf16 %v9278_v33 }
 0x122   : > { %v7178_v43 = vsel %vm1717_vm9, %v6988_v40, %v4884_v31  ;;  %v7182_v55 = vsel %vm1717_vm9, %v6991_v7, %v4885_v59  ;;  %2272 = vst.msk [vmem:[#allocation3 + $0x41] sm:$0x1] %vm2251_vm11, %v9276_v14  ;;  %2273 = vst.msk [vmem:[#allocation3 + $0x59] sm:$0x1] %vm2251_vm11, %v9276_v14  ;;  %v9277_v40 = vld [vmem:[#allocation15_spill] sm:$0xff]  ;;  %5177 = vrot.lane.b32.xlu0 %v9270_v51, %s5910_s15 }
 0x123   : > { %2274 = vst.msk [vmem:[#allocation3 + $0x71] sm:$0x1] %vm2251_vm11, %v9276_v14  ;;  %2275 = vst.msk [vmem:[#allocation3 + $0x89] sm:$0x1] %vm2251_vm11, %v9276_v14  ;;  %v4670_v7 = vunpack.i.h.bf16 %v9277_v40  ;;  %v4669_v4 = vunpack.i.l.bf16 %v9277_v40  ;;  %v4893_v63 = vpop.permute.xlu1 %4892  ;;  %v7270_v49 = vsel %vm1717_vm9, %v7000_v46, %v4889_v35  ;;  %v7274_v3 = vsel %vm1717_vm9, %v7003_v30, %v4890_v24  ;;  %v9279_v59 = vld [vmem:[#allocation23_spill] sm:$0xff]  ;;  %v9290_v30 = vld [vmem:[#allocation18_spill] sm:$0xff] }
 0x124   : > { %2276 = vst.msk [vmem:[#allocation3 + $0xa1] sm:$0x1] %vm2251_vm11, %v9276_v14  ;;  %2277 = vst.msk [vmem:[#allocation3 + $0xb9] sm:$0x1] %vm2251_vm11, %v9276_v14  ;;  %v4895_v51 = vunpack.i.h.bf16 %v4893_v63  ;;  %v4894_v34 = vunpack.i.l.bf16 %v4893_v63  ;;  %v4898_v61 = vpop.permute.xlu0 %4897  ;;  %v5201_v46 = vpack.i.bf16 %v7095_v56, %v7093_v16  ;;  %v1654_v16 = vsel %vm1651_vm7, %v7112_v57, %v4674_v42  ;;  %v2321_v63 = vld [vmem:[#allocation3] sm:$0xff] }
 0x125   : > { %2278 = vst.msk [vmem:[#allocation3 + $0xd1] sm:$0x1] %vm2251_vm11, %v9276_v14  ;;  %2279 = vst.msk [vmem:[#allocation3 + $0xe9] sm:$0x1] %vm2251_vm11, %v9276_v14  ;;  %5182 = vrot.lane.b32.xlu1 %v9279_v59, %s5910_s15  ;;  %v4900_v12 = vunpack.i.h.bf16 %v4898_v61  ;;  %v4899_v23 = vunpack.i.l.bf16 %v4898_v61  ;;  %v1653_v15 = vsel %vm1651_vm7, %v7088_v38, %v4670_v7  ;;  %v1652_v24 = vsel %vm1651_vm7, %v7091_v32, %v4669_v4  ;;  %v9284_v4 = vld [vmem:[#allocation27_spill] sm:$0xff]  ;;  %v9288_v61 = vld [vmem:[#allocation17_spill] sm:$0xff] }
 0x126   : > { %2280 = vst.msk [vmem:[#allocation3 + $0x101] sm:$0x1] %vm2251_vm11, %v9276_v14  ;;  %2281 = vst.msk [vmem:[#allocation3 + $0x119] sm:$0x1] %vm2251_vm11, %v9276_v14  ;;  %v7290_v31 = vsel %vm1717_vm9, %v7014_v47, %v4894_v34  ;;  %v7294_v52 = vsel %vm1717_vm9, %v7017_v45, %v4895_v51  ;;  %5187 = vrot.lane.b32.xlu0 %v9279_v59, %s5907_s28  ;;  %v1655_v57 = vsel %vm1651_vm7, %v7109_v2, %v4675_v6  ;;  %v2322_v51 = vld [vmem:[#allocation3 + $0x8] sm:$0xff] }
 0x127   : > { %2282 = vst.msk [vmem:[#allocation3 + $0x131] sm:$0x1] %vm2251_vm11, %v9276_v14  ;;  %2283 = vst.msk [vmem:[#allocation3 + $0x149] sm:$0x1] %vm2251_vm11, %v9276_v14  ;;  %v4903_v47 = vpop.permute.xlu1 %4902  ;;  %v7308_v45 = vsel %vm1717_vm9, %v7034_v36, %v4899_v23  ;;  %v7312_v38 = vsel %vm1717_vm9, %v7037_v17, %v4900_v12  ;;  %v4755_v33 = vunpack.i.h.bf16 %v9284_v4  ;;  %v9285_v36 = vld [vmem:[#allocation9_spill] sm:$0xff]  ;;  %v4754_v17 = vunpack.i.l.bf16 %v9284_v4 }
 0x128   : > { %2284 = vst.msk [vmem:[#allocation3 + $0x161] sm:$0x1] %vm2251_vm11, %v9276_v14  ;;  %2285 = vst.msk [vmem:[#allocation3 + $0x179] sm:$0x1] %vm2251_vm11, %v9276_v14  ;;  %v4905_v35 = vunpack.i.h.bf16 %v4903_v47  ;;  %v4904_v32 = vunpack.i.l.bf16 %v4903_v47  ;;  %v4908_v42 = vpop.permute.xlu0 %4907  ;;  %v4829_v34 = vunpack.i.l.bf16 %v7041_v28  ;;  %v9289_v12 = vld [vmem:[#allocation5_spill] sm:$0xff]  ;;  %v2423_v47 = vrot.slane %v2321_v63, 1 }
 0x129   : > { %2286 = vst.msk [vmem:[#allocation3 + $0x191] sm:$0x1] %vm2251_vm11, %v9276_v14  ;;  %2270 = vst.msk [vmem:[#allocation3 + $0x11] sm:$0x1] %vm2251_vm11, %v9276_v14  ;;  %5192 = vrot.lane.b32.xlu1 %v9285_v36, %s5907_s28  ;;  %v1687_v56 = vsel %vm1684_vm8, %v1654_v16, %v4754_v17 }
 0x12a   : > { %2287 = vst.msk [vmem:[#allocation3 + $0x1a9] sm:$0x1] %vm2251_vm11, %v9276_v14  ;;  %9280 = vst [vmem:[#allocation6_spill] sm:$0xff] %v7294_v52  ;;  %v9283_v14 = vld [vmem:[#allocation26_spill] sm:$0xff]  ;;  %v7325_v2 = vsel %vm1717_vm9, %v7046_v41, %v4904_v32  ;;  %v7329_v48 = vsel %vm1717_vm9, %v7049_v29, %v4905_v35  ;;  %5197 = vrot.lane.b32.xlu0 %v9289_v12, %s5908_s12  ;;  %v4830_v29 = vunpack.i.h.bf16 %v7041_v28  ;;  %v4835_v12 = vunpack.i.h.bf16 %v7053_v62  ;;  %v9291_v28 = vld [vmem:[#allocation7_spill] sm:$0xff] }
 0x12b   : > { %9281 = vst [vmem:[#allocation4_spill] sm:$0xff] %v7308_v45  ;;  %9282 = vst [vmem:[#allocation10_spill] sm:$0xff] %v7312_v38  ;;  %v4750_v40 = vunpack.i.h.bf16 %v9283_v14  ;;  %v4749_v7 = vunpack.i.l.bf16 %v9283_v14  ;;  %v4913_v23 = vpop.permute.xlu1 %4912  ;;  %v2424_v14 = vrot.slane %v2322_v51, 1  ;;  %v1688_v41 = vsel %vm1684_vm8, %v1655_v57, %v4755_v33 }
 0x12c   : > { %9286 = vst [vmem:[#allocation14_spill] sm:$0xff] %v7325_v2  ;;  %9287 = vst [vmem:[#allocation8_spill] sm:$0xff] %v7329_v48  ;;  %v4834_v48 = vunpack.i.l.bf16 %v7053_v62  ;;  %v4918_v2 = vpop.permute.xlu0 %4917  ;;  %v2503_v38 = vrot.slane %v2321_v63, 2  ;;  %v4909_v52 = vunpack.i.l.bf16 %v4908_v42  ;;  %v4914_v16 = vunpack.i.l.bf16 %v4913_v23 }
 0x12d   : > { %v1685_v35 = vsel %vm1684_vm8, %v1652_v24, %v4749_v7  ;;  %v1686_v59 = vsel %vm1684_vm8, %v1653_v15, %v4750_v40  ;;  %5202 = vrot.lane.b32.xlu1 %v5201_v46, %s5908_s12  ;;  %v2425_v15 = vsel %vm663_vm3, %v2423_v47, %v2424_v14  ;;  %v2504_v7 = vrot.slane %v2322_v51, 2 }
 0x12e   : > { %v1718_v32 = vsel %vm1717_vm9, %v1685_v35, %v4829_v34  ;;  %5207 = vrot.lane.b32.xlu0 %v9291_v28, %s5909_s13  ;;  %v1719_v45 = vsel %vm1717_vm9, %v1686_v59, %v4830_v29  ;;  %v4910_v46 = vunpack.i.h.bf16 %v4908_v42  ;;  %v1720_v57 = vsel %vm1717_vm9, %v1687_v56, %v4834_v48  ;;  %v5823_v29 = vld [vmem:[%s6081_s19 + $0x8] sm:$0xff] }
 0x12f   : > { %v4923_v24 = vpop.permute.xlu1 %4922  ;;  %v1721_v33 = vsel %vm1717_vm9, %v1688_v41, %v4835_v12  ;;  %v4915_v63 = vunpack.i.h.bf16 %v4913_v23  ;;  %v4920_v17 = vunpack.i.h.bf16 %v4918_v2  ;;  %v9292_v47 = vpack.i.bf16 %v7169_v10, %v7155_v54 }
 0x130   : > { %v2323_v6 = vld [vmem:[#allocation3 + $0x10] sm:$0x3]  ;;  %v4928_v34 = vpop.permute.xlu0 %4927  ;;  %v4919_v51 = vunpack.i.l.bf16 %v4918_v2  ;;  %v2505_v42 = vsel %vm744_vm4, %v2503_v38, %v2504_v7  ;;  %v4924_v56 = vunpack.i.l.bf16 %v4923_v24  ;;  %v1751_v41 = vsel %vm1750_vm12, %v1718_v32, %v4909_v52 }
 0x131   : > { %v2426_v4 = vrot.slane %v2323_v6, 1  ;;  %v2506_v62 = vrot.slane %v2323_v6, 2  ;;  %5212 = vrot.lane.b32.xlu1 %v9292_v47, %s5909_s13  ;;  %v4930_v48 = vunpack.i.h.bf16 %v4928_v34  ;;  %v1752_v54 = vsel %vm1750_vm12, %v1719_v45, %v4910_v46  ;;  %v5822_v2 = vld [vmem:[%s6081_s19] sm:$0xff] }
 0x132   : > { %5217 = vrot.lane.b32.xlu0 %v9285_v36, %s5910_s15  ;;  %v1753_v10 = vsel %vm1750_vm12, %v1720_v57, %v4914_v16  ;;  %v5236_v35 = vpack.i.bf16 %v5823_v29, %v5822_v2  ;;  %v1754_v38 = vsel %vm1750_vm12, %v1721_v33, %v4915_v63  ;;  %v1784_v45 = vsel %vm1783_vm13, %v1751_v41, %v4919_v51  ;;  %v9295_v41 = vld [vmem:[#allocation29_spill] sm:$0xff] }
 0x133   : > { %v2427_v40 = vsel %vm663_vm3, %v2424_v14, %v2426_v4  ;;  %v2507_v59 = vsel %vm744_vm4, %v2504_v7, %v2506_v62  ;;  %v4925_v14 = vunpack.i.h.bf16 %v4923_v24  ;;  %v4929_v4 = vunpack.i.l.bf16 %v4928_v34  ;;  %v4933_v23 = vpop.permute.xlu1 %4932 }
 0x134   : > { %v5226_v6 = vpack.i.bf16 %v2427_v40, %v2425_v15  ;;  %v4935_v12 = vunpack.i.h.bf16 %v4933_v23  ;;  %v4934_v28 = vunpack.i.l.bf16 %v4933_v23  ;;  %v4938_v24 = vpop.permute.xlu0 %4937  ;;  %v9293_v15 = vpack.i.bf16 %v7262_v26, %v7174_v9 }
 0x135   : > { %v5231_v36 = vpack.i.bf16 %v2507_v59, %v2505_v42  ;;  %v4940_v40 = vunpack.i.h.bf16 %v4938_v24  ;;  %v4939_v52 = vunpack.i.l.bf16 %v4938_v24  ;;  %v1785_v32 = vsel %vm1783_vm13, %v1752_v54, %v4920_v17  ;;  %v5824_v42 = vld [vmem:[%s6081_s19 + $0x10] sm:$0xff]  ;;  %v9296_v24 = vld [vmem:[#allocation11_spill] sm:$0xff] }
 0x136   : > { %5222 = vrot.lane.b32.xlu1 %v9293_v15, %s5910_s15  ;;  %v1786_v7 = vsel %vm1783_vm13, %v1753_v10, %v4924_v56  ;;  %v1787_v62 = vsel %vm1783_vm13, %v1754_v38, %v4925_v14  ;;  %v1817_v16 = vsel %vm1816_vm14, %v1784_v45, %v4929_v4  ;;  %v1818_v57 = vsel %vm1816_vm14, %v1785_v32, %v4930_v48  ;;  %v9294_v14 = vld [vmem:[#allocation28_spill] sm:$0xff]  ;;  %v5826_v38 = vld [vmem:[%s6081_s19 + $0x30] sm:$0xff] }
 0x137   : > { %v4943_v46 = vpop.permute.xlu1 %4942  ;;  %5227 = vrot.lane.b32.xlu0 %v5226_v6, %s5910_s15  ;;  %v1850_v33 = vsel %vm1849_vm5, %v1817_v16, %v4939_v52  ;;  %v1851_v63 = vsel %vm1849_vm5, %v1818_v57, %v4940_v40  ;;  %v1819_v17 = vsel %vm1816_vm14, %v1786_v7, %v4934_v28  ;;  %v1820_v34 = vsel %vm1816_vm14, %v1787_v62, %v4935_v12  ;;  %v5825_v6 = vld [vmem:[%s6081_s19 + $0x18] sm:$0xff]  ;;  %v5829_v16 = vld [vmem:[%s6081_s19 + $0x28] sm:$0xff] }
 0x138   : > { %v4945_v9 = vunpack.i.h.bf16 %v4943_v46  ;;  %v4944_v26 = vunpack.i.l.bf16 %v4943_v46  ;;  %v7382_v47 = vpop.permute.xlu0 %4947  ;;  %v1882_v51 = vpack.c.bf16 %v1851_v63, %v1850_v33  ;;  %v5241_v59 = vpack.i.bf16 %v5825_v6, %v5824_v42  ;;  %v5827_v12 = vld [vmem:[%s6081_s19 + $0x38] sm:$0xff] }
 0x139   : > { %v4760_v56 = vunpack.i.h.bf16 %v9294_v14  ;;  %v4759_v48 = vunpack.i.l.bf16 %v9294_v14  ;;  %v4765_v54 = vunpack.i.h.bf16 %v9295_v41  ;;  %v4764_v10 = vunpack.i.l.bf16 %v9295_v41  ;;  %v5833_v41 = vld [vmem:[%s6081_s19 + $0x58] sm:$0xff] }
 0x13a   : > { %5232 = vrot.lane.b32.xlu1 %v5231_v36, %s5911_s16  ;;  %v1852_v4 = vsel %vm1849_vm5, %v1819_v17, %v4944_v26  ;;  %v1853_v23 = vsel %vm1849_vm5, %v1820_v34, %v4945_v9  ;;  %4495 = vmatprep.mubr.msk.bf16.mxu0 %vm1919_vm15, %v1882_v51  ;;  %v5251_v28 = vpack.i.bf16 %v5827_v12, %v5826_v38  ;;  %v4615_v15 = vunpack.i.h.bf16 %v9296_v24  ;;  %v5835_v12 = vld [vmem:[%s6081_s19 + $0x68] sm:$0xff] }
 0x13b   : > { %v7394_v2 = vpop.permute.xlu1 %4952  ;;  %v1883_v29 = vpack.c.bf16 %v1853_v23, %v1852_v4  ;;  %5237 = vrot.lane.b32.xlu0 %v5236_v35, %s5910_s15  ;;  %v4614_v36 = vunpack.i.l.bf16 %v9296_v24  ;;  %v4840_v40 = vunpack.i.h.bf16 %v7055_v11  ;;  %v4839_v52 = vunpack.i.l.bf16 %v7055_v11  ;;  %v5828_v11 = vld [vmem:[%s6081_s19 + $0x20] sm:$0xff]  ;;  %v5832_v23 = vld [vmem:[%s6081_s19 + $0x50] sm:$0xff] }
 0x13c   : > { %v9297_v45 = vunpack.i.h.bf16 %v9288_v61  ;;  %v9298_v7 = vunpack.i.l.bf16 %v9288_v61  ;;  %v4844_v62 = vunpack.i.l.bf16 %v7061_v39  ;;  %v4958_v46 = vpop.permute.xlu0 %4957  ;;  %v5246_v57 = vpack.i.bf16 %v5829_v16, %v5828_v11  ;;  %v5837_v11 = vld [vmem:[%s6081_s19 + $0x88] sm:$0xff] }
 0x13d   : > { %4496 = vmatmul.mubr.msk.bf16.vlgmr.msra.gmra.mrb[0].mxu0 %vm1919_vm15, %v1883_v29  ;;  %v9299_v9 = vunpack.i.h.bf16 %v9290_v30  ;;  %v9300_v61 = vunpack.i.l.bf16 %v9290_v30  ;;  %v4845_v33 = vunpack.i.h.bf16 %v7061_v39  ;;  %v5831_v30 = vld [vmem:[%s6081_s19 + $0x48] sm:$0xff]  ;;  %v4950_v6 = vunpack.i.h.bf16 %v7382_v47 }
 0x13e   : > { %v1657_v32 = vsel %vm1651_vm7, %v7099_v18, %v9297_v45  ;;  %v1656_v35 = vsel %vm1651_vm7, %v7103_v21, %v9298_v7  ;;  %5242 = vrot.lane.b32.xlu1 %v5241_v59, %s5910_s15  ;;  %v4949_v59 = vunpack.i.l.bf16 %v7382_v47  ;;  %v4960_v29 = vunpack.i.h.bf16 %v4958_v46  ;;  %v5834_v47 = vld [vmem:[%s6081_s19 + $0x60] sm:$0xff] }
 0x13f   : > { %v1659_v18 = vsel %vm1651_vm7, %v7117_v27, %v9299_v9  ;;  %v1658_v21 = vsel %vm1651_vm7, %v7133_v20, %v9300_v61  ;;  %v1689_v26 = vsel %vm1684_vm8, %v1656_v35, %v4759_v48  ;;  %v1690_v63 = vsel %vm1684_vm8, %v1657_v32, %v4760_v56  ;;  %v4963_v51 = vpop.permute.xlu1 %4962  ;;  %5252 = vrot.lane.b32.xlu0 %v5251_v28, %s5910_s15  ;;  %v5830_v27 = vld [vmem:[%s6081_s19 + $0x40] sm:$0xff] }
 0x140   : > { %v1691_v17 = vsel %vm1684_vm8, %v1658_v21, %v4764_v10  ;;  %v1692_v34 = vsel %vm1684_vm8, %v1659_v18, %v4765_v54  ;;  %v5256_v42 = vpack.i.bf16 %v5831_v30, %v5830_v27  ;;  %v1722_v20 = vsel %vm1717_vm9, %v1689_v26, %v4839_v52  ;;  %v4968_v4 = vpop.permute.xlu0 %4967 }
 0x141   : > { %v1723_v39 = vsel %vm1717_vm9, %v1690_v63, %v4840_v40  ;;  %v1724_v14 = vsel %vm1717_vm9, %v1691_v17, %v4844_v62  ;;  %v4955_v56 = vunpack.i.h.bf16 %v7394_v2  ;;  %v4954_v48 = vunpack.i.l.bf16 %v7394_v2  ;;  %v5836_v62 = vld [vmem:[%s6081_s19 + $0x80] sm:$0xff] }
 0x142   : > { %5247 = vrot.lane.b32.xlu1 %v5246_v57, %s5910_s15  ;;  %v5261_v54 = vpack.i.bf16 %v5833_v41, %v5832_v23  ;;  %v1725_v10 = vsel %vm1717_vm9, %v1692_v34, %v4845_v33  ;;  %v4959_v38 = vunpack.i.l.bf16 %v4958_v46  ;;  %v5266_v28 = vpack.i.bf16 %v5835_v12, %v5834_v47  ;;  %v5838_v57 = vld [vmem:[%s6081_s19 + $0x70] sm:$0xff]  ;;  %v5839_v46 = vld [vmem:[%s6081_s19 + $0x78] sm:$0xff] }
 0x143   : > { %v4965_v40 = vunpack.i.h.bf16 %v4963_v51  ;;  %v4964_v52 = vunpack.i.l.bf16 %v4963_v51  ;;  %v4970_v2 = vunpack.i.h.bf16 %v4968_v4  ;;  %v4969_v45 = vunpack.i.l.bf16 %v4968_v4  ;;  %v4973_v32 = vpop.permute.xlu1 %4972  ;;  %5257 = vrot.lane.b32.xlu0 %v5256_v42, %s5910_s15 }
 0x144   : > { %v1755_v7 = vsel %vm1750_vm12, %v1722_v20, %v4949_v59  ;;  %v1756_v35 = vsel %vm1750_vm12, %v1723_v39, %v4950_v6  ;;  %v5276_v16 = vpack.i.bf16 %v5837_v11, %v5836_v62  ;;  %v5271_v9 = vpack.i.bf16 %v5839_v46, %v5838_v57  ;;  %v4978_v33 = vpop.permute.xlu0 %4977  ;;  %v5841_v11 = vld [vmem:[#allocation2 + $0x78] sm:$0xff]  ;;  %v9304_v46 = vld [vmem:[#allocation12_spill] sm:$0xff] }
 0x145   : > { %v1757_v18 = vsel %vm1750_vm12, %v1724_v14, %v4954_v48  ;;  %v1758_v61 = vsel %vm1750_vm12, %v1725_v10, %v4955_v56  ;;  %v4975_v21 = vunpack.i.h.bf16 %v4973_v32  ;;  %v4974_v26 = vunpack.i.l.bf16 %v4973_v32  ;;  %v9301_v48 = vld [vmem:[#allocation19_spill] sm:$0xff] }
 0x146   : > { %5262 = vrot.lane.b32.xlu1 %v5261_v54, %s5910_s15  ;;  %v1788_v63 = vsel %vm1783_vm13, %v1755_v7, %v4959_v38  ;;  %v1789_v17 = vsel %vm1783_vm13, %v1756_v35, %v4960_v29  ;;  %v4980_v34 = vunpack.i.h.bf16 %v4978_v33  ;;  %v4979_v51 = vunpack.i.l.bf16 %v4978_v33  ;;  %v9302_v38 = vld [vmem:[#allocation22_spill] sm:$0xff]  ;;  %v5840_v35 = vld [vmem:[#allocation2 + $0x80] sm:$0xff] }
 0x147   : > { %v1790_v27 = vsel %vm1783_vm13, %v1757_v18, %v4964_v52  ;;  %v1791_v30 = vsel %vm1783_vm13, %v1758_v61, %v4965_v40  ;;  %v1821_v42 = vsel %vm1816_vm14, %v1788_v63, %v4969_v45  ;;  %v1822_v20 = vsel %vm1816_vm14, %v1789_v17, %v4970_v2  ;;  %v4983_v39 = vpop.permute.xlu1 %4982  ;;  %5267 = vrot.lane.b32.xlu0 %v5266_v28, %s5910_s15  ;;  %v9303_v52 = vld [vmem:[#allocation30_spill] sm:$0xff]  ;;  %v9305_v61 = vld [vmem:[#allocation13_spill] sm:$0xff] }
 0x148   : > { %v1854_v6 = vsel %vm1849_vm5, %v1821_v42, %v4979_v51  ;;  %v1855_v59 = vsel %vm1849_vm5, %v1822_v20, %v4980_v34  ;;  %v4985_v14 = vunpack.i.h.bf16 %v4983_v39  ;;  %v4984_v56 = vunpack.i.l.bf16 %v4983_v39  ;;  %v4988_v54 = vpop.permute.xlu0 %4987 }
 0x149   : > { %v4690_v4 = vunpack.i.h.bf16 %v9301_v48  ;;  %v1823_v23 = vsel %vm1816_vm14, %v1790_v27, %v4974_v26  ;;  %v1824_v41 = vsel %vm1816_vm14, %v1791_v30, %v4975_v21  ;;  %v1884_v10 = vpack.c.bf16 %v1855_v59, %v1854_v6 }
 0x14a   : > { %5272 = vrot.lane.b32.xlu1 %v5271_v9, %s5910_s15  ;;  %v4689_v29 = vunpack.i.l.bf16 %v9301_v48  ;;  %v4695_v47 = vunpack.i.h.bf16 %v9302_v38  ;;  %v1856_v12 = vsel %vm1849_vm5, %v1823_v23, %v4984_v56  ;;  %v1857_v28 = vsel %vm1849_vm5, %v1824_v41, %v4985_v14 }
 0x14b   : > { %v4694_v40 = vunpack.i.l.bf16 %v9302_v38  ;;  %v4770_v2 = vunpack.i.h.bf16 %v9303_v52  ;;  %v4769_v45 = vunpack.i.l.bf16 %v9303_v52  ;;  %4499 = vmatprep.mubr.msk.bf16.mxu0 %vm1919_vm15, %v1884_v10  ;;  %v4993_v32 = vpop.permute.xlu1 %4992  ;;  %v1885_v7 = vpack.c.bf16 %v1857_v28, %v1856_v12  ;;  %5277 = vrot.lane.b32.xlu0 %v5276_v16, %s5910_s15 }
 0x14c   : > { %v1630_v62 = vsel %vm482_vm0, %v5840_v35, %v4615_v15  ;;  %v1629_v57 = vsel %vm482_vm0, %v5841_v11, %v4614_v36  ;;  %v4620_v9 = vunpack.i.h.bf16 %v9304_v46  ;;  %v4619_v18 = vunpack.i.l.bf16 %v9304_v46  ;;  %v4998_v63 = vpop.permute.xlu0 %4997 }
 0x14d   : > { %v4625_v21 = vunpack.i.h.bf16 %v9305_v61  ;;  %v4624_v26 = vunpack.i.l.bf16 %v9305_v61  ;;  %v4775_v16 = vunpack.i.h.bf16 %v6887_v50  ;;  %v4774_v33 = vunpack.i.l.bf16 %v6887_v50  ;;  %4500 = vmatmul.mubr.msk.bf16.gmra.mrb[4].mxu0 %vm1919_vm15, %v1885_v7 }
 0x14e   : > { %v1660_v24 = vsel %vm1651_vm7, %v7279_v22, %v4689_v29  ;;  %v1661_v15 = vsel %vm1651_vm7, %v7149_v60, %v4690_v4  ;;  %v4850_v36 = vunpack.i.h.bf16 %v7063_v8  ;;  %v4849_v17 = vunpack.i.l.bf16 %v7063_v8 }
 0x14f   : > { %v1663_v34 = vsel %vm1651_vm7, %v1630_v62, %v4695_v47  ;;  %v1662_v51 = vsel %vm1651_vm7, %v1629_v57, %v4694_v40  ;;  %v1693_v27 = vsel %vm1684_vm8, %v1660_v24, %v4769_v45  ;;  %v1694_v50 = vsel %vm1684_vm8, %v1661_v15, %v4770_v2  ;;  %v5003_v30 = vpop.permute.xlu1 %5002 }
 0x150   : > { %v4855_v42 = vunpack.i.h.bf16 %v7069_v19  ;;  %v4854_v22 = vunpack.i.l.bf16 %v7069_v19  ;;  %v4990_v20 = vunpack.i.h.bf16 %v4988_v54  ;;  %v4989_v39 = vunpack.i.l.bf16 %v4988_v54  ;;  %v5008_v14 = vpop.permute.xlu0 %5007 }
 0x151   : > { %v1695_v60 = vsel %vm1684_vm8, %v1662_v51, %v4774_v33  ;;  %v1696_v6 = vsel %vm1684_vm8, %v1663_v34, %v4775_v16  ;;  %v4995_v8 = vunpack.i.h.bf16 %v4993_v32  ;;  %v4994_v59 = vunpack.i.l.bf16 %v4993_v32  ;;  %v9306_v51 = vld [vmem:[#allocation24_spill] sm:$0xff] }
 0x152   : > { %v1726_v56 = vsel %vm1717_vm9, %v1693_v27, %v4849_v17  ;;  %v1727_v48 = vsel %vm1717_vm9, %v1694_v50, %v4850_v36  ;;  %v5000_v4 = vunpack.i.h.bf16 %v4998_v63  ;;  %v4999_v23 = vunpack.i.l.bf16 %v4998_v63 }
 0x153   : > { %v5005_v41 = vunpack.i.h.bf16 %v5003_v30  ;;  %v5004_v10 = vunpack.i.l.bf16 %v5003_v30  ;;  %v5010_v29 = vunpack.i.h.bf16 %v5008_v14  ;;  %v5009_v38 = vunpack.i.l.bf16 %v5008_v14  ;;  %v5013_v19 = vpop.permute.xlu1 %5012  ;;  %v9308_v14 = vld [vmem:[#allocation31_spill] sm:$0xff] }
 0x154   : > { %v1728_v54 = vsel %vm1717_vm9, %v1695_v60, %v4854_v22  ;;  %v1729_v47 = vsel %vm1717_vm9, %v1696_v6, %v4855_v42  ;;  %v1759_v12 = vsel %vm1750_vm12, %v1726_v56, %v4989_v39  ;;  %v1760_v28 = vsel %vm1750_vm12, %v1727_v48, %v4990_v20  ;;  %v5018_v32 = vpop.permute.xlu0 %5017  ;;  %v9307_v39 = vld [vmem:[#allocation25_spill] sm:$0xff] }
 0x155   : > { %v1761_v40 = vsel %vm1750_vm12, %v1728_v54, %v4994_v59  ;;  %v1762_v52 = vsel %vm1750_vm12, %v1729_v47, %v4995_v8  ;;  %v5015_v2 = vunpack.i.h.bf16 %v5013_v19  ;;  %v5014_v45 = vunpack.i.l.bf16 %v5013_v19  ;;  %v5844_v19 = vld [vmem:[#allocation2 + $0xb0] sm:$0xff]  ;;  %v5845_v47 = vld [vmem:[#allocation2 + $0xa8] sm:$0xff] }
 0x156   : > { %v1792_v7 = vsel %vm1783_vm13, %v1759_v12, %v4999_v23  ;;  %v1793_v35 = vsel %vm1783_vm13, %v1760_v28, %v5000_v4  ;;  %v5020_v62 = vunpack.i.h.bf16 %v5018_v32  ;;  %v5019_v11 = vunpack.i.l.bf16 %v5018_v32 }
 0x157   : > { %v1794_v57 = vsel %vm1783_vm13, %v1761_v40, %v5004_v10  ;;  %v1795_v16 = vsel %vm1783_vm13, %v1762_v52, %v5005_v41  ;;  %v1825_v33 = vsel %vm1816_vm14, %v1792_v7, %v5009_v38  ;;  %v1826_v63 = vsel %vm1816_vm14, %v1793_v35, %v5010_v29  ;;  %v5023_v24 = vpop.permute.xlu1 %5022  ;;  %v5842_v41 = vld [vmem:[#allocation2 + $0x98] sm:$0xff]  ;;  %v5843_v29 = vld [vmem:[#allocation2 + $0x90] sm:$0xff] }
 0x158   : > { %v1858_v15 = vsel %vm1849_vm5, %v1825_v33, %v5019_v11  ;;  %v1859_v36 = vsel %vm1849_vm5, %v1826_v63, %v5020_v62  ;;  %v5025_v17 = vunpack.i.h.bf16 %v5023_v24  ;;  %v5024_v34 = vunpack.i.l.bf16 %v5023_v24  ;;  %v5028_v42 = vpop.permute.xlu0 %5027 }
 0x159   : > { %v4700_v27 = vunpack.i.h.bf16 %v9306_v51  ;;  %v1827_v50 = vsel %vm1816_vm14, %v1794_v57, %v5014_v45  ;;  %v1828_v30 = vsel %vm1816_vm14, %v1795_v16, %v5015_v2  ;;  %v1886_v22 = vpack.c.bf16 %v1859_v36, %v1858_v15 }
 0x15a   : > { %v4699_v20 = vunpack.i.l.bf16 %v9306_v51  ;;  %v4705_v60 = vunpack.i.h.bf16 %v9307_v39  ;;  %v1860_v6 = vsel %vm1849_vm5, %v1827_v50, %v5024_v34  ;;  %v1861_v8 = vsel %vm1849_vm5, %v1828_v30, %v5025_v17 }
 0x15b   : > { %v4704_v59 = vunpack.i.l.bf16 %v9307_v39  ;;  %v4780_v56 = vunpack.i.h.bf16 %v9308_v14  ;;  %v4779_v48 = vunpack.i.l.bf16 %v9308_v14  ;;  %4503 = vmatprep.mubr.msk.bf16.mxu0 %vm1919_vm15, %v1886_v22  ;;  %v5033_v4 = vpop.permute.xlu1 %5032  ;;  %v1887_v23 = vpack.c.bf16 %v1861_v8, %v1860_v6 }
 0x15c   : > { %v1632_v10 = vsel %vm482_vm0, %v5842_v41, %v4620_v9  ;;  %v1631_v38 = vsel %vm482_vm0, %v5843_v29, %v4619_v18  ;;  %v1634_v54 = vsel %vm482_vm0, %v5844_v19, %v4625_v21  ;;  %v1633_v12 = vsel %vm482_vm0, %v5845_v47, %v4624_v26  ;;  %v5038_v9 = vpop.permute.xlu0 %5037 }
 0x15d   : > { %v4785_v28 = vunpack.i.h.bf16 %v6917_v13  ;;  %v4784_v40 = vunpack.i.l.bf16 %v6917_v13  ;;  %4504 = vmatmul.mubr.msk.bf16.gmra.mrb[8].mxu0 %vm1919_vm15, %v1887_v23  ;;  %v1664_v46 = vsel %vm1651_vm7, %v1631_v38, %v4699_v20  ;;  %v1665_v18 = vsel %vm1651_vm7, %v1632_v10, %v4700_v27 }
 0x15e   : > { %v4860_v52 = vunpack.i.h.bf16 %v7075_v5  ;;  %v4859_v21 = vunpack.i.l.bf16 %v7075_v5  ;;  %v1667_v2 = vsel %vm1651_vm7, %v1634_v54, %v4705_v60  ;;  %v1666_v61 = vsel %vm1651_vm7, %v1633_v12, %v4704_v59 }
 0x15f   : > { %v1697_v26 = vsel %vm1684_vm8, %v1664_v46, %v4779_v48  ;;  %v1698_v45 = vsel %vm1684_vm8, %v1665_v18, %v4780_v56  ;;  %v5043_v13 = vpop.permute.xlu1 %5042  ;;  %v4865_v32 = vunpack.i.h.bf16 %v7084_v58  ;;  %v4864_v7 = vunpack.i.l.bf16 %v7084_v58 }
 0x160   : > { %v5030_v35 = vunpack.i.h.bf16 %v5028_v42  ;;  %v5029_v62 = vunpack.i.l.bf16 %v5028_v42  ;;  %v1699_v11 = vsel %vm1684_vm8, %v1666_v61, %v4784_v40  ;;  %v1700_v57 = vsel %vm1684_vm8, %v1667_v2, %v4785_v28  ;;  %v5048_v33 = vpop.permute.xlu0 %5047 }
 0x161   : > { %v5035_v5 = vunpack.i.h.bf16 %v5033_v4  ;;  %v5034_v16 = vunpack.i.l.bf16 %v5033_v4  ;;  %v1730_v63 = vsel %vm1717_vm9, %v1697_v26, %v4859_v21  ;;  %v1731_v24 = vsel %vm1717_vm9, %v1698_v45, %v4860_v52 }
 0x162   : > { %v5040_v15 = vunpack.i.h.bf16 %v5038_v9  ;;  %v5039_v36 = vunpack.i.l.bf16 %v5038_v9  ;;  %v5045_v17 = vunpack.i.h.bf16 %v5043_v13  ;;  %v5044_v34 = vunpack.i.l.bf16 %v5043_v13 }
 0x163   : > { %v5050_v51 = vunpack.i.h.bf16 %v5048_v33  ;;  %v5049_v27 = vunpack.i.l.bf16 %v5048_v33  ;;  %v5053_v58 = vpop.permute.xlu1 %5052  ;;  %v1732_v50 = vsel %vm1717_vm9, %v1699_v11, %v4864_v7  ;;  %v1733_v30 = vsel %vm1717_vm9, %v1700_v57, %v4865_v32 }
 0x164   : > { %v1763_v42 = vsel %vm1750_vm12, %v1730_v63, %v5029_v62  ;;  %v1764_v22 = vsel %vm1750_vm12, %v1731_v24, %v5030_v35  ;;  %v1765_v20 = vsel %vm1750_vm12, %v1732_v50, %v5034_v16  ;;  %v1766_v39 = vsel %vm1750_vm12, %v1733_v30, %v5035_v5  ;;  %v5058_v8 = vpop.permute.xlu0 %5057 }
 0x165   : > { %v5055_v60 = vunpack.i.h.bf16 %v5053_v58  ;;  %v5054_v6 = vunpack.i.l.bf16 %v5053_v58  ;;  %v1796_v59 = vsel %vm1783_vm13, %v1763_v42, %v5039_v36  ;;  %v1797_v14 = vsel %vm1783_vm13, %v1764_v22, %v5040_v15 }
 0x166   : > { %v5060_v56 = vunpack.i.h.bf16 %v5058_v8  ;;  %v5059_v48 = vunpack.i.l.bf16 %v5058_v8  ;;  %v1798_v4 = vsel %vm1783_vm13, %v1765_v20, %v5044_v34  ;;  %v1799_v23 = vsel %vm1783_vm13, %v1766_v39, %v5045_v17 }
 0x167   : > { %v1829_v41 = vsel %vm1816_vm14, %v1796_v59, %v5049_v27  ;;  %v1830_v10 = vsel %vm1816_vm14, %v1797_v14, %v5050_v51  ;;  %v5063_v29 = vpop.permute.xlu1 %5062  ;;  %v1831_v12 = vsel %vm1816_vm14, %v1798_v4, %v5054_v6  ;;  %v1832_v28 = vsel %vm1816_vm14, %v1799_v23, %v5055_v60 }
 0x168   : > { %v1862_v38 = vsel %vm1849_vm5, %v1829_v41, %v5059_v48  ;;  %v1863_v19 = vsel %vm1849_vm5, %v1830_v10, %v5060_v56  ;;  %v5065_v54 = vunpack.i.h.bf16 %v5063_v29  ;;  %v5064_v47 = vunpack.i.l.bf16 %v5063_v29  ;;  %v5068_v40 = vpop.permute.xlu0 %5067 }
 0x169   : > { %v1888_v9 = vpack.c.bf16 %v1863_v19, %v1862_v38  ;;  %v5070_v26 = vunpack.i.h.bf16 %v5068_v40  ;;  %v5069_v45 = vunpack.i.l.bf16 %v5068_v40  ;;  %vm3409_vm0 = vcmask 523264  }
 0x16a   : > { %v1864_v46 = vsel %vm1849_vm5, %v1831_v12, %v5064_v47  ;;  %v1865_v18 = vsel %vm1849_vm5, %v1832_v28, %v5065_v54 }
 0x16b   : > { %4507 = vmatprep.mubr.msk.bf16.mxu0 %vm1919_vm15, %v1888_v9  ;;  %v5073_v52 = vpop.permute.xlu1 %5072  ;;  %v1889_v21 = vpack.c.bf16 %v1865_v18, %v1864_v46  ;;  %v1767_v63 = vsel %vm1750_vm12, %v7125_v44, %v5069_v45  ;;  %v1768_v24 = vsel %vm1750_vm12, %v7129_v0, %v5070_v26 }
 0x16c   : > { %v5078_v2 = vpop.permute.xlu0 %5077  ;;  %v5075_v13 = vunpack.i.h.bf16 %v5073_v52  ;;  %v5074_v32 = vunpack.i.l.bf16 %v5073_v52 }
 0x16d   : > { %4508 = vmatmul.mubr.msk.bf16.gmra.mrb[12].mxu0 %vm1919_vm15, %v1889_v21  ;;  %v5080_v35 = vunpack.i.h.bf16 %v5078_v2  ;;  %v5079_v62 = vunpack.i.l.bf16 %v5078_v2 }
 0x16e   : > { %v1769_v15 = vsel %vm1750_vm12, %v7142_v53, %v5074_v32  ;;  %v1770_v36 = vsel %vm1750_vm12, %v7146_v25, %v5075_v13 }
 0x16f   : > { %v5083_v61 = vpop.permute.xlu1 %5082  ;;  %v1800_v27 = vsel %vm1783_vm13, %v1767_v63, %v5079_v62  ;;  %v1801_v58 = vsel %vm1783_vm13, %v1768_v24, %v5080_v35 }
 0x170   : > { %v5088_v7 = vpop.permute.xlu0 %5087  ;;  %v5085_v11 = vunpack.i.h.bf16 %v5083_v61  ;;  %v5084_v57 = vunpack.i.l.bf16 %v5083_v61 }
 0x171   : > { %v5090_v5 = vunpack.i.h.bf16 %v5088_v7  ;;  %v5089_v16 = vunpack.i.l.bf16 %v5088_v7 }
 0x172   : > { %v1802_v44 = vsel %vm1783_vm13, %v1769_v15, %v5084_v57  ;;  %v1803_v42 = vsel %vm1783_vm13, %v1770_v36, %v5085_v11 }
 0x173   : > { %v5093_v33 = vpop.permute.xlu1 %5092  ;;  %v1833_v0 = vsel %vm1816_vm14, %v1800_v27, %v5089_v16  ;;  %v1834_v53 = vsel %vm1816_vm14, %v1801_v58, %v5090_v5 }
 0x174   : > { %v5095_v17 = vunpack.i.h.bf16 %v5093_v33  ;;  %v5094_v34 = vunpack.i.l.bf16 %v5093_v33  ;;  %v5098_v51 = vpop.permute.xlu0 %5097 }
 0x175   : > { %v5100_v50 = vunpack.i.h.bf16 %v5098_v51  ;;  %v5099_v30 = vunpack.i.l.bf16 %v5098_v51 }
 0x176   : > { %v1835_v6 = vsel %vm1816_vm14, %v1802_v44, %v5094_v34  ;;  %v1836_v8 = vsel %vm1816_vm14, %v1803_v42, %v5095_v17 }
 0x177   : > { %v5103_v22 = vpop.permute.xlu1 %5102  ;;  %v1866_v25 = vsel %vm1849_vm5, %v1833_v0, %v5099_v30  ;;  %v1867_v20 = vsel %vm1849_vm5, %v1834_v53, %v5100_v50 }
 0x178   : > { %v5105_v39 = vunpack.i.h.bf16 %v5103_v22  ;;  %v5104_v60 = vunpack.i.l.bf16 %v5103_v22  ;;  %v5108_v59 = vpop.permute.xlu0 %5107  ;;  %v1890_v14 = vpack.c.bf16 %v1867_v20, %v1866_v25 }
 0x179   : > { %v5110_v29 = vunpack.i.h.bf16 %v5108_v59  ;;  %v5109_v38 = vunpack.i.l.bf16 %v5108_v59 }
 0x17a   : > { %v1868_v56 = vsel %vm1849_vm5, %v1835_v6, %v5104_v60  ;;  %v1869_v48 = vsel %vm1849_vm5, %v1836_v8, %v5105_v39  ;;  %4511 = vmatprep.mubr.msk.bf16.mxu0 %vm1919_vm15, %v1890_v14 }
 0x17b   : > { %v5113_v4 = vpop.permute.xlu1 %5112  ;;  %v1891_v23 = vpack.c.bf16 %v1869_v48, %v1868_v56  ;;  %v1771_v21 = vsel %vm1750_vm12, %v7160_v37, %v5109_v38  ;;  %v1772_v2 = vsel %vm1750_vm12, %v7164_v1, %v5110_v29 }
 0x17c   : > { %v5118_v41 = vpop.permute.xlu0 %5117  ;;  %v5115_v19 = vunpack.i.h.bf16 %v5113_v4  ;;  %v5114_v54 = vunpack.i.l.bf16 %v5113_v4  ;;  %v9309_v4 = vld [vmem:[#allocation6_spill] sm:$0xff] }
 0x17d   : > { %4512 = vmatmul.mubr.msk.bf16.gmra.mrb[16].mxu0 %vm1919_vm15, %v1891_v23  ;;  %v5120_v12 = vunpack.i.h.bf16 %v5118_v41  ;;  %v5119_v28 = vunpack.i.l.bf16 %v5118_v41 }
 0x17e   : > { %v1773_v61 = vsel %vm1750_vm12, %v7178_v43, %v5114_v54  ;;  %v1774_v26 = vsel %vm1750_vm12, %v7182_v55, %v5115_v19 }
 0x17f   : > { %v5123_v10 = vpop.permute.xlu1 %5122  ;;  %v1804_v7 = vsel %vm1783_vm13, %v1771_v21, %v5119_v28  ;;  %v1805_v35 = vsel %vm1783_vm13, %v1772_v2, %v5120_v12 }
 0x180   : > { %v5128_v47 = vpop.permute.xlu0 %5127  ;;  %v5125_v40 = vunpack.i.h.bf16 %v5123_v10  ;;  %v5124_v9 = vunpack.i.l.bf16 %v5123_v10 }
 0x181   : > { %v5130_v46 = vunpack.i.h.bf16 %v5128_v47  ;;  %v5129_v18 = vunpack.i.l.bf16 %v5128_v47 }
 0x182   : > { %v1806_v37 = vsel %vm1783_vm13, %v1773_v61, %v5124_v9  ;;  %v1807_v57 = vsel %vm1783_vm13, %v1774_v26, %v5125_v40 }
 0x183   : > { %v5133_v52 = vpop.permute.xlu1 %5132  ;;  %v1837_v1 = vsel %vm1816_vm14, %v1804_v7, %v5129_v18  ;;  %v1838_v43 = vsel %vm1816_vm14, %v1805_v35, %v5130_v46 }
 0x184   : > { %v5135_v45 = vunpack.i.h.bf16 %v5133_v52  ;;  %v5134_v13 = vunpack.i.l.bf16 %v5133_v52  ;;  %v5138_v32 = vpop.permute.xlu0 %5137 }
 0x185   : > { %v5140_v62 = vunpack.i.h.bf16 %v5138_v32  ;;  %v5139_v11 = vunpack.i.l.bf16 %v5138_v32 }
 0x186   : > { %v1839_v24 = vsel %vm1816_vm14, %v1806_v37, %v5134_v13  ;;  %v1840_v15 = vsel %vm1816_vm14, %v1807_v57, %v5135_v45 }
 0x187   : > { %v5143_v5 = vpop.permute.xlu1 %5142  ;;  %v1870_v55 = vsel %vm1849_vm5, %v1837_v1, %v5139_v11  ;;  %v1871_v16 = vsel %vm1849_vm5, %v1838_v43, %v5140_v62 }
 0x188   : > { %v5145_v33 = vunpack.i.h.bf16 %v5143_v5  ;;  %v5144_v63 = vunpack.i.l.bf16 %v5143_v5  ;;  %v5148_v36 = vpop.permute.xlu0 %5147  ;;  %v1892_v17 = vpack.c.bf16 %v1871_v16, %v1870_v55 }
 0x189   : > { %v5150_v44 = vunpack.i.h.bf16 %v5148_v36  ;;  %v5149_v42 = vunpack.i.l.bf16 %v5148_v36 }
 0x18a   : > { %v1872_v34 = vsel %vm1849_vm5, %v1839_v24, %v5144_v63  ;;  %v1873_v51 = vsel %vm1849_vm5, %v1840_v15, %v5145_v33  ;;  %4515 = vmatprep.mubr.msk.bf16.mxu0 %vm1919_vm15, %v1892_v17  ;;  %v9310_v15 = vld [vmem:[#allocation4_spill] sm:$0xff]  ;;  %v9311_v17 = vld [vmem:[#allocation10_spill] sm:$0xff] }
 0x18b   : > { %v5153_v27 = vpop.permute.xlu1 %5152  ;;  %v1893_v58 = vpack.c.bf16 %v1873_v51, %v1872_v34  ;;  %v1775_v14 = vsel %vm1750_vm12, %v7270_v49, %v5149_v42  ;;  %v1776_v56 = vsel %vm1750_vm12, %v7274_v3, %v5150_v44  ;;  %v9312_v51 = vld [vmem:[#allocation14_spill] sm:$0xff] }
 0x18c   : > { %v5158_v50 = vpop.permute.xlu0 %5157  ;;  %v5155_v0 = vunpack.i.h.bf16 %v5153_v27  ;;  %v5154_v53 = vunpack.i.l.bf16 %v5153_v27 }
 0x18d   : > { %4516 = vmatmul.mubr.msk.bf16.gmra.mrb[20].mxu0 %vm1919_vm15, %v1893_v58  ;;  %v5160_v25 = vunpack.i.h.bf16 %v5158_v50  ;;  %v5159_v20 = vunpack.i.l.bf16 %v5158_v50  ;;  %v9313_v58 = vld [vmem:[#allocation8_spill] sm:$0xff] }
 0x18e   : > { %v1777_v48 = vsel %vm1750_vm12, %v7290_v31, %v5154_v53  ;;  %v1778_v23 = vsel %vm1750_vm12, %v9309_v4, %v5155_v0 }
 0x18f   : > { %v5163_v30 = vpop.permute.xlu1 %5162  ;;  %v1808_v38 = vsel %vm1783_vm13, %v1775_v14, %v5159_v20  ;;  %v1809_v19 = vsel %vm1783_vm13, %v1776_v56, %v5160_v25 }
 0x190   : > { %v5168_v22 = vpop.permute.xlu0 %5167  ;;  %v5165_v39 = vunpack.i.h.bf16 %v5163_v30  ;;  %v5164_v60 = vunpack.i.l.bf16 %v5163_v30 }
 0x191   : > { %v5170_v6 = vunpack.i.h.bf16 %v5168_v22  ;;  %v5169_v8 = vunpack.i.l.bf16 %v5168_v22 }
 0x192   : > { %v1810_v49 = vsel %vm1783_vm13, %v1777_v48, %v5164_v60  ;;  %v1811_v12 = vsel %vm1783_vm13, %v1778_v23, %v5165_v39 }
 0x193   : > { %v5173_v59 = vpop.permute.xlu1 %5172  ;;  %v1841_v3 = vsel %vm1816_vm14, %v1808_v38, %v5169_v8  ;;  %v1842_v31 = vsel %vm1816_vm14, %v1809_v19, %v5170_v6  ;;  %v5789_v19 = vld [vmem:[%s9121_s7 + $0x80] sm:$0xff]  }
 0x194   : > { %v5175_v41 = vunpack.i.h.bf16 %v5173_v59  ;;  %v5174_v10 = vunpack.i.l.bf16 %v5173_v59  ;;  %v5178_v29 = vpop.permute.xlu0 %5177  ;;  %4527 = vmatprep.subr.bf16.mxu0 %v5789_v19 }
 0x195   : > { %v5180_v54 = vunpack.i.h.bf16 %v5178_v29  ;;  %v5179_v47 = vunpack.i.l.bf16 %v5178_v29  ;;  %4528 = vmatpush3.bf16.msra.mxu0 %v5789_v19  ;;  %v5802_v19 = vld [vmem:[%s9121_s7 + $0x68] sm:$0xff]  }
 0x196   : > { %v1843_v52 = vsel %vm1816_vm14, %v1810_v49, %v5174_v10  ;;  %v1844_v21 = vsel %vm1816_vm14, %v1811_v12, %v5175_v41  ;;  %v7682_v12 = vld [vmem:[%s9116_s2] ss:$0 sm:$0xff] }
 0x197   : > { %v5183_v28 = vpop.permute.xlu1 %5182  ;;  %v1874_v40 = vsel %vm1849_vm5, %v1841_v3, %v5179_v47  ;;  %v1875_v9 = vsel %vm1849_vm5, %v1842_v31, %v5180_v54  ;;  %v5790_v54 = vld [vmem:[%s9121_s7 + $0x88] sm:$0xff]   ;;  %v5791_v47 = vld [vmem:[%s9121_s7 + $0x90] ss:$0 sps:$4 sm:$0x33]   ;;  %v5792_v3 = vld [vmem:[%s9121_s7 + $0x40] sm:$0xff]  }
 0x198   : > { %v5185_v46 = vunpack.i.h.bf16 %v5183_v28  ;;  %v5184_v18 = vunpack.i.l.bf16 %v5183_v28  ;;  %v5188_v2 = vpop.permute.xlu0 %5187  ;;  %v1894_v61 = vpack.c.bf16 %v1875_v9, %v1874_v40  ;;  %4529 = vmatprep.subr.bf16.mxu0 %v5790_v54  ;;  %v3855_v49 = vsel %vm1968_vm6, %v5791_v47, 0  ;;  %v5793_v31 = vld [vmem:[%s9121_s7] sm:$0xff]   ;;  %4358 = vmatprep.subr.bf16.mxu1 %v5792_v3 }
 0x199   : > { %v5190_v62 = vunpack.i.h.bf16 %v5188_v2  ;;  %v5189_v11 = vunpack.i.l.bf16 %v5188_v2  ;;  %4530 = vmatpush3.bf16.msra.mxu0 %v5790_v54  ;;  %v7693_v40 = vld [vmem:[%s9119_s5] ss:$0 sm:$0xff]  ;;  %4359 = vmatpush3.bf16.msra.mxu1 %v5793_v31  ;;  %v5803_v54 = vld [vmem:[%s9121_s7 + $0x28] sm:$0xff]  }
 0x19a   : > { %v1876_v26 = vsel %vm1849_vm5, %v1843_v52, %v5184_v18  ;;  %v1877_v45 = vsel %vm1849_vm5, %v1844_v21, %v5185_v46  ;;  %4519 = vmatprep.mubr.msk.bf16.mxu0 %vm1919_vm15, %v1894_v61  ;;  %4566 = vmatprep.subr.msk.bf16.mxu0 %vm1968_vm6, %v5791_v47  ;;  %v7699_v18 = vld [vmem:[%s9120_s6] ss:$0 sm:$0xff] }
 0x19b   : > { %v5193_v13 = vpop.permute.xlu1 %5192  ;;  %v1895_v32 = vpack.c.bf16 %v1877_v45, %v1876_v26  ;;  %v1779_v36 = vsel %vm1750_vm12, %v9310_v15, %v5189_v11  ;;  %v1780_v34 = vsel %vm1750_vm12, %v9311_v17, %v5190_v62  ;;  %v5794_v45 = vld [vmem:[%s9121_s7 + $0x48] sm:$0xff]   ;;  %v5798_v15 = vld [vmem:[%s9121_s7 + $0x58] sm:$0xff]  }
 0x19c   : > { %v5198_v7 = vpop.permute.xlu0 %5197  ;;  %v5195_v37 = vunpack.i.h.bf16 %v5193_v13  ;;  %v5194_v57 = vunpack.i.l.bf16 %v5193_v13  ;;  %v5795_v13 = vld [vmem:[%s9121_s7 + $0x8] sm:$0xff]   ;;  %4360 = vmatprep.subr.bf16.mxu1 %v5794_v45 }
 0x19d   : > { %4520 = vmatmul.mubr.msk.bf16.gmra.mrb[24].mxu0 %vm1919_vm15, %v1895_v32  ;;  %v5200_v43 = vunpack.i.h.bf16 %v5198_v7  ;;  %v5199_v5 = vunpack.i.l.bf16 %v5198_v7  ;;  %4361 = vmatpush3.bf16.msra.mxu1 %v5795_v13  ;;  %v5804_v13 = vld [vmem:[%s9121_s7 + $0x70] sm:$0xff]  }
 0x19e   : > { %v1781_v27 = vsel %vm1750_vm12, %v9312_v51, %v5194_v57  ;;  %v1782_v50 = vsel %vm1750_vm12, %v9313_v58, %v5195_v37  ;;  %4532 = vmatpush3.bf16.msra.mxu0 %v3855_v49  ;;  %v5801_v51 = vld [vmem:[%s9121_s7 + $0x20] sm:$0xff]  }
 0x19f   : > { %v5203_v35 = vpop.permute.xlu1 %5202  ;;  %v1812_v0 = vsel %vm1783_vm13, %v1779_v36, %v5199_v5  ;;  %v1813_v53 = vsel %vm1783_vm13, %v1780_v34, %v5200_v43  ;;  %v5796_v43 = vld [vmem:[%s9121_s7 + $0x50] sm:$0xff]   ;;  %v5799_v36 = vld [vmem:[%s9121_s7 + $0x18] sm:$0xff]   ;;  %v5800_v34 = vld [vmem:[%s9121_s7 + $0x60] sm:$0xff]  }
 0x1a0   : > { %v5208_v1 = vpop.permute.xlu0 %5207  ;;  %v5205_v55 = vunpack.i.h.bf16 %v5203_v35  ;;  %v5204_v16 = vunpack.i.l.bf16 %v5203_v35  ;;  %v5797_v5 = vld [vmem:[%s9121_s7 + $0x10] sm:$0xff]   ;;  %4362 = vmatprep.subr.bf16.mxu1 %v5796_v43 }
 0x1a1   : > { %v5210_v33 = vunpack.i.h.bf16 %v5208_v1  ;;  %v5209_v63 = vunpack.i.l.bf16 %v5208_v1  ;;  %4363 = vmatpush3.bf16.msra.mxu1 %v5797_v5 }
 0x1a2   : > { %v1814_v20 = vsel %vm1783_vm13, %v1781_v27, %v5204_v16  ;;  %v1815_v39 = vsel %vm1783_vm13, %v1782_v50, %v5205_v55  ;;  %4364 = vmatprep.subr.bf16.mxu1 %v5798_v15 }
 0x1a3   : > { %v5213_v24 = vpop.permute.xlu1 %5212  ;;  %v1845_v60 = vsel %vm1816_vm14, %v1812_v0, %v5209_v63  ;;  %v1846_v6 = vsel %vm1816_vm14, %v1813_v53, %v5210_v33 }
 0x1a4   : > { %v5215_v30 = vunpack.i.h.bf16 %v5213_v24  ;;  %v5214_v44 = vunpack.i.l.bf16 %v5213_v24  ;;  %v5218_v42 = vpop.permute.xlu0 %5217 }
 0x1a5   : > { %v5220_v22 = vunpack.i.h.bf16 %v5218_v42  ;;  %v5219_v25 = vunpack.i.l.bf16 %v5218_v42  ;;  %4365 = vmatpush3.bf16.msra.mxu1 %v5799_v36 }
 0x1a6   : > { %v1847_v4 = vsel %vm1816_vm14, %v1814_v20, %v5214_v44  ;;  %v1848_v23 = vsel %vm1816_vm14, %v1815_v39, %v5215_v30  ;;  %4366 = vmatprep.subr.bf16.mxu1 %v5800_v34 }
 0x1a7   : > { %v1878_v59 = vsel %vm1849_vm5, %v1845_v60, %v5219_v25  ;;  %v1879_v14 = vsel %vm1849_vm5, %v1846_v6, %v5220_v22 }
 0x1a8   : > { %v5223_v8 = vpop.permute.xlu1 %5222  ;;  %v1896_v41 = vpack.c.bf16 %v1879_v14, %v1878_v59 }
 0x1a9   : > { %v5225_v56 = vunpack.i.h.bf16 %v5223_v8  ;;  %v5224_v48 = vunpack.i.l.bf16 %v5223_v8  ;;  %v7724_v33 = vpop.permute.xlu0 %5227  ;;  %4367 = vmatpush3.bf16.msra.mxu1 %v5801_v51 }
 0x1aa   : > { %4523 = vmatprep.mubr.msk.bf16.mxu0 %vm1919_vm15, %v1896_v41  ;;  %4368 = vmatprep.subr.bf16.mxu1 %v5802_v19 }
 0x1ab   : > { %v1880_v10 = vsel %vm1849_vm5, %v1847_v4, %v5224_v48  ;;  %v1881_v29 = vsel %vm1849_vm5, %v1848_v23, %v5225_v56 }
 0x1ac   : > { %v1897_v38 = vpack.c.bf16 %v1881_v29, %v1880_v10  ;;  %v7748_v53 = vpop.permute.xlu1 %5232 }
 0x1ad   : > { %v5238_v17 = vpop.permute.xlu0 %5237  ;;  %4369 = vmatpush3.bf16.msra.mxu1 %v5803_v54 }
 0x1ae   : > { %4524 = vmatmul.mubr.msk.bf16.gmra.mrb[28].mxu0 %vm1919_vm15, %v1897_v38  ;;  %v5240_v44 = vunpack.i.h.bf16 %v5238_v17  ;;  %v5239_v20 = vunpack.i.l.bf16 %v5238_v17  ;;  %4370 = vmatprep.subr.bf16.mxu1 %v5804_v13 }
 0x1b0   : > { %v7776_v45 = vpop.permute.xlu1 %5242 }
 0x210   : > { %v4497_v28 = vpop.f32.mrb[0].mxu0 }
 0x211   : > { %v2015_v9 = vadd.f32 %v4497_v28, %v7682_v12  ;;  %v2006_v46 = vpop.f32.mrb[1].mxu0 }
 0x212   : > { %v2007_v52 = vadd.f32 %v7682_v12, %v2006_v46  ;;  %v4498_v21 = vpop.f32.mrb[2].mxu0 }
 0x213   : > { %v2142_v2 = vmul.f32 %v7693_v40, %v2015_v9  ;;  %v2018_v61 = vadd.f32 %v4498_v21, %v7682_v12  ;;  %v2009_v26 = vpop.f32.mrb[3].mxu0 }
 0x214   : > { %v2140_v32 = vmul.f32 %v7693_v40, %v2007_v52  ;;  %v2010_v7 = vadd.f32 %v7682_v12, %v2009_v26 }
 0x215   : > { %v2181_v35 = vadd.f32 %v7699_v18, %v2142_v2  ;;  %v2143_v62 = vmul.f32 %v7693_v40, %v2018_v61 }
 0x216   : > { %v2179_v11 = vadd.f32 %v7699_v18, %v2140_v32  ;;  %v2141_v37 = vmul.f32 %v7693_v40, %v2010_v7 }
 0x217   : > { %v2213_v57 = vmax.f32 %v2181_v35, 0.0  ;;  %v2182_v1 = vadd.f32 %v7699_v18, %v2143_v62 }
 0x218   : > { %v2211_v55 = vmax.f32 %v2179_v11, 0.0  ;;  %v2180_v16 = vadd.f32 %v7699_v18, %v2141_v37  ;;  %v5805_v11 = vld [vmem:[%s9121_s7 + $0x30] sm:$0xff]  }
 0x219   : > { %2291 = vst.msk [vmem:[#allocation3 + $0x31] sm:$0xff] %vm1849_vm5, %v2213_v57  ;;  %v2214_v63 = vmax.f32 %v2182_v1, 0.0  ;;  %4371 = vmatpush3.bf16.msra.mxu1 %v5805_v11 }
 0x21a   : > { %2289 = vst.msk [vmem:[#allocation3 + $0x19] sm:$0xff] %vm1849_vm5, %v2211_v55  ;;  %v2212_v24 = vmax.f32 %v2180_v16, 0.0 }
 0x21b   : > { %2292 = vst.msk [vmem:[#allocation3 + $0x39] sm:$0xff] %vm1849_vm5, %v2214_v63 }
 0x21c   : > { %2290 = vst.msk [vmem:[#allocation3 + $0x21] sm:$0xff] %vm1849_vm5, %v2212_v24 }
 0x220   : > { %v4501_v27 = vpop.f32.mrb[4].mxu0  ;;  %v7742_v58 = vld [vmem:[#allocation3 + $0x30] sm:$0xff] }
 0x221   : > { %v2031_v50 = vadd.f32 %v4501_v27, %v7682_v12  ;;  %v2022_v30 = vpop.f32.mrb[5].mxu0  ;;  %v2513_v42 = vrot.slane %v7742_v58, 2  ;;  %v7746_v0 = vld [vmem:[#allocation3 + $0x18] sm:$0xff]  ;;  %v2433_v6 = vrot.slane %v7742_v58, 1  ;;  %v5248_v27 = vpop.permute.xlu1 %5247 }
 0x222   : > { %v2023_v22 = vadd.f32 %v7682_v12, %v2022_v30  ;;  %v4502_v25 = vpop.f32.mrb[6].mxu0  ;;  %v2328_v39 = vld [vmem:[#allocation3 + $0x38] sm:$0xff]  ;;  %v2329_v60 = vld [vmem:[#allocation3 + $0x40] sm:$0x3]  ;;  %v2428_v8 = vrot.slane %v7746_v0, 1  ;;  %v2508_v34 = vrot.slane %v7746_v0, 2  ;;  %v5245_v30 = vunpack.i.h.bf16 %v7776_v45 }
 0x223   : > { %v2146_v59 = vmul.f32 %v7693_v40, %v2031_v50  ;;  %v2034_v14 = vadd.f32 %v4502_v25, %v7682_v12  ;;  %v2514_v56 = vrot.slane %v2328_v39, 2  ;;  %v2516_v48 = vrot.slane %v2329_v60, 2  ;;  %v2025_v4 = vpop.f32.mrb[7].mxu0  ;;  %v2325_v23 = vld [vmem:[#allocation3 + $0x20] sm:$0xff]  ;;  %v2326_v21 = vld [vmem:[#allocation3 + $0x28] sm:$0x3] }
 0x224   : > { %v2144_v41 = vmul.f32 %v7693_v40, %v2023_v22  ;;  %v2026_v10 = vadd.f32 %v7682_v12, %v2025_v4  ;;  %v5281_v29 = vpack.i.bf16 %v2328_v39, %v7742_v58  ;;  %v5291_v38 = vpack.i.bf16 %v2325_v23, %v7746_v0  ;;  %v5806_v25 = vld [vmem:[%s9121_s7 + $0x78] sm:$0xff]  }
 0x225   : > { %v2185_v47 = vadd.f32 %v7699_v18, %v2146_v59  ;;  %v2147_v49 = vmul.f32 %v7693_v40, %v2034_v14  ;;  %v2515_v3 = vsel %vm744_vm4, %v2513_v42, %v2514_v56  ;;  %v2517_v31 = vsel %vm744_vm4, %v2514_v56, %v2516_v48  ;;  %4372 = vmatprep.subr.bf16.mxu1 %v5806_v25 }
 0x226   : > { %v2183_v28 = vadd.f32 %v7699_v18, %v2144_v41  ;;  %v3571_v9 = vsel %vm1849_vm5, %v2515_v3, %v5239_v20  ;;  %v3572_v46 = vsel %vm1849_vm5, %v2517_v31, %v5240_v44  ;;  %v2145_v52 = vmul.f32 %v7693_v40, %v2026_v10  ;;  %5282 = vrot.lane.b32.xlu0 %v5281_v29, %s5911_s16  ;;  %v5807_v20 = vld [vmem:[%s9121_s7 + $0x38] sm:$0xff]  }
 0x227   : > { %v2217_v2 = vmax.f32 %v2185_v47, 0.0  ;;  %v2186_v61 = vadd.f32 %v7699_v18, %v2147_v49  ;;  %5292 = vrot.lane.b32.xlu1 %v5291_v38, %s5912_s24  ;;  %v3605_v26 = vpack.c.bf16 %v3572_v46, %v3571_v9  ;;  %v7782_v35 = vpack.i.bf16 %v2517_v31, %v2515_v3  ;;  %4373 = vmatpush3.bf16.msra.mxu1 %v5807_v20 }
 0x228   : > { %v2215_v32 = vmax.f32 %v2183_v28, 0.0  ;;  %v2184_v7 = vadd.f32 %v7699_v18, %v2145_v52  ;;  %v2434_v62 = vrot.slane %v2328_v39, 1  ;;  %v2436_v57 = vrot.slane %v2329_v60, 1 }
 0x229   : > { %2295 = vst.msk [vmem:[#allocation3 + $0x61] sm:$0xff] %vm1849_vm5, %v2217_v2  ;;  %v2218_v37 = vmax.f32 %v2186_v61, 0.0  ;;  %4533 = vmatprep.mubr.msk.bf16.mxu0 %vm1919_vm15, %v3605_v26  ;;  %v2429_v1 = vrot.slane %v2325_v23, 1  ;;  %v2431_v43 = vrot.slane %v2326_v21, 1  ;;  %v2509_v16 = vrot.slane %v2325_v23, 2 }
 0x22a   : > { %2293 = vst.msk [vmem:[#allocation3 + $0x49] sm:$0xff] %vm1849_vm5, %v2215_v32  ;;  %v2216_v5 = vmax.f32 %v2184_v7, 0.0  ;;  %5287 = vrot.lane.b32.xlu0 %v5281_v29, %s5912_s24  ;;  %v7792_v55 = vsel %vm663_vm3, %v2433_v6, %v2434_v62  ;;  %v2511_v63 = vrot.slane %v2326_v21, 2  ;;  %v7798_v24 = vsel %vm663_vm3, %v2434_v62, %v2436_v57 }
 0x22b   : > { %2296 = vst.msk [vmem:[#allocation3 + $0x69] sm:$0xff] %vm1849_vm5, %v2218_v37  ;;  %5312 = vrot.lane.b32.xlu1 %v7782_v35, %s5911_s16  ;;  %v7801_v15 = vsel %vm663_vm3, %v2428_v8, %v2429_v1  ;;  %v7804_v36 = vsel %vm663_vm3, %v2429_v1, %v2431_v43  ;;  %v5296_v17 = vpack.i.bf16 %v7798_v24, %v7792_v55  ;;  %v5244_v44 = vunpack.i.l.bf16 %v7776_v45 }
 0x22c   : > { %2294 = vst.msk [vmem:[#allocation3 + $0x51] sm:$0xff] %vm1849_vm5, %v2216_v5  ;;  %v5316_v51 = vpack.i.bf16 %v7804_v36, %v7801_v15  ;;  %v2510_v58 = vsel %vm744_vm4, %v2508_v34, %v2509_v16  ;;  %v2512_v50 = vsel %vm744_vm4, %v2509_v16, %v2511_v63  ;;  %v5250_v22 = vunpack.i.h.bf16 %v5248_v27  ;;  %v7862_v5 = vpop.permute.xlu0 %5252 }
 0x22d   : > { %v5321_v8 = vpack.i.bf16 %v2512_v50, %v2510_v58  ;;  %v5249_v59 = vunpack.i.l.bf16 %v5248_v27 }
 0x22e   : > { %5297 = vrot.lane.b32.xlu0 %v5296_v17, %s5910_s15 }
 0x22f   : > { %5317 = vrot.lane.b32.xlu1 %v5316_v51, %s5910_s15 }
 0x230   : > { %v4505_v42 = vpop.f32.mrb[8].mxu0  ;;  %v7818_v0 = vld [vmem:[#allocation3 + $0x60] sm:$0xff] }
 0x231   : > { %v7826_v39 = vld [vmem:[#allocation3 + $0x48] sm:$0xff]  ;;  %v2047_v60 = vadd.f32 %v4505_v42, %v7682_v12  ;;  %v2038_v6 = vpop.f32.mrb[9].mxu0  ;;  %v2523_v41 = vrot.slane %v7818_v0, 2  ;;  %v2443_v42 = vrot.slane %v7818_v0, 1 }
 0x232   : > { %v2518_v14 = vrot.slane %v7826_v39, 2  ;;  %5302 = vrot.lane.b32.xlu0 %v5296_v17, %s5912_s24  ;;  %v2039_v56 = vadd.f32 %v7682_v12, %v2038_v6  ;;  %v4506_v48 = vpop.f32.mrb[10].mxu0  ;;  %v7832_v4 = vld [vmem:[#allocation3 + $0x68] sm:$0xff]  ;;  %v2335_v23 = vld [vmem:[#allocation3 + $0x70] sm:$0x3]  ;;  %v5254_v6 = vunpack.i.l.bf16 %v7862_v5 }
 0x233   : > { %v2331_v10 = vld [vmem:[#allocation3 + $0x50] sm:$0xff]  ;;  %v2332_v29 = vld [vmem:[#allocation3 + $0x58] sm:$0x3]  ;;  %v2150_v38 = vmul.f32 %v7693_v40, %v2047_v60  ;;  %v2050_v19 = vadd.f32 %v4506_v48, %v7682_v12  ;;  %5322 = vrot.lane.b32.xlu1 %v5321_v8, %s5910_s15  ;;  %v2524_v54 = vrot.slane %v7832_v4, 2  ;;  %v2526_v47 = vrot.slane %v2335_v23, 2  ;;  %v2041_v49 = vpop.f32.mrb[11].mxu0 }
 0x234   : > { %v2519_v3 = vrot.slane %v2331_v10, 2  ;;  %v2521_v31 = vrot.slane %v2332_v29, 2  ;;  %v2148_v28 = vmul.f32 %v7693_v40, %v2039_v56  ;;  %v2042_v9 = vadd.f32 %v7682_v12, %v2041_v49 }
 0x235   : > { %v2189_v46 = vadd.f32 %v7699_v18, %v2150_v38  ;;  %v2151_v52 = vmul.f32 %v7693_v40, %v2050_v19  ;;  %v2525_v21 = vsel %vm744_vm4, %v2523_v41, %v2524_v54  ;;  %v2527_v2 = vsel %vm744_vm4, %v2524_v54, %v2526_v47 }
 0x236   : > { %v7846_v61 = vsel %vm744_vm4, %v2518_v14, %v2519_v3  ;;  %v7849_v26 = vsel %vm744_vm4, %v2519_v3, %v2521_v31  ;;  %v2187_v45 = vadd.f32 %v7699_v18, %v2148_v28  ;;  %v3575_v13 = vsel %vm1849_vm5, %v2525_v21, %v5249_v59  ;;  %5307 = vrot.lane.b32.xlu0 %v7782_v35, %s5910_s15 }
 0x237   : > { %v3573_v32 = vsel %vm1849_vm5, %v7846_v61, %v5244_v44  ;;  %v3574_v7 = vsel %vm1849_vm5, %v7849_v26, %v5245_v30  ;;  %v2221_v62 = vmax.f32 %v2189_v46, 0.0  ;;  %v2190_v11 = vadd.f32 %v7699_v18, %v2151_v52 }
 0x238   : > { %v3608_v37 = vpack.c.bf16 %v3574_v7, %v3573_v32  ;;  %v2219_v57 = vmax.f32 %v2187_v45, 0.0  ;;  %v3576_v1 = vsel %vm1849_vm5, %v2527_v2, %v5250_v22  ;;  %v2149_v43 = vmul.f32 %v7693_v40, %v2042_v9  ;;  %v5258_v22 = vpop.permute.xlu0 %5257 }
 0x239   : > { %2299 = vst.msk [vmem:[#allocation3 + $0x91] sm:$0xff] %vm1849_vm5, %v2221_v62  ;;  %v2222_v35 = vmax.f32 %v2190_v11, 0.0  ;;  %v5341_v16 = vpack.i.bf16 %v2331_v10, %v7826_v39  ;;  %v3611_v63 = vpack.c.bf16 %v3576_v1, %v3575_v13  ;;  %v2439_v34 = vrot.slane %v2331_v10, 1 }
 0x23a   : > { %2297 = vst.msk [vmem:[#allocation3 + $0x79] sm:$0xff] %vm1849_vm5, %v2219_v57  ;;  %v2188_v17 = vadd.f32 %v7699_v18, %v2149_v43  ;;  %5327 = vrot.lane.b32.xlu0 %v5321_v8, %s5911_s16  ;;  %4534 = vmatmul.mubr.msk.bf16.vlgmr.msra.gmra.mrb[32].mxu0 %vm1919_vm15, %v3608_v37  ;;  %v2441_v51 = vrot.slane %v2332_v29, 1  ;;  %v2444_v27 = vrot.slane %v7832_v4, 1  ;;  %v2446_v58 = vrot.slane %v2335_v23, 1 }
 0x23b   : > { %2300 = vst.msk [vmem:[#allocation3 + $0x99] sm:$0xff] %vm1849_vm5, %v2222_v35  ;;  %5342 = vrot.lane.b32.xlu1 %v5341_v16, %s5911_s16  ;;  %4537 = vmatprep.mubr.msk.bf16.mxu0 %vm1919_vm15, %v3611_v63  ;;  %v5331_v30 = vpack.i.bf16 %v7832_v4, %v7818_v0  ;;  %v2438_v44 = vrot.slane %v7826_v39, 1  ;;  %v5255_v0 = vunpack.i.h.bf16 %v7862_v5  ;;  %v5366_v14 = vpack.i.bf16 %v2527_v2, %v2525_v21 }
 0x23c   : > { %v2220_v50 = vmax.f32 %v2188_v17, 0.0  ;;  %v7885_v20 = vsel %vm663_vm3, %v2439_v34, %v2441_v51  ;;  %v7888_v60 = vsel %vm663_vm3, %v2443_v42, %v2444_v27  ;;  %v7891_v39 = vsel %vm663_vm3, %v2444_v27, %v2446_v58 }
 0x23d   : > { %v7882_v25 = vsel %vm663_vm3, %v2438_v44, %v2439_v34  ;;  %v5260_v4 = vunpack.i.h.bf16 %v5258_v22  ;;  %v5259_v23 = vunpack.i.l.bf16 %v5258_v22  ;;  %v5351_v47 = vpack.i.bf16 %v7891_v39, %v7888_v60 }
 0x23e   : > { %2298 = vst.msk [vmem:[#allocation3 + $0x81] sm:$0xff] %vm1849_vm5, %v2220_v50  ;;  %5332 = vrot.lane.b32.xlu0 %v5331_v30, %s5911_s16  ;;  %v5371_v29 = vpack.i.bf16 %v7885_v20, %v7882_v25 }
 0x23f   : > { %5347 = vrot.lane.b32.xlu1 %v5341_v16, %s5912_s24 }
 0x240   : > { %v4509_v8 = vpop.f32.mrb[12].mxu0  ;;  %v7895_v59 = vld [vmem:[#allocation3 + $0x90] sm:$0xff] }
 0x241   : > { %v2063_v56 = vadd.f32 %v4509_v8, %v7682_v12  ;;  %v2054_v48 = vpop.f32.mrb[13].mxu0  ;;  %v2533_v54 = vrot.slane %v7895_v59, 2  ;;  %v7910_v49 = vld [vmem:[#allocation3 + $0x78] sm:$0xff]  ;;  %v5381_v8 = vpack.i.bf16 %v7849_v26, %v7846_v61 }
 0x242   : > { %v2055_v41 = vadd.f32 %v7682_v12, %v2054_v48  ;;  %5337 = vrot.lane.b32.xlu0 %v5331_v30, %s5912_s24  ;;  %v4510_v10 = vpop.f32.mrb[14].mxu0  ;;  %v7902_v38 = vld [vmem:[#allocation3 + $0x98] sm:$0xff]  ;;  %v7904_v19 = vld [vmem:[#allocation3 + $0xa0] sm:$0x3]  ;;  %v2528_v11 = vrot.slane %v7910_v49, 2  ;;  %v2448_v26 = vrot.slane %v7910_v49, 1 }
 0x243   : > { %5367 = vrot.lane.b32.xlu1 %v5366_v14, %s5911_s16  ;;  %v2154_v3 = vmul.f32 %v7693_v40, %v2063_v56  ;;  %v2066_v31 = vadd.f32 %v4510_v10, %v7682_v12  ;;  %v2534_v28 = vrot.slane %v7902_v38, 2  ;;  %v2536_v9 = vrot.slane %v7904_v19, 2  ;;  %v2057_v46 = vpop.f32.mrb[15].mxu0 }
 0x244   : > { %v2152_v52 = vmul.f32 %v7693_v40, %v2055_v41  ;;  %v2058_v21 = vadd.f32 %v7682_v12, %v2057_v46  ;;  %v2453_v41 = vrot.slane %v7895_v59, 1  ;;  %v5391_v61 = vpack.i.bf16 %v7902_v38, %v7895_v59 }
 0x245   : > { %v7918_v2 = vld [vmem:[#allocation3 + $0x80] sm:$0xff]  ;;  %v7920_v45 = vld [vmem:[#allocation3 + $0x88] sm:$0x3]  ;;  %v2193_v13 = vadd.f32 %v7699_v18, %v2154_v3  ;;  %v2155_v32 = vmul.f32 %v7693_v40, %v2066_v31  ;;  %v2535_v7 = vsel %vm744_vm4, %v2533_v54, %v2534_v28  ;;  %v2537_v62 = vsel %vm744_vm4, %v2534_v28, %v2536_v9 }
 0x246   : > { %v2529_v37 = vrot.slane %v7918_v2, 2  ;;  %v2531_v57 = vrot.slane %v7920_v45, 2  ;;  %v2191_v1 = vadd.f32 %v7699_v18, %v2152_v52  ;;  %5352 = vrot.lane.b32.xlu0 %v5351_v47, %s5910_s15  ;;  %v3579_v35 = vsel %vm1849_vm5, %v2535_v7, %v5259_v23 }
 0x247   : > { %v2225_v43 = vmax.f32 %v2193_v13, 0.0  ;;  %v2194_v5 = vadd.f32 %v7699_v18, %v2155_v32  ;;  %5372 = vrot.lane.b32.xlu1 %v5371_v29, %s5910_s15  ;;  %v2153_v16 = vmul.f32 %v7693_v40, %v2058_v21  ;;  %v3580_v51 = vsel %vm1849_vm5, %v2537_v62, %v5260_v4 }
 0x248   : > { %v7936_v63 = vsel %vm744_vm4, %v2528_v11, %v2529_v37  ;;  %v7939_v17 = vsel %vm744_vm4, %v2529_v37, %v2531_v57  ;;  %v2223_v34 = vmax.f32 %v2191_v1, 0.0  ;;  %v3617_v22 = vpack.c.bf16 %v3580_v51, %v3579_v35 }
 0x249   : > { %v3577_v27 = vsel %vm1849_vm5, %v7936_v63, %v5254_v6  ;;  %v3578_v58 = vsel %vm1849_vm5, %v7939_v17, %v5255_v0  ;;  %2303 = vst.msk [vmem:[#allocation3 + $0xc1] sm:$0xff] %vm1849_vm5, %v2225_v43  ;;  %v2226_v50 = vmax.f32 %v2194_v5, 0.0  ;;  %v2192_v30 = vadd.f32 %v7699_v18, %v2153_v16  ;;  %v7952_v6 = vpop.permute.xlu0 %5267  ;;  %v7955_v0 = vpop.permute.xlu1 %5262 }
 0x24a   : > { %2301 = vst.msk [vmem:[#allocation3 + $0xa9] sm:$0xff] %vm1849_vm5, %v2223_v34  ;;  %5357 = vrot.lane.b32.xlu0 %v5351_v47, %s5912_s24  ;;  %v3614_v44 = vpack.c.bf16 %v3578_v58, %v3577_v27  ;;  %v5270_v56 = vunpack.i.h.bf16 %v7952_v6  ;;  %v5269_v48 = vunpack.i.l.bf16 %v7952_v6  ;;  %v5265_v4 = vunpack.i.h.bf16 %v7955_v0 }
 0x24b   : > { %2304 = vst.msk [vmem:[#allocation3 + $0xc9] sm:$0xff] %vm1849_vm5, %v2226_v50  ;;  %v2224_v42 = vmax.f32 %v2192_v30, 0.0  ;;  %5377 = vrot.lane.b32.xlu1 %v5371_v29, %s5912_s24  ;;  %v5264_v23 = vunpack.i.l.bf16 %v7955_v0  ;;  %v5401_v54 = vpack.i.bf16 %v7918_v2, %v7910_v49  ;;  %v2454_v31 = vrot.slane %v7902_v38, 1 }
 0x24c   : > { %4538 = vmatmul.mubr.msk.bf16.gmra.mrb[36].mxu0 %vm1919_vm15, %v3614_v44  ;;  %v7985_v21 = vpack.i.bf16 %v2537_v62, %v2535_v7  ;;  %v2451_v49 = vrot.slane %v7920_v45, 1  ;;  %v2456_v43 = vrot.slane %v7904_v19, 1 }
 0x24d   : > { %2302 = vst.msk [vmem:[#allocation3 + $0xb1] sm:$0xff] %vm1849_vm5, %v2224_v42  ;;  %4541 = vmatprep.mubr.msk.bf16.mxu0 %vm1919_vm15, %v3617_v22  ;;  %v8011_v34 = vsel %vm663_vm3, %v2453_v41, %v2454_v31 }
 0x24e   : > { %5362 = vrot.lane.b32.xlu0 %v5366_v14, %s5910_s15  ;;  %v2449_v14 = vrot.slane %v7918_v2, 1 }
 0x24f   : > { %5382 = vrot.lane.b32.xlu1 %v5381_v8, %s5910_s15 }
 0x250   : > { %v4513_v10 = vpop.f32.mrb[16].mxu0  ;;  %v7968_v29 = vld [vmem:[#allocation3 + $0xc0] sm:$0xff]  ;;  %v8002_v1 = vsel %vm663_vm3, %v2448_v26, %v2449_v14 }
 0x251   : > { %v2079_v47 = vadd.f32 %v4513_v10, %v7682_v12  ;;  %v2070_v3 = vpop.f32.mrb[17].mxu0  ;;  %v2543_v52 = vrot.slane %v7968_v29, 2  ;;  %v7993_v37 = vld [vmem:[#allocation3 + $0xa8] sm:$0xff] }
 0x252   : > { %v2071_v28 = vadd.f32 %v7682_v12, %v2070_v3  ;;  %5387 = vrot.lane.b32.xlu0 %v5381_v8, %s5911_s16  ;;  %v4514_v9 = vpop.f32.mrb[18].mxu0  ;;  %v7980_v46 = vld [vmem:[#allocation3 + $0xc8] sm:$0xff]  ;;  %v7982_v59 = vld [vmem:[#allocation3 + $0xd0] sm:$0x3]  ;;  %v2538_v50 = vrot.slane %v7993_v37, 2  ;;  %v8028_v8 = vsel %vm663_vm3, %v2454_v31, %v2456_v43  ;;  %v8046_v31 = vsel %vm663_vm3, %v2449_v14, %v2451_v49 }
 0x253   : > { %5402 = vrot.lane.b32.xlu1 %v5401_v54, %s5911_s16  ;;  %v2158_v2 = vmul.f32 %v7693_v40, %v2079_v47  ;;  %v2082_v38 = vadd.f32 %v4514_v9, %v7682_v12  ;;  %v2544_v13 = vrot.slane %v7980_v46, 2  ;;  %v2546_v32 = vrot.slane %v7982_v59, 2  ;;  %v2073_v11 = vpop.f32.mrb[19].mxu0  ;;  %v5278_v9 = vpop.permute.xlu0 %5277 }
 0x254   : > { %v2156_v57 = vmul.f32 %v7693_v40, %v2071_v28  ;;  %v2074_v7 = vadd.f32 %v7682_v12, %v2073_v11  ;;  %v7997_v62 = vld [vmem:[#allocation3 + $0xb0] sm:$0xff]  ;;  %v7999_v45 = vld [vmem:[#allocation3 + $0xb8] sm:$0x3]  ;;  %v5280_v14 = vunpack.i.h.bf16 %v5278_v9  ;;  %v5279_v49 = vunpack.i.l.bf16 %v5278_v9 }
 0x255   : > { %v2197_v5 = vadd.f32 %v7699_v18, %v2158_v2  ;;  %v2159_v35 = vmul.f32 %v7693_v40, %v2082_v38  ;;  %v8008_v16 = vsel %vm744_vm4, %v2543_v52, %v2544_v13  ;;  %v8015_v27 = vsel %vm744_vm4, %v2544_v13, %v2546_v32 }
 0x256   : > { %v2195_v51 = vadd.f32 %v7699_v18, %v2156_v57  ;;  %v2157_v58 = vmul.f32 %v7693_v40, %v2074_v7  ;;  %5392 = vrot.lane.b32.xlu0 %v5391_v61, %s5911_s16  ;;  %v2539_v44 = vrot.slane %v7997_v62, 2  ;;  %v2541_v42 = vrot.slane %v7999_v45, 2 }
 0x257   : > { %v2229_v19 = vmax.f32 %v2197_v5, 0.0  ;;  %v2198_v30 = vadd.f32 %v7699_v18, %v2159_v35  ;;  %5407 = vrot.lane.b32.xlu1 %v5401_v54, %s5912_s24  ;;  %v3583_v6 = vsel %vm1849_vm5, %v8008_v16, %v5269_v48  ;;  %v3584_v10 = vsel %vm1849_vm5, %v8015_v27, %v5270_v56 }
 0x258   : > { %v2227_v22 = vmax.f32 %v2195_v51, 0.0  ;;  %v2196_v0 = vadd.f32 %v7699_v18, %v2157_v58  ;;  %v8034_v26 = vsel %vm744_vm4, %v2538_v50, %v2539_v44  ;;  %v8037_v54 = vsel %vm744_vm4, %v2539_v44, %v2541_v42 }
 0x259   : > { %2307 = vst.msk [vmem:[#allocation3 + $0xf1] sm:$0xff] %vm1849_vm5, %v2229_v19  ;;  %v2230_v41 = vmax.f32 %v2198_v30, 0.0  ;;  %v3581_v47 = vsel %vm1849_vm5, %v8034_v26, %v5264_v23  ;;  %v3582_v3 = vsel %vm1849_vm5, %v8037_v54, %v5265_v4  ;;  %v3623_v28 = vpack.c.bf16 %v3584_v10, %v3583_v6 }
 0x25a   : > { %2305 = vst.msk [vmem:[#allocation3 + $0xd9] sm:$0xff] %vm1849_vm5, %v2227_v22  ;;  %v2228_v48 = vmax.f32 %v2196_v0, 0.0  ;;  %5397 = vrot.lane.b32.xlu0 %v5391_v61, %s5912_s24  ;;  %v3620_v56 = vpack.c.bf16 %v3582_v3, %v3581_v47  ;;  %v5411_v23 = vpack.i.bf16 %v8028_v8, %v8011_v34  ;;  %v5431_v4 = vpack.i.bf16 %v8046_v31, %v8002_v1  ;;  %v5273_v61 = vpop.permute.xlu1 %5272 }
 0x25b   : > { %2308 = vst.msk [vmem:[#allocation3 + $0xf9] sm:$0xff] %vm1849_vm5, %v2230_v41  ;;  %5427 = vrot.lane.b32.xlu1 %v7985_v21, %s5911_s16  ;;  %v5275_v38 = vunpack.i.h.bf16 %v5273_v61  ;;  %v5274_v13 = vunpack.i.l.bf16 %v5273_v61  ;;  %v5441_v57 = vpack.i.bf16 %v7939_v17, %v7936_v63 }
 0x25c   : > { %2306 = vst.msk [vmem:[#allocation3 + $0xe1] sm:$0xff] %vm1849_vm5, %v2228_v48  ;;  %4542 = vmatmul.mubr.msk.bf16.gmra.mrb[40].mxu0 %vm1919_vm15, %v3620_v56 }
 0x25d   : > { %4545 = vmatprep.mubr.msk.bf16.mxu0 %vm1919_vm15, %v3623_v28 }
 0x25e   : > { %5412 = vrot.lane.b32.xlu0 %v5411_v23, %s5910_s15 }
 0x25f   : > { %5432 = vrot.lane.b32.xlu1 %v5431_v4, %s5910_s15 }
 0x260   : > { %v4517_v52 = vpop.f32.mrb[20].mxu0  ;;  %v8060_v2 = vld [vmem:[#allocation3 + $0xf0] sm:$0xff] }
 0x261   : > { %v2095_v32 = vadd.f32 %v4517_v52, %v7682_v12  ;;  %v2086_v11 = vpop.f32.mrb[21].mxu0  ;;  %v8065_v7 = vld [vmem:[#allocation3 + $0xd8] sm:$0xff]  ;;  %v2553_v58 = vrot.slane %v8060_v2, 2 }
 0x262   : > { %v2087_v43 = vadd.f32 %v7682_v12, %v2086_v11  ;;  %5417 = vrot.lane.b32.xlu0 %v5411_v23, %s5912_s24  ;;  %v4518_v5 = vpop.f32.mrb[22].mxu0  ;;  %v8069_v35 = vld [vmem:[#allocation3 + $0xf8] sm:$0xff]  ;;  %v8071_v51 = vld [vmem:[#allocation3 + $0x100] sm:$0x3]  ;;  %v2548_v50 = vrot.slane %v8065_v7, 2 }
 0x263   : > { %5437 = vrot.lane.b32.xlu1 %v5431_v4, %s5912_s24  ;;  %v2162_v19 = vmul.f32 %v7693_v40, %v2095_v32  ;;  %v2098_v63 = vadd.f32 %v4518_v5, %v7682_v12  ;;  %v2554_v17 = vrot.slane %v8069_v35, 2  ;;  %v2556_v30 = vrot.slane %v8071_v51, 2  ;;  %v2089_v44 = vpop.f32.mrb[23].mxu0  ;;  %v8080_v42 = vld [vmem:[#allocation3 + $0xe0] sm:$0xff]  ;;  %v8082_v22 = vld [vmem:[#allocation3 + $0xe8] sm:$0x3] }
 0x264   : > { %v2160_v6 = vmul.f32 %v7693_v40, %v2087_v43  ;;  %v2090_v0 = vadd.f32 %v7682_v12, %v2089_v44  ;;  %v2549_v41 = vrot.slane %v8080_v42, 2  ;;  %v2551_v10 = vrot.slane %v8082_v22, 2 }
 0x265   : > { %v2201_v48 = vadd.f32 %v7699_v18, %v2162_v19  ;;  %v2163_v47 = vmul.f32 %v7693_v40, %v2098_v63  ;;  %v8091_v3 = vsel %vm744_vm4, %v2553_v58, %v2554_v17  ;;  %v8094_v56 = vsel %vm744_vm4, %v2554_v17, %v2556_v30 }
 0x266   : > { %v2199_v28 = vadd.f32 %v7699_v18, %v2160_v6  ;;  %v3587_v23 = vsel %vm1849_vm5, %v8091_v3, %v5279_v49  ;;  %v3588_v9 = vsel %vm1849_vm5, %v8094_v56, %v5280_v14  ;;  %v2161_v4 = vmul.f32 %v7693_v40, %v2090_v0  ;;  %5422 = vrot.lane.b32.xlu0 %v7985_v21, %s5910_s15 }
 0x267   : > { %v2233_v61 = vmax.f32 %v2201_v48, 0.0  ;;  %v2202_v52 = vadd.f32 %v7699_v18, %v2163_v47  ;;  %5442 = vrot.lane.b32.xlu1 %v5441_v57, %s5910_s15  ;;  %v8107_v32 = vsel %vm744_vm4, %v2548_v50, %v2549_v41  ;;  %v8110_v11 = vsel %vm744_vm4, %v2549_v41, %v2551_v10 }
 0x268   : > { %v2231_v49 = vmax.f32 %v2199_v28, 0.0  ;;  %v2200_v43 = vadd.f32 %v7699_v18, %v2161_v4  ;;  %v3585_v14 = vsel %vm1849_vm5, %v8107_v32, %v5274_v13  ;;  %v3586_v21 = vsel %vm1849_vm5, %v8110_v11, %v5275_v38 }
 0x269   : > { %2311 = vst.msk [vmem:[#allocation3 + $0x121] sm:$0xff] %vm1849_vm5, %v2233_v61  ;;  %v2234_v5 = vmax.f32 %v2202_v52, 0.0  ;;  %v5461_v58 = vpack.i.bf16 %v7997_v62, %v7993_v37  ;;  %v3626_v50 = vpack.c.bf16 %v3586_v21, %v3585_v14  ;;  %v3629_v63 = vpack.c.bf16 %v3588_v9, %v3587_v23 }
 0x26a   : > { %2309 = vst.msk [vmem:[#allocation3 + $0x109] sm:$0xff] %vm1849_vm5, %v2231_v49  ;;  %v2232_v19 = vmax.f32 %v2200_v43, 0.0  ;;  %5447 = vrot.lane.b32.xlu0 %v5441_v57, %s5911_s16  ;;  %v5451_v38 = vpack.i.bf16 %v7980_v46, %v7968_v29  ;;  %v2464_v13 = vrot.slane %v7980_v46, 1  ;;  %v2466_v17 = vrot.slane %v7982_v59, 1 }
 0x26b   : > { %2312 = vst.msk [vmem:[#allocation3 + $0x129] sm:$0xff] %vm1849_vm5, %v2234_v5  ;;  %5462 = vrot.lane.b32.xlu1 %v5461_v58, %s5911_s16  ;;  %4546 = vmatmul.mubr.msk.bf16.gmra.mrb[44].mxu0 %vm1919_vm15, %v3626_v50  ;;  %v2459_v57 = vrot.slane %v7997_v62, 1  ;;  %v2461_v30 = vrot.slane %v7999_v45, 1  ;;  %v2463_v44 = vrot.slane %v7968_v29, 1  ;;  %v2458_v0 = vrot.slane %v7993_v37, 1 }
 0x26c   : > { %2310 = vst.msk [vmem:[#allocation3 + $0x111] sm:$0xff] %vm1849_vm5, %v2232_v19  ;;  %4549 = vmatprep.mubr.msk.bf16.mxu0 %vm1919_vm15, %v3629_v63  ;;  %v5486_v41 = vpack.i.bf16 %v8015_v27, %v8008_v16  ;;  %v8144_v62 = vsel %vm663_vm3, %v2464_v13, %v2466_v17  ;;  %v5501_v63 = vpack.i.bf16 %v8037_v54, %v8034_v26 }
 0x26d   : > { %v8141_v59 = vsel %vm663_vm3, %v2463_v44, %v2464_v13  ;;  %v8149_v48 = vsel %vm663_vm3, %v2458_v0, %v2459_v57  ;;  %v8152_v37 = vsel %vm663_vm3, %v2459_v57, %v2461_v30  ;;  %v5521_v13 = vpack.i.bf16 %v8080_v42, %v8065_v7 }
 0x26e   : > { %5452 = vrot.lane.b32.xlu0 %v5451_v38, %s5911_s16  ;;  %v5471_v9 = vpack.i.bf16 %v8144_v62, %v8141_v59  ;;  %v5491_v52 = vpack.i.bf16 %v8152_v37, %v8149_v48 }
 0x26f   : > { %5467 = vrot.lane.b32.xlu1 %v5461_v58, %s5912_s24 }
 0x270   : > { %v4521_v6 = vpop.f32.mrb[24].mxu0 }
 0x271   : > { %v2111_v46 = vadd.f32 %v4521_v6, %v7682_v12  ;;  %v2102_v10 = vpop.f32.mrb[25].mxu0 }
 0x272   : > { %v2103_v45 = vadd.f32 %v7682_v12, %v2102_v10  ;;  %5457 = vrot.lane.b32.xlu0 %v5451_v38, %s5912_s24  ;;  %v4522_v29 = vpop.f32.mrb[26].mxu0 }
 0x273   : > { %5487 = vrot.lane.b32.xlu1 %v5486_v41, %s5911_s16  ;;  %v2166_v16 = vmul.f32 %v7693_v40, %v2111_v46  ;;  %v2114_v27 = vadd.f32 %v4522_v29, %v7682_v12  ;;  %v2105_v47 = vpop.f32.mrb[27].mxu0  ;;  %v5511_v46 = vpack.i.bf16 %v8069_v35, %v8060_v2  ;;  %v2474_v29 = vrot.slane %v8069_v35, 1 }
 0x274   : > { %v2164_v28 = vmul.f32 %v7693_v40, %v2103_v45  ;;  %v2106_v23 = vadd.f32 %v7682_v12, %v2105_v47 }
 0x275   : > { %v2205_v4 = vadd.f32 %v7699_v18, %v2166_v16  ;;  %v2167_v61 = vmul.f32 %v7693_v40, %v2114_v27  ;;  %v2476_v16 = vrot.slane %v8071_v51, 1 }
 0x276   : > { %v2203_v49 = vadd.f32 %v7699_v18, %v2164_v28  ;;  %v2165_v43 = vmul.f32 %v7693_v40, %v2106_v23  ;;  %5472 = vrot.lane.b32.xlu0 %v5471_v9, %s5910_s15  ;;  %v2469_v28 = vrot.slane %v8080_v42, 1  ;;  %v5546_v42 = vpack.i.bf16 %v8094_v56, %v8091_v3 }
 0x277   : > { %v2237_v14 = vmax.f32 %v2205_v4, 0.0  ;;  %v2206_v21 = vadd.f32 %v7699_v18, %v2167_v61  ;;  %5492 = vrot.lane.b32.xlu1 %v5491_v52, %s5910_s15  ;;  %v2473_v4 = vrot.slane %v8060_v2, 1  ;;  %v2468_v61 = vrot.slane %v8065_v7, 1 }
 0x278   : > { %v2235_v5 = vmax.f32 %v2203_v49, 0.0  ;;  %v2204_v58 = vadd.f32 %v7699_v18, %v2165_v43  ;;  %v5561_v49 = vpack.i.bf16 %v8110_v11, %v8107_v32  ;;  %v2358_v43 = vld [vmem:[#allocation3 + $0x128] sm:$0xff]  ;;  %v5230_v32 = vunpack.i.h.bf16 %v7724_v33 }
 0x279   : > { %2315 = vst.msk [vmem:[#allocation3 + $0x151] sm:$0xff] %vm1849_vm5, %v2237_v14  ;;  %v2238_v50 = vmax.f32 %v2206_v21, 0.0  ;;  %v2359_v14 = vld [vmem:[#allocation3 + $0x130] sm:$0x3]  ;;  %v2357_v21 = vld [vmem:[#allocation3 + $0x120] sm:$0xff]  ;;  %v8248_v11 = vld [vmem:[#allocation3 + $0x108] sm:$0xff] }
 0x27a   : > { %2313 = vst.msk [vmem:[#allocation3 + $0x139] sm:$0xff] %vm1849_vm5, %v2235_v5  ;;  %v2236_v19 = vmax.f32 %v2204_v58, 0.0  ;;  %5477 = vrot.lane.b32.xlu0 %v5471_v9, %s5912_s24  ;;  %v5576_v58 = vpack.i.bf16 %v2358_v43, %v2357_v21 }
 0x27b   : > { %2316 = vst.msk [vmem:[#allocation3 + $0x159] sm:$0xff] %vm1849_vm5, %v2238_v50  ;;  %5497 = vrot.lane.b32.xlu1 %v5491_v52, %s5912_s24  ;;  %v8214_v52 = vsel %vm663_vm3, %v2474_v29, %v2476_v16 }
 0x27c   : > { %2314 = vst.msk [vmem:[#allocation3 + $0x141] sm:$0xff] %vm1849_vm5, %v2236_v19  ;;  %v8243_v19 = vld [vmem:[#allocation3 + $0x110] sm:$0xff] }
 0x27e   : > { %5482 = vrot.lane.b32.xlu0 %v5486_v41, %s5910_s15 }
 0x27f   : > { %5502 = vrot.lane.b32.xlu1 %v5501_v63, %s5910_s15 }
 0x281   : > { %v4525_v38 = vpop.f32.mrb[28].mxu0 }
 0x282   : > { %v2127_v17 = vadd.f32 %v4525_v38, %v7682_v12  ;;  %v2118_v57 = vpop.f32.mrb[29].mxu0  ;;  %5507 = vrot.lane.b32.xlu0 %v5501_v63, %s5911_s16  ;;  %v2484_v63 = vrot.slane %v2358_v43, 1  ;;  %v2486_v38 = vrot.slane %v2359_v14, 1 }
 0x283   : > { %v2119_v30 = vadd.f32 %v7682_v12, %v2118_v57  ;;  %v4526_v44 = vpop.f32.mrb[30].mxu0  ;;  %5522 = vrot.lane.b32.xlu1 %v5521_v13, %s5911_s16  ;;  %v5581_v57 = vpack.i.bf16 %v8243_v19, %v8248_v11 }
 0x284   : > { %v2170_v26 = vmul.f32 %v7693_v40, %v2127_v17  ;;  %v2130_v54 = vadd.f32 %v4526_v44, %v7682_v12  ;;  %v2121_v6 = vpop.f32.mrb[31].mxu0  ;;  %v5229_v17 = vunpack.i.l.bf16 %v7724_v33 }
 0x285   : > { %v2168_v0 = vmul.f32 %v7693_v40, %v2119_v30  ;;  %v2122_v41 = vadd.f32 %v7682_v12, %v2121_v6  ;;  %v2471_v12 = vrot.slane %v8082_v22, 1  ;;  %v8211_v22 = vsel %vm663_vm3, %v2473_v4, %v2474_v29  ;;  %v5847_v29 = vld [vmem:[#allocation3] sm:$0xff] }
 0x286   : > { %v2209_v10 = vadd.f32 %v7699_v18, %v2170_v26  ;;  %v2171_v45 = vmul.f32 %v7693_v40, %v2130_v54  ;;  %5512 = vrot.lane.b32.xlu0 %v5511_v46, %s5911_s16  ;;  %v5531_v3 = vpack.i.bf16 %v8214_v52, %v8211_v22  ;;  %v8261_v54 = vsel %vm663_vm3, %v2484_v63, %v2486_v38 }
 0x287   : > { %v2207_v27 = vadd.f32 %v7699_v18, %v2168_v0  ;;  %v2169_v47 = vmul.f32 %v7693_v40, %v2122_v41  ;;  %5527 = vrot.lane.b32.xlu1 %v5521_v13, %s5912_s24  ;;  %v8222_v7 = vsel %vm663_vm3, %v2469_v28, %v2471_v12  ;;  %v2483_v13 = vrot.slane %v2357_v21, 1  ;;  %v5846_v41 = vld [vmem:[#allocation3 + $0x8] sm:$0xff] }
 0x288   : > { %v2241_v23 = vmax.f32 %v2209_v10, 0.0  ;;  %v2210_v9 = vadd.f32 %v7699_v18, %v2171_v45  ;;  %v2564_v6 = vrot.slane %v2358_v43, 2  ;;  %v2566_v0 = vrot.slane %v2359_v14, 2  ;;  %v8267_v45 = vld [vmem:[#allocation3 + $0x118] sm:$0x3]  ;;  %v8298_v14 = vld [vmem:[#allocation3 + $0x150] sm:$0xff] }
 0x289   : > { %v2239_v35 = vmax.f32 %v2207_v27, 0.0  ;;  %v2208_v51 = vadd.f32 %v7699_v18, %v2169_v47  ;;  %v8219_v18 = vsel %vm663_vm3, %v2468_v61, %v2469_v28  ;;  %v8258_v26 = vsel %vm663_vm3, %v2483_v13, %v2484_v63 }
 0x28a   : > { %2319 = vst.msk [vmem:[#allocation3 + $0x181] sm:$0xff] %vm1849_vm5, %v2241_v23  ;;  %v2242_v40 = vmax.f32 %v2210_v9, 0.0  ;;  %5517 = vrot.lane.b32.xlu0 %v5511_v46, %s5912_s24  ;;  %v5551_v56 = vpack.i.bf16 %v8222_v7, %v8219_v18  ;;  %v3378_v33 = vsel %vm1849_vm5, %v5846_v41, %v5230_v32  ;;  %v5234_v46 = vunpack.i.l.bf16 %v7748_v53 }
 0x28b   : > { %2317 = vst.msk [vmem:[#allocation3 + $0x169] sm:$0xff] %vm1849_vm5, %v2239_v35  ;;  %v2240_v2 = vmax.f32 %v2208_v51, 0.0  ;;  %5547 = vrot.lane.b32.xlu1 %v5546_v42, %s5911_s16  ;;  %v2563_v10 = vrot.slane %v2357_v21, 2  ;;  %v3377_v16 = vsel %vm1849_vm5, %v5847_v29, %v5229_v17  ;;  %v5235_v27 = vunpack.i.h.bf16 %v7748_v53  ;;  %v8287_v35 = vld [vmem:[#allocation3 + $0x158] sm:$0xff]  ;;  %v2361_v29 = vld [vmem:[#allocation3 + $0x140] sm:$0xff] }
 0x28c   : > { %2320 = vst.msk [vmem:[#allocation3 + $0x189] sm:$0xff] %vm1849_vm5, %v2242_v40  ;;  %v5591_v28 = vpack.i.bf16 %v8261_v54, %v8258_v26  ;;  %v8281_v9 = vsel %vm744_vm4, %v2564_v6, %v2566_v0  ;;  %v2479_v4 = vrot.slane %v8243_v19, 1  ;;  %v2481_v53 = vrot.slane %v8267_v45, 1 }
 0x28d   : > { %2318 = vst.msk [vmem:[#allocation3 + $0x171] sm:$0xff] %vm1849_vm5, %v2240_v2  ;;  %v8278_v23 = vsel %vm744_vm4, %v2563_v10, %v2564_v6  ;;  %9315 = vst [vmem:[#allocation21_spill] sm:$0xff] %v8281_v9  ;;  %v2478_v51 = vrot.slane %v8248_v11, 1  ;;  %v3410_v61 = vsel %vm3409_vm0, %v3377_v16, %v5234_v46  ;;  %v3411_v2 = vsel %vm3409_vm0, %v3378_v33, %v5235_v27 }
 0x28e   : > { %5532 = vrot.lane.b32.xlu0 %v5531_v3, %s5910_s15  ;;  %9314 = vst [vmem:[#allocation20_spill] sm:$0xff] %v8278_v23  ;;  %v8306_v38 = vpack.i.bf16 %v8287_v35, %v8298_v14  ;;  %v8309_v32 = vsel %vm663_vm3, %v2479_v4, %v2481_v53  ;;  %v2494_v17 = vrot.slane %v8287_v35, 1  ;;  %v2362_v53 = vld [vmem:[#allocation3 + $0x148] sm:$0x3] }
 0x28f   : > { %5552 = vrot.lane.b32.xlu1 %v5551_v56, %s5910_s15  ;;  %v8301_v21 = vsel %vm663_vm3, %v2478_v51, %v2479_v4 }
 0x290   : > { %9316 = vst [vmem:[#allocation15_spill] sm:$0xff] %v8301_v21 }
 0x292   : > { %5537 = vrot.lane.b32.xlu0 %v5531_v3, %s5912_s24  ;;  %v8294_v3 = vld [vmem:[#allocation3 + $0x160] sm:$0x3] }
 0x293   : > { %5557 = vrot.lane.b32.xlu1 %v5551_v56, %s5912_s24 }
 0x296   : > { %5542 = vrot.lane.b32.xlu0 %v5546_v42, %s5910_s15  ;;  %v5596_v42 = vpack.i.bf16 %v8281_v9, %v8278_v23  ;;  %v5849_v23 = vld [vmem:[%s6081_s19 + $0x98] sm:$0xff] }
 0x297   : > { %5562 = vrot.lane.b32.xlu1 %v5561_v49, %s5910_s15 }
 0x298   : > { %v8239_v5 = vpop.permute.xlu0 %5282 }
 0x299   : > { %v8241_v50 = vpop.permute.xlu1 %5292  ;;  %v5285_v13 = vunpack.i.h.bf16 %v8239_v5 }
 0x29a   : > { %5567 = vrot.lane.b32.xlu0 %v5561_v49, %s5911_s16  ;;  %v5295_v56 = vunpack.i.h.bf16 %v8241_v50  ;;  %v5294_v49 = vunpack.i.l.bf16 %v8241_v50  ;;  %v5284_v50 = vunpack.i.l.bf16 %v8239_v5 }
 0x29b   : > { %5577 = vrot.lane.b32.xlu1 %v5576_v58, %s5912_s24 }
 0x29c   : > { %v8253_v30 = vpop.permute.xlu0 %5287  ;;  %v3443_v16 = vsel %vm3442_vm1, %v3410_v61, %v5294_v49  ;;  %v3444_v27 = vsel %vm3442_vm1, %v3411_v2, %v5295_v56  ;;  %v2493_v61 = vrot.slane %v8298_v14, 1  ;;  %v5611_v2 = vpack.i.bf16 %v8309_v32, %v8301_v21 }
 0x29d   : > { %v8255_v44 = vpop.permute.xlu1 %5312 }
 0x29e   : > { %5572 = vrot.lane.b32.xlu0 %v5576_v58, %s5911_s16 }
 0x29f   : > { %5582 = vrot.lane.b32.xlu1 %v5581_v57, %s5911_s16 }
 0x2a0   : > { %v8271_v47 = vpop.permute.xlu0 %5297 }
 0x2a1   : > { %v8275_v12 = vpop.permute.xlu1 %5317 }
 0x2a2   : > { %5592 = vrot.lane.b32.xlu0 %v5591_v28, %s5912_s24 }
 0x2a3   : > { %5587 = vrot.lane.b32.xlu1 %v5581_v57, %s5912_s24  ;;  %v2496_v57 = vrot.slane %v8294_v3, 1 }
 0x2a4   : > { %v5303_v40 = vpop.permute.xlu0 %5302 }
 0x2a5   : > { %v5323_v43 = vpop.permute.xlu1 %5322  ;;  %v5305_v6 = vunpack.i.h.bf16 %v5303_v40  ;;  %v5304_v0 = vunpack.i.l.bf16 %v5303_v40  ;;  %v2360_v40 = vld [vmem:[#allocation3 + $0x138] sm:$0xff] }
 0x2a6   : > { %v5325_v58 = vunpack.i.h.bf16 %v5323_v43  ;;  %v5324_v63 = vunpack.i.l.bf16 %v5323_v43  ;;  %5597 = vrot.lane.b32.xlu0 %v5596_v42, %s5910_s15  ;;  %v8338_v49 = vpack.i.bf16 %v2361_v29, %v2360_v40  ;;  %v3603_v43 = vpack.c.bf16 %v3444_v27, %v3443_v16 }
 0x2a7   : > { %5602 = vrot.lane.b32.xlu1 %v5591_v28, %s5910_s15  ;;  %v2568_v27 = vrot.slane %v2360_v40, 2 }
 0x2a8   : > { %v8316_v41 = vpop.permute.xlu0 %5307  ;;  %v3475_v33 = vsel %vm1849_vm5, %v7801_v15, %v5324_v63  ;;  %v3476_v46 = vsel %vm1849_vm5, %v7804_v36, %v5325_v58  ;;  %v2559_v15 = vrot.slane %v8243_v19, 2  ;;  %v2561_v36 = vrot.slane %v8267_v45, 2 }
 0x2a9   : > { %v3507_v10 = vsel %vm3409_vm0, %v3475_v33, %v5284_v50  ;;  %v3508_v5 = vsel %vm3409_vm0, %v3476_v46, %v5285_v13  ;;  %v2558_v58 = vrot.slane %v8248_v11, 2  ;;  %v8344_v45 = vsel %vm663_vm3, %v2493_v61, %v2494_v17 }
 0x2aa   : > { %5637 = vrot.lane.b32.xlu0 %v8306_v38, %s5911_s16  ;;  %v3539_v28 = vsel %vm3442_vm1, %v3507_v10, %v5304_v0  ;;  %v3540_v4 = vsel %vm3442_vm1, %v3508_v5, %v5305_v6  ;;  %9317 = vst [vmem:[#allocation16_spill] sm:$0xff] %v8344_v45  ;;  %v2489_v63 = vrot.slane %v2361_v29, 1  ;;  %v2491_v13 = vrot.slane %v2362_v53, 1 }
 0x2ab   : > { %5607 = vrot.lane.b32.xlu1 %v5596_v42, %s5911_s16  ;;  %v3604_v51 = vpack.c.bf16 %v3540_v4, %v3539_v28  ;;  %v8347_v42 = vsel %vm663_vm3, %v2494_v17, %v2496_v57  ;;  %v8352_v50 = vsel %vm744_vm4, %v2558_v58, %v2559_v15  ;;  %v8355_v11 = vsel %vm744_vm4, %v2559_v15, %v2561_v36  ;;  %v8385_v36 = vld [vmem:[#allocation3 + $0x170] sm:$0xff]  ;;  %v8407_v58 = vld [vmem:[#allocation3 + $0x178] sm:$0x3] }
 0x2ac   : > { %v8336_v56 = vpop.permute.xlu0 %5327  ;;  %9318 = vst [vmem:[#allocation23_spill] sm:$0xff] %v8347_v42  ;;  %9319 = vst [vmem:[#allocation26_spill] sm:$0xff] %v8352_v50  ;;  %v2488_v6 = vrot.slane %v2360_v40, 1  ;;  %v2569_v0 = vrot.slane %v2361_v29, 2  ;;  %v2571_v33 = vrot.slane %v2362_v53, 2  ;;  %v8362_v17 = vpack.i.bf16 %v8347_v42, %v8344_v45  ;;  %v8394_v40 = vld [vmem:[#allocation3 + $0x168] sm:$0xff] }
 0x2ad   : > { %v8341_v19 = vpop.permute.xlu1 %5342  ;;  %3889 = vmatprep.mubr.bf16.mxu1 %v3604_v51  ;;  %9320 = vst [vmem:[#allocation27_spill] sm:$0xff] %v8355_v11  ;;  %v5616_v10 = vpack.i.bf16 %v8355_v11, %v8352_v50  ;;  %v8372_v16 = vsel %vm663_vm3, %v2489_v63, %v2491_v13  ;;  %v2574_v29 = vrot.slane %v8287_v35, 2  ;;  %v2576_v15 = vrot.slane %v8294_v3, 2  ;;  %v8441_v45 = vld [vmem:[%s6081_s19 + $0xa8] sm:$0xff] }
 0x2ae   : > { %5642 = vrot.lane.b32.xlu0 %v8338_v49, %s5911_s16  ;;  %3890 = vmatmul.mubr.bf16.vlgmr.msra.gmra.mrb[0].mxu1 %v3603_v43  ;;  %v8369_v5 = vsel %vm663_vm3, %v2488_v6, %v2489_v63  ;;  %9322 = vst [vmem:[#allocation17_spill] sm:$0xff] %v8372_v16  ;;  %v8379_v28 = vsel %vm744_vm4, %v2568_v27, %v2569_v0  ;;  %v2573_v35 = vrot.slane %v8298_v14, 2  ;;  %v2499_v14 = vrot.slane %v8385_v36, 1  ;;  %v5853_v50 = vld [vmem:[#allocation3 + $0x18] sm:$0xff] }
 0x2af   : > { %5612 = vrot.lane.b32.xlu1 %v5611_v2, %s5912_s24  ;;  %9321 = vst [vmem:[#allocation9_spill] sm:$0xff] %v8369_v5  ;;  %9323 = vst [vmem:[#allocation5_spill] sm:$0xff] %v8379_v28  ;;  %v8382_v4 = vsel %vm744_vm4, %v2569_v0, %v2571_v33  ;;  %v8391_v51 = vpack.i.bf16 %v8372_v16, %v8369_v5  ;;  %v5320_v63 = vunpack.i.h.bf16 %v8275_v12  ;;  %v5319_v13 = vunpack.i.l.bf16 %v8275_v12 }
 0x2b0   : > { %v8358_v46 = vpop.permute.xlu0 %5332  ;;  %9324 = vst [vmem:[#allocation18_spill] sm:$0xff] %v8382_v4  ;;  %v8402_v3 = vpack.i.bf16 %v8382_v4, %v8379_v28  ;;  %v8405_v43 = vsel %vm744_vm4, %v2573_v35, %v2574_v29  ;;  %v8414_v6 = vsel %vm744_vm4, %v2574_v29, %v2576_v15  ;;  %v2498_v0 = vrot.slane %v8394_v40, 1 }
 0x2b1   : > { %v8364_v57 = vpop.permute.xlu1 %5347  ;;  %9325 = vst [vmem:[#allocation7_spill] sm:$0xff] %v8405_v43  ;;  %9326 = vst [vmem:[#allocation28_spill] sm:$0xff] %v8414_v6  ;;  %v5310_v33 = vunpack.i.h.bf16 %v8316_v41  ;;  %v5309_v27 = vunpack.i.l.bf16 %v8316_v41  ;;  %v5330_v35 = vunpack.i.h.bf16 %v8336_v56  ;;  %v5329_v28 = vunpack.i.l.bf16 %v8336_v56  ;;  %v8438_v56 = vld [vmem:[%s6081_s19 + $0xa0] sm:$0xff] }
 0x2b2   : > { %5652 = vrot.lane.b32.xlu0 %v8362_v17, %s5912_s24  ;;  %v2501_v29 = vrot.slane %v8407_v58, 1  ;;  %v8432_v15 = vpack.i.bf16 %v8414_v6, %v8405_v43  ;;  %v8435_v41 = vsel %vm663_vm3, %v2498_v0, %v2499_v14  ;;  %v3379_v11 = vsel %vm1849_vm5, %v5853_v50, %v5319_v13 }
 0x2b3   : > { %5617 = vrot.lane.b32.xlu1 %v5616_v10, %s5910_s15  ;;  %9327 = vst [vmem:[#allocation29_spill] sm:$0xff] %v8435_v41  ;;  %v5345_v5 = vunpack.i.h.bf16 %v8341_v19  ;;  %v5344_v43 = vunpack.i.l.bf16 %v8341_v19  ;;  %v3478_v0 = vsel %vm1849_vm5, %v7798_v24, %v5310_v33  ;;  %v3477_v6 = vsel %vm1849_vm5, %v7792_v55, %v5309_v27 }
 0x2b4   : > { %v8387_v53 = vpop.permute.xlu0 %5337  ;;  %v3412_v42 = vsel %vm3409_vm0, %v3379_v11, %v5329_v28  ;;  %v5289_v50 = vunpack.i.l.bf16 %v8253_v30  ;;  %v5300_v13 = vunpack.i.h.bf16 %v8271_v47  ;;  %v5299_v24 = vunpack.i.l.bf16 %v8271_v47 }
 0x2b5   : > { %v8396_v61 = vpop.permute.xlu1 %5367  ;;  %v3510_v55 = vsel %vm3409_vm0, %v3478_v0, %v5345_v5  ;;  %v3509_v11 = vsel %vm3409_vm0, %v3477_v6, %v5344_v43  ;;  %v5854_v43 = vld [vmem:[#allocation3 + $0x38] sm:$0xff] }
 0x2b6   : > { %5657 = vrot.lane.b32.xlu0 %v8391_v51, %s5912_s24 }
 0x2b7   : > { %5622 = vrot.lane.b32.xlu1 %v5611_v2, %s5910_s15  ;;  %v5848_v2 = vld [vmem:[%s6081_s19 + $0x90] sm:$0xff] }
 0x2b8   : > { %v8421_v4 = vpop.permute.xlu0 %5352  ;;  %v5631_v9 = vpack.i.bf16 %v5849_v23, %v5848_v2  ;;  %v5852_v23 = vld [vmem:[#allocation3 + $0x20] sm:$0xff] }
 0x2b9   : > { %v8423_v12 = vpop.permute.xlu1 %5372  ;;  %v3380_v2 = vsel %vm1849_vm5, %v5852_v23, %v5320_v63  ;;  %v5290_v23 = vunpack.i.h.bf16 %v8253_v30  ;;  %v3445_v30 = vsel %vm3442_vm1, %v3412_v42, %v5289_v50  ;;  %v5314_v42 = vunpack.i.l.bf16 %v8255_v44 }
 0x2ba   : > { %5662 = vrot.lane.b32.xlu0 %v8402_v3, %s5910_s15  ;;  %v3413_v16 = vsel %vm3409_vm0, %v3380_v2, %v5330_v35  ;;  %v8476_v35 = vpack.i.bf16 %v8385_v36, %v8394_v40 }
 0x2bb   : > { %5627 = vrot.lane.b32.xlu1 %v5616_v10, %s5911_s16  ;;  %v8460_v10 = vsel %vm663_vm3, %v2499_v14, %v2501_v29  ;;  %v3446_v28 = vsel %vm3442_vm1, %v3413_v16, %v5290_v23  ;;  %v3382_v16 = vsel %vm1849_vm5, %v5854_v43, %v5300_v13  ;;  %v5855_v29 = vld [vmem:[#allocation3 + $0x30] sm:$0xff] }
 0x2bc   : > { %v5358_v63 = vpop.permute.xlu0 %5357  ;;  %v8480_v5 = vpack.i.bf16 %v8460_v10, %v8435_v41  ;;  %v3381_v2 = vsel %vm1849_vm5, %v5855_v29, %v5299_v24  ;;  %v3606_v50 = vpack.c.bf16 %v3446_v28, %v3445_v30 }
 0x2bd   : > { %v5378_v19 = vpop.permute.xlu1 %5377  ;;  %v5360_v13 = vunpack.i.h.bf16 %v5358_v63  ;;  %v5359_v24 = vunpack.i.l.bf16 %v5358_v63 }
 0x2be   : > { %v5380_v33 = vunpack.i.h.bf16 %v5378_v19  ;;  %v5379_v21 = vunpack.i.l.bf16 %v5378_v19  ;;  %5667 = vrot.lane.b32.xlu0 %v8432_v15, %s5910_s15  ;;  %v5350_v19 = vunpack.i.h.bf16 %v8364_v57 }
 0x2bf   : > { %5632 = vrot.lane.b32.xlu1 %v5631_v9, %s5910_s15  ;;  %v5315_v9 = vunpack.i.h.bf16 %v8255_v44  ;;  %v5335_v44 = vunpack.i.h.bf16 %v8358_v46 }
 0x2c0   : > { %v3541_v14 = vsel %vm3442_vm1, %v3509_v11, %v5379_v21  ;;  %v3542_v27 = vsel %vm3442_vm1, %v3510_v55, %v5380_v33  ;;  %v8472_v47 = vpop.permute.xlu0 %5362  ;;  %v5349_v33 = vunpack.i.l.bf16 %v8364_v57  ;;  %v5334_v55 = vunpack.i.l.bf16 %v8358_v46 }
 0x2c1   : > { %v5383_v21 = vpop.permute.xlu1 %5382  ;;  %v3607_v6 = vpack.c.bf16 %v3542_v27, %v3541_v14  ;;  %v2581_v27 = vrot.slane %v8407_v58, 2  ;;  %v3415_v43 = vsel %vm3409_vm0, %v3382_v16, %v5315_v9  ;;  %v2578_v58 = vrot.slane %v8394_v40, 2 }
 0x2c2   : > { %v5385_v0 = vunpack.i.h.bf16 %v5383_v21  ;;  %v5384_v23 = vunpack.i.l.bf16 %v5383_v21  ;;  %5682 = vrot.lane.b32.xlu0 %v8476_v35, %s5911_s16  ;;  %v9330_v40 = vpack.i.bf16 %v8441_v45, %v8438_v56  ;;  %v5856_v45 = vld [vmem:[%s6081_s19 + $0xb0] sm:$0xff]  ;;  %v5857_v56 = vld [vmem:[%s6081_s19 + $0xb8] sm:$0xff] }
 0x2c3   : > { %5647 = vrot.lane.b32.xlu1 %v8338_v49, %s5912_s24  ;;  %3897 = vmatprep.mubr.bf16.mxu1 %v3607_v6  ;;  %v2579_v49 = vrot.slane %v8385_v36, 2  ;;  %v3448_v36 = vsel %vm3442_vm1, %v3415_v43, %v5350_v19 }
 0x2c4   : > { %v3480_v11 = vsel %vm1849_vm5, %v7885_v20, %v5385_v0  ;;  %v3479_v30 = vsel %vm1849_vm5, %v7882_v25, %v5384_v23  ;;  %3898 = vmatmul.mubr.bf16.gmra.mrb[4].mxu1 %v3606_v50  ;;  %v8498_v28 = vpop.permute.xlu0 %5387  ;;  %v3414_v25 = vsel %vm3409_vm0, %v3381_v2, %v5314_v42  ;;  %v8519_v0 = vld [vmem:[#allocation3 + $0x188] sm:$0xff]  ;;  %v8521_v23 = vld [vmem:[#allocation3 + $0x190] sm:$0x3]  ;;  %v2369_v2 = vld [vmem:[#allocation3 + $0x180] sm:$0xff] }
 0x2c5   : > { %v8500_v57 = vpop.permute.xlu1 %5402  ;;  %v3511_v14 = vsel %vm3409_vm0, %v3479_v30, %v5334_v55  ;;  %v3512_v46 = vsel %vm3409_vm0, %v3480_v11, %v5335_v44  ;;  %v3447_v6 = vsel %vm3442_vm1, %v3414_v25, %v5349_v33  ;;  %v8529_v9 = vsel %vm744_vm4, %v2579_v49, %v2581_v27  ;;  %v8555_v11 = vld [vmem:[%s6081_s19 + $0xc0] sm:$0xff]  ;;  %v8558_v30 = vld [vmem:[%s6081_s19 + $0xc8] sm:$0xff] }
 0x2c6   : > { %v3543_v63 = vsel %vm3442_vm1, %v3511_v14, %v5359_v24  ;;  %v3544_v20 = vsel %vm3442_vm1, %v3512_v46, %v5360_v13  ;;  %5687 = vrot.lane.b32.xlu0 %v8480_v5, %s5912_s24  ;;  %9329 = vst [vmem:[#allocation19_spill] sm:$0xff] %v8529_v9  ;;  %v3609_v16 = vpack.c.bf16 %v3448_v36, %v3447_v6  ;;  %v2587_v50 = vrot.slane %v8519_v0, 1  ;;  %v8563_v27 = vld [vmem:[#allocation3 + $0x198] sm:$0xff] }
 0x2c7   : > { %5672 = vrot.lane.b32.xlu1 %v8391_v51, %s5910_s15  ;;  %v3610_v21 = vpack.c.bf16 %v3544_v20, %v3543_v63  ;;  %v8526_v51 = vsel %vm744_vm4, %v2578_v58, %v2579_v49  ;;  %v2589_v19 = vrot.slane %v8521_v23, 1  ;;  %v5701_v13 = vpack.i.bf16 %v5857_v56, %v5856_v45  ;;  %v8565_v63 = vld [vmem:[#allocation3 + $0x1a0] sm:$0xff]  ;;  %v5862_v56 = vld [vmem:[#allocation3 + $0x50] sm:$0xff] }
 0x2c8   : > { %v8517_v29 = vpop.permute.xlu0 %5392  ;;  %9328 = vst [vmem:[#allocation11_spill] sm:$0xff] %v8526_v51  ;;  %v8543_v44 = vpack.i.bf16 %v8529_v9, %v8526_v51  ;;  %v2586_v24 = vrot.slane %v2369_v2, 1  ;;  %v2623_v46 = vrot.slane %v2369_v2, 2  ;;  %v2624_v49 = vrot.slane %v8519_v0, 2  ;;  %v8610_v51 = vld [vmem:[#allocation3 + $0x1a8] sm:$0x3] }
 0x2c9   : > { %v8523_v42 = vpop.permute.xlu1 %5407  ;;  %3905 = vmatprep.mubr.bf16.mxu1 %v3610_v21  ;;  %v5375_v20 = vunpack.i.h.bf16 %v8423_v12  ;;  %v5374_v25 = vunpack.i.l.bf16 %v8423_v12  ;;  %v8575_v21 = vsel %vm663_vm3, %v2587_v50, %v2589_v19  ;;  %v5365_v6 = vunpack.i.h.bf16 %v8472_v47 }
 0x2ca   : > { %5697 = vrot.lane.b32.xlu0 %v9330_v40, %s5910_s15  ;;  %v8572_v43 = vsel %vm663_vm3, %v2586_v24, %v2587_v50  ;;  %9332 = vst [vmem:[#allocation30_spill] sm:$0xff] %v8575_v21  ;;  %v5364_v36 = vunpack.i.l.bf16 %v8472_v47  ;;  %v5390_v58 = vunpack.i.h.bf16 %v8498_v28  ;;  %v8587_v40 = vld [vmem:[%s6081_s19 + $0xd0] sm:$0xff]  ;;  %v2631_v45 = vrot.slane %v8563_v27, 1  ;;  %v5863_v50 = vld [vmem:[#allocation3 + $0x48] sm:$0xff] }
 0x2cb   : > { %5677 = vrot.lane.b32.xlu1 %v8402_v3, %s5911_s16  ;;  %v8552_v3 = vpack.i.bf16 %v8519_v0, %v2369_v2  ;;  %9331 = vst [vmem:[#allocation22_spill] sm:$0xff] %v8572_v43  ;;  %v5389_v0 = vunpack.i.l.bf16 %v8498_v28  ;;  %v8590_v2 = vld [vmem:[%s6081_s19 + $0xd8] sm:$0xff]  ;;  %v5726_v28 = vpack.i.bf16 %v8575_v21, %v8572_v43  ;;  %v3384_v24 = vsel %vm1849_vm5, %v5862_v56, %v5375_v20 }
 0x2cc   : > { %3906 = vmatmul.mubr.bf16.gmra.mrb[8].mxu1 %v3609_v16  ;;  %v8539_v33 = vpop.permute.xlu0 %5397  ;;  %v3383_v19 = vsel %vm1849_vm5, %v5863_v50, %v5374_v25  ;;  %v5405_v14 = vunpack.i.h.bf16 %v8500_v57  ;;  %v5404_v47 = vunpack.i.l.bf16 %v8500_v57  ;;  %v3481_v43 = vsel %vm1849_vm5, %v7888_v60, %v5364_v36 }
 0x2cd   : > { %v8545_v55 = vpop.permute.xlu1 %5427  ;;  %v3416_v9 = vsel %vm3409_vm0, %v3383_v19, %v5389_v0  ;;  %v3417_v20 = vsel %vm3409_vm0, %v3384_v24, %v5390_v58  ;;  %v5340_v25 = vunpack.i.h.bf16 %v8387_v53  ;;  %v5339_v50 = vunpack.i.l.bf16 %v8387_v53  ;;  %v5865_v24 = vld [vmem:[#allocation3 + $0x60] sm:$0xff] }
 0x2ce   : > { %5707 = vrot.lane.b32.xlu0 %v8543_v44, %s5910_s15  ;;  %v5355_v57 = vunpack.i.h.bf16 %v8421_v4  ;;  %v2634_v60 = vrot.slane %v8610_v51, 1  ;;  %v3513_v58 = vsel %vm3409_vm0, %v3481_v43, %v5404_v47  ;;  %v5369_v43 = vunpack.i.l.bf16 %v8396_v61  ;;  %v5864_v47 = vld [vmem:[#allocation3 + $0x68] sm:$0xff] }
 0x2cf   : > { %5692 = vrot.lane.b32.xlu1 %v8306_v38, %s5912_s24  ;;  %v2626_v38 = vrot.slane %v8521_v23, 2  ;;  %v8602_v23 = vsel %vm744_vm4, %v2623_v46, %v2624_v49  ;;  %v3482_v46 = vsel %vm1849_vm5, %v7891_v39, %v5365_v6  ;;  %v5354_v39 = vunpack.i.l.bf16 %v8421_v4 }
 0x2d0   : > { %v8581_v16 = vpop.permute.xlu0 %5412  ;;  %v3514_v36 = vsel %vm3409_vm0, %v3482_v46, %v5405_v14  ;;  %v3449_v53 = vsel %vm3442_vm1, %v3416_v9, %v5339_v50  ;;  %v5370_v14 = vunpack.i.h.bf16 %v8396_v61  ;;  %v9333_v50 = vpack.i.bf16 %v8558_v30, %v8555_v11 }
 0x2d1   : > { %v8583_v12 = vpop.permute.xlu1 %5432  ;;  %v8622_v21 = vsel %vm744_vm4, %v2624_v49, %v2626_v38  ;;  %v3450_v49 = vsel %vm3442_vm1, %v3417_v20, %v5340_v25  ;;  %v3385_v46 = vsel %vm1849_vm5, %v5865_v24, %v5354_v39  ;;  %v5409_v61 = vunpack.i.l.bf16 %v8523_v42 }
 0x2d2   : > { %5717 = vrot.lane.b32.xlu0 %v8552_v3, %s5911_s16  ;;  %v5746_v19 = vpack.i.bf16 %v8622_v21, %v8602_v23  ;;  %v3612_v25 = vpack.c.bf16 %v3450_v49, %v3449_v53  ;;  %v9334_v49 = vrot.slane %v8565_v63, 1 }
 0x2d3   : > { %5702 = vrot.lane.b32.xlu1 %v5701_v13, %s5910_s15 }
 0x2d4   : > { %v5418_v56 = vpop.permute.xlu0 %5417 }
 0x2d5   : > { %v5438_v13 = vpop.permute.xlu1 %5437  ;;  %v5420_v39 = vunpack.i.h.bf16 %v5418_v56 }
 0x2d6   : > { %v5440_v6 = vunpack.i.h.bf16 %v5438_v13  ;;  %v5439_v41 = vunpack.i.l.bf16 %v5438_v13  ;;  %5727 = vrot.lane.b32.xlu0 %v5726_v28, %s5912_s24  ;;  %v5410_v13 = vunpack.i.h.bf16 %v8523_v42 }
 0x2d7   : > { %5712 = vrot.lane.b32.xlu1 %v8362_v17, %s5910_s15  ;;  %v3386_v17 = vsel %vm1849_vm5, %v5864_v47, %v5355_v57  ;;  %v5394_v57 = vunpack.i.l.bf16 %v8517_v29 }
 0x2d8   : > { %v3545_v0 = vsel %vm3442_vm1, %v3513_v58, %v5439_v41  ;;  %v3546_v4 = vsel %vm3442_vm1, %v3514_v36, %v5440_v6  ;;  %v8635_v38 = vpop.permute.xlu0 %5422  ;;  %v5395_v6 = vunpack.i.h.bf16 %v8517_v29  ;;  %v5419_v36 = vunpack.i.l.bf16 %v5418_v56 }
 0x2d9   : > { %v5443_v28 = vpop.permute.xlu1 %5442  ;;  %v3613_v9 = vpack.c.bf16 %v3546_v4, %v3545_v0 }
 0x2da   : > { %v5445_v41 = vunpack.i.h.bf16 %v5443_v28  ;;  %v5444_v20 = vunpack.i.l.bf16 %v5443_v28  ;;  %5737 = vrot.lane.b32.xlu0 %v9333_v50, %s5910_s15  ;;  %v9335_v28 = vmov %v9334_v49  ;;  %v5435_v50 = vunpack.i.h.bf16 %v8583_v12 }
 0x2db   : > { %5722 = vrot.lane.b32.xlu1 %v8432_v15, %s5911_s16  ;;  %3913 = vmatprep.mubr.bf16.mxu1 %v3613_v9  ;;  %v2633_v15 = vsel %vm663_vm3, %v2631_v45, %v9334_v49  ;;  %v2635_v9 = vsel %vm663_vm3, %v9335_v28, %v2634_v60  ;;  %v5400_v49 = vunpack.i.h.bf16 %v8539_v33 }
 0x2dc   : > { %v3484_v58 = vsel %vm1849_vm5, %v8046_v31, %v5445_v41  ;;  %v3483_v11 = vsel %vm1849_vm5, %v8002_v1, %v5444_v20  ;;  %3914 = vmatmul.mubr.bf16.gmra.mrb[12].mxu1 %v3612_v25  ;;  %v5448_v30 = vpop.permute.xlu0 %5447  ;;  %v3418_v1 = vsel %vm3409_vm0, %v3385_v46, %v5369_v43  ;;  %v3419_v31 = vsel %vm3409_vm0, %v3386_v17, %v5370_v14  ;;  %v5866_v41 = vld [vmem:[%s6081_s19 + $0xe0] sm:$0xff]  ;;  %v5867_v20 = vld [vmem:[%s6081_s19 + $0xe8] sm:$0xff] }
 0x2dd   : > { %v8657_v53 = vpop.permute.xlu1 %5462  ;;  %v3515_v42 = vsel %vm3409_vm0, %v3483_v11, %v5394_v57  ;;  %v3516_v29 = vsel %vm3409_vm0, %v3484_v58, %v5395_v6  ;;  %v3451_v47 = vsel %vm3442_vm1, %v3418_v1, %v5409_v61  ;;  %v3452_v45 = vsel %vm3442_vm1, %v3419_v31, %v5410_v13  ;;  %v5868_v57 = vld [vmem:[#allocation3 + $0x80] sm:$0xff]  ;;  %v5871_v31 = vld [vmem:[%s6081_s19 + $0xf8] sm:$0xff] }
 0x2de   : > { %v3547_v56 = vsel %vm3442_vm1, %v3515_v42, %v5419_v36  ;;  %v3548_v0 = vsel %vm3442_vm1, %v3516_v29, %v5420_v39  ;;  %5747 = vrot.lane.b32.xlu0 %v5746_v19, %s5910_s15  ;;  %v3615_v14 = vpack.c.bf16 %v3452_v45, %v3451_v47  ;;  %v5766_v43 = vpack.i.bf16 %v2635_v9, %v2633_v15  ;;  %v5869_v36 = vld [vmem:[#allocation3 + $0x78] sm:$0xff] }
 0x2df   : > { %5732 = vrot.lane.b32.xlu1 %v8476_v35, %s5912_s24  ;;  %v3616_v4 = vpack.c.bf16 %v3548_v0, %v3547_v56  ;;  %v9336_v35 = vpack.i.bf16 %v8565_v63, %v8563_v27  ;;  %v9337_v17 = vpack.i.bf16 %v8590_v2, %v8587_v40  ;;  %v5776_v25 = vpack.i.bf16 %v5867_v20, %v5866_v41 }
 0x2e0   : > { %v8676_v24 = vpop.permute.xlu0 %5452  ;;  %v5434_v27 = vunpack.i.l.bf16 %v8583_v12  ;;  %v5425_v63 = vunpack.i.h.bf16 %v8635_v38  ;;  %v5424_v40 = vunpack.i.l.bf16 %v8635_v38  ;;  %v5450_v2 = vunpack.i.h.bf16 %v5448_v30 }
 0x2e1   : > { %v8678_v19 = vpop.permute.xlu1 %5467  ;;  %3921 = vmatprep.mubr.bf16.mxu1 %v3616_v4  ;;  %v5449_v13 = vunpack.i.l.bf16 %v5448_v30  ;;  %v3388_v39 = vsel %vm1849_vm5, %v5868_v57, %v5435_v50  ;;  %v5464_v38 = vunpack.i.l.bf16 %v8657_v53  ;;  %v5399_v15 = vunpack.i.l.bf16 %v8539_v33 }
 0x2e2   : > { %5757 = vrot.lane.b32.xlu0 %v9336_v35, %s5911_s16  ;;  %v3387_v12 = vsel %vm1849_vm5, %v5869_v36, %v5434_v27  ;;  %v3486_v58 = vsel %vm1849_vm5, %v8028_v8, %v5425_v63  ;;  %v3485_v11 = vsel %vm1849_vm5, %v8011_v34, %v5424_v40  ;;  %v3421_v42 = vsel %vm3409_vm0, %v3388_v39, %v5450_v2  ;;  %v5870_v8 = vld [vmem:[%s6081_s19 + $0xf0] sm:$0xff] }
 0x2e3   : > { %5742 = vrot.lane.b32.xlu1 %v9337_v17, %s5910_s15  ;;  %v3420_v30 = vsel %vm3409_vm0, %v3387_v12, %v5449_v13  ;;  %v5781_v4 = vpack.i.bf16 %v5871_v31, %v5870_v8  ;;  %v3517_v47 = vsel %vm3409_vm0, %v3485_v11, %v5464_v38  ;;  %v3454_v33 = vsel %vm3442_vm1, %v3421_v42, %v5400_v49 }
 0x2e4   : > { %3922 = vmatmul.mubr.bf16.gmra.mrb[16].mxu1 %v3615_v14  ;;  %v8688_v46 = vpop.permute.xlu0 %5457  ;;  %v3453_v45 = vsel %vm3442_vm1, %v3420_v30, %v5399_v15  ;;  %v5430_v14 = vunpack.i.h.bf16 %v8545_v55  ;;  %v5429_v35 = vunpack.i.l.bf16 %v8545_v55  ;;  %v5470_v40 = vunpack.i.h.bf16 %v8678_v19 }
 0x2e5   : > { %v8690_v60 = vpop.permute.xlu1 %5487  ;;  %v3618_v63 = vpack.c.bf16 %v3454_v33, %v3453_v45  ;;  %v5469_v2 = vunpack.i.l.bf16 %v8678_v19  ;;  %v5455_v13 = vunpack.i.h.bf16 %v8676_v24  ;;  %v5454_v57 = vunpack.i.l.bf16 %v8676_v24  ;;  %v5874_v33 = vld [vmem:[#allocation3 + $0xb0] sm:$0xff] }
 0x2e6   : > { %5767 = vrot.lane.b32.xlu0 %v5766_v43, %s5912_s24  ;;  %v5872_v43 = vld [vmem:[#allocation3 + $0x98] sm:$0xff] }
 0x2e7   : > { %5752 = vrot.lane.b32.xlu1 %v8480_v5, %s5910_s15  ;;  %v5465_v5 = vunpack.i.h.bf16 %v8657_v53  ;;  %v5415_v53 = vunpack.i.h.bf16 %v8581_v16 }
 0x2e8   : > { %v8701_v61 = vpop.permute.xlu0 %5472 }
 0x2e9   : > { %v8703_v6 = vpop.permute.xlu1 %5492  ;;  %v3518_v34 = vsel %vm3409_vm0, %v3486_v58, %v5465_v5  ;;  %v3390_v17 = vsel %vm1849_vm5, %v5872_v43, %v5415_v53 }
 0x2ea   : > { %5777 = vrot.lane.b32.xlu0 %v5776_v25, %s5910_s15  ;;  %v5873_v25 = vld [vmem:[#allocation3 + $0x90] sm:$0xff]  ;;  %v3423_v42 = vsel %vm3409_vm0, %v3390_v17, %v5430_v14 }
 0x2eb   : > { %5762 = vrot.lane.b32.xlu1 %v8543_v44, %s5911_s16  ;;  %v5414_v44 = vunpack.i.l.bf16 %v8581_v16 }
 0x2ec   : > { %v5478_v29 = vpop.permute.xlu0 %5477 }
 0x2ed   : > { %v5498_v56 = vpop.permute.xlu1 %5497  ;;  %v5480_v55 = vunpack.i.h.bf16 %v5478_v29  ;;  %v5479_v39 = vunpack.i.l.bf16 %v5478_v29 }
 0x2ee   : > { %v5500_v0 = vunpack.i.h.bf16 %v5498_v56  ;;  %v5499_v1 = vunpack.i.l.bf16 %v5498_v56 }
 0x2ef   : > { %5772 = vrot.lane.b32.xlu1 %v8552_v3, %s5912_s24  ;;  %v3389_v3 = vsel %vm1849_vm5, %v5873_v25, %v5414_v44  ;;  %v5460_v25 = vunpack.i.h.bf16 %v8688_v46 }
 0x2f0   : > { %v3549_v28 = vsel %vm3442_vm1, %v3517_v47, %v5499_v1  ;;  %v3550_v16 = vsel %vm3442_vm1, %v3518_v34, %v5500_v0  ;;  %v5483_v9 = vpop.permute.xlu0 %5482  ;;  %v3422_v30 = vsel %vm3409_vm0, %v3389_v3, %v5429_v35  ;;  %v5495_v0 = vunpack.i.h.bf16 %v8703_v6 }
 0x2f1   : > { %v5503_v41 = vpop.permute.xlu1 %5502  ;;  %v3619_v20 = vpack.c.bf16 %v3550_v16, %v3549_v28  ;;  %v5494_v1 = vunpack.i.l.bf16 %v8703_v6  ;;  %v5485_v8 = vunpack.i.h.bf16 %v5483_v9  ;;  %v5484_v31 = vunpack.i.l.bf16 %v5483_v9  ;;  %v5875_v16 = vld [vmem:[#allocation3 + $0xa8] sm:$0xff] }
 0x2f2   : > { %v5505_v50 = vunpack.i.h.bf16 %v5503_v41  ;;  %v5504_v27 = vunpack.i.l.bf16 %v5503_v41  ;;  %v3392_v28 = vsel %vm1849_vm5, %v5874_v33, %v5495_v0  ;;  %v5459_v3 = vunpack.i.l.bf16 %v8688_v46 }
 0x2f3   : > { %5782 = vrot.lane.b32.xlu1 %v5781_v4, %s5910_s15  ;;  %3929 = vmatprep.mubr.bf16.mxu1 %v3619_v20  ;;  %v3391_v14 = vsel %vm1849_vm5, %v5875_v16, %v5494_v1  ;;  %v3490_v17 = vsel %vm1849_vm5, %v8144_v62, %v5485_v8  ;;  %v3489_v6 = vsel %vm1849_vm5, %v8141_v59, %v5484_v31 }
 0x2f4   : > { %v3488_v36 = vsel %vm1849_vm5, %v8152_v37, %v5505_v50  ;;  %v3487_v12 = vsel %vm1849_vm5, %v8149_v48, %v5504_v27  ;;  %3930 = vmatmul.mubr.bf16.gmra.mrb[20].mxu1 %v3618_v63  ;;  %v5508_v5 = vpop.permute.xlu0 %5507  ;;  %v3455_v37 = vsel %vm3442_vm1, %v3422_v30, %v5469_v2  ;;  %v3456_v48 = vsel %vm3442_vm1, %v3423_v42, %v5470_v40 }
 0x2f5   : > { %v5523_v38 = vpop.permute.xlu1 %5522  ;;  %v3519_v19 = vsel %vm3409_vm0, %v3487_v12, %v5454_v57  ;;  %v3520_v58 = vsel %vm3409_vm0, %v3488_v36, %v5455_v13  ;;  %v3621_v53 = vpack.c.bf16 %v3456_v48, %v3455_v37  ;;  %v5510_v4 = vunpack.i.h.bf16 %v5508_v5  ;;  %v5876_v12 = vld [vmem:[#allocation3 + $0xc8] sm:$0xff] }
 0x2f6   : > { %v3551_v24 = vsel %vm3442_vm1, %v3519_v19, %v5479_v39  ;;  %v3552_v11 = vsel %vm3442_vm1, %v3520_v58, %v5480_v55  ;;  %v5509_v34 = vunpack.i.l.bf16 %v5508_v5  ;;  %v5525_v35 = vunpack.i.h.bf16 %v5523_v38  ;;  %v5877_v58 = vld [vmem:[#allocation3 + $0xc0] sm:$0xff] }
 0x2f7   : > { %v3622_v29 = vpack.c.bf16 %v3552_v11, %v3551_v24  ;;  %v5524_v43 = vunpack.i.l.bf16 %v5523_v38  ;;  %v3425_v41 = vsel %vm3409_vm0, %v3392_v28, %v5510_v4  ;;  %v5475_v50 = vunpack.i.h.bf16 %v8701_v61 }
 0x2f8   : > { %v8753_v49 = vpop.permute.xlu0 %5512  ;;  %v3424_v9 = vsel %vm3409_vm0, %v3391_v14, %v5509_v34  ;;  %v5474_v63 = vunpack.i.l.bf16 %v8701_v61  ;;  %v3522_v62 = vsel %vm3409_vm0, %v3490_v17, %v5525_v35  ;;  %v3458_v57 = vsel %vm3442_vm1, %v3425_v41, %v5460_v25 }
 0x2f9   : > { %v8755_v15 = vpop.permute.xlu1 %5527  ;;  %3937 = vmatprep.mubr.bf16.mxu1 %v3622_v29  ;;  %v3521_v59 = vsel %vm3409_vm0, %v3489_v6, %v5524_v43  ;;  %v3457_v13 = vsel %vm3442_vm1, %v3424_v9, %v5459_v3  ;;  %v5490_v36 = vunpack.i.h.bf16 %v8690_v60  ;;  %v5489_v61 = vunpack.i.l.bf16 %v8690_v60 }
 0x2fa   : > { %v3394_v5 = vsel %vm1849_vm5, %v5876_v12, %v5475_v50  ;;  %v3393_v24 = vsel %vm1849_vm5, %v5877_v58, %v5474_v63  ;;  %v3624_v42 = vpack.c.bf16 %v3458_v57, %v3457_v13  ;;  %v5530_v29 = vunpack.i.h.bf16 %v8755_v15  ;;  %v5881_v58 = vld [vmem:[#allocation3 + $0xf8] sm:$0xff] }
 0x2fb   : > { %v5529_v37 = vunpack.i.l.bf16 %v8755_v15  ;;  %v5515_v48 = vunpack.i.h.bf16 %v8753_v49 }
 0x2fc   : > { %3938 = vmatmul.mubr.bf16.gmra.mrb[24].mxu1 %v3621_v53  ;;  %v8757_v56 = vpop.permute.xlu0 %5517  ;;  %v5514_v53 = vunpack.i.l.bf16 %v8753_v49 }
 0x2fd   : > { %v8759_v44 = vpop.permute.xlu1 %5547 }
 0x2fe   : > { %v5549_v57 = vunpack.i.l.bf16 %v8759_v44 }
 0x300   : > { %v8763_v47 = vpop.permute.xlu0 %5532 }
 0x301   : > { %v8765_v45 = vpop.permute.xlu1 %5552  ;;  %v5534_v63 = vunpack.i.l.bf16 %v8763_v47 }
 0x304   : > { %v5538_v20 = vpop.permute.xlu0 %5537 }
 0x305   : > { %v5558_v27 = vpop.permute.xlu1 %5557  ;;  %v5540_v60 = vunpack.i.h.bf16 %v5538_v20  ;;  %v5539_v0 = vunpack.i.l.bf16 %v5538_v20 }
 0x306   : > { %v5560_v40 = vunpack.i.h.bf16 %v5558_v27  ;;  %v5559_v2 = vunpack.i.l.bf16 %v5558_v27  ;;  %v5554_v27 = vunpack.i.l.bf16 %v8765_v45 }
 0x308   : > { %v3553_v55 = vsel %vm3442_vm1, %v3521_v59, %v5559_v2  ;;  %v3554_v39 = vsel %vm3442_vm1, %v3522_v62, %v5560_v40  ;;  %v8785_v46 = vpop.permute.xlu0 %5542  ;;  %v5555_v2 = vunpack.i.h.bf16 %v8765_v45  ;;  %v5535_v62 = vunpack.i.h.bf16 %v8763_v47  ;;  %v5880_v45 = vld [vmem:[#allocation3 + $0xe0] sm:$0xff] }
 0x309   : > { %v5563_v38 = vpop.permute.xlu1 %5562  ;;  %v3625_v19 = vpack.c.bf16 %v3554_v39, %v3553_v55  ;;  %v5878_v39 = vld [vmem:[#allocation3 + $0xd8] sm:$0xff] }
 0x30a   : > { %v5565_v11 = vunpack.i.h.bf16 %v5563_v38  ;;  %v5564_v30 = vunpack.i.l.bf16 %v5563_v38  ;;  %v5544_v38 = vunpack.i.l.bf16 %v8785_v46  ;;  %v3396_v47 = vsel %vm1849_vm5, %v5880_v45, %v5555_v2 }
 0x30b   : > { %3945 = vmatprep.mubr.bf16.mxu1 %v3625_v19 }
 0x30c   : > { %v3492_v1 = vsel %vm1849_vm5, %v8222_v7, %v5565_v11  ;;  %v3491_v8 = vsel %vm1849_vm5, %v8219_v18, %v5564_v30  ;;  %3946 = vmatmul.mubr.bf16.gmra.mrb[28].mxu1 %v3624_v42  ;;  %v5568_v31 = vpop.permute.xlu0 %5567  ;;  %v3426_v7 = vsel %vm3409_vm0, %v3393_v24, %v5489_v61  ;;  %v3427_v18 = vsel %vm3409_vm0, %v3394_v5, %v5490_v36  ;;  %v5879_v61 = vld [vmem:[#allocation3 + $0xf0] sm:$0xff] }
 0x30d   : > { %v8799_v4 = vpop.permute.xlu1 %5577  ;;  %v3523_v34 = vsel %vm3409_vm0, %v3491_v8, %v5514_v53  ;;  %v3524_v15 = vsel %vm3409_vm0, %v3492_v1, %v5515_v48  ;;  %v8803_v33 = vpop.f32.mrb[32].mxu0  ;;  %v3459_v43 = vsel %vm3442_vm1, %v3426_v7, %v5529_v37  ;;  %v3460_v17 = vsel %vm3442_vm1, %v3427_v18, %v5530_v29 }
 0x30e   : > { %v3555_v49 = vsel %vm3442_vm1, %v3523_v34, %v5539_v0  ;;  %v3556_v28 = vsel %vm3442_vm1, %v3524_v15, %v5540_v60  ;;  %v8807_v16 = vpop.f32.mrb[33].mxu0  ;;  %v3627_v20 = vpack.c.bf16 %v3460_v17, %v3459_v43  ;;  %v5569_v59 = vunpack.i.l.bf16 %v5568_v31 }
 0x30f   : > { %v3628_v14 = vpack.c.bf16 %v3556_v28, %v3555_v49  ;;  %v8811_v35 = vpop.f32.mrb[34].mxu0  ;;  %v5570_v13 = vunpack.i.h.bf16 %v5568_v31  ;;  %v3395_v36 = vsel %vm1849_vm5, %v5878_v39, %v5554_v27  ;;  %v3397_v12 = vsel %vm1849_vm5, %v5879_v61, %v5534_v63 }
 0x310   : > { %v8815_v6 = vpop.permute.xlu0 %5572  ;;  %v8817_v9 = vpop.f32.mrb[35].mxu0  ;;  %v5545_v5 = vunpack.i.h.bf16 %v8785_v46  ;;  %v3398_v24 = vsel %vm1849_vm5, %v5881_v58, %v5535_v62  ;;  %v3428_v11 = vsel %vm3409_vm0, %v3395_v36, %v5569_v59  ;;  %v5550_v42 = vunpack.i.h.bf16 %v8759_v44 }
 0x311   : > { %v5583_v41 = vpop.permute.xlu1 %5582  ;;  %3953 = vmatprep.mubr.bf16.mxu1 %v3628_v14  ;;  %v5519_v29 = vunpack.i.l.bf16 %v8757_v56  ;;  %v3429_v37 = vsel %vm3409_vm0, %v3396_v47, %v5570_v13  ;;  %v5520_v46 = vunpack.i.h.bf16 %v8757_v56  ;;  %v3430_v1 = vsel %vm3409_vm0, %v3397_v12, %v5549_v57 }
 0x312   : > { %v5585_v30 = vunpack.i.h.bf16 %v5583_v41  ;;  %v5584_v48 = vunpack.i.l.bf16 %v5583_v41  ;;  %v3494_v8 = vsel %vm1849_vm5, %v8214_v52, %v5545_v5  ;;  %v3493_v44 = vsel %vm1849_vm5, %v8211_v22, %v5544_v38 }
 0x313   : > { %v3461_v15 = vsel %vm3442_vm1, %v3428_v11, %v5519_v29  ;;  %v3431_v49 = vsel %vm3409_vm0, %v3398_v24, %v5550_v42  ;;  %v3462_v14 = vsel %vm3442_vm1, %v3429_v37, %v5520_v46  ;;  %v5575_v62 = vunpack.i.h.bf16 %v8815_v6  ;;  %v9338_v24 = vld [vmem:[#allocation15_spill] sm:$0xff] }
 0x314   : > { %3954 = vmatmul.mubr.bf16.gmra.mrb[32].mxu1 %v3627_v20  ;;  %v8819_v25 = vpop.permute.xlu0 %5592  ;;  %v3526_v56 = vsel %vm3409_vm0, %v3494_v8, %v5585_v30  ;;  %v3525_v52 = vsel %vm3409_vm0, %v3493_v44, %v5584_v48  ;;  %v5574_v59 = vunpack.i.l.bf16 %v8815_v6  ;;  %v3630_v39 = vpack.c.bf16 %v3462_v14, %v3461_v15 }
 0x315   : > { %v8821_v3 = vpop.permute.xlu1 %5587 }
 0x316   : > { %v5590_v43 = vunpack.i.h.bf16 %v8821_v3  ;;  %v5589_v22 = vunpack.i.l.bf16 %v8821_v3  ;;  %v5595_v3 = vunpack.i.h.bf16 %v8819_v25 }
 0x318   : > { %v8823_v50 = vpop.permute.xlu0 %5597  ;;  %v3463_v38 = vsel %vm3442_vm1, %v3430_v1, %v5589_v22  ;;  %v3464_v45 = vsel %vm3442_vm1, %v3431_v49, %v5590_v43 }
 0x319   : > { %v8827_v40 = vpop.permute.xlu1 %5602  ;;  %v5599_v17 = vunpack.i.l.bf16 %v8823_v50  ;;  %v5600_v41 = vunpack.i.h.bf16 %v8823_v50  ;;  %v5594_v50 = vunpack.i.l.bf16 %v8819_v25  ;;  %v3633_v15 = vpack.c.bf16 %v3464_v45, %v3463_v38 }
 0x31b   : > { %v3497_v5 = vsel %vm1849_vm5, %v8258_v26, %v5599_v17  ;;  %v3498_v6 = vsel %vm1849_vm5, %v8261_v54, %v5600_v41  ;;  %v5882_v41 = vld [vmem:[#allocation3 + $0x110] sm:$0xff] }
 0x31c   : > { %v8832_v55 = vpop.permute.xlu0 %5637 }
 0x31d   : > { %v8838_v19 = vpop.permute.xlu1 %5607  ;;  %v5640_v49 = vunpack.i.h.bf16 %v8832_v55 }
 0x31f   : > { %v8846_v53 = vpop.f32.mrb[36].mxu0 }
 0x320   : > { %v8849_v60 = vpop.f32.mrb[37].mxu0  ;;  %v5643_v0 = vpop.permute.xlu0 %5642 }
 0x321   : > { %v5613_v31 = vpop.permute.xlu1 %5612  ;;  %v8856_v34 = vpop.f32.mrb[38].mxu0  ;;  %v5644_v20 = vunpack.i.l.bf16 %v5643_v0  ;;  %v5645_v36 = vunpack.i.h.bf16 %v5643_v0 }
 0x322   : > { %v5615_v28 = vunpack.i.h.bf16 %v5613_v31  ;;  %v5614_v7 = vunpack.i.l.bf16 %v5613_v31  ;;  %v8861_v18 = vpop.f32.mrb[39].mxu0 }
 0x323   : > { %v3529_v47 = vsel %vm3409_vm0, %v3497_v5, %v5644_v20  ;;  %v3530_v48 = vsel %vm3409_vm0, %v3498_v6, %v5645_v36  ;;  %v5579_v5 = vunpack.i.l.bf16 %v8799_v4 }
 0x324   : > { %v3557_v27 = vsel %vm3442_vm1, %v3525_v52, %v5614_v7  ;;  %v3558_v63 = vsel %vm3442_vm1, %v3526_v56, %v5615_v28  ;;  %v8871_v2 = vpop.permute.xlu0 %5652  ;;  %v5639_v52 = vunpack.i.l.bf16 %v8832_v55 }
 0x325   : > { %v5618_v13 = vpop.permute.xlu1 %5617  ;;  %v3631_v57 = vpack.c.bf16 %v3558_v63, %v3557_v27  ;;  %v5654_v43 = vunpack.i.l.bf16 %v8871_v2  ;;  %v5883_v27 = vld [vmem:[#allocation3 + $0x108] sm:$0xff]  ;;  %v5655_v38 = vunpack.i.h.bf16 %v8871_v2 }
 0x326   : > { %v5620_v61 = vunpack.i.h.bf16 %v5618_v13  ;;  %v5619_v12 = vunpack.i.l.bf16 %v5618_v13  ;;  %v9340_v13 = vld [vmem:[#allocation9_spill] sm:$0xff] }
 0x327   : > { %3961 = vmatprep.mubr.bf16.mxu1 %v3631_v57 }
 0x328   : > { %v3496_v58 = vsel %vm1849_vm5, %v8309_v32, %v5620_v61  ;;  %v3495_v11 = vsel %vm1849_vm5, %v9338_v24, %v5619_v12  ;;  %3962 = vmatmul.mubr.bf16.gmra.mrb[36].mxu1 %v3630_v39  ;;  %v5658_v25 = vpop.permute.xlu0 %5657 }
 0x329   : > { %v5623_v30 = vpop.permute.xlu1 %5622  ;;  %v5660_v26 = vunpack.i.h.bf16 %v5658_v25  ;;  %v5659_v42 = vunpack.i.l.bf16 %v5658_v25  ;;  %v3527_v29 = vsel %vm3409_vm0, %v3495_v11, %v5574_v59  ;;  %v3528_v37 = vsel %vm3409_vm0, %v3496_v58, %v5575_v62  ;;  %v9339_v62 = vld [vmem:[#allocation17_spill] sm:$0xff] }
 0x32a   : > { %v5625_v54 = vunpack.i.h.bf16 %v5623_v30  ;;  %v3559_v46 = vsel %vm3442_vm1, %v3527_v29, %v5594_v50  ;;  %v3560_v0 = vsel %vm3442_vm1, %v3528_v37, %v5595_v3  ;;  %v5624_v32 = vunpack.i.l.bf16 %v5623_v30  ;;  %v9341_v37 = vld [vmem:[#allocation27_spill] sm:$0xff] }
 0x32b   : > { %v3634_v1 = vpack.c.bf16 %v3560_v0, %v3559_v46  ;;  %v3561_v8 = vsel %vm3442_vm1, %v3529_v47, %v5659_v42  ;;  %v3562_v44 = vsel %vm3442_vm1, %v3530_v48, %v5660_v26  ;;  %v5580_v50 = vunpack.i.h.bf16 %v8799_v4 }
 0x32c   : > { %v5663_v31 = vpop.permute.xlu0 %5662  ;;  %v3637_v14 = vpack.c.bf16 %v3562_v44, %v3561_v8  ;;  %v3400_v20 = vsel %vm1849_vm5, %v5882_v41, %v5625_v54  ;;  %v3399_v63 = vsel %vm1849_vm5, %v5883_v27, %v5624_v32  ;;  %v5605_v25 = vunpack.i.h.bf16 %v8827_v40  ;;  %v9342_v54 = vld [vmem:[#allocation26_spill] sm:$0xff]  ;;  %v9343_v41 = vld [vmem:[#allocation23_spill] sm:$0xff]  ;;  %v9344_v27 = vld [vmem:[#allocation16_spill] sm:$0xff] }
 0x32d   : > { %v5628_v56 = vpop.permute.xlu1 %5627  ;;  %3969 = vmatprep.mubr.bf16.mxu1 %v3634_v1  ;;  %v5665_v28 = vunpack.i.h.bf16 %v5663_v31  ;;  %v5664_v7 = vunpack.i.l.bf16 %v5663_v31  ;;  %v5604_v42 = vunpack.i.l.bf16 %v8827_v40  ;;  %v5610_v29 = vunpack.i.h.bf16 %v8838_v19 }
 0x32e   : > { %v5630_v22 = vunpack.i.h.bf16 %v5628_v56  ;;  %v5629_v17 = vunpack.i.l.bf16 %v5628_v56 }
 0x32f   : > { %v3500_v59 = vsel %vm1849_vm5, %v9339_v62, %v5665_v28  ;;  %v3499_v57 = vsel %vm1849_vm5, %v9340_v13, %v5664_v7  ;;  %v8906_v3 = vpop.f32.mrb[40].mxu0 }
 0x330   : > { %v3432_v39 = vsel %vm3409_vm0, %v3399_v63, %v5629_v17  ;;  %v3433_v55 = vsel %vm3409_vm0, %v3400_v20, %v5630_v22  ;;  %3970 = vmatmul.mubr.bf16.gmra.mrb[40].mxu1 %v3633_v15  ;;  %v5668_v36 = vpop.permute.xlu0 %5667  ;;  %v3531_v61 = vsel %vm3409_vm0, %v3499_v57, %v5639_v52  ;;  %v3532_v12 = vsel %vm3409_vm0, %v3500_v59, %v5640_v49  ;;  %v8913_v6 = vpop.f32.mrb[41].mxu0 }
 0x331   : > { %v5633_v45 = vpop.permute.xlu1 %5632  ;;  %3977 = vmatprep.mubr.bf16.mxu1 %v3637_v14  ;;  %v8915_v24 = vpop.f32.mrb[42].mxu0  ;;  %v3563_v11 = vsel %vm3442_vm1, %v3531_v61, %v5654_v43  ;;  %v3465_v26 = vsel %vm3442_vm1, %v3432_v39, %v5579_v5  ;;  %v3466_v4 = vsel %vm3442_vm1, %v3433_v55, %v5580_v50  ;;  %v3564_v2 = vsel %vm3442_vm1, %v3532_v12, %v5655_v38  ;;  %v5884_v14 = vld [vmem:[#allocation3 + $0x128] sm:$0xff]  ;;  %v5885_v43 = vld [vmem:[#allocation3 + $0x120] sm:$0xff] }
 0x332   : > { %v5635_v47 = vunpack.i.h.bf16 %v5633_v45  ;;  %v5634_v58 = vunpack.i.l.bf16 %v5633_v45  ;;  %v8919_v30 = vpop.f32.mrb[43].mxu0  ;;  %v5670_v1 = vunpack.i.h.bf16 %v5668_v36  ;;  %v5669_v8 = vunpack.i.l.bf16 %v5668_v36 }
 0x333   : > { %v3640_v31 = vpack.c.bf16 %v3564_v2, %v3563_v11  ;;  %v5609_v15 = vunpack.i.l.bf16 %v8838_v19  ;;  %v3636_v28 = vpack.c.bf16 %v3466_v4, %v3465_v26  ;;  %v3402_v52 = vsel %vm1849_vm5, %v5884_v14, %v5605_v25 }
 0x334   : > { %v3590_v48 = vsel %vm1849_vm5, %v9341_v37, %v5635_v47  ;;  %v3589_v46 = vsel %vm1849_vm5, %v9342_v54, %v5634_v58  ;;  %v5683_v0 = vpop.permute.xlu0 %5682  ;;  %v3401_v22 = vsel %vm1849_vm5, %v5885_v43, %v5604_v42  ;;  %v3502_v20 = vsel %vm1849_vm5, %v9343_v41, %v5670_v1 }
 0x335   : > { %v3632_v32 = vpack.c.bf16 %v3590_v48, %v3589_v46  ;;  %v5648_v44 = vpop.permute.xlu1 %5647  ;;  %v5685_v49 = vunpack.i.h.bf16 %v5683_v0  ;;  %v5684_v56 = vunpack.i.l.bf16 %v5683_v0  ;;  %v3501_v19 = vsel %vm1849_vm5, %v9344_v27, %v5669_v8  ;;  %v9346_v48 = vld [vmem:[#allocation20_spill] sm:$0xff] }
 0x336   : > { %v5650_v40 = vunpack.i.h.bf16 %v5648_v44  ;;  %v5649_v7 = vunpack.i.l.bf16 %v5648_v44  ;;  %v3434_v13 = vsel %vm3409_vm0, %v3401_v22, %v5609_v15  ;;  %v3435_v57 = vsel %vm3409_vm0, %v3402_v52, %v5610_v29  ;;  %v9345_v29 = vld [vmem:[#allocation21_spill] sm:$0xff] }
 0x337   : > { %4550 = vmatmul.mubr.msk.bf16.gmra.mrb[48].mxu0 %vm1919_vm15, %v3632_v32  ;;  %v3533_v39 = vsel %vm3409_vm0, %v3501_v19, %v5684_v56  ;;  %v3534_v55 = vsel %vm3409_vm0, %v3502_v20, %v5685_v49  ;;  %v5887_v49 = vld [vmem:[#allocation3 + $0x138] sm:$0xff] }
 0x338   : > { %3978 = vmatmul.mubr.bf16.gmra.mrb[44].mxu1 %v3636_v28  ;;  %v5688_v17 = vpop.permute.xlu0 %5687  ;;  %v3467_v36 = vsel %vm3442_vm1, %v3434_v13, %v5649_v7  ;;  %v3468_v61 = vsel %vm3442_vm1, %v3435_v57, %v5650_v40  ;;  %v9347_v57 = vld [vmem:[#allocation18_spill] sm:$0xff] }
 0x339   : > { %v5673_v63 = vpop.permute.xlu1 %5672  ;;  %3985 = vmatprep.mubr.bf16.mxu1 %v3640_v31  ;;  %v5690_v62 = vunpack.i.h.bf16 %v5688_v17  ;;  %v5689_v59 = vunpack.i.l.bf16 %v5688_v17  ;;  %v3639_v26 = vpack.c.bf16 %v3468_v61, %v3467_v36  ;;  %v5886_v31 = vld [vmem:[#allocation3 + $0x140] sm:$0xff] }
 0x33a   : > { %v5675_v11 = vunpack.i.h.bf16 %v5673_v63  ;;  %v5674_v25 = vunpack.i.l.bf16 %v5673_v63 }
 0x33b   : > { %v3565_v12 = vsel %vm3442_vm1, %v3533_v39, %v5689_v59  ;;  %v3566_v50 = vsel %vm3442_vm1, %v3534_v55, %v5690_v62  ;;  %v9348_v55 = vld [vmem:[#allocation5_spill] sm:$0xff] }
 0x33c   : > { %v5698_v5 = vpop.permute.xlu0 %5697  ;;  %v3643_v58 = vpack.c.bf16 %v3566_v50, %v3565_v12  ;;  %v3404_v15 = vsel %vm1849_vm5, %v5886_v31, %v5675_v11  ;;  %v3403_v56 = vsel %vm1849_vm5, %v5887_v49, %v5674_v25  ;;  %v9349_v12 = vld [vmem:[#allocation29_spill] sm:$0xff] }
 0x33d   : > { %v5678_v38 = vpop.permute.xlu1 %5677  ;;  %v5700_v45 = vunpack.i.h.bf16 %v5698_v5  ;;  %v5699_v47 = vunpack.i.l.bf16 %v5698_v5 }
 0x33e   : > { %v8946_v4 = vpop.f32.mrb[44].mxu0  ;;  %v5680_v2 = vunpack.i.h.bf16 %v5678_v38  ;;  %v5679_v42 = vunpack.i.l.bf16 %v5678_v38 }
 0x33f   : > { %v3592_v37 = vsel %vm1849_vm5, %v9345_v29, %v5700_v45  ;;  %v3591_v54 = vsel %vm1849_vm5, %v9346_v48, %v5699_v47  ;;  %v8952_v46 = vpop.f32.mrb[45].mxu0 }
 0x340   : > { %v3635_v0 = vpack.c.bf16 %v3592_v37, %v3591_v54  ;;  %3986 = vmatmul.mubr.bf16.gmra.mrb[48].mxu1 %v3639_v26  ;;  %v8954_v32 = vpop.f32.mrb[46].mxu0  ;;  %v5708_v1 = vpop.permute.xlu0 %5707  ;;  %v3436_v7 = vsel %vm3409_vm0, %v3403_v56, %v5679_v42  ;;  %v3437_v14 = vsel %vm3409_vm0, %v3404_v15, %v5680_v2  ;;  %v9351_v15 = vld [vmem:[#allocation7_spill] sm:$0xff] }
 0x341   : > { %v5693_v8 = vpop.permute.xlu1 %5692  ;;  %3993 = vmatprep.mubr.bf16.mxu1 %v3643_v58  ;;  %v8956_v44 = vpop.f32.mrb[47].mxu0  ;;  %v5710_v52 = vunpack.i.h.bf16 %v5708_v1  ;;  %v5709_v41 = vunpack.i.l.bf16 %v5708_v1 }
 0x342   : > { %v5695_v28 = vunpack.i.h.bf16 %v5693_v8  ;;  %v5694_v40 = vunpack.i.l.bf16 %v5693_v8  ;;  %4553 = vmatprep.mubr.msk.bf16.mxu0 %vm1919_vm15, %v3635_v0  ;;  %v9350_v8 = vld [vmem:[#allocation28_spill] sm:$0xff] }
 0x343   : > { %v3504_v13 = vsel %vm1849_vm5, %v8460_v10, %v5710_v52  ;;  %v3503_v50 = vsel %vm1849_vm5, %v9349_v12, %v5709_v41  ;;  %v5889_v52 = vld [vmem:[#allocation3 + $0x150] sm:$0xff]  ;;  %v9352_v12 = vld [vmem:[#allocation30_spill] sm:$0xff] }
 0x344   : > { %v5718_v43 = vpop.permute.xlu0 %5717  ;;  %v3469_v22 = vsel %vm3442_vm1, %v3436_v7, %v5694_v40  ;;  %v3470_v17 = vsel %vm3442_vm1, %v3437_v14, %v5695_v28  ;;  %v5888_v7 = vld [vmem:[#allocation3 + $0x158] sm:$0xff] }
 0x345   : > { %v5703_v20 = vpop.permute.xlu1 %5702  ;;  %v3642_v27 = vpack.c.bf16 %v3470_v17, %v3469_v22  ;;  %v5720_v62 = vunpack.i.h.bf16 %v5718_v43  ;;  %v5719_v59 = vunpack.i.l.bf16 %v5718_v43 }
 0x346   : > { %v5705_v19 = vunpack.i.h.bf16 %v5703_v20  ;;  %v5704_v63 = vunpack.i.l.bf16 %v5703_v20 }
 0x347   : > { %v3535_v58 = vsel %vm3409_vm0, %v3503_v50, %v5719_v59  ;;  %v3536_v11 = vsel %vm3409_vm0, %v3504_v13, %v5720_v62 }
 0x348   : > { %v3594_v39 = vsel %vm1849_vm5, %v9347_v57, %v5705_v19  ;;  %v3593_v36 = vsel %vm1849_vm5, %v9348_v55, %v5704_v63  ;;  %3994 = vmatmul.mubr.bf16.gmra.mrb[52].mxu1 %v3642_v27  ;;  %v5728_v61 = vpop.permute.xlu0 %5727 }
 0x349   : > { %v3638_v5 = vpack.c.bf16 %v3594_v39, %v3593_v36  ;;  %v5713_v38 = vpop.permute.xlu1 %5712  ;;  %v5730_v45 = vunpack.i.h.bf16 %v5728_v61  ;;  %v5729_v47 = vunpack.i.l.bf16 %v5728_v61 }
 0x34a   : > { %v5715_v48 = vunpack.i.h.bf16 %v5713_v38  ;;  %v5714_v54 = vunpack.i.l.bf16 %v5713_v38 }
 0x34b   : > { %4554 = vmatmul.mubr.msk.bf16.gmra.mrb[52].mxu0 %vm1919_vm15, %v3638_v5  ;;  %v3567_v10 = vsel %vm3442_vm1, %v3535_v58, %v5729_v47  ;;  %v3568_v25 = vsel %vm3442_vm1, %v3536_v11, %v5730_v45  ;;  %v9353_v5 = vld [vmem:[#allocation19_spill] sm:$0xff]  ;;  %v9355_v11 = vld [vmem:[#allocation22_spill] sm:$0xff] }
 0x34c   : > { %v5738_v26 = vpop.permute.xlu0 %5737  ;;  %v3646_v2 = vpack.c.bf16 %v3568_v25, %v3567_v10  ;;  %v3406_v14 = vsel %vm1849_vm5, %v5888_v7, %v5715_v48  ;;  %v3405_v43 = vsel %vm1849_vm5, %v5889_v52, %v5714_v54  ;;  %v9354_v45 = vld [vmem:[#allocation11_spill] sm:$0xff] }
 0x34d   : > { %v5723_v42 = vpop.permute.xlu1 %5722  ;;  %v5740_v29 = vunpack.i.h.bf16 %v5738_v26  ;;  %v5739_v37 = vunpack.i.l.bf16 %v5738_v26 }
 0x34e   : > { %4001 = vmatprep.mubr.bf16.mxu1 %v3646_v2  ;;  %v5725_v0 = vunpack.i.h.bf16 %v5723_v42  ;;  %v5724_v1 = vunpack.i.l.bf16 %v5723_v42 }
 0x34f   : > { %v3596_v31 = vsel %vm1849_vm5, %v9350_v8, %v5740_v29  ;;  %v3595_v49 = vsel %vm1849_vm5, %v9351_v15, %v5739_v37 }
 0x350   : > { %v3641_v56 = vpack.c.bf16 %v3596_v31, %v3595_v49  ;;  %v5748_v28 = vpop.permute.xlu0 %5747  ;;  %v3438_v41 = vsel %vm3409_vm0, %v3405_v43, %v5724_v1  ;;  %v3439_v20 = vsel %vm3409_vm0, %v3406_v14, %v5725_v0 }
 0x351   : > { %v5733_v40 = vpop.permute.xlu1 %5732  ;;  %v5750_v27 = vunpack.i.h.bf16 %v5748_v28  ;;  %v5749_v59 = vunpack.i.l.bf16 %v5748_v28 }
 0x352   : > { %v5735_v22 = vunpack.i.h.bf16 %v5733_v40  ;;  %v5734_v17 = vunpack.i.l.bf16 %v5733_v40  ;;  %4557 = vmatprep.mubr.msk.bf16.mxu0 %vm1919_vm15, %v3641_v56 }
 0x353   : > { %v3506_v50 = vsel %vm1849_vm5, %v9352_v12, %v5750_v27  ;;  %v3505_v10 = vsel %vm1849_vm5, %v9355_v11, %v5749_v59  ;;  %v2639_v27 = vrot.slane %v8610_v51, 2  ;;  %v9022_v11 = vld [vmem:[%s9122_s8] ss:$0 sm:$0xff] }
 0x354   : > { %v3471_v19 = vsel %vm3442_vm1, %v3438_v41, %v5734_v17  ;;  %v3472_v63 = vsel %vm3442_vm1, %v3439_v20, %v5735_v22  ;;  %v5758_v62 = vpop.permute.xlu0 %5757  ;;  %v5890_v22 = vld [vmem:[#allocation3 + $0x198] sm:$0xff]  ;;  %v5891_v41 = vld [vmem:[#allocation3 + $0x1a0] sm:$0xff] }
 0x355   : > { %v5743_v13 = vpop.permute.xlu1 %5742  ;;  %v3645_v57 = vpack.c.bf16 %v3472_v63, %v3471_v19  ;;  %v5760_v36 = vunpack.i.h.bf16 %v5758_v62  ;;  %v5759_v61 = vunpack.i.l.bf16 %v5758_v62  ;;  %v2636_v17 = vrot.slane %v5890_v22, 2  ;;  %v5892_v19 = vld [vmem:[#allocation3 + $0x170] sm:$0xff]  ;;  %v5893_v62 = vld [vmem:[#allocation3 + $0x168] sm:$0xff] }
 0x356   : > { %v5745_v39 = vunpack.i.h.bf16 %v5743_v13  ;;  %v5744_v55 = vunpack.i.l.bf16 %v5743_v13  ;;  %v2637_v20 = vrot.slane %v5891_v41, 2 }
 0x357   : > { %4002 = vmatmul.mubr.bf16.gmra.mrb[56].mxu1 %v3645_v57  ;;  %v3537_v29 = vsel %vm3409_vm0, %v3505_v10, %v5759_v61  ;;  %v3538_v37 = vsel %vm3409_vm0, %v3506_v50, %v5760_v36 }
 0x358   : > { %v3598_v38 = vsel %vm1849_vm5, %v9353_v5, %v5745_v39  ;;  %v3597_v47 = vsel %vm1849_vm5, %v9354_v45, %v5744_v55  ;;  %v5768_v58 = vpop.permute.xlu0 %5767  ;;  %v2638_v51 = vsel %vm744_vm4, %v2636_v17, %v2637_v20  ;;  %v2640_v36 = vsel %vm744_vm4, %v2637_v20, %v2639_v27 }
 0x359   : > { %v3644_v25 = vpack.c.bf16 %v3598_v38, %v3597_v47  ;;  %v5753_v26 = vpop.permute.xlu1 %5752  ;;  %v5770_v2 = vunpack.i.h.bf16 %v5768_v58  ;;  %v5769_v42 = vunpack.i.l.bf16 %v5768_v58 }
 0x35a   : > { %v5755_v49 = vunpack.i.h.bf16 %v5753_v26  ;;  %v5754_v56 = vunpack.i.l.bf16 %v5753_v26 }
 0x35b   : > { %4558 = vmatmul.mubr.msk.bf16.gmra.mrb[56].mxu0 %vm1919_vm15, %v3644_v25  ;;  %v3569_v48 = vsel %vm3442_vm1, %v3537_v29, %v5769_v42  ;;  %v3570_v54 = vsel %vm3442_vm1, %v3538_v37, %v5770_v2 }
 0x35c   : > { %v5778_v0 = vpop.permute.xlu0 %5777  ;;  %v3649_v1 = vpack.c.bf16 %v3570_v54, %v3569_v48  ;;  %v3408_v63 = vsel %vm1849_vm5, %v5892_v19, %v5755_v49  ;;  %v3407_v59 = vsel %vm1849_vm5, %v5893_v62, %v5754_v56 }
 0x35d   : > { %v5763_v8 = vpop.permute.xlu1 %5762  ;;  %v5780_v31 = vunpack.i.h.bf16 %v5778_v0  ;;  %v5779_v15 = vunpack.i.l.bf16 %v5778_v0 }
 0x35e   : > { %4009 = vmatprep.mubr.bf16.mxu1 %v3649_v1  ;;  %v5765_v28 = vunpack.i.h.bf16 %v5763_v8  ;;  %v5764_v40 = vunpack.i.l.bf16 %v5763_v8 }
 0x35f   : > { %v3600_v7 = vsel %vm1849_vm5, %v8622_v21, %v5780_v31  ;;  %v3599_v14 = vsel %vm1849_vm5, %v8602_v23, %v5779_v15 }
 0x360   : > { %v3647_v52 = vpack.c.bf16 %v3600_v7, %v3599_v14  ;;  %v3440_v21 = vsel %vm3409_vm0, %v3407_v59, %v5764_v40  ;;  %v3441_v23 = vsel %vm3409_vm0, %v3408_v63, %v5765_v28 }
 0x361   : > { %v5773_v43 = vpop.permute.xlu1 %5772 }
 0x362   : > { %v5775_v13 = vunpack.i.h.bf16 %v5773_v43  ;;  %v5774_v57 = vunpack.i.l.bf16 %v5773_v43  ;;  %4561 = vmatprep.mubr.msk.bf16.mxu0 %vm1919_vm15, %v3647_v52 }
 0x364   : > { %v3473_v39 = vsel %vm3442_vm1, %v3440_v21, %v5774_v57  ;;  %v3474_v55 = vsel %vm3442_vm1, %v3441_v23, %v5775_v13 }
 0x365   : > { %v5783_v61 = vpop.permute.xlu1 %5782  ;;  %v3648_v12 = vpack.c.bf16 %v3474_v55, %v3473_v39 }
 0x366   : > { %v5785_v50 = vunpack.i.h.bf16 %v5783_v61  ;;  %v5784_v5 = vunpack.i.l.bf16 %v5783_v61 }
 0x367   : > { %4010 = vmatmul.mubr.bf16.gmra.mrb[60].mxu1 %v3648_v12 }
 0x368   : > { %v3602_v38 = vsel %vm1849_vm5, %v2640_v36, %v5785_v50  ;;  %v3601_v45 = vsel %vm1849_vm5, %v2638_v51, %v5784_v5 }
 0x369   : > { %v3650_v47 = vpack.c.bf16 %v3602_v38, %v3601_v45 }
 0x36b   : > { %4562 = vmatmul.mubr.msk.bf16.gmra.mrb[60].mxu0 %vm1919_vm15, %v3650_v47 }
 0x381   : > { %v4374_v58 = vpop.f32.mrb[0].mxu1 }
 0x382   : > { %v4375_v10 = vpop.f32.mrb[1].mxu1 }
 0x383   : > { %v4376_v25 = vadd.f32 %v4375_v10, %v4374_v58  ;;  %v4377_v26 = vpop.f32.mrb[2].mxu1 }
 0x384   : > { %v4378_v2 = vpop.f32.mrb[3].mxu1 }
 0x385   : > { %v3892_v42 = vadd.f32 %v4376_v25, %v9022_v11  ;;  %v4379_v29 = vadd.f32 %v4378_v2, %v4377_v26 }
 0x387   : > { %v4053_v37 = vadd.f32 %v8807_v16, %v3892_v42  ;;  %v3895_v48 = vadd.f32 %v4379_v29, %v9022_v11 }
 0x389   : > { %4179 = vst [vmem:[%s9030_s18] sm:$0xff] %v4053_v37  ;;  %v4056_v54 = vadd.f32 %v8817_v9, %v3895_v48 }
 0x38b   : > { %4180 = vst [vmem:[%s9030_s18 + $0x8] sm:$0xff] %v4056_v54 }
 0x397   : > { %v4380_v0 = vpop.f32.mrb[4].mxu1 }
 0x398   : > { %v4381_v1 = vpop.f32.mrb[5].mxu1 }
 0x399   : > { %v4382_v8 = vadd.f32 %v4381_v1, %v4380_v0  ;;  %v4383_v31 = vpop.f32.mrb[6].mxu1 }
 0x39a   : > { %v4384_v15 = vpop.f32.mrb[7].mxu1 }
 0x39b   : > { %v3900_v49 = vadd.f32 %v4382_v8, %v9022_v11  ;;  %v4385_v56 = vadd.f32 %v4384_v15, %v4383_v31 }
 0x39d   : > { %v4061_v28 = vadd.f32 %v8803_v33, %v3900_v49  ;;  %v3903_v16 = vadd.f32 %v4385_v56, %v9022_v11 }
 0x39f   : > { %4181 = vst [vmem:[%s9030_s18 + $0x10] sm:$0xff] %v4061_v28  ;;  %v4064_v40 = vadd.f32 %v8811_v35, %v3903_v16  ;;  %v4386_v7 = vpop.f32.mrb[8].mxu1 }
 0x3a0   : > { %v4387_v9 = vpop.f32.mrb[9].mxu1 }
 0x3a1   : > { %4182 = vst [vmem:[%s9030_s18 + $0x18] sm:$0xff] %v4064_v40  ;;  %v4388_v14 = vadd.f32 %v4387_v9, %v4386_v7  ;;  %v4389_v52 = vpop.f32.mrb[10].mxu1 }
 0x3a2   : > { %v4390_v43 = vpop.f32.mrb[11].mxu1 }
 0x3a3   : > { %v3908_v22 = vadd.f32 %v4388_v14, %v9022_v11  ;;  %v4391_v17 = vadd.f32 %v4390_v43, %v4389_v52 }
 0x3a5   : > { %v4069_v41 = vadd.f32 %v8849_v60, %v3908_v22  ;;  %v3911_v33 = vadd.f32 %v4391_v17, %v9022_v11 }
 0x3a7   : > { %4183 = vst [vmem:[%s9030_s18 + $0x20] sm:$0xff] %v4069_v41  ;;  %v4072_v20 = vadd.f32 %v8861_v18, %v3911_v33 }
 0x3a9   : > { %4184 = vst [vmem:[%s9030_s18 + $0x28] sm:$0xff] %v4072_v20 }
 0x3af   : > { %v4392_v35 = vpop.f32.mrb[12].mxu1 }
 0x3b0   : > { %v4393_v27 = vpop.f32.mrb[13].mxu1 }
 0x3b1   : > { %v4394_v19 = vadd.f32 %v4393_v27, %v4392_v35  ;;  %v4395_v63 = vpop.f32.mrb[14].mxu1 }
 0x3b2   : > { %v4396_v62 = vpop.f32.mrb[15].mxu1 }
 0x3b3   : > { %v3916_v59 = vadd.f32 %v4394_v19, %v9022_v11  ;;  %v4397_v13 = vadd.f32 %v4396_v62, %v4395_v63 }
 0x3b5   : > { %v4077_v57 = vadd.f32 %v8846_v53, %v3916_v59  ;;  %v3919_v60 = vadd.f32 %v4397_v13, %v9022_v11 }
 0x3b7   : > { %4185 = vst [vmem:[%s9030_s18 + $0x30] sm:$0xff] %v4077_v57  ;;  %v4080_v21 = vadd.f32 %v8856_v34, %v3919_v60  ;;  %v4398_v23 = vpop.f32.mrb[16].mxu1 }
 0x3b8   : > { %v4399_v18 = vpop.f32.mrb[17].mxu1 }
 0x3b9   : > { %4186 = vst [vmem:[%s9030_s18 + $0x38] sm:$0xff] %v4080_v21  ;;  %v4400_v39 = vadd.f32 %v4399_v18, %v4398_v23  ;;  %v4401_v55 = vpop.f32.mrb[18].mxu1 }
 0x3ba   : > { %v4402_v51 = vpop.f32.mrb[19].mxu1 }
 0x3bb   : > { %v3924_v36 = vadd.f32 %v4400_v39, %v9022_v11  ;;  %v4403_v61 = vadd.f32 %v4402_v51, %v4401_v55 }
 0x3bd   : > { %v4085_v12 = vadd.f32 %v8913_v6, %v3924_v36  ;;  %v3927_v53 = vadd.f32 %v4403_v61, %v9022_v11 }
 0x3bf   : > { %4187 = vst [vmem:[%s9030_s18 + $0x40] sm:$0xff] %v4085_v12  ;;  %v4088_v50 = vadd.f32 %v8919_v30, %v3927_v53 }
 0x3c1   : > { %4188 = vst [vmem:[%s9030_s18 + $0x48] sm:$0xff] %v4088_v50 }
 0x3c7   : > { %v4404_v34 = vpop.f32.mrb[20].mxu1 }
 0x3c8   : > { %v4405_v5 = vpop.f32.mrb[21].mxu1 }
 0x3c9   : > { %v4406_v38 = vadd.f32 %v4405_v5, %v4404_v34  ;;  %v4407_v45 = vpop.f32.mrb[22].mxu1 }
 0x3ca   : > { %v4408_v47 = vpop.f32.mrb[23].mxu1 }
 0x3cb   : > { %v3932_v58 = vadd.f32 %v4406_v38, %v9022_v11  ;;  %v4409_v10 = vadd.f32 %v4408_v47, %v4407_v45 }
 0x3cd   : > { %v4093_v25 = vadd.f32 %v8906_v3, %v3932_v58  ;;  %v3935_v6 = vadd.f32 %v4409_v10, %v9022_v11 }
 0x3cf   : > { %4189 = vst [vmem:[%s9030_s18 + $0x50] sm:$0xff] %v4093_v25  ;;  %v4096_v26 = vadd.f32 %v8915_v24, %v3935_v6  ;;  %v4410_v2 = vpop.f32.mrb[24].mxu1 }
 0x3d0   : > { %v4411_v30 = vpop.f32.mrb[25].mxu1 }
 0x3d1   : > { %4190 = vst [vmem:[%s9030_s18 + $0x58] sm:$0xff] %v4096_v26  ;;  %v4412_v42 = vadd.f32 %v4411_v30, %v4410_v2  ;;  %v4413_v29 = vpop.f32.mrb[26].mxu1 }
 0x3d2   : > { %v4414_v37 = vpop.f32.mrb[27].mxu1 }
 0x3d3   : > { %v3940_v48 = vadd.f32 %v4412_v42, %v9022_v11  ;;  %v4415_v54 = vadd.f32 %v4414_v37, %v4413_v29 }
 0x3d5   : > { %v4101_v0 = vadd.f32 %v8952_v46, %v3940_v48  ;;  %v3943_v3 = vadd.f32 %v4415_v54, %v9022_v11 }
 0x3d7   : > { %4191 = vst [vmem:[%s9030_s18 + $0x60] sm:$0xff] %v4101_v0  ;;  %v4104_v1 = vadd.f32 %v8956_v44, %v3943_v3 }
 0x3d9   : > { %4192 = vst [vmem:[%s9030_s18 + $0x68] sm:$0xff] %v4104_v1 }
 0x3df   : > { %v4416_v24 = vpop.f32.mrb[28].mxu1 }
 0x3e0   : > { %v4417_v8 = vpop.f32.mrb[29].mxu1 }
 0x3e1   : > { %v4418_v31 = vadd.f32 %v4417_v8, %v4416_v24  ;;  %v4419_v15 = vpop.f32.mrb[30].mxu1 }
 0x3e2   : > { %v4420_v49 = vpop.f32.mrb[31].mxu1 }
 0x3e3   : > { %v3948_v56 = vadd.f32 %v4418_v31, %v9022_v11  ;;  %v4421_v28 = vadd.f32 %v4420_v49, %v4419_v15 }
 0x3e5   : > { %v4109_v16 = vadd.f32 %v8946_v4, %v3948_v56  ;;  %v3951_v40 = vadd.f32 %v4421_v28, %v9022_v11 }
 0x3e7   : > { %4193 = vst [vmem:[%s9030_s18 + $0x70] sm:$0xff] %v4109_v16  ;;  %v4112_v46 = vadd.f32 %v8954_v32, %v3951_v40  ;;  %v4422_v7 = vpop.f32.mrb[32].mxu1 }
 0x3e8   : > { %v4423_v9 = vpop.f32.mrb[33].mxu1 }
 0x3e9   : > { %4194 = vst [vmem:[%s9030_s18 + $0x78] sm:$0xff] %v4112_v46  ;;  %v4424_v44 = vadd.f32 %v4423_v9, %v4422_v7  ;;  %v4425_v14 = vpop.f32.mrb[34].mxu1 }
 0x3ea   : > { %v4426_v52 = vpop.f32.mrb[35].mxu1 }
 0x3eb   : > { %v4427_v43 = vadd.f32 %v4426_v52, %v4425_v14  ;;  %v3956_v57 = vadd.f32 %v4424_v44, %v9022_v11 }
 0x3ed   : > { %v3959_v36 = vadd.f32 %v4427_v43, %v9022_v11 }
 0x3fb   : > { %v4428_v22 = vpop.f32.mrb[36].mxu1 }
 0x3fc   : > { %v4429_v17 = vpop.f32.mrb[37].mxu1 }
 0x3fd   : > { %v4430_v41 = vadd.f32 %v4429_v17, %v4428_v22  ;;  %v4431_v33 = vpop.f32.mrb[38].mxu1 }
 0x3fe   : > { %v4432_v20 = vpop.f32.mrb[39].mxu1 }
 0x3ff   : > { %v4433_v35 = vadd.f32 %v4432_v20, %v4431_v33  ;;  %v3964_v59 = vadd.f32 %v4430_v41, %v9022_v11 }
 0x401   : > { %v3967_v18 = vadd.f32 %v4433_v35, %v9022_v11 }
 0x403   : > { %v4434_v27 = vpop.f32.mrb[40].mxu1 }
 0x404   : > { %v4435_v4 = vpop.f32.mrb[41].mxu1 }
 0x405   : > { %v4436_v19 = vadd.f32 %v4435_v4, %v4434_v27  ;;  %v4437_v63 = vpop.f32.mrb[42].mxu1 }
 0x406   : > { %v4438_v62 = vpop.f32.mrb[43].mxu1 }
 0x407   : > { %v4439_v32 = vadd.f32 %v4438_v62, %v4437_v63  ;;  %v3972_v54 = vadd.f32 %v4436_v19, %v9022_v11 }
 0x409   : > { %v3975_v15 = vadd.f32 %v4439_v32, %v9022_v11 }
 0x40a   : > { %v4551_v13 = vpop.f32.mrb[48].mxu0 }
 0x40b   : > { %v4125_v60 = vadd.f32 %v4551_v13, %v3964_v59  ;;  %v4440_v21 = vpop.f32.mrb[44].mxu1  ;;  %v4116_v23 = vpop.f32.mrb[49].mxu0 }
 0x40c   : > { %v4117_v39 = vadd.f32 %v4116_v23, %v3956_v57  ;;  %v4441_v55 = vpop.f32.mrb[45].mxu1  ;;  %v4552_v51 = vpop.f32.mrb[50].mxu0 }
 0x40d   : > { %4197 = vst [vmem:[%s9030_s18 + $0x90] sm:$0xff] %v4125_v60  ;;  %v4442_v61 = vadd.f32 %v4441_v55, %v4440_v21  ;;  %v4128_v12 = vadd.f32 %v4552_v51, %v3967_v18  ;;  %v4443_v53 = vpop.f32.mrb[46].mxu1  ;;  %v4119_v50 = vpop.f32.mrb[51].mxu0 }
 0x40e   : > { %4195 = vst [vmem:[%s9030_s18 + $0x80] sm:$0xff] %v4117_v39  ;;  %v4120_v34 = vadd.f32 %v4119_v50, %v3959_v36  ;;  %v4444_v5 = vpop.f32.mrb[47].mxu1 }
 0x40f   : > { %4198 = vst [vmem:[%s9030_s18 + $0x98] sm:$0xff] %v4128_v12  ;;  %v4445_v38 = vadd.f32 %v4444_v5, %v4443_v53  ;;  %v3980_v29 = vadd.f32 %v4442_v61, %v9022_v11 }
 0x410   : > { %4196 = vst [vmem:[%s9030_s18 + $0x88] sm:$0xff] %v4120_v34 }
 0x411   : > { %v3983_v24 = vadd.f32 %v4445_v38, %v9022_v11 }
 0x413   : > { %v4446_v45 = vpop.f32.mrb[48].mxu1 }
 0x414   : > { %v4447_v47 = vpop.f32.mrb[49].mxu1 }
 0x415   : > { %v4448_v58 = vadd.f32 %v4447_v47, %v4446_v45  ;;  %v4449_v10 = vpop.f32.mrb[50].mxu1 }
 0x416   : > { %v4450_v25 = vpop.f32.mrb[51].mxu1 }
 0x417   : > { %v4451_v6 = vadd.f32 %v4450_v25, %v4449_v10  ;;  %v3988_v43 = vadd.f32 %v4448_v58, %v9022_v11 }
 0x419   : > { %v3991_v35 = vadd.f32 %v4451_v6, %v9022_v11 }
 0x41b   : > { %v4452_v26 = vpop.f32.mrb[52].mxu1 }
 0x41c   : > { %v4453_v2 = vpop.f32.mrb[53].mxu1 }
 0x41d   : > { %v4454_v30 = vadd.f32 %v4453_v2, %v4452_v26  ;;  %v4455_v42 = vpop.f32.mrb[54].mxu1 }
 0x41e   : > { %v4456_v37 = vpop.f32.mrb[55].mxu1  ;;  %v4555_v48 = vpop.f32.mrb[52].mxu0 }
 0x41f   : > { %v4457_v0 = vadd.f32 %v4456_v37, %v4455_v42  ;;  %v4141_v3 = vadd.f32 %v4555_v48, %v3980_v29  ;;  %v4132_v1 = vpop.f32.mrb[53].mxu0  ;;  %v3996_v44 = vadd.f32 %v4454_v30, %v9022_v11 }
 0x420   : > { %v4133_v8 = vadd.f32 %v4132_v1, %v3972_v54  ;;  %v4556_v31 = vpop.f32.mrb[54].mxu0 }
 0x421   : > { %4201 = vst [vmem:[%s9030_s18 + $0xb0] sm:$0xff] %v4141_v3  ;;  %v4144_v49 = vadd.f32 %v4556_v31, %v3983_v24  ;;  %v4135_v56 = vpop.f32.mrb[55].mxu0  ;;  %v3999_v41 = vadd.f32 %v4457_v0, %v9022_v11 }
 0x422   : > { %4199 = vst [vmem:[%s9030_s18 + $0xa0] sm:$0xff] %v4133_v8  ;;  %v4136_v28 = vadd.f32 %v4135_v56, %v3975_v15 }
 0x423   : > { %4202 = vst [vmem:[%s9030_s18 + $0xb8] sm:$0xff] %v4144_v49 }
 0x424   : > { %4200 = vst [vmem:[%s9030_s18 + $0xa8] sm:$0xff] %v4136_v28 }
 0x42a   : > { %v4458_v16 = vpop.f32.mrb[56].mxu1 }
 0x42b   : > { %v4459_v40 = vpop.f32.mrb[57].mxu1 }
 0x42c   : > { %v4460_v46 = vadd.f32 %v4459_v40, %v4458_v16  ;;  %v4461_v7 = vpop.f32.mrb[58].mxu1 }
 0x42d   : > { %v4462_v9 = vpop.f32.mrb[59].mxu1 }
 0x42e   : > { %v4463_v14 = vadd.f32 %v4462_v9, %v4461_v7  ;;  %v4559_v52 = vpop.f32.mrb[56].mxu0  ;;  %v4004_v23 = vadd.f32 %v4460_v46, %v9022_v11 }
 0x42f   : > { %v4157_v22 = vadd.f32 %v4559_v52, %v3996_v44  ;;  %v4148_v17 = vpop.f32.mrb[57].mxu0 }
 0x430   : > { %v4149_v33 = vadd.f32 %v4148_v17, %v3988_v43  ;;  %v4560_v20 = vpop.f32.mrb[58].mxu0  ;;  %v4007_v61 = vadd.f32 %v4463_v14, %v9022_v11 }
 0x431   : > { %4205 = vst [vmem:[%s9030_s18 + $0xd0] sm:$0xff] %v4157_v22  ;;  %v4160_v27 = vadd.f32 %v4560_v20, %v3999_v41  ;;  %v4151_v4 = vpop.f32.mrb[59].mxu0 }
 0x432   : > { %4203 = vst [vmem:[%s9030_s18 + $0xc0] sm:$0xff] %v4149_v33  ;;  %v4152_v19 = vadd.f32 %v4151_v4, %v3991_v35 }
 0x433   : > { %4206 = vst [vmem:[%s9030_s18 + $0xd8] sm:$0xff] %v4160_v27 }
 0x434   : > { %4204 = vst [vmem:[%s9030_s18 + $0xc8] sm:$0xff] %v4152_v19 }
 0x43a   : > { %v4464_v63 = vpop.f32.mrb[60].mxu1 }
 0x43b   : > { %v4465_v62 = vpop.f32.mrb[61].mxu1 }
 0x43c   : > { %v4466_v32 = vadd.f32 %v4465_v62, %v4464_v63  ;;  %v4467_v59 = vpop.f32.mrb[62].mxu1 }
 0x43d   : > { %v4468_v13 = vpop.f32.mrb[63].mxu1 }
 0x43e   : > { %v4469_v57 = vadd.f32 %v4468_v13, %v4467_v59  ;;  %v4012_v60 = vadd.f32 %v4466_v32, %v9022_v11  ;;  %v4563_v21 = vpop.f32.mrb[60].mxu0 }
 0x43f   : > { %v4164_v18 = vpop.f32.mrb[61].mxu0 }
 0x440   : > { %v4173_v39 = vadd.f32 %v4563_v21, %v4012_v60  ;;  %v4165_v55 = vadd.f32 %v4164_v18, %v4004_v23  ;;  %v4015_v51 = vadd.f32 %v4469_v57, %v9022_v11  ;;  %v4564_v36 = vpop.f32.mrb[62].mxu0 }
 0x441   : > { %v4167_v12 = vpop.f32.mrb[63].mxu0 }
 0x442   : > { %4209 = vst [vmem:[%s9030_s18 + $0xf0] sm:$0xff] %v4173_v39  ;;  %4207 = vst [vmem:[%s9030_s18 + $0xe0] sm:$0xff] %v4165_v55  ;;  %v4176_v53 = vadd.f32 %v4564_v36, %v4015_v51  ;;  %v4168_v50 = vadd.f32 %v4167_v12, %v4007_v61 }
 0x444   : > { %4210 = vst [vmem:[%s9030_s18 + $0xf8] sm:$0xff] %v4176_v53  ;;  %4208 = vst [vmem:[%s9030_s18 + $0xe8] sm:$0xff] %v4168_v50 }
 0x445 PF: > { %s19_s30 = sadd.s32 1, %s5900_s30  }
 0x446   : > { %p16_p4 = scmp.ge.s32.totalorder %s19_s30, 4  }
 0x448   :  { %18 = sbr.rel (!%p16_p4) target bundleno = 1 (0x1), region = 90 }

</bundles_post_ra>
